<compile_context>
chip_gen: v7x
topology: tpu7x:2x2x1
jax: 0.10.0
libtpu: 0.0.40
codegen_flags: <defaults>
</compile_context>

<pallas_src>
import jax
import jax.numpy as jnp
import numpy as np
from jax.experimental import pallas as pl
from jax.experimental.pallas import tpu as pltpu

STATE_SIZE = 12          # forced by action_head_1 = nn.Linear(12, 11)
HIDDEN = 11
N_LANES = 128            # lane-dense working width / output width
SLAB_ROWS = 32           # packed parameter slab rows

# parameter slab layout (f32, [SLAB_ROWS, N_LANES]):
ROW_A_W1 = 0                    # rows [ 0,12): actor  Linear(12,11) weight, x2 folded
ROW_C_W1 = STATE_SIZE           # rows [12,24): critic Linear(12,11) weight, 2/N folded
ROW_A_B1 = 2 * STATE_SIZE       # row 24: actor  Linear(12,11) bias
ROW_A_W5 = ROW_A_B1 + 1         # row 25: actor  Linear(11,1) weight (as a row)
ROW_C_B1 = ROW_A_B1 + 2         # row 26: critic Linear(12,11) bias (+1.0 in lane 127)
ROW_C_W5 = ROW_A_B1 + 3         # row 27: critic Linear(11,1) weight (+bias in lane 127)


def actor_critic_kernel(x_ref, slab_ref, out_ref):
    bt, n, f = x_ref.shape                       # (B_tile, N, 12)
    x_bf = x_ref[...]                            # bf16 node features
    x_f32 = x_bf.astype(jnp.float32)

    a_w1 = slab_ref[ROW_A_W1:ROW_A_W1 + f, :].astype(jnp.bfloat16)   # (12, 128)
    c_w1 = slab_ref[ROW_C_W1:ROW_C_W1 + f, :]                        # (12, 128) f32
    a_b1 = slab_ref[ROW_A_B1:ROW_A_B1 + 1, :]                        # (1, 128)
    a_w5 = slab_ref[ROW_A_W5:ROW_A_W5 + 1, :]
    c_b1 = slab_ref[ROW_C_B1:ROW_C_B1 + 1, :]
    c_w5 = slab_ref[ROW_C_W5:ROW_C_W5 + 1, :]

    # ---- actor: per-node scores; bt*n rows feed the MXU (bf16 in, f32 acc) ----
    xa = x_bf.reshape(bt * n, f)
    h_a = jnp.dot(xa, a_w1, preferred_element_type=jnp.float32)       # (bt*n, 128)
    h_a = jnp.maximum(h_a + a_b1, 0.0)
    scores = jnp.sum(h_a.reshape(bt, n, N_LANES) * a_w5.reshape(1, 1, N_LANES),
                     axis=-1)                                         # (bt, n)
    # actor output bias omitted: a constant shift of all scores, softmax-invariant.

    # ---- critic: pooled value; M = bt is tiny -> exact f32 VPU MACs (matches ref) ----
    pooled = jnp.sum(x_f32, axis=1)              # (bt, 12); the 2/N of "2*mean" is in c_w1
    h_c = jnp.broadcast_to(c_b1, (bt, N_LANES))
    for k in range(f):                           # 12 static broadcast-MAC steps
        h_c = h_c + pooled[:, k:k + 1] * c_w1[k:k + 1, :]
    h_c = jnp.maximum(h_c, 0.0)                  # lane 127 stays exactly 1.0 (bias carrier)
    value = jnp.sum(h_c * c_w5, axis=-1, keepdims=True)   # (bt, 1), incl. critic output bias

    # ---- ActorCritic head: mask action 0, softmax over nodes ----
    node = jax.lax.broadcasted_iota(jnp.int32, (bt, n), 1)
    masked = jnp.where(node == 0, -1e30, scores)
    m = jnp.max(masked, axis=-1, keepdims=True)
    e = jnp.where(node == 0, 0.0, jnp.exp(scores - m))     # masked action -> exactly 0
    probs = e / jnp.sum(e, axis=-1, keepdims=True)

    # ---- lane-dense combined output: cols [0, n) = probs, col n = value, rest 0 ----
    # One full-width unmasked store carries the zeros AND the value lane; a single
    # slice store then fills the probs lanes (was 3 stores in the previous version).
    lane = jax.lax.broadcasted_iota(jnp.int32, (bt, N_LANES), 1)
    out_ref[...] = jnp.where(lane == n, value, 0.0)
    out_ref[:, 0:n] = probs


def actor_critic_forward(x_bf16, slab, *, block_graphs=32):
    """x_bf16: [B, N, 12] bf16 node features of B independent graphs with N nodes.
    Returns (action_probs [B, N] f32, state_value [B] f32)."""
    b, n, f = x_bf16.shape
    assert f == STATE_SIZE, "action_head_1 = Linear(12, 11) forces 12 input features"
    assert n + 1 <= N_LANES

    bt = min(block_graphs, b)
    pb = ((b + bt - 1) // bt) * bt
    if pb != b:                                  # pad batch to a multiple of the tile
        x_bf16 = jnp.pad(x_bf16, ((0, pb - b), (0, 0), (0, 0)))

    flops = (2 * pb * n * f * N_LANES            # actor layer-1 (MXU)
             + 2 * pb * n * N_LANES              # actor layer-2 reduce
             + 2 * pb * f * N_LANES              # critic layer-1 (VPU MACs)
             + 2 * pb * N_LANES                  # critic layer-2 reduce
             + 6 * pb * n)                       # mask + softmax
    bytes_accessed = x_bf16.size * 2 + slab.size * 4 + pb * N_LANES * 4

    out = pl.pallas_call(
        actor_critic_kernel,
        out_shape=jax.ShapeDtypeStruct((pb, N_LANES), jnp.float32),
        grid_spec=pltpu.PrefetchScalarGridSpec(
            num_scalar_prefetch=0,
            grid=(pb // bt,),
            in_specs=[
                pl.BlockSpec((bt, n, f), lambda g: (g, 0, 0)),          # graph tile
                pl.BlockSpec((SLAB_ROWS, N_LANES), lambda g: (0, 0)),   # params: loaded once
            ],
            out_specs=pl.BlockSpec((bt, N_LANES), lambda g: (g, 0)),
        ),
        compiler_params=pltpu.CompilerParams(
            dimension_semantics=("parallel",),            # megacore: split graph tiles across TCs
            vmem_limit_bytes=16 * 1024 * 1024,            # explicit budget; fits v5e/v6e/v7x
        ),
        cost_estimate=pl.CostEstimate(flops=flops, transcendentals=pb * n,
                                      bytes_accessed=bytes_accessed),
    )(x_bf16, slab)

    return out[:b, :n], out[:b, n]


def init_params(key, state_size=STATE_SIZE, hidden=HIDDEN):
    """Deterministic PyTorch-style Linear init (uniform +-1/sqrt(fan_in)) for both heads."""
    ks = jax.random.split(key, 8)

    def lin(kw, kb, fan_in, fan_out):
        bound = 1.0 / np.sqrt(fan_in)
        w = jax.random.uniform(kw, (fan_in, fan_out), jnp.float32, -bound, bound)
        bb = jax.random.uniform(kb, (fan_out,), jnp.float32, -bound, bound)
        return w, bb

    a_w1, a_b1 = lin(ks[0], ks[1], state_size, hidden)   # actor  action_head_1
    a_w5, a_b5 = lin(ks[2], ks[3], hidden, 1)            # actor  action_head_5
    c_w1, c_b1 = lin(ks[4], ks[5], state_size, hidden)   # critic action_head_1
    c_w5, c_b5 = lin(ks[6], ks[7], hidden, 1)            # critic action_head_5
    # TODO(synk): g_conv_1/g_conv_2 (GraphConv) params exist in the modules but their
    #             outputs are overwritten before use in forward(), so they are omitted.
    return dict(a_w1=a_w1, a_b1=a_b1, a_w5=a_w5, a_b5=a_b5,
                c_w1=c_w1, c_b1=c_b1, c_w5=c_w5, c_b5=c_b5)


def pack_params(params, n_nodes):
    """Fold scales/biases and pack everything into one f32 [SLAB_ROWS, 128] slab."""
    p = {k: np.asarray(v, np.float32) for k, v in params.items()}
    slab = np.zeros((SLAB_ROWS, N_LANES), np.float32)
    slab[ROW_A_W1:ROW_A_W1 + STATE_SIZE, 0:HIDDEN] = 2.0 * p["a_w1"]               # x' = 2x
    slab[ROW_C_W1:ROW_C_W1 + STATE_SIZE, 0:HIDDEN] = (2.0 / n_nodes) * p["c_w1"]   # 2*mean
    slab[ROW_A_B1, 0:HIDDEN] = p["a_b1"]
    slab[ROW_A_W5, 0:HIDDEN] = p["a_w5"][:, 0]
    # actor output bias a_b5 intentionally dropped: softmax is shift-invariant.
    slab[ROW_C_B1, 0:HIDDEN] = p["c_b1"]
    slab[ROW_C_B1, N_LANES - 1] = 1.0                 # constant-1 hidden unit
    slab[ROW_C_W5, 0:HIDDEN] = p["c_w5"][:, 0]
    slab[ROW_C_W5, N_LANES - 1] = p["c_b5"][0]        # critic output bias rides the 1-unit
    return jnp.asarray(slab)


def actor_critic_ref(x_bf16, params):
    """Pure-JAX reference of the module's live forward path.  Matmul operands are
    cast to bf16 exactly like the kernel's native MXU path (f32 accumulation)."""
    x = x_bf16.astype(jnp.float32)
    bsz, n, f = x.shape
    # actor: x' = 2x ; relu(Linear(12,11)) ; Linear(11,1)
    a_w1 = (2.0 * params["a_w1"]).astype(jnp.bfloat16)
    h_a = jnp.dot(x_bf16.reshape(bsz * n, f), a_w1,
                  preferred_element_type=jnp.float32) + params["a_b1"][None, :]
    h_a = jnp.maximum(h_a, 0.0).reshape(bsz, n, -1)
    scores = (h_a * params["a_w5"][:, 0][None, None, :]).sum(-1) + params["a_b5"][0]
    # critic: x' = 2*mean ; relu(Linear(12,11)) ; Linear(11,1)
    pooled2 = 2.0 * jnp.mean(x, axis=1)                                  # [B, 12]
    h_c = jnp.maximum((pooled2[:, :, None] * params["c_w1"][None, :, :]).sum(1)
                      + params["c_b1"][None, :], 0.0)                    # [B, 11]
    value = (h_c * params["c_w5"][:, 0][None, :]).sum(-1) + params["c_b5"][0]
    # ActorCritic head: mask action 0, softmax
    scores = scores.at[:, 0].set(-jnp.inf)
    probs = jax.nn.softmax(scores, axis=-1)
    return probs, value


if __name__ == "__main__":
    key = jax.random.PRNGKey(0)
    kx, kp = jax.random.split(key)

    NUM_GRAPHS, N_NODES = 64, 16                 # batched graphs; state_size forced to 12
    x = jax.random.normal(kx, (NUM_GRAPHS, N_NODES, STATE_SIZE), jnp.float32)
    x_bf16 = x.astype(jnp.bfloat16)              # bf16 node features (halves HBM traffic)

    params = init_params(kp)
    slab = pack_params(params, N_NODES)

    probs, value = actor_critic_forward(x_bf16, slab, block_graphs=32)
    probs, value = jax.block_until_ready((probs, value))

    ref_probs, ref_value = actor_critic_ref(x_bf16, params)

    assert probs.shape == (NUM_GRAPHS, N_NODES) and value.shape == (NUM_GRAPHS,)
    # tolerance covers f32 accumulation-order differences between Pallas and XLA
    assert np.allclose(np.asarray(probs), np.asarray(ref_probs), rtol=1e-3, atol=1e-5)
    assert np.allclose(np.asarray(value), np.asarray(ref_value), rtol=1e-3, atol=1e-5)
    assert np.allclose(np.asarray(probs[:, 0]), 0.0)                 # masked action
    assert np.allclose(np.asarray(probs.sum(-1)), 1.0, atol=1e-5)    # valid distribution

    print("KERNEL_OK")
</pallas_src>

<mosaic_0001>
module attributes {stable_mosaic.version = 11 : i64} {
  func.func @actor_critic_kernel(%arg0: i32, %arg1: memref<32x16x12xbf16, #tpu.memory_space<vmem>>, %arg2: memref<32x128xf32, #tpu.memory_space<vmem>>, %arg3: memref<32x128xf32, #tpu.memory_space<vmem>>) attributes {dimension_semantics = [#tpu.dimension_semantics<parallel>], iteration_bounds = array<i64: 2>, scalar_prefetch = 0 : i64, scratch_operands = 0 : i64, tpu.core_type = #tpu.core_type<tc>, window_params = [{transform_indices = @transform_0, window_bounds = array<i64: 32, 16, 12>}, {pipeline_mode = #tpu.pipeline_mode<synchronous>, transform_indices = @transform_1, window_bounds = array<i64: 32, 128>}, {transform_indices = @transform_2, window_bounds = array<i64: 32, 128>}]} {
    %c0 = arith.constant 0 : index
    %c0_0 = arith.constant 0 : index
    %c0_1 = arith.constant 0 : index
    %0 = vector.load %arg1[%c0, %c0_0, %c0_1] : memref<32x16x12xbf16, #tpu.memory_space<vmem>>, vector<32x16x12xbf16>
    %1 = arith.extf %0 : vector<32x16x12xbf16> to vector<32x16x12xf32>
    %c0_2 = arith.constant 0 : index
    %c0_3 = arith.constant 0 : index
    %2 = vector.load %arg2[%c0_2, %c0_3] : memref<32x128xf32, #tpu.memory_space<vmem>>, vector<12x128xf32>
    %3 = arith.truncf %2 : vector<12x128xf32> to vector<12x128xbf16>
    %c12 = arith.constant 12 : index
    %c0_4 = arith.constant 0 : index
    %4 = vector.load %arg2[%c12, %c0_4] : memref<32x128xf32, #tpu.memory_space<vmem>>, vector<12x128xf32>
    %c24 = arith.constant 24 : index
    %c0_5 = arith.constant 0 : index
    %5 = vector.load %arg2[%c24, %c0_5] : memref<32x128xf32, #tpu.memory_space<vmem>>, vector<1x128xf32>
    %c25 = arith.constant 25 : index
    %c0_6 = arith.constant 0 : index
    %6 = vector.load %arg2[%c25, %c0_6] : memref<32x128xf32, #tpu.memory_space<vmem>>, vector<1x128xf32>
    %c26 = arith.constant 26 : index
    %c0_7 = arith.constant 0 : index
    %7 = vector.load %arg2[%c26, %c0_7] : memref<32x128xf32, #tpu.memory_space<vmem>>, vector<1x128xf32>
    %c27 = arith.constant 27 : index
    %c0_8 = arith.constant 0 : index
    %8 = vector.load %arg2[%c27, %c0_8] : memref<32x128xf32, #tpu.memory_space<vmem>>, vector<1x128xf32>
    %9 = vector.shape_cast %0 : vector<32x16x12xbf16> to vector<512x12xbf16>
    %cst = arith.constant dense<0.000000e+00> : vector<512x128xf32>
    %10 = tpu.matmul %9, %3, %cst {dimension_numbers = #tpu.dot_dimension_numbers<[1], [0], [0], [1], [0, 0, 1, 1], [], []>} : vector<512x12xbf16>, vector<12x128xbf16>, vector<512x128xf32> -> vector<512x128xf32>
    %11 = vector.broadcast %5 : vector<1x128xf32> to vector<512x128xf32>
    %12 = arith.addf %10, %11 : vector<512x128xf32>
    %cst_9 = arith.constant 0.000000e+00 : f32
    %13 = vector.broadcast %cst_9 : f32 to vector<512x128xf32>
    %14 = arith.maximumf %12, %13 : vector<512x128xf32>
    %15 = vector.shape_cast %14 : vector<512x128xf32> to vector<32x16x128xf32>
    %16 = vector.shape_cast %6 : vector<1x128xf32> to vector<1x1x128xf32>
    %17 = vector.broadcast %16 : vector<1x1x128xf32> to vector<32x16x128xf32>
    %18 = arith.mulf %15, %17 : vector<32x16x128xf32>
    %cst_10 = arith.constant dense<0.000000e+00> : vector<32x16xf32>
    %19 = vector.multi_reduction <add>, %18, %cst_10 [2] : vector<32x16x128xf32> to vector<32x16xf32>
    %cst_11 = arith.constant dense<0.000000e+00> : vector<32x12xf32>
    %20 = vector.multi_reduction <add>, %1, %cst_11 [1] : vector<32x16x12xf32> to vector<32x12xf32>
    %21 = vector.shape_cast %7 : vector<1x128xf32> to vector<1x128xf32>
    %22 = vector.broadcast %21 : vector<1x128xf32> to vector<32x128xf32>
    %23 = vector.extract_strided_slice %20 {offsets = [0, 0], sizes = [32, 1], strides = [1, 1]} : vector<32x12xf32> to vector<32x1xf32>
    %24 = vector.extract_strided_slice %4 {offsets = [0, 0], sizes = [1, 128], strides = [1, 1]} : vector<12x128xf32> to vector<1x128xf32>
    %25 = vector.broadcast %23 : vector<32x1xf32> to vector<32x128xf32>
    %26 = vector.broadcast %24 : vector<1x128xf32> to vector<32x128xf32>
    %27 = arith.mulf %25, %26 : vector<32x128xf32>
    %28 = arith.addf %22, %27 : vector<32x128xf32>
    %29 = vector.extract_strided_slice %20 {offsets = [0, 1], sizes = [32, 1], strides = [1, 1]} : vector<32x12xf32> to vector<32x1xf32>
    %30 = vector.extract_strided_slice %4 {offsets = [1, 0], sizes = [1, 128], strides = [1, 1]} : vector<12x128xf32> to vector<1x128xf32>
    %31 = vector.broadcast %29 : vector<32x1xf32> to vector<32x128xf32>
    %32 = vector.broadcast %30 : vector<1x128xf32> to vector<32x128xf32>
    %33 = arith.mulf %31, %32 : vector<32x128xf32>
    %34 = arith.addf %28, %33 : vector<32x128xf32>
    %35 = vector.extract_strided_slice %20 {offsets = [0, 2], sizes = [32, 1], strides = [1, 1]} : vector<32x12xf32> to vector<32x1xf32>
    %36 = vector.extract_strided_slice %4 {offsets = [2, 0], sizes = [1, 128], strides = [1, 1]} : vector<12x128xf32> to vector<1x128xf32>
    %37 = vector.broadcast %35 : vector<32x1xf32> to vector<32x128xf32>
    %38 = vector.broadcast %36 : vector<1x128xf32> to vector<32x128xf32>
    %39 = arith.mulf %37, %38 : vector<32x128xf32>
    %40 = arith.addf %34, %39 : vector<32x128xf32>
    %41 = vector.extract_strided_slice %20 {offsets = [0, 3], sizes = [32, 1], strides = [1, 1]} : vector<32x12xf32> to vector<32x1xf32>
    %42 = vector.extract_strided_slice %4 {offsets = [3, 0], sizes = [1, 128], strides = [1, 1]} : vector<12x128xf32> to vector<1x128xf32>
    %43 = vector.broadcast %41 : vector<32x1xf32> to vector<32x128xf32>
    %44 = vector.broadcast %42 : vector<1x128xf32> to vector<32x128xf32>
    %45 = arith.mulf %43, %44 : vector<32x128xf32>
    %46 = arith.addf %40, %45 : vector<32x128xf32>
    %47 = vector.extract_strided_slice %20 {offsets = [0, 4], sizes = [32, 1], strides = [1, 1]} : vector<32x12xf32> to vector<32x1xf32>
    %48 = vector.extract_strided_slice %4 {offsets = [4, 0], sizes = [1, 128], strides = [1, 1]} : vector<12x128xf32> to vector<1x128xf32>
    %49 = vector.broadcast %47 : vector<32x1xf32> to vector<32x128xf32>
    %50 = vector.broadcast %48 : vector<1x128xf32> to vector<32x128xf32>
    %51 = arith.mulf %49, %50 : vector<32x128xf32>
    %52 = arith.addf %46, %51 : vector<32x128xf32>
    %53 = vector.extract_strided_slice %20 {offsets = [0, 5], sizes = [32, 1], strides = [1, 1]} : vector<32x12xf32> to vector<32x1xf32>
    %54 = vector.extract_strided_slice %4 {offsets = [5, 0], sizes = [1, 128], strides = [1, 1]} : vector<12x128xf32> to vector<1x128xf32>
    %55 = vector.broadcast %53 : vector<32x1xf32> to vector<32x128xf32>
    %56 = vector.broadcast %54 : vector<1x128xf32> to vector<32x128xf32>
    %57 = arith.mulf %55, %56 : vector<32x128xf32>
    %58 = arith.addf %52, %57 : vector<32x128xf32>
    %59 = vector.extract_strided_slice %20 {offsets = [0, 6], sizes = [32, 1], strides = [1, 1]} : vector<32x12xf32> to vector<32x1xf32>
    %60 = vector.extract_strided_slice %4 {offsets = [6, 0], sizes = [1, 128], strides = [1, 1]} : vector<12x128xf32> to vector<1x128xf32>
    %61 = vector.broadcast %59 : vector<32x1xf32> to vector<32x128xf32>
    %62 = vector.broadcast %60 : vector<1x128xf32> to vector<32x128xf32>
    %63 = arith.mulf %61, %62 : vector<32x128xf32>
    %64 = arith.addf %58, %63 : vector<32x128xf32>
    %65 = vector.extract_strided_slice %20 {offsets = [0, 7], sizes = [32, 1], strides = [1, 1]} : vector<32x12xf32> to vector<32x1xf32>
    %66 = vector.extract_strided_slice %4 {offsets = [7, 0], sizes = [1, 128], strides = [1, 1]} : vector<12x128xf32> to vector<1x128xf32>
    %67 = vector.broadcast %65 : vector<32x1xf32> to vector<32x128xf32>
    %68 = vector.broadcast %66 : vector<1x128xf32> to vector<32x128xf32>
    %69 = arith.mulf %67, %68 : vector<32x128xf32>
    %70 = arith.addf %64, %69 : vector<32x128xf32>
    %71 = vector.extract_strided_slice %20 {offsets = [0, 8], sizes = [32, 1], strides = [1, 1]} : vector<32x12xf32> to vector<32x1xf32>
    %72 = vector.extract_strided_slice %4 {offsets = [8, 0], sizes = [1, 128], strides = [1, 1]} : vector<12x128xf32> to vector<1x128xf32>
    %73 = vector.broadcast %71 : vector<32x1xf32> to vector<32x128xf32>
    %74 = vector.broadcast %72 : vector<1x128xf32> to vector<32x128xf32>
    %75 = arith.mulf %73, %74 : vector<32x128xf32>
    %76 = arith.addf %70, %75 : vector<32x128xf32>
    %77 = vector.extract_strided_slice %20 {offsets = [0, 9], sizes = [32, 1], strides = [1, 1]} : vector<32x12xf32> to vector<32x1xf32>
    %78 = vector.extract_strided_slice %4 {offsets = [9, 0], sizes = [1, 128], strides = [1, 1]} : vector<12x128xf32> to vector<1x128xf32>
    %79 = vector.broadcast %77 : vector<32x1xf32> to vector<32x128xf32>
    %80 = vector.broadcast %78 : vector<1x128xf32> to vector<32x128xf32>
    %81 = arith.mulf %79, %80 : vector<32x128xf32>
    %82 = arith.addf %76, %81 : vector<32x128xf32>
    %83 = vector.extract_strided_slice %20 {offsets = [0, 10], sizes = [32, 1], strides = [1, 1]} : vector<32x12xf32> to vector<32x1xf32>
    %84 = vector.extract_strided_slice %4 {offsets = [10, 0], sizes = [1, 128], strides = [1, 1]} : vector<12x128xf32> to vector<1x128xf32>
    %85 = vector.broadcast %83 : vector<32x1xf32> to vector<32x128xf32>
    %86 = vector.broadcast %84 : vector<1x128xf32> to vector<32x128xf32>
    %87 = arith.mulf %85, %86 : vector<32x128xf32>
    %88 = arith.addf %82, %87 : vector<32x128xf32>
    %89 = vector.extract_strided_slice %20 {offsets = [0, 11], sizes = [32, 1], strides = [1, 1]} : vector<32x12xf32> to vector<32x1xf32>
    %90 = vector.extract_strided_slice %4 {offsets = [11, 0], sizes = [1, 128], strides = [1, 1]} : vector<12x128xf32> to vector<1x128xf32>
    %91 = vector.broadcast %89 : vector<32x1xf32> to vector<32x128xf32>
    %92 = vector.broadcast %90 : vector<1x128xf32> to vector<32x128xf32>
    %93 = arith.mulf %91, %92 : vector<32x128xf32>
    %94 = arith.addf %88, %93 : vector<32x128xf32>
    %cst_12 = arith.constant 0.000000e+00 : f32
    %95 = vector.broadcast %cst_12 : f32 to vector<32x128xf32>
    %96 = arith.maximumf %94, %95 : vector<32x128xf32>
    %97 = vector.broadcast %8 : vector<1x128xf32> to vector<32x128xf32>
    %98 = arith.mulf %96, %97 : vector<32x128xf32>
    %cst_13 = arith.constant dense<0.000000e+00> : vector<32xf32>
    %99 = vector.multi_reduction <add>, %98, %cst_13 [1] : vector<32x128xf32> to vector<32xf32>
    %100 = vector.shape_cast %99 : vector<32xf32> to vector<32x1xf32>
    %101 = tpu.iota {dimensions = array<i32: 1>} : vector<32x16xi32>
    %c0_i32 = arith.constant 0 : i32
    %102 = vector.broadcast %c0_i32 : i32 to vector<32x16xi32>
    %103 = arith.cmpi eq, %101, %102 : vector<32x16xi32>
    %cst_14 = arith.constant -1.000000e+30 : f32
    %104 = vector.broadcast %cst_14 : f32 to vector<32x16xf32>
    %105 = arith.select %103, %104, %19 : vector<32x16xi1>, vector<32x16xf32>
    %cst_15 = arith.constant dense<0xFF800000> : vector<32xf32>
    %106 = vector.multi_reduction <maximumf>, %105, %cst_15 [1] : vector<32x16xf32> to vector<32xf32>
    %107 = vector.shape_cast %106 : vector<32xf32> to vector<32x1xf32>
    %c0_i32_16 = arith.constant 0 : i32
    %108 = vector.broadcast %c0_i32_16 : i32 to vector<32x16xi32>
    %109 = arith.cmpi eq, %101, %108 : vector<32x16xi32>
    %110 = vector.broadcast %107 : vector<32x1xf32> to vector<32x16xf32>
    %111 = arith.subf %19, %110 : vector<32x16xf32>
    %112 = math.exp %111 : vector<32x16xf32>
    %cst_17 = arith.constant 0.000000e+00 : f32
    %113 = vector.broadcast %cst_17 : f32 to vector<32x16xf32>
    %114 = arith.select %109, %113, %112 : vector<32x16xi1>, vector<32x16xf32>
    %cst_18 = arith.constant dense<0.000000e+00> : vector<32xf32>
    %115 = vector.multi_reduction <add>, %114, %cst_18 [1] : vector<32x16xf32> to vector<32xf32>
    %116 = vector.shape_cast %115 : vector<32xf32> to vector<32x1xf32>
    %117 = vector.broadcast %116 : vector<32x1xf32> to vector<32x16xf32>
    %118 = arith.divf %114, %117 : vector<32x16xf32>
    %119 = tpu.iota {dimensions = array<i32: 1>} : vector<32x128xi32>
    %c16_i32 = arith.constant 16 : i32
    %120 = vector.broadcast %c16_i32 : i32 to vector<32x128xi32>
    %121 = arith.cmpi eq, %119, %120 : vector<32x128xi32>
    %cst_19 = arith.constant 0.000000e+00 : f32
    %122 = vector.shape_cast %100 : vector<32x1xf32> to vector<32x1xf32>
    %123 = vector.broadcast %122 : vector<32x1xf32> to vector<32x128xf32>
    %124 = vector.broadcast %cst_19 : f32 to vector<32x128xf32>
    %125 = arith.select %121, %123, %124 : vector<32x128xi1>, vector<32x128xf32>
    %c0_20 = arith.constant 0 : index
    %c0_21 = arith.constant 0 : index
    %126 = vector.load %arg3[%c0_20, %c0_21] : memref<32x128xf32, #tpu.memory_space<vmem>>, vector<32x128xf32>
    tpu.vector_store %arg3[%c0_20, %c0_21], %125 {strides = array<i32>} : memref<32x128xf32, #tpu.memory_space<vmem>>, vector<32x128xf32>,
    %c0_22 = arith.constant 0 : index
    %c0_23 = arith.constant 0 : index
    %127 = vector.load %arg3[%c0_22, %c0_23] : memref<32x128xf32, #tpu.memory_space<vmem>>, vector<32x16xf32>
    tpu.vector_store %arg3[%c0_22, %c0_23], %118 {strides = array<i32>} : memref<32x128xf32, #tpu.memory_space<vmem>>, vector<32x16xf32>,
    return
  }
  func.func @transform_0(%arg0: i32) -> (i32, i32, i32) {
    %c0_i32 = arith.constant 0 : i32
    %c0_i32_0 = arith.constant 0 : i32
    %c0_i32_1 = arith.constant 0 : i32
    return %arg0, %c0_i32, %c0_i32_0 : i32, i32, i32
  }
  func.func @transform_1(%arg0: i32) -> (i32, i32) {
    %c0_i32 = arith.constant 0 : i32
    %c0_i32_0 = arith.constant 0 : i32
    %c0_i32_1 = arith.constant 0 : i32
    return %c0_i32, %c0_i32_0 : i32, i32
  }
  func.func @transform_2(%arg0: i32) -> (i32, i32) {
    %c0_i32 = arith.constant 0 : i32
    %c0_i32_0 = arith.constant 0 : i32
    return %arg0, %c0_i32 : i32, i32
  }
}

</mosaic_0001>

<bundles_post_ra>
// kernel: tpu_custom_call.1
= control target key start
LH: loop header
LB: loop body
LE: loop exit
PB: predicated region body
PF: predicated region fallthrough
CT: control target
= control target key end

     0   :  { %7 = vsyncpa [#allocation3], 0  ;;  %s10511_s0 = inlined_call_operand.vmem [shape: bf16[64,16,12], index: 0, kind: input, shape index: {}]   ;;  %s10512_s1 = inlined_call_operand.vmem [shape: f32[32,128], index: 1, kind: input, shape index: {}]   ;;  %s10513_s2 = inlined_call_operand.hbm [shape: f32[64,128], index: 2, kind: output, shape index: {}]  }
   0x1   :  { %9 = vsyncpa [#allocation3 + $0x1], 0  ;;  %s6581_s9 = smov 0   ;;  %s6583_s10 = smov 0  }
   0x2   :  { %s6585_s11 = smov 0   ;;  %s6587_s12 = smov 0  }
   0x3 LB: > { %s6602_s13 = sadd.s32 4294967295, %s6549_s12   ;;  %s6022_s14 = sadd.s32 4294967294, %s6549_s12   ;;  %s6549_s12 = sphi %s6587_s12, %s11660_s12   ;;  %s6545_s11 = sphi %s6585_s11, %s11659_s11   ;;  %s6541_s10 = sphi %s6583_s10, %s11658_s10   ;;  %s6537_s9 = sphi %s6581_s9, %s11657_s9  }
   0x4   : > { %s6606_s15 = sadd.s32 1, %s6549_s12   ;;  %s69_s16 = sadd.s32 1, %s6545_s11 }
   0x5   : > { %s66_s17 = ssub.s32 %s6549_s12, %s6606_s15  ;;  %p79_p0 = scmp.ne.s32.totalorder %s6545_s11, %s6541_s10 }
   0x6   : > { %p67_p1 = scmp.eq.s32.totalorder %s66_s17, 0  ;;  %p80_p2 = scmp.eq.s32.totalorder %s6602_s13, 1 }
   0x7   : > { %p85_p3 = scmp.ne.s32.totalorder %s6541_s10, %s6537_s9  ;;  %p86_p4 = scmp.eq.s32.totalorder %s6022_s14, 1 }
   0x8   : > { %s6617_s18 = scalar_select %p67_p1, %s6545_s11, %s69_s16  }
   0x9   : > { %p6619_p5 = por %p80_p2, %p79_p0  ;;  %p6623_p6 = por %p86_p4, %p85_p3 }
   0xa   : > { %p6025_p7 = scmp.ge.s32.totalorder %s6549_s12, 1  ;;  %p117_p8 = scmp.lt.s32.totalorder %s6549_s12, 3 }
   0xc   : > { %p118_p9 = pnand %p6025_p7, %p117_p8 }
   0xe   : > { %121 = sbr.rel (%p118_p9) target bundleno = 1805 (0x70d), region = 28 }
  0x15   : > { %v277_v0 = vld [vmem:[%s10512_s1] sm:$0xff]  ;;  %v278_v1 = vld [vmem:[%s10512_s1 + $0x8] sm:$0xf]  ;;  %vm547_vm0 = vcmask 1045504   ;;  %s6027_s25 = sshll.u32 %s6602_s13, 5  ;;  %v10514_v3 = vmov 0  }
  0x16   : > { %v279_v2 = vpack.c.bf16 %v278_v1, %v277_v0  ;;  %p141_p10 = scmp.lt.s32.totalorder %s6027_s25, 63  ;;  %6261 = vset.pattern.permute.xlu1 %v10514_v3  ;;  %v6552_v4 = vmov 1   ;;  %vm450_vm1 = vcmask 97280   ;;  %vm1621_vm2 = vcmask 1041409   ;;  %s6104_s28 = sshll.u32 %s6602_s13, 9 }
  0x17   : > { %6263 = vset.pattern.permute.xlu0 %v6552_v4  ;;  %vm1624_vm3 = vcmask 1042434   ;;  %vm1627_vm4 = vcmask 1043459   ;;  %vm1630_vm5 = vcmask 1044484   ;;  %vm1633_vm6 = vcmask 1045509   ;;  %s10462_s4 = scalar_lea.hbm %s10513_s2, %s6104_s28  ;;  %s6563_s6 = smov [#allocation2]  }
  0x18   : > { %6206 = vmatprep.subr.msk.bf16.mxu0 %vm547_vm0, %v279_v2  ;;  %6207 = vmatprep.subr.msk.bf16.mxu1 %vm547_vm0, %v279_v2  ;;  %v549_v5 = vsel %vm547_vm0, %v279_v2, 0  ;;  %s11662_s25 = smov (!%p141_p10, %s6027_s25), 63  ;;  %vm1636_vm7 = vcmask 1046534   ;;  %vm4647_vm8 = vcmask 130112   ;;  %vm1639_vm9 = vcmask 1047559   ;;  %s6491_s7 = sshll.u32 %s6563_s6, 4  ;;  %s6492_s7 = int_to_ptr.vmem [resolvable:$false] %s6491_s7 }
  0x19   : > { %6139 = vmatpush3.bf16.msra.mxu0 %v549_v5  ;;  %6205 = vmatpush3.bf16.msra.mxu1 %v549_v5  ;;  %s6103_s26 = sshll.u32 %s11662_s25, 3  ;;  %vm4964_vm11 = vcmask 130048   ;;  %s137_s25 = sand.u32 1, %s6541_s10  }
  0x1a   : > { %s6641_s29 = scalar_lea.vmem %s10511_s0, %s6103_s26  ;;  %s6026_s26 = sshll.u32 %s137_s25, 5 }
  0x1b   : > { %v6644_v6 = vld [vmem:[%s6641_s29] sm:$0xff]   ;;  %v151_v8 = vld [vmem:[%s6641_s29 + $0x8] sm:$0xff]   ;;  %v153_v12 = vld [vmem:[%s6641_s29 + $0x10] sm:$0xff]   ;;  %s10125_s27 = scalar_lea.vmem [#allocation2], %s6026_s26  ;;  %s10470_s5 = scalar_lea.sflag [#allocation3], %s137_s25 }
  0x1c   : > { %v6647_v7 = vld [vmem:[%s6641_s29 + $0x80] sm:$0xff]   ;;  %v215_v9 = vunpack.c.l.bf16 %v151_v8  ;;  %v216_v10 = vunpack.c.h.bf16 %v151_v8  ;;  %6140 = vmatprep.mubr.msk.bf16.mxu0 %vm450_vm1, %v6644_v6  ;;  %v6653_v11 = vld [vmem:[%s6641_s29 + $0x88] sm:$0xff]   ;;  %v217_v16 = vunpack.c.l.bf16 %v153_v12  ;;  %v218_v17 = vunpack.c.h.bf16 %v153_v12  ;;  %v155_v18 = vld [vmem:[%s6641_s29 + $0x18] sm:$0xff]   ;;  %s6493_s8 = scalar_lea.vmem %s6492_s7, 1024 }
  0x1d   : > { %6172 = vmatprep.mubr.msk.bf16.mxu1 %vm450_vm1, %v6647_v7  ;;  %6141 = vmatmul.mubr.msk.bf16.vlgmr.msra.gmra.mrb[0].mxu0 %vm450_vm1, %v151_v8  ;;  %v219_v23 = vunpack.c.l.bf16 %v155_v18  ;;  %v220_v25 = vunpack.c.h.bf16 %v155_v18  ;;  %v6670_v30 = vld [vmem:[%s6641_s29 + $0x90] sm:$0xff]   ;;  %v6674_v37 = vld [vmem:[%s6641_s29 + $0x98] sm:$0xff]   ;;  %v157_v38 = vld [vmem:[%s6641_s29 + $0x20] sm:$0xff]  }
  0x1e   : > { %v1109_v13 = vsel %vm450_vm1, %v215_v9, 0.0  ;;  %v1110_v14 = vsel %vm450_vm1, %v216_v10, 0.0  ;;  %6173 = vmatmul.mubr.msk.bf16.vlgmr.msra.gmra.mrb[0].mxu1 %vm450_vm1, %v6653_v11  ;;  %v1118_v20 = vsel %vm450_vm1, %v217_v16, 0.0  ;;  %v1119_v22 = vsel %vm450_vm1, %v218_v17, 0.0  ;;  %6144 = vmatprep.mubr.msk.bf16.mxu0 %vm450_vm1, %v153_v12  ;;  %v159_v45 = vld [vmem:[%s6641_s29 + $0x28] sm:$0xff]   ;;  %v6693_v55 = vld [vmem:[%s6641_s29 + $0xa0] sm:$0xff]  }
  0x1f   : > { %v1111_v15 = vadd.f32 %v1110_v14, %v1109_v13  ;;  %v1120_v24 = vadd.f32 %v1119_v22, %v1118_v20  ;;  %v1127_v27 = vsel %vm450_vm1, %v219_v23, 0.0  ;;  %v1128_v29 = vsel %vm450_vm1, %v220_v25, 0.0  ;;  %6176 = vmatprep.mubr.msk.bf16.mxu1 %vm450_vm1, %v6670_v30  ;;  %v6701_v61 = vld [vmem:[%s6641_s29 + $0xa8] sm:$0xff]   ;;  %v161_v0 = vld [vmem:[%s6641_s29 + $0x30] sm:$0xff]   ;;  %v163_v5 = vld [vmem:[%s6641_s29 + $0x38] sm:$0xff]  }
  0x20   : > { %v1129_v32 = vadd.f32 %v1128_v29, %v1127_v27  ;;  %v221_v43 = vunpack.c.l.bf16 %v157_v38  ;;  %v222_v47 = vunpack.c.h.bf16 %v157_v38  ;;  %v223_v52 = vunpack.c.l.bf16 %v159_v45 }
  0x21   : > { %v1112_v19 = vrot.slane %v1111_v15, 4  ;;  %v1121_v28 = vrot.slane %v1120_v24, 4  ;;  %v224_v53 = vunpack.c.h.bf16 %v159_v45  ;;  %v225_v8 = vunpack.c.l.bf16 %v161_v0 }
  0x22   : > { %v1130_v35 = vrot.slane %v1129_v32, 4  ;;  %v1136_v48 = vsel %vm450_vm1, %v221_v43, 0.0  ;;  %v1137_v51 = vsel %vm450_vm1, %v222_v47, 0.0  ;;  %v1145_v57 = vsel %vm450_vm1, %v223_v52, 0.0 }
  0x23   : > { %v1113_v21 = vadd.f32 %v1112_v19, %v1111_v15  ;;  %v1122_v33 = vadd.f32 %v1121_v28, %v1120_v24  ;;  %v1138_v54 = vadd.f32 %v1137_v51, %v1136_v48  ;;  %v1146_v58 = vsel %vm450_vm1, %v224_v53, 0.0  ;;  %v193_v51 = vld [vmem:[%s6641_s29 + $0xb0] sm:$0xff]  }
  0x24   : > { %v1131_v40 = vadd.f32 %v1130_v35, %v1129_v32  ;;  %v1147_v60 = vadd.f32 %v1146_v58, %v1145_v57  ;;  %v226_v9 = vunpack.c.h.bf16 %v161_v0  ;;  %v245_v10 = vunpack.c.l.bf16 %v6647_v7 }
  0x25   : > { %v1114_v26 = vrot.slane %v1113_v21, 2  ;;  %6145 = vmatmul.mubr.msk.bf16.gmra.mrb[4].mxu0 %vm450_vm1, %v155_v18  ;;  %v1123_v36 = vrot.slane %v1122_v33, 2  ;;  %v1139_v59 = vrot.slane %v1138_v54, 4  ;;  %v246_v14 = vunpack.c.h.bf16 %v6647_v7  ;;  %v6715_v18 = vld [vmem:[%s6641_s29 + $0x40] sm:$0xff]  }
  0x26   : > { %v1132_v42 = vrot.slane %v1131_v40, 2  ;;  %6177 = vmatmul.mubr.msk.bf16.gmra.mrb[4].mxu1 %vm450_vm1, %v6674_v37  ;;  %6148 = vmatprep.mubr.msk.bf16.mxu0 %vm450_vm1, %v157_v38  ;;  %v1148_v63 = vrot.slane %v1147_v60, 4  ;;  %v1154_v15 = vsel %vm450_vm1, %v225_v8, 0.0  ;;  %v1155_v16 = vsel %vm450_vm1, %v226_v9, 0.0  ;;  %v6752_v9 = vld [vmem:[%s6641_s29 + $0x60] sm:$0xff]  }
  0x27   : > { %v1115_v31 = vadd.f32 %v1114_v26, %v1113_v21  ;;  %v1124_v41 = vadd.f32 %v1123_v36, %v1122_v33  ;;  %v1140_v62 = vadd.f32 %v1139_v59, %v1138_v54  ;;  %6180 = vmatprep.mubr.msk.bf16.mxu1 %vm450_vm1, %v6693_v55  ;;  %v227_v17 = vunpack.c.l.bf16 %v163_v5  ;;  %v6731_v36 = vld [vmem:[%s6641_s29 + $0x50] sm:$0xff]  }
  0x28   : > { %v1133_v46 = vadd.f32 %v1132_v42, %v1131_v40  ;;  %v1149_v2 = vadd.f32 %v1148_v63, %v1147_v60  ;;  %v1156_v21 = vadd.f32 %v1155_v16, %v1154_v15  ;;  %v228_v22 = vunpack.c.h.bf16 %v163_v5  ;;  %v6748_v63 = vld [vmem:[%s6641_s29 + $0xb8] sm:$0xff]  }
  0x29   : > { %v1116_v34 = vrot.slane %v1115_v31, 1  ;;  %v1125_v44 = vrot.slane %v1124_v41, 1  ;;  %v1141_v1 = vrot.slane %v1140_v62, 2  ;;  %v1163_v23 = vsel %vm450_vm1, %v227_v17, 0.0 }
  0x2a   : > { %v1134_v50 = vrot.slane %v1133_v46, 1  ;;  %v1150_v13 = vrot.slane %v1149_v2, 2  ;;  %v1244_v24 = vsel %vm450_vm1, %v245_v10, 0.0  ;;  %v229_v7 = vunpack.c.l.bf16 %v6715_v18 }
  0x2b   : > { %v6677_v39 = vadd.f32 %v1116_v34, %v1115_v31  ;;  %v6687_v49 = vadd.f32 %v1125_v44, %v1124_v41  ;;  %v1142_v12 = vadd.f32 %v1141_v1, %v1140_v62  ;;  %v1245_v27 = vsel %vm450_vm1, %v246_v14, 0.0 }
  0x2c   : > { %v6695_v56 = vadd.f32 %v1134_v50, %v1133_v46  ;;  %v1151_v20 = vadd.f32 %v1150_v13, %v1149_v2  ;;  %v1157_v28 = vrot.slane %v1156_v21, 4  ;;  %v1164_v29 = vsel %vm450_vm1, %v228_v22, 0.0 }
  0x2d   : > { %10668 = vst [vmem:[#allocation5_spill] sm:$0xff] %v6677_v39  ;;  %1399 = vperm.xlu1 %6261, %v6677_v39   ;;  %1696 = vperm.xlu0 %6263, %v6677_v39   ;;  %v1143_v19 = vrot.slane %v1142_v12, 1  ;;  %v230_v31 = vunpack.c.h.bf16 %v6715_v18  ;;  %v249_v32 = vunpack.c.l.bf16 %v6670_v30  ;;  %v1165_v34 = vadd.f32 %v1164_v29, %v1163_v23 }
  0x2e   : > { %10669 = vst [vmem:[#allocation6_spill] sm:$0xff] %v6695_v56  ;;  %6149 = vmatmul.mubr.msk.bf16.gmra.mrb[8].mxu0 %vm450_vm1, %v159_v45  ;;  %6181 = vmatmul.mubr.msk.bf16.gmra.mrb[8].mxu1 %vm450_vm1, %v6701_v61  ;;  %v1152_v26 = vrot.slane %v1151_v20, 1  ;;  %v1172_v35 = vsel %vm450_vm1, %v229_v7, 0.0  ;;  %v250_v38 = vunpack.c.h.bf16 %v6670_v30  ;;  %v1158_v40 = vadd.f32 %v1157_v28, %v1156_v21 }
  0x2f   : > { %v6719_v25 = vadd.f32 %v1143_v19, %v1142_v12  ;;  %v1173_v41 = vsel %vm450_vm1, %v230_v31, 0.0  ;;  %v1166_v42 = vrot.slane %v1165_v34, 4  ;;  %6152 = vmatprep.mubr.msk.bf16.mxu0 %vm450_vm1, %v161_v0  ;;  %v233_v45 = vunpack.c.l.bf16 %v6731_v36  ;;  %6184 = vmatprep.mubr.msk.bf16.mxu1 %vm450_vm1, %v193_v51  ;;  %v6759_v19 = vld [vmem:[%s6641_s29 + $0x70] sm:$0xff]  }
  0x30   : > { %v6727_v33 = vadd.f32 %v1152_v26, %v1151_v20  ;;  %v1174_v43 = vadd.f32 %v1173_v41, %v1172_v35  ;;  %v1159_v44 = vrot.slane %v1158_v40, 2  ;;  %v234_v46 = vunpack.c.h.bf16 %v6731_v36 }
  0x31   : > { %1404 = vperm.xlu1 %6261, %v6687_v49   ;;  %1708 = vperm.xlu0 %6263, %v6719_v25   ;;  %v1246_v47 = vadd.f32 %v1245_v27, %v1244_v24  ;;  %v1262_v48 = vsel %vm450_vm1, %v249_v32, 0.0  ;;  %v1167_v50 = vadd.f32 %v1166_v42, %v1165_v34  ;;  %v1263_v52 = vsel %vm450_vm1, %v250_v38, 0.0 }
  0x32   : > { %10670 = vst [vmem:[#allocation7_spill] sm:$0xff] %v6727_v33  ;;  %v1175_v30 = vrot.slane %v1174_v43, 4  ;;  %v1160_v53 = vadd.f32 %v1159_v44, %v1158_v40  ;;  %v1190_v54 = vsel %vm450_vm1, %v233_v45, 0.0  ;;  %v1191_v57 = vsel %vm450_vm1, %v234_v46, 0.0  ;;  %v6776_v40 = vld [vmem:[%s6641_s29 + $0x48] sm:$0xff]  }
  0x33   : > { %v253_v58 = vunpack.c.l.bf16 %v6693_v55  ;;  %v1168_v59 = vrot.slane %v1167_v50, 2  ;;  %v1192_v62 = vadd.f32 %v1191_v57, %v1190_v54  ;;  %v254_v0 = vunpack.c.h.bf16 %v6693_v55 }
  0x34   : > { %v1176_v60 = vadd.f32 %v1175_v30, %v1174_v43  ;;  %v1161_v1 = vrot.slane %v1160_v53, 1  ;;  %v1247_v10 = vrot.slane %v1246_v47, 4  ;;  %v1264_v12 = vadd.f32 %v1263_v52, %v1262_v48  ;;  %v197_v48 = vld [vmem:[%s6641_s29 + $0xc0] sm:$0xff]  }
  0x35   : > { %1409 = vperm.xlu1 %6261, %v6695_v56   ;;  %v1169_v2 = vadd.f32 %v1168_v59, %v1167_v50  ;;  %v1193_v8 = vrot.slane %v1192_v62, 4  ;;  %v1280_v14 = vsel %vm450_vm1, %v253_v58, 0.0  ;;  %v1281_v55 = vsel %vm450_vm1, %v254_v0, 0.0 }
  0x36   : > { %6153 = vmatmul.mubr.msk.bf16.gmra.mrb[12].mxu0 %vm450_vm1, %v163_v5  ;;  %v1177_v5 = vrot.slane %v1176_v60, 2  ;;  %v6754_v13 = vadd.f32 %v1161_v1, %v1160_v53  ;;  %v257_v20 = vunpack.c.l.bf16 %v193_v51  ;;  %6185 = vmatmul.mubr.msk.bf16.gmra.mrb[12].mxu1 %vm450_vm1, %v6748_v63  ;;  %v237_v21 = vunpack.c.l.bf16 %v6752_v9 }
  0x37   : > { %v1170_v15 = vrot.slane %v1169_v2, 1  ;;  %v1194_v17 = vadd.f32 %v1193_v8, %v1192_v62  ;;  %v238_v22 = vunpack.c.h.bf16 %v6752_v9  ;;  %v258_v7 = vunpack.c.h.bf16 %v193_v51  ;;  %6156 = vmatprep.mubr.msk.bf16.mxu0 %vm450_vm1, %v6715_v18  ;;  %v6796_v8 = vld [vmem:[%s6641_s29 + $0xc8] sm:$0xff]   ;;  %6188 = vmatprep.mubr.msk.bf16.mxu1 %vm450_vm1, %v197_v48 }
  0x38   : > { %v1178_v16 = vadd.f32 %v1177_v5, %v1176_v60  ;;  %1716 = vperm.xlu0 %6263, %v6754_v13   ;;  %v1248_v27 = vadd.f32 %v1247_v10, %v1246_v47  ;;  %v1208_v28 = vsel %vm450_vm1, %v237_v21, 0.0  ;;  %v241_v31 = vunpack.c.l.bf16 %v6759_v19 }
  0x39   : > { %1414 = vperm.xlu1 %6261, %v6719_v25   ;;  %v6767_v23 = vadd.f32 %v1170_v15, %v1169_v2  ;;  %v1195_v26 = vrot.slane %v1194_v17, 2  ;;  %v1209_v29 = vsel %vm450_vm1, %v238_v22, 0.0  ;;  %v1282_v32 = vadd.f32 %v1281_v55, %v1280_v14 }
  0x3a   : > { %v1179_v24 = vrot.slane %v1178_v16, 1  ;;  %v1210_v38 = vadd.f32 %v1209_v29, %v1208_v28  ;;  %v1265_v41 = vrot.slane %v1264_v12, 4  ;;  %v242_v42 = vunpack.c.h.bf16 %v6759_v19 }
  0x3b   : > { %10671 = vst [vmem:[#allocation8_spill] sm:$0xff] %v6767_v23  ;;  %v1196_v35 = vadd.f32 %v1195_v26, %v1194_v17  ;;  %v1226_v43 = vsel %vm450_vm1, %v241_v31, 0.0  ;;  %v1298_v45 = vsel %vm450_vm1, %v257_v20, 0.0  ;;  %v1299_v46 = vsel %vm450_vm1, %v258_v7, 0.0  ;;  %v6802_v20 = vld [vmem:[%s6641_s29 + $0x58] sm:$0xff]   ;;  %v201_v26 = vld [vmem:[%s6641_s29 + $0xd0] sm:$0xff]  }
  0x3c   : > { %v6773_v34 = vadd.f32 %v1179_v24, %v1178_v16  ;;  %v1211_v47 = vrot.slane %v1210_v38, 4  ;;  %v1227_v50 = vsel %vm450_vm1, %v242_v42, 0.0  ;;  %v1283_v30 = vrot.slane %v1282_v32, 4 }
  0x3d   : > { %1419 = vperm.xlu1 %6261, %v6727_v33   ;;  %v1197_v44 = vrot.slane %v1196_v35, 1  ;;  %v1228_v53 = vadd.f32 %v1227_v50, %v1226_v43  ;;  %v1249_v54 = vrot.slane %v1248_v27, 2  ;;  %v1300_v57 = vadd.f32 %v1299_v46, %v1298_v45 }
  0x3e   : > { %1724 = vperm.xlu0 %6263, %v6773_v34   ;;  %v1212_v52 = vadd.f32 %v1211_v47, %v1210_v38  ;;  %6157 = vmatmul.mubr.msk.bf16.gmra.mrb[16].mxu0 %vm450_vm1, %v6776_v40  ;;  %v261_v58 = vunpack.c.l.bf16 %v197_v48  ;;  %v1266_v59 = vadd.f32 %v1265_v41, %v1264_v12  ;;  %v262_v18 = vunpack.c.h.bf16 %v197_v48  ;;  %v6818_v41 = vld [vmem:[%s6641_s29 + $0xd8] sm:$0xff]   ;;  %v205_v47 = vld [vmem:[%s6641_s29 + $0xe0] sm:$0xff]  }
  0x3f   : > { %v6788_v51 = vadd.f32 %v1197_v44, %v1196_v35  ;;  %v1229_v62 = vrot.slane %v1228_v53, 4  ;;  %v1284_v1 = vadd.f32 %v1283_v30, %v1282_v32  ;;  %v1250_v10 = vadd.f32 %v1249_v54, %v1248_v27  ;;  %6189 = vmatmul.mubr.msk.bf16.gmra.mrb[16].mxu1 %vm450_vm1, %v6796_v8  ;;  %6160 = vmatprep.mubr.msk.bf16.mxu0 %vm450_vm1, %v6731_v36 }
  0x40   : > { %v1213_v60 = vrot.slane %v1212_v52, 2  ;;  %v1316_v0 = vsel %vm450_vm1, %v261_v58, 0.0  ;;  %v1301_v14 = vrot.slane %v1300_v57, 4  ;;  %v1317_v12 = vsel %vm450_vm1, %v262_v18, 0.0  ;;  %6192 = vmatprep.mubr.msk.bf16.mxu1 %vm450_vm1, %v201_v26 }
  0x41   : > { %1424 = vperm.xlu1 %6261, %v6754_v13   ;;  %v1230_v5 = vadd.f32 %v1229_v62, %v1228_v53  ;;  %v1267_v15 = vrot.slane %v1266_v59, 2  ;;  %v1318_v55 = vadd.f32 %v1317_v12, %v1316_v0  ;;  %v1285_v21 = vrot.slane %v1284_v1, 2  ;;  %v209_v53 = vld [vmem:[%s6641_s29 + $0xf0] sm:$0xff]   ;;  %v6842_v12 = vld [vmem:[%s6641_s29 + $0x68] sm:$0xff]  }
  0x42   : > { %1732 = vperm.xlu0 %6263, %v6788_v51   ;;  %v1214_v2 = vadd.f32 %v1213_v60, %v1212_v52  ;;  %v1251_v7 = vrot.slane %v1250_v10, 1  ;;  %v1302_v27 = vadd.f32 %v1301_v14, %v1300_v57  ;;  %v265_v32 = vunpack.c.l.bf16 %v201_v26 }
  0x43   : > { %v1231_v17 = vrot.slane %v1230_v5, 2  ;;  %v1268_v28 = vadd.f32 %v1267_v15, %v1266_v59  ;;  %v1319_v31 = vrot.slane %v1318_v55, 4  ;;  %v1286_v35 = vadd.f32 %v1285_v21, %v1284_v1 }
  0x44   : > { %v1215_v16 = vrot.slane %v1214_v2, 1  ;;  %v1303_v42 = vrot.slane %v1302_v27, 2  ;;  %v266_v43 = vunpack.c.h.bf16 %v201_v26  ;;  %v1334_v44 = vsel %vm450_vm1, %v265_v32, 0.0 }
  0x45   : > { %1429 = vperm.xlu1 %6261, %v6767_v23   ;;  %v1232_v24 = vadd.f32 %v1231_v17, %v1230_v5  ;;  %v6821_v45 = vadd.f32 %v1251_v7, %v1250_v10  ;;  %v1269_v46 = vrot.slane %v1268_v28, 1  ;;  %v1320_v36 = vadd.f32 %v1319_v31, %v1318_v55 }
  0x46   : > { %v6804_v22 = vadd.f32 %v1215_v16, %v1214_v2  ;;  %6161 = vmatmul.mubr.msk.bf16.gmra.mrb[20].mxu0 %vm450_vm1, %v6802_v20  ;;  %v1335_v48 = vsel %vm450_vm1, %v266_v43, 0.0  ;;  %v213_v50 = vunpack.c.l.bf16 %v6644_v6  ;;  %v214_v30 = vunpack.c.h.bf16 %v6644_v6 }
  0x47   : > { %v1233_v29 = vrot.slane %v1232_v24, 1  ;;  %10674 = vst [vmem:[#allocation11_spill] sm:$0xff] %v6821_v45  ;;  %v1336_v52 = vadd.f32 %v1335_v48, %v1334_v44  ;;  %v1287_v54 = vrot.slane %v1286_v35, 1  ;;  %v1304_v57 = vadd.f32 %v1303_v42, %v1302_v27  ;;  %6193 = vmatmul.mubr.msk.bf16.gmra.mrb[20].mxu1 %vm450_vm1, %v6818_v41  ;;  %6164 = vmatprep.mubr.msk.bf16.mxu0 %vm450_vm1, %v6752_v9  ;;  %v179_v9 = vld [vmem:[%s6641_s29 + $0x78] sm:$0xff]  }
  0x48   : > { %10672 = vst [vmem:[#allocation9_spill] sm:$0xff] %v6804_v22  ;;  %1740 = vperm.xlu0 %6263, %v6804_v22   ;;  %v269_v58 = vunpack.c.l.bf16 %v205_v47  ;;  %v270_v59 = vunpack.c.h.bf16 %v205_v47  ;;  %v6833_v60 = vadd.f32 %v1269_v46, %v1268_v28  ;;  %v1321_v62 = vrot.slane %v1320_v36, 2  ;;  %6196 = vmatprep.mubr.msk.bf16.mxu1 %vm450_vm1, %v205_v47 }
  0x49   : > { %1434 = vperm.xlu1 %6261, %v6773_v34   ;;  %v6813_v38 = vadd.f32 %v1233_v29, %v1232_v24  ;;  %v1337_v18 = vrot.slane %v1336_v52, 4  ;;  %v273_v1 = vunpack.c.l.bf16 %v209_v53  ;;  %v1100_v2 = vsel %vm450_vm1, %v213_v50, 0.0  ;;  %v6853_v29 = vld [vmem:[%s6641_s29 + $0xe8] sm:$0xff]  }
  0x4a   : > { %10675 = vst [vmem:[#allocation12_spill] sm:$0xff] %v6833_v60  ;;  %v1352_v6 = vsel %vm450_vm1, %v269_v58, 0.0  ;;  %v1353_v0 = vsel %vm450_vm1, %v270_v59, 0.0  ;;  %v1101_v5 = vsel %vm450_vm1, %v214_v30, 0.0  ;;  %v6844_v15 = vadd.f32 %v1287_v54, %v1286_v35 }
  0x4b   : > { %10673 = vst [vmem:[#allocation10_spill] sm:$0xff] %v6813_v38  ;;  %v1338_v10 = vadd.f32 %v1337_v18, %v1336_v52  ;;  %v1354_v14 = vadd.f32 %v1353_v0, %v1352_v6  ;;  %v1305_v16 = vrot.slane %v1304_v57, 1  ;;  %v274_v17 = vunpack.c.h.bf16 %v209_v53 }
  0x4c   : > { %1748 = vperm.xlu0 %6263, %v6813_v38   ;;  %10676 = vst [vmem:[#allocation13_spill] sm:$0xff] %v6844_v15  ;;  %v1322_v55 = vadd.f32 %v1321_v62, %v1320_v36  ;;  %v1370_v26 = vsel %vm450_vm1, %v273_v1, 0.0  ;;  %v1102_v7 = vadd.f32 %v1101_v5, %v1100_v2  ;;  %v231_v18 = vunpack.c.l.bf16 %v6776_v40 }
  0x4d   : > { %1444 = vperm.xlu1 %6261, %v6788_v51   ;;  %v1339_v21 = vrot.slane %v1338_v10, 2  ;;  %v1355_v24 = vrot.slane %v1354_v14, 4  ;;  %v1371_v27 = vsel %vm450_vm1, %v274_v17, 0.0  ;;  %v6857_v32 = vadd.f32 %v1305_v16, %v1304_v57  ;;  %v6872_v57 = vld [vmem:[%s6641_s29 + $0xf8] sm:$0xff]   ;;  %s5960_s29 = sshll.u32 %s10125_s27, 4  ;;  %s10464_s29 = int_to_ptr.vmem [resolvable:$true] %s5960_s29 }
  0x4e   : > { %v1372_v31 = vadd.f32 %v1371_v27, %v1370_v26  ;;  %6165 = vmatmul.mubr.msk.bf16.gmra.mrb[24].mxu0 %vm450_vm1, %v6842_v12  ;;  %v1323_v35 = vrot.slane %v1322_v55, 1  ;;  %v1103_v44 = vrot.slane %v1102_v7, 4  ;;  %v232_v6 = vunpack.c.h.bf16 %v6776_v40  ;;  %s6487_s13 = scalar_lea.vmem %s10464_s29, 512  ;;  %p6494_p0 = scmp.lt.s32.totalorder %s10464_s29, %s6492_s7 }
  0x4f   : > { %v1356_v28 = vadd.f32 %v1355_v24, %v1354_v14  ;;  %10677 = vst [vmem:[#allocation14_spill] sm:$0xff] %v6857_v32  ;;  %v1340_v42 = vadd.f32 %v1339_v21, %v1338_v10  ;;  %6197 = vmatmul.mubr.msk.bf16.gmra.mrb[24].mxu1 %vm450_vm1, %v6853_v29  ;;  %6168 = vmatprep.mubr.msk.bf16.mxu0 %vm450_vm1, %v6759_v19  ;;  %v235_v5 = vunpack.c.l.bf16 %v6802_v20  ;;  %v236_v10 = vunpack.c.h.bf16 %v6802_v20  ;;  %p6488_p11 = scmp.ne.s32.totalorder %s10464_s29, %s6487_s13  ;;  %p6495_p1 = scmp.lt.s32.totalorder %s6493_s8, %s6487_s13 }
  0x50   : > { %1756 = vperm.xlu0 %6263, %v6821_v45   ;;  %v1373_v46 = vrot.slane %v1372_v31, 4  ;;  %v6865_v48 = vadd.f32 %v1323_v35, %v1322_v55  ;;  %v1104_v52 = vadd.f32 %v1103_v44, %v1102_v7  ;;  %6200 = vmatprep.mubr.msk.bf16.mxu1 %vm450_vm1, %v209_v53  ;;  %v1181_v53 = vsel %vm450_vm1, %v231_v18, 0.0 }
  0x51   : > { %1454 = vperm.xlu1 %6261, %v6804_v22   ;;  %v1357_v43 = vrot.slane %v1356_v28, 2  ;;  %v1341_v50 = vrot.slane %v1340_v42, 1  ;;  %v1182_v2 = vsel %vm450_vm1, %v232_v6, 0.0  ;;  %v1199_v17 = vsel %vm450_vm1, %v235_v5, 0.0  ;;  %p6489_p12 = pnand %p6488_p11, %p6619_p5  ;;  %p6496_p2 = por %p6495_p1, %p6494_p0 }
  0x52   : > { %v1374_v36 = vadd.f32 %v1373_v46, %v1372_v31  ;;  %10678 = vst [vmem:[#allocation15_spill] sm:$0xff] %v6865_v48  ;;  %v1105_v62 = vrot.slane %v1104_v52, 2  ;;  %v1183_v16 = vadd.f32 %v1182_v2, %v1181_v53  ;;  %v1200_v55 = vsel %vm450_vm1, %v236_v10, 0.0 }
  0x53   : > { %v1358_v30 = vadd.f32 %v1357_v43, %v1356_v28  ;;  %v6876_v47 = vadd.f32 %v1341_v50, %v1340_v42  ;;  %v239_v21 = vunpack.c.l.bf16 %v6842_v12  ;;  %v240_v24 = vunpack.c.h.bf16 %v6842_v12  ;;  %p6490_p13 = pneg %p6489_p12 }
  0x54   : > { %1764 = vperm.xlu0 %6263, %v6833_v60   ;;  %v1375_v54 = vrot.slane %v1374_v36, 2  ;;  %v1106_v1 = vadd.f32 %v1105_v62, %v1104_v52  ;;  %v1184_v20 = vrot.slane %v1183_v16, 4  ;;  %v1201_v7 = vadd.f32 %v1200_v55, %v1199_v17 }
  0x55   : > { %1464 = vperm.xlu1 %6261, %v6813_v38   ;;  %10679 = vst [vmem:[#allocation16_spill] sm:$0xff] %v6876_v47  ;;  %v1359_v58 = vrot.slane %v1358_v30, 1  ;;  %v1217_v27 = vsel %vm450_vm1, %v239_v21, 0.0  ;;  %v1218_v28 = vsel %vm450_vm1, %v240_v24, 0.0  ;;  %v243_v31 = vunpack.c.l.bf16 %v179_v9  ;;  %p6497_p3 = pnand %p6496_p2, %p6490_p13 }
  0x56   : > { %6169 = vmatmul.mubr.msk.bf16.gmra.mrb[28].mxu0 %vm450_vm1, %v179_v9  ;;  %v1376_v59 = vadd.f32 %v1375_v54, %v1374_v36  ;;  %v1107_v14 = vrot.slane %v1106_v1, 1  ;;  %v244_v35 = vunpack.c.h.bf16 %v179_v9  ;;  %v247_v42 = vunpack.c.l.bf16 %v6653_v11 }
  0x57   : > { %6201 = vmatmul.mubr.msk.bf16.gmra.mrb[28].mxu1 %vm450_vm1, %v6872_v57  ;;  %v6885_v19 = vadd.f32 %v1359_v58, %v1358_v30  ;;  %v248_v43 = vunpack.c.h.bf16 %v6653_v11  ;;  %v1185_v12 = vadd.f32 %v1184_v20, %v1183_v16  ;;  %v1202_v44 = vrot.slane %v1201_v7, 4 }
  0x58   : > { %1772 = vperm.xlu0 %6263, %v6844_v15   ;;  %v1377_v0 = vrot.slane %v1376_v59, 1  ;;  %v6901_v26 = vadd.f32 %v1107_v14, %v1106_v1  ;;  %v1219_v46 = vadd.f32 %v1218_v28, %v1217_v27  ;;  %v6553_v36 = vmov 2  }
  0x59   : > { %1474 = vperm.xlu1 %6261, %v6821_v45   ;;  %10680 = vst [vmem:[#allocation17_spill] sm:$0xff] %v6885_v19  ;;  %v1235_v50 = vsel %vm450_vm1, %v243_v31, 0.0  ;;  %v1236_v30 = vsel %vm450_vm1, %v244_v35, 0.0  ;;  %v1253_v9 = vsel %vm450_vm1, %v247_v42, 0.0  ;;  %v1254_v11 = vsel %vm450_vm1, %v248_v43, 0.0 }
  0x5a   : > { %v6893_v40 = vadd.f32 %v1377_v0, %v1376_v59  ;;  %10682 = vst [vmem:[#allocation19_spill] sm:$0xff] %v6901_v26  ;;  %v252_v52 = vunpack.c.h.bf16 %v6674_v37  ;;  %v1186_v54 = vrot.slane %v1185_v12, 2  ;;  %v1203_v58 = vadd.f32 %v1202_v44, %v1201_v7 }
  0x5b   : > { %v1220_v59 = vrot.slane %v1219_v46, 4  ;;  %v1237_v62 = vadd.f32 %v1236_v30, %v1235_v50  ;;  %v1255_v18 = vadd.f32 %v1254_v11, %v1253_v9  ;;  %v255_v1 = vunpack.c.l.bf16 %v6701_v61 }
  0x5c   : > { %1780 = vperm.xlu0 %6263, %v6857_v32   ;;  %10681 = vst [vmem:[#allocation18_spill] sm:$0xff] %v6893_v40  ;;  %v1272_v0 = vsel %vm450_vm1, %v252_v52, 0.0  ;;  %v256_v53 = vunpack.c.h.bf16 %v6701_v61  ;;  %v1187_v2 = vadd.f32 %v1186_v54, %v1185_v12  ;;  %v1204_v5 = vrot.slane %v1203_v58, 2 }
  0x5d   : > { %1484 = vperm.xlu1 %6261, %v6833_v60   ;;  %v1221_v10 = vadd.f32 %v1220_v59, %v1219_v46  ;;  %v1256_v14 = vrot.slane %v1255_v18, 4  ;;  %v1289_v17 = vsel %vm450_vm1, %v255_v1, 0.0  ;;  %v259_v21 = vunpack.c.l.bf16 %v6748_v63 }
  0x5e   : > { %v1290_v55 = vsel %vm450_vm1, %v256_v53, 0.0  ;;  %v260_v24 = vunpack.c.h.bf16 %v6748_v63  ;;  %v1188_v20 = vrot.slane %v1187_v2, 1  ;;  %v1205_v7 = vadd.f32 %v1204_v5, %v1203_v58 }
  0x5f   : > { %v1222_v27 = vrot.slane %v1221_v10, 2  ;;  %v1257_v28 = vadd.f32 %v1256_v14, %v1255_v18  ;;  %v1291_v35 = vadd.f32 %v1290_v55, %v1289_v17  ;;  %v1307_v42 = vsel %vm450_vm1, %v259_v21, 0.0 }
  0x60   : > { %1788 = vperm.xlu0 %6263, %v6865_v48   ;;  %v1308_v43 = vsel %vm450_vm1, %v260_v24, 0.0  ;;  %v6931_v12 = vadd.f32 %v1188_v20, %v1187_v2  ;;  %v1206_v44 = vrot.slane %v1205_v7, 1  ;;  %v263_v50 = vunpack.c.l.bf16 %v6796_v8 }
  0x61   : > { %1494 = vperm.xlu1 %6261, %v6844_v15   ;;  %v1223_v46 = vadd.f32 %v1222_v27, %v1221_v10  ;;  %v264_v30 = vunpack.c.h.bf16 %v6796_v8  ;;  %v1292_v11 = vrot.slane %v1291_v35, 4  ;;  %v1258_v52 = vrot.slane %v1257_v28, 2 }
  0x62   : > { %10683 = vst [vmem:[#allocation20_spill] sm:$0xff] %v6931_v12  ;;  %v6936_v54 = vadd.f32 %v1206_v44, %v1205_v7  ;;  %v271_v17 = vunpack.c.l.bf16 %v6853_v29  ;;  %v272_v55 = vunpack.c.h.bf16 %v6853_v29 }
  0x63   : > { %v1224_v58 = vrot.slane %v1223_v46, 1  ;;  %v1326_v18 = vsel %vm450_vm1, %v264_v30, 0.0  ;;  %v1293_v8 = vadd.f32 %v1292_v11, %v1291_v35  ;;  %v1259_v2 = vadd.f32 %v1258_v52, %v1257_v28 }
  0x64   : > { %1796 = vperm.xlu0 %6263, %v6876_v47   ;;  %10684 = vst [vmem:[#allocation21_spill] sm:$0xff] %v6936_v54  ;;  %v1361_v28 = vsel %vm450_vm1, %v271_v17, 0.0  ;;  %v275_v35 = vunpack.c.l.bf16 %v6872_v57 }
  0x65   : > { %1504 = vperm.xlu1 %6261, %v6857_v32   ;;  %v6943_v10 = vadd.f32 %v1224_v58, %v1223_v46  ;;  %v1260_v20 = vrot.slane %v1259_v2, 1 }
  0x67   : > { %10685 = vst [vmem:[#allocation22_spill] sm:$0xff] %v6943_v10  ;;  %v6957_v46 = vadd.f32 %v1260_v20, %v1259_v2 }
  0x68   : > { %1804 = vperm.xlu0 %6263, %v6885_v19  }
  0x69   : > { %1514 = vperm.xlu1 %6261, %v6865_v48  }
  0x6c   : > { %1812 = vperm.xlu0 %6263, %v6893_v40  }
  0x6d   : > { %1524 = vperm.xlu1 %6261, %v6876_v47  }
  0x70   : > { %6264 = vset.pattern.permute.xlu0 %v6553_v36 }
  0x71   : > { %1534 = vperm.xlu1 %6261, %v6885_v19   ;;  %1952 = vperm.xlu0 %6264, %v6901_v26  }
  0x75   : > { %1544 = vperm.xlu1 %6261, %v6893_v40  }
  0x79   : > { %6262 = vset.pattern.permute.xlu1 %v6552_v4  ;;  %v251_v4 = vunpack.c.l.bf16 %v6674_v37  ;;  %v1238_v37 = vrot.slane %v1237_v62, 4 }
  0x7a   : > { %1692 = vperm.xlu1 %6262, %v6901_v26  }
  0x7b   : > { %v1271_v6 = vsel %vm450_vm1, %v251_v4, 0.0  ;;  %v1239_v61 = vadd.f32 %v1238_v37, %v1237_v62  ;;  %v1309_v4 = vadd.f32 %v1308_v43, %v1307_v42  ;;  %v1325_v62 = vsel %vm450_vm1, %v263_v50, 0.0 }
  0x7c   : > { %v1273_v16 = vadd.f32 %v1272_v0, %v1271_v6  ;;  %v267_v6 = vunpack.c.l.bf16 %v6818_v41  ;;  %v268_v0 = vunpack.c.h.bf16 %v6818_v41  ;;  %v1327_v5 = vadd.f32 %v1326_v18, %v1325_v62 }
  0x7d   : > { %v1240_v63 = vrot.slane %v1239_v61, 2  ;;  %v1310_v53 = vrot.slane %v1309_v4, 4  ;;  %v1294_v41 = vrot.slane %v1293_v8, 2  ;;  %v276_v42 = vunpack.c.h.bf16 %v6872_v57 }
  0x7e   : > { %1700 = vperm.xlu1 %6262, %v6687_v49   ;;  %v1274_v31 = vrot.slane %v1273_v16, 4  ;;  %v1343_v14 = vsel %vm450_vm1, %v267_v6, 0.0  ;;  %v1328_v7 = vrot.slane %v1327_v5, 4 }
  0x7f   : > { %v1241_v59 = vadd.f32 %v1240_v63, %v1239_v61  ;;  %v1311_v24 = vadd.f32 %v1310_v53, %v1309_v4  ;;  %v1295_v29 = vadd.f32 %v1294_v41, %v1293_v8  ;;  %v1380_v11 = vsel %vm450_vm1, %v276_v42, 0.0 }
  0x80   : > { %v1275_v9 = vadd.f32 %v1274_v31, %v1273_v16  ;;  %v1344_v16 = vsel %vm450_vm1, %v268_v0, 0.0  ;;  %v1362_v31 = vsel %vm450_vm1, %v272_v55, 0.0  ;;  %v1329_v63 = vadd.f32 %v1328_v7, %v1327_v5 }
  0x81   : > { %v1242_v37 = vrot.slane %v1241_v59, 1  ;;  %v1345_v27 = vadd.f32 %v1344_v16, %v1343_v14  ;;  %v1312_v44 = vrot.slane %v1311_v24, 2  ;;  %v1363_v30 = vadd.f32 %v1362_v31, %v1361_v28 }
  0x82   : > { %1704 = vperm.xlu1 %6262, %v6695_v56   ;;  %v1276_v1 = vrot.slane %v1275_v9, 2  ;;  %v1296_v52 = vrot.slane %v1295_v29, 1 }
  0x83   : > { %v6950_v61 = vadd.f32 %v1242_v37, %v1241_v59  ;;  %v1346_v50 = vrot.slane %v1345_v27, 4  ;;  %v1313_v58 = vadd.f32 %v1312_v44, %v1311_v24  ;;  %v1330_v59 = vrot.slane %v1329_v63, 2 }
  0x84   : > { %v1277_v21 = vadd.f32 %v1276_v1, %v1275_v9  ;;  %v1379_v9 = vsel %vm450_vm1, %v275_v35, 0.0  ;;  %v1364_v62 = vrot.slane %v1363_v30, 4  ;;  %v6965_v6 = vadd.f32 %v1296_v52, %v1295_v29 }
  0x85   : > { %10686 = vst [vmem:[#allocation23_spill] sm:$0xff] %v6950_v61  ;;  %v1347_v57 = vadd.f32 %v1346_v50, %v1345_v27  ;;  %v1381_v18 = vadd.f32 %v1380_v11, %v1379_v9  ;;  %v1314_v0 = vrot.slane %v1313_v58, 1  ;;  %v1331_v1 = vadd.f32 %v1330_v59, %v1329_v63 }
  0x86   : > { %1712 = vperm.xlu1 %6262, %v6727_v33   ;;  %v1278_v43 = vrot.slane %v1277_v21, 1  ;;  %v1365_v53 = vadd.f32 %v1364_v62, %v1363_v30 }
  0x87   : > { %v1348_v8 = vrot.slane %v1347_v57, 2  ;;  %v1382_v2 = vrot.slane %v1381_v18, 4  ;;  %v6970_v37 = vadd.f32 %v1314_v0, %v1313_v58  ;;  %v1332_v14 = vrot.slane %v1331_v1, 1 }
  0x88   : > { %v6962_v4 = vadd.f32 %v1278_v43, %v1277_v21  ;;  %v1366_v17 = vrot.slane %v1365_v53, 2 }
  0x89   : > { %v1349_v16 = vadd.f32 %v1348_v8, %v1347_v57  ;;  %v1383_v55 = vadd.f32 %v1382_v2, %v1381_v18  ;;  %v6975_v41 = vadd.f32 %v1332_v14, %v1331_v1 }
  0x8a   : > { %1720 = vperm.xlu1 %6262, %v6767_v23   ;;  %v1367_v20 = vadd.f32 %v1366_v17, %v1365_v53  ;;  %v7022_v53 = vld [vmem:[%s10512_s1 + $0x19] ss:$0 sm:$0xff] }
  0x8b   : > { %v1350_v24 = vrot.slane %v1349_v16, 1  ;;  %v1384_v7 = vrot.slane %v1383_v55, 2 }
  0x8c   : > { %v1368_v28 = vrot.slane %v1367_v20, 1 }
  0x8d   : > { %v6978_v27 = vadd.f32 %v1350_v24, %v1349_v16  ;;  %v1385_v31 = vadd.f32 %v1384_v7, %v1383_v55 }
  0x8e   : > { %1728 = vperm.xlu1 %6262, %v6931_v12   ;;  %v6983_v42 = vadd.f32 %v1368_v28, %v1367_v20 }
  0x8f   : > { %10689 = vst [vmem:[#allocation26_spill] sm:$0xff] %v6978_v27  ;;  %v1386_v43 = vrot.slane %v1385_v31, 1 }
  0x90   : > { %10691 = vst [vmem:[#allocation28_spill] sm:$0xff] %v6983_v42 }
  0x91   : > { %v6988_v44 = vadd.f32 %v1386_v43, %v1385_v31 }
  0x92   : > { %1736 = vperm.xlu1 %6262, %v6936_v54  }
  0x93   : > { %10693 = vst [vmem:[#allocation30_spill] sm:$0xff] %v6988_v44 }
  0x96   : > { %1744 = vperm.xlu1 %6262, %v6943_v10  }
  0x9a   : > { %1752 = vperm.xlu1 %6262, %v6950_v61  }
  0x9e   : > { %1760 = vperm.xlu1 %6262, %v6957_v46  }
  0xa2   : > { %1768 = vperm.xlu1 %6262, %v6962_v4  }
  0xa6   : > { %1776 = vperm.xlu1 %6262, %v6965_v6  }
  0xaa   : > { %1784 = vperm.xlu1 %6262, %v6970_v37  }
  0xac   : > { %v6968_v5 = vpop.permute.xlu1 %1399 }
  0xad   : > { %10687 = vst [vmem:[#allocation24_spill] sm:$0xff] %v6968_v5 }
  0xae   : > { %1792 = vperm.xlu1 %6262, %v6975_v41  }
  0xb0   : > { %v6973_v21 = vpop.permute.xlu1 %1404 }
  0xb1   : > { %10688 = vst [vmem:[#allocation25_spill] sm:$0xff] %v6973_v21 }
  0xb2   : > { %1800 = vperm.xlu1 %6262, %v6978_v27  }
  0xb4   : > { %v6981_v35 = vpop.permute.xlu1 %1409 }
  0xb5   : > { %10690 = vst [vmem:[#allocation27_spill] sm:$0xff] %v6981_v35 }
  0xb6   : > { %1808 = vperm.xlu1 %6262, %v6983_v42  }
  0xb8   : > { %v6986_v29 = vpop.permute.xlu1 %1414 }
  0xb9   : > { %10692 = vst [vmem:[#allocation29_spill] sm:$0xff] %v6986_v29 }
  0xba   : > { %1816 = vperm.xlu1 %6262, %v6988_v44  }
  0xbc   : > { %v6991_v63 = vpop.permute.xlu1 %1419 }
  0xbd   : > { %10694 = vst [vmem:[#allocation31_spill] sm:$0xff] %v6991_v63 }
  0xbe   : > { %6265 = vset.pattern.permute.xlu1 %v6553_v36  ;;  %v7013_v36 = vld [vmem:[%s10512_s1 + $0x18] ss:$0 sm:$0xff] }
  0xbf   : > { %1956 = vperm.xlu1 %6265, %v6677_v39  }
  0xc0   : > { %v6995_v50 = vpop.permute.xlu1 %1424 }
  0xc1   : > { %10695 = vst [vmem:[#allocation32_spill] sm:$0xff] %v6995_v50 }
  0xc4   : > { %v6998_v30 = vpop.permute.xlu1 %1429 }
  0xc5   : > { %10696 = vst [vmem:[#allocation33_spill] sm:$0xff] %v6998_v30 }
  0xc8   : > { %v7000_v9 = vpop.permute.xlu1 %1434 }
  0xc9   : > { %10697 = vst [vmem:[#allocation34_spill] sm:$0xff] %v7000_v9 }
  0xcc   : > { %v7002_v11 = vpop.permute.xlu1 %1444 }
  0xcd   : > { %10698 = vst [vmem:[#allocation35_spill] sm:$0xff] %v7002_v11 }
  0xd0   : > { %v7004_v52 = vpop.permute.xlu1 %1454 }
  0xd1   : > { %10699 = vst [vmem:[#allocation36_spill] sm:$0xff] %v7004_v52 }
  0xd4   : > { %v7006_v58 = vpop.permute.xlu1 %1464 }
  0xd5   : > { %10700 = vst [vmem:[#allocation37_spill] sm:$0xff] %v7006_v58 }
  0xd8   : > { %v7008_v59 = vpop.permute.xlu1 %1474 }
  0xd9   : > { %10701 = vst [vmem:[#allocation38_spill] sm:$0xff] %v7008_v59 }
  0xdc   : > { %v7016_v0 = vpop.permute.xlu1 %1484 }
  0xdd   : > { %10702 = vst [vmem:[#allocation39_spill] sm:$0xff] %v7016_v0 }
  0xf0   : > { %v6142_v57 = vpop.f32.mrb[0].mxu0 }
  0xf1   : > { %v594_v62 = vadd.f32 %v6142_v57, %v7013_v36  ;;  %v585_v18 = vpop.f32.mrb[1].mxu0  ;;  %v6174_v14 = vpop.f32.mrb[0].mxu1 }
  0xf2   : > { %v586_v1 = vadd.f32 %v7013_v36, %v585_v18  ;;  %v6143_v8 = vpop.f32.mrb[2].mxu0  ;;  %v722_v55 = vadd.f32 %v6174_v14, %v7013_v36  ;;  %v713_v24 = vpop.f32.mrb[1].mxu1 }
  0xf3   : > { %v842_v2 = vmax.f32 %v594_v62, 0.0  ;;  %v597_v16 = vadd.f32 %v6143_v8, %v7013_v36  ;;  %v588_v17 = vpop.f32.mrb[3].mxu0  ;;  %v6175_v20 = vpop.f32.mrb[2].mxu1  ;;  %v714_v8 = vadd.f32 %v7013_v36, %v713_v24 }
  0xf4   : > { %v874_v31 = vmax.f32 %v722_v55, 0.0  ;;  %v840_v43 = vmax.f32 %v586_v1, 0.0  ;;  %v725_v57 = vadd.f32 %v6175_v20, %v7013_v36  ;;  %v716_v18 = vpop.f32.mrb[3].mxu1  ;;  %v7029_v62 = vpop.permute.xlu1 %1494 }
  0xf5   : > { %v843_v7 = vmax.f32 %v597_v16, 0.0  ;;  %v910_v28 = vmul.f32 %v7022_v53, %v842_v2  ;;  %10703 = vst [vmem:[#allocation40_spill] sm:$0xff] %v7029_v62  ;;  %v717_v16 = vadd.f32 %v7013_v36, %v716_v18 }
  0xf6   : > { %v942_v59 = vmul.f32 %v7022_v53, %v874_v31  ;;  %v875_v0 = vmax.f32 %v725_v57, 0.0  ;;  %v908_v1 = vmul.f32 %v7022_v53, %v840_v43 }
  0xf7   : > { %976 = vadd.xlane.f32.xlu1 %v910_v28  ;;  %v911_v3 = vmul.f32 %v7022_v53, %v843_v7  ;;  %v872_v7 = vmax.f32 %v714_v8, 0.0  ;;  %v589_v28 = vadd.f32 %v7013_v36, %v588_v17  ;;  %v873_v62 = vmax.f32 %v717_v16, 0.0 }
  0xf8   : > { %v6146_v14 = vpop.f32.mrb[4].mxu0  ;;  %1040 = vadd.xlane.f32.xlu0 %v942_v59  ;;  %v943_v24 = vmul.f32 %v7022_v53, %v875_v0  ;;  %v7038_v31 = vpop.permute.xlu1 %1504 }
  0xf9   : > { %v601_v9 = vpop.f32.mrb[5].mxu0  ;;  %10704 = vst [vmem:[#allocation41_spill] sm:$0xff] %v7038_v31  ;;  %v610_v57 = vadd.f32 %v6146_v14, %v7013_v36  ;;  %v841_v59 = vmax.f32 %v589_v28, 0.0  ;;  %v940_v43 = vmul.f32 %v7022_v53, %v872_v7 }
  0xfa   : > { %v6147_v2 = vpop.f32.mrb[6].mxu0 }
  0xfb   : > { %978 = vadd.xlane.f32.xlu1 %v911_v3  ;;  %v613_v55 = vadd.f32 %v6147_v2, %v7013_v36  ;;  %v604_v20 = vpop.f32.mrb[7].mxu0  ;;  %v6178_v3 = vpop.f32.mrb[4].mxu1  ;;  %v941_v2 = vmul.f32 %v7022_v53, %v873_v62  ;;  %v846_v8 = vmax.f32 %v610_v57, 0.0  ;;  %v909_v28 = vmul.f32 %v7022_v53, %v841_v59 }
  0xfc   : > { %972 = vadd.xlane.f32.xlu0 %v908_v1  ;;  %v729_v58 = vpop.f32.mrb[5].mxu1  ;;  %v738_v17 = vadd.f32 %v6178_v3, %v7013_v36  ;;  %v605_v7 = vadd.f32 %v7013_v36, %v604_v20 }
  0xfd   : > { %v847_v18 = vmax.f32 %v613_v55, 0.0  ;;  %v6179_v16 = vpop.f32.mrb[6].mxu1  ;;  %v7046_v55 = vpop.permute.xlu1 %1514  ;;  %v914_v57 = vmul.f32 %v7022_v53, %v846_v8 }
  0xfe   : > { %v741_v0 = vadd.f32 %v6179_v16, %v7013_v36  ;;  %v732_v1 = vpop.f32.mrb[7].mxu1  ;;  %10705 = vst [vmem:[#allocation42_spill] sm:$0xff] %v7046_v55  ;;  %v878_v62 = vmax.f32 %v738_v17, 0.0  ;;  %v602_v16 = vadd.f32 %v7013_v36, %v601_v9  ;;  %v845_v52 = vmax.f32 %v605_v7, 0.0 }
  0xff   : > { %1042 = vadd.xlane.f32.xlu1 %v943_v24  ;;  %v915_v14 = vmul.f32 %v7022_v53, %v847_v18  ;;  %v733_v55 = vadd.f32 %v7013_v36, %v732_v1 }
 0x100   : > { %1036 = vadd.xlane.f32.xlu0 %v940_v43  ;;  %v879_v24 = vmax.f32 %v741_v0, 0.0  ;;  %v946_v20 = vmul.f32 %v7022_v53, %v878_v62  ;;  %v913_v9 = vmul.f32 %v7022_v53, %v845_v52 }
 0x101   : > { %v6150_v31 = vpop.f32.mrb[8].mxu0  ;;  %v7054_v59 = vpop.permute.xlu1 %1524  ;;  %v877_v11 = vmax.f32 %v733_v55, 0.0 }
 0x102   : > { %v617_v43 = vpop.f32.mrb[9].mxu0  ;;  %v947_v3 = vmul.f32 %v7022_v53, %v879_v24  ;;  %10706 = vst [vmem:[#allocation43_spill] sm:$0xff] %v7054_v59  ;;  %v6182_v17 = vpop.f32.mrb[8].mxu1  ;;  %v626_v1 = vadd.f32 %v6150_v31, %v7013_v36 }
 0x103   : > { %1038 = vadd.xlane.f32.xlu1 %v941_v2  ;;  %v6151_v2 = vpop.f32.mrb[10].mxu0  ;;  %v745_v0 = vpop.f32.mrb[9].mxu1  ;;  %v754_v55 = vadd.f32 %v6182_v17, %v7013_v36 }
 0x104   : > { %974 = vadd.xlane.f32.xlu0 %v909_v28  ;;  %v620_v18 = vpop.f32.mrb[11].mxu0  ;;  %v629_v8 = vadd.f32 %v6151_v2, %v7013_v36  ;;  %v730_v28 = vadd.f32 %v7013_v36, %v729_v58  ;;  %v6183_v24 = vpop.f32.mrb[10].mxu1  ;;  %v850_v58 = vmax.f32 %v626_v1, 0.0 }
 0x105   : > { %v748_v7 = vpop.f32.mrb[11].mxu1  ;;  %v757_v62 = vadd.f32 %v6183_v24, %v7013_v36 }
 0x106   : > { %v851_v59 = vmax.f32 %v629_v8, 0.0  ;;  %v621_v8 = vadd.f32 %v7013_v36, %v620_v18 }
 0x107   : > { %986 = vadd.xlane.f32.xlu1 %v915_v14  ;;  %v844_v14 = vmax.f32 %v602_v16, 0.0  ;;  %v945_v16 = vmul.f32 %v7022_v53, %v877_v11  ;;  %v883_v52 = vmax.f32 %v757_v62, 0.0  ;;  %v618_v62 = vadd.f32 %v7013_v36, %v617_v43 }
 0x108   : > { %984 = vadd.xlane.f32.xlu0 %v914_v57  ;;  %v7062_v57 = vpop.permute.xlu1 %1534 }
 0x109   : > { %10707 = vst [vmem:[#allocation44_spill] sm:$0xff] %v7062_v57  ;;  %v912_v2 = vmul.f32 %v7022_v53, %v844_v14  ;;  %v6154_v24 = vpop.f32.mrb[12].mxu0  ;;  %v918_v14 = vmul.f32 %v7022_v53, %v850_v58  ;;  %v951_v1 = vmul.f32 %v7022_v53, %v883_v52  ;;  %v848_v58 = vmax.f32 %v618_v62, 0.0 }
 0x10a   : > { %v633_v11 = vpop.f32.mrb[13].mxu0 }
 0x10b   : > { %1050 = vadd.xlane.f32.xlu1 %v947_v3  ;;  %v876_v3 = vmax.f32 %v730_v28, 0.0  ;;  %v882_v28 = vmax.f32 %v754_v55, 0.0  ;;  %v6155_v17 = vpop.f32.mrb[14].mxu0  ;;  %v916_v57 = vmul.f32 %v7022_v53, %v848_v58 }
 0x10c   : > { %1048 = vadd.xlane.f32.xlu0 %v946_v20  ;;  %v919_v20 = vmul.f32 %v7022_v53, %v851_v59  ;;  %v849_v59 = vmax.f32 %v621_v8, 0.0  ;;  %v642_v8 = vadd.f32 %v6154_v24, %v7013_v36 }
 0x10d   : > { %v944_v31 = vmul.f32 %v7022_v53, %v876_v3  ;;  %v749_v3 = vadd.f32 %v7013_v36, %v748_v7  ;;  %v950_v18 = vmul.f32 %v7022_v53, %v882_v28 }
 0x10f   : > { %982 = vadd.xlane.f32.xlu1 %v913_v9  ;;  %v7070_v9 = vpop.permute.xlu1 %1544  ;;  %v881_v52 = vmax.f32 %v749_v3, 0.0  ;;  %v854_v3 = vmax.f32 %v642_v8, 0.0 }
 0x110   : > { %980 = vadd.xlane.f32.xlu0 %v912_v2  ;;  %10708 = vst [vmem:[#allocation45_spill] sm:$0xff] %v7070_v9  ;;  %v636_v2 = vpop.f32.mrb[15].mxu0  ;;  %v917_v9 = vmul.f32 %v7022_v53, %v849_v59 }
 0x111   : > { %v949_v62 = vmul.f32 %v7022_v53, %v881_v52  ;;  %v922_v58 = vmul.f32 %v7022_v53, %v854_v3 }
 0x113   : > { %1046 = vadd.xlane.f32.xlu1 %v945_v16  ;;  %v645_v16 = vadd.f32 %v6155_v17, %v7013_v36  ;;  %v7078_v55 = vpop.permute.xlu1 %1692 }
 0x114   : > { %1044 = vadd.xlane.f32.xlu0 %v944_v31  ;;  %10709 = vst [vmem:[#allocation46_spill] sm:$0xff] %v7078_v55  ;;  %v6186_v31 = vpop.f32.mrb[12].mxu1 }
 0x115   : > { %v761_v43 = vpop.f32.mrb[13].mxu1  ;;  %v770_v59 = vadd.f32 %v6186_v31, %v7013_v36 }
 0x116   : > { %v6187_v7 = vpop.f32.mrb[14].mxu1 }
 0x117   : > { %994 = vadd.xlane.f32.xlu1 %v919_v20  ;;  %v746_v20 = vadd.f32 %v7013_v36, %v745_v0  ;;  %v773_v28 = vadd.f32 %v6187_v7, %v7013_v36  ;;  %v7086_v0 = vpop.permute.xlu1 %1700  ;;  %v637_v7 = vadd.f32 %v7013_v36, %v636_v2  ;;  %v886_v55 = vmax.f32 %v770_v59, 0.0 }
 0x118   : > { %992 = vadd.xlane.f32.xlu0 %v918_v14  ;;  %v855_v14 = vmax.f32 %v645_v16, 0.0  ;;  %10710 = vst [vmem:[#allocation47_spill] sm:$0xff] %v7086_v0  ;;  %v6158_v16 = vpop.f32.mrb[16].mxu0 }
 0x119   : > { %v880_v17 = vmax.f32 %v746_v20, 0.0  ;;  %v887_v24 = vmax.f32 %v773_v28, 0.0  ;;  %v649_v20 = vpop.f32.mrb[17].mxu0  ;;  %v853_v28 = vmax.f32 %v637_v7, 0.0  ;;  %v954_v2 = vmul.f32 %v7022_v53, %v886_v55 }
 0x11a   : > { %v6159_v52 = vpop.f32.mrb[18].mxu0 }
 0x11b   : > { %1058 = vadd.xlane.f32.xlu1 %v951_v1  ;;  %v764_v1 = vpop.f32.mrb[15].mxu1  ;;  %v955_v8 = vmul.f32 %v7022_v53, %v887_v24  ;;  %v7094_v31 = vpop.permute.xlu1 %1704  ;;  %v661_v3 = vadd.f32 %v6159_v52, %v7013_v36  ;;  %v762_v24 = vadd.f32 %v7013_v36, %v761_v43 }
 0x11c   : > { %1056 = vadd.xlane.f32.xlu0 %v950_v18  ;;  %v923_v18 = vmul.f32 %v7022_v53, %v855_v14  ;;  %10711 = vst [vmem:[#allocation48_spill] sm:$0xff] %v7094_v31  ;;  %v634_v14 = vadd.f32 %v7013_v36, %v633_v11 }
 0x11d   : > { %v859_v55 = vmax.f32 %v661_v3, 0.0 }
 0x11e   : > { %v852_v59 = vmax.f32 %v634_v14, 0.0  ;;  %v884_v14 = vmax.f32 %v762_v24, 0.0 }
 0x11f   : > { %990 = vadd.xlane.f32.xlu1 %v917_v9  ;;  %v948_v9 = vmul.f32 %v7022_v53, %v880_v17  ;;  %v765_v17 = vadd.f32 %v7013_v36, %v764_v1  ;;  %v7104_v11 = vpop.permute.xlu1 %1712  ;;  %v658_v1 = vadd.f32 %v6158_v16, %v7013_v36 }
 0x120   : > { %988 = vadd.xlane.f32.xlu0 %v916_v57  ;;  %v652_v57 = vpop.f32.mrb[19].mxu0  ;;  %10713 = vst [vmem:[#allocation50_spill] sm:$0xff] %v7104_v11  ;;  %v920_v43 = vmul.f32 %v7022_v53, %v852_v59  ;;  %v952_v59 = vmul.f32 %v7022_v53, %v884_v14 }
 0x121   : > { %v885_v31 = vmax.f32 %v765_v17, 0.0  ;;  %v6162_v52 = vpop.f32.mrb[20].mxu0  ;;  %v653_v63 = vadd.f32 %v7013_v36, %v652_v57 }
 0x122   : > { %v7109_v30 = vpop.f32.mrb[21].mxu0 }
 0x123   : > { %1054 = vadd.xlane.f32.xlu1 %v949_v62  ;;  %v7099_v62 = vpop.permute.xlu0 %1696  ;;  %v953_v17 = vmul.f32 %v7022_v53, %v885_v31  ;;  %v6163_v11 = vpop.f32.mrb[22].mxu0 }
 0x124   : > { %1052 = vadd.xlane.f32.xlu0 %v948_v9  ;;  %10712 = vst [vmem:[#allocation49_spill] sm:$0xff] %v7099_v62  ;;  %v921_v9 = vmul.f32 %v7022_v53, %v853_v28  ;;  %v668_v3 = vpop.f32.mrb[23].mxu0  ;;  %v7116_v50 = vpop.permute.xlu1 %1720 }
 0x125   : > { %10715 = vst [vmem:[#allocation52_spill] sm:$0xff] %v7116_v50  ;;  %v857_v50 = vmax.f32 %v653_v63, 0.0 }
 0x127   : > { %1002 = vadd.xlane.f32.xlu1 %v923_v18  ;;  %v6190_v18 = vpop.f32.mrb[16].mxu1  ;;  %v7111_v28 = vpop.permute.xlu0 %1708 }
 0x128   : > { %1000 = vadd.xlane.f32.xlu0 %v922_v58  ;;  %v777_v0 = vpop.f32.mrb[17].mxu1  ;;  %10714 = vst [vmem:[#allocation51_spill] sm:$0xff] %v7111_v28  ;;  %v786_v16 = vadd.f32 %v6190_v18, %v7013_v36  ;;  %v7128_v29 = vpop.permute.xlu1 %1728 }
 0x129   : > { %v6191_v7 = vpop.f32.mrb[18].mxu1  ;;  %10717 = vst [vmem:[#allocation54_spill] sm:$0xff] %v7128_v29 }
 0x12a   : > { %v789_v58 = vadd.f32 %v6191_v7, %v7013_v36  ;;  %v890_v31 = vmax.f32 %v786_v16, 0.0 }
 0x12b   : > { %1066 = vadd.xlane.f32.xlu1 %v955_v8  ;;  %v780_v8 = vpop.f32.mrb[19].mxu1  ;;  %v7123_v18 = vpop.permute.xlu0 %1716 }
 0x12c   : > { %1064 = vadd.xlane.f32.xlu0 %v954_v2  ;;  %v858_v2 = vmax.f32 %v658_v1, 0.0  ;;  %v891_v7 = vmax.f32 %v789_v58, 0.0  ;;  %v6194_v24 = vpop.f32.mrb[20].mxu1  ;;  %10716 = vst [vmem:[#allocation53_spill] sm:$0xff] %v7123_v18  ;;  %v781_v14 = vadd.f32 %v7013_v36, %v780_v8  ;;  %v958_v57 = vmul.f32 %v7022_v53, %v890_v31  ;;  %v6166_v18 = vpop.f32.mrb[24].mxu0 }
 0x12d   : > { %v7120_v28 = vpop.f32.mrb[21].mxu1  ;;  %v7136_v63 = vpop.f32.mrb[25].mxu0  ;;  %v674_v8 = vadd.f32 %v6162_v52, %v7013_v36  ;;  %v802_v52 = vadd.f32 %v6194_v24, %v7013_v36 }
 0x12e   : > { %v926_v1 = vmul.f32 %v7022_v53, %v858_v2  ;;  %v677_v2 = vadd.f32 %v6163_v11, %v7013_v36 }
 0x12f   : > { %998 = vadd.xlane.f32.xlu1 %v921_v9  ;;  %v927_v9 = vmul.f32 %v7022_v53, %v859_v55  ;;  %v959_v55 = vmul.f32 %v7022_v53, %v891_v7  ;;  %v7133_v7 = vpop.permute.xlu0 %1724 }
 0x130   : > { %996 = vadd.xlane.f32.xlu0 %v920_v43  ;;  %v6195_v43 = vpop.f32.mrb[22].mxu1  ;;  %10718 = vst [vmem:[#allocation55_spill] sm:$0xff] %v7133_v7  ;;  %v863_v29 = vmax.f32 %v677_v2, 0.0 }
 0x131   : > { %v796_v58 = vpop.f32.mrb[23].mxu1  ;;  %v805_v31 = vadd.f32 %v6195_v43, %v7013_v36 }
 0x132   : > { %v6198_v7 = vpop.f32.mrb[24].mxu1  ;;  %v931_v43 = vmul.f32 %v7022_v53, %v863_v29 }
 0x133   : > { %1062 = vadd.xlane.f32.xlu1 %v953_v17  ;;  %v650_v17 = vadd.f32 %v7013_v36, %v649_v20  ;;  %v889_v20 = vmax.f32 %v781_v14, 0.0  ;;  %v7146_v14 = vpop.f32.mrb[25].mxu1  ;;  %v895_v62 = vmax.f32 %v805_v31, 0.0 }
 0x134   : > { %1060 = vadd.xlane.f32.xlu0 %v952_v59  ;;  %v778_v59 = vadd.f32 %v7013_v36, %v777_v0  ;;  %v6199_v2 = vpop.f32.mrb[26].mxu1 }
 0x135   : > { %v856_v16 = vmax.f32 %v650_v17, 0.0  ;;  %v963_v29 = vmul.f32 %v7022_v53, %v895_v62 }
 0x136   : > { %v888_v0 = vmax.f32 %v778_v59, 0.0 }
 0x137   : > { %1010 = vadd.xlane.f32.xlu1 %v927_v9  ;;  %v925_v9 = vmul.f32 %v7022_v53, %v857_v50  ;;  %v924_v17 = vmul.f32 %v7022_v53, %v856_v16  ;;  %v957_v50 = vmul.f32 %v7022_v53, %v889_v20  ;;  %v669_v20 = vadd.f32 %v7013_v36, %v668_v3 }
 0x138   : > { %1008 = vadd.xlane.f32.xlu0 %v926_v1  ;;  %v6167_v1 = vpop.f32.mrb[26].mxu0  ;;  %v956_v59 = vmul.f32 %v7022_v53, %v888_v0  ;;  %v666_v0 = vadd.f32 %v7013_v36, %v7109_v30 }
 0x139   : > { %v7140_v11 = vpop.f32.mrb[27].mxu0  ;;  %v861_v21 = vmax.f32 %v669_v20, 0.0  ;;  %v693_v62 = vadd.f32 %v6167_v1, %v7013_v36  ;;  %v821_v1 = vadd.f32 %v6199_v2, %v7013_v36 }
 0x13a   : > { %v7153_v16 = vpop.f32.mrb[28].mxu0  ;;  %v860_v30 = vmax.f32 %v666_v0, 0.0  ;;  %v685_v2 = vadd.f32 %v7013_v36, %v7140_v11 }
 0x13b   : > { %1074 = vadd.xlane.f32.xlu1 %v959_v55  ;;  %v7142_v55 = vpop.permute.xlu1 %1736  ;;  %v7156_v35 = vpop.f32.mrb[29].mxu0  ;;  %v929_v20 = vmul.f32 %v7022_v53, %v861_v21  ;;  %v818_v21 = vadd.f32 %v6198_v7, %v7013_v36  ;;  %v682_v7 = vadd.f32 %v7013_v36, %v7136_v63  ;;  %v706_v63 = vadd.f32 %v7153_v16, %v7013_v36 }
 0x13c   : > { %1072 = vadd.xlane.f32.xlu0 %v958_v57  ;;  %10719 = vst [vmem:[#allocation56_spill] sm:$0xff] %v7142_v55  ;;  %v862_v57 = vmax.f32 %v674_v8, 0.0  ;;  %v812_v55 = vpop.f32.mrb[27].mxu1  ;;  %v928_v44 = vmul.f32 %v7022_v53, %v860_v30 }
 0x13e   : > { %v930_v24 = vmul.f32 %v7022_v53, %v862_v57 }
 0x13f   : > { %1006 = vadd.xlane.f32.xlu1 %v925_v9  ;;  %v7149_v9 = vpop.permute.xlu0 %1732  ;;  %v7158_v8 = vpop.permute.xlu1 %1744 }
 0x140   : > { %1004 = vadd.xlane.f32.xlu0 %v924_v17  ;;  %10720 = vst [vmem:[#allocation57_spill] sm:$0xff] %v7149_v9  ;;  %10721 = vst [vmem:[#allocation58_spill] sm:$0xff] %v7158_v8  ;;  %v894_v17 = vmax.f32 %v802_v52, 0.0  ;;  %v6171_v9 = vpop.f32.mrb[30].mxu0  ;;  %v797_v8 = vadd.f32 %v7013_v36, %v796_v58 }
 0x141   : > { %v7162_v31 = vpop.f32.mrb[31].mxu0  ;;  %v709_v11 = vadd.f32 %v6171_v9, %v7013_v36 }
 0x142   : > { %v962_v57 = vmul.f32 %v7022_v53, %v894_v17  ;;  %v893_v58 = vmax.f32 %v797_v8, 0.0  ;;  %v867_v17 = vmax.f32 %v693_v62, 0.0 }
 0x143   : > { %1070 = vadd.xlane.f32.xlu1 %v957_v50  ;;  %v7166_v50 = vpop.f32.mrb[28].mxu1  ;;  %v7168_v3 = vpop.permute.xlu0 %1740 }
 0x144   : > { %1068 = vadd.xlane.f32.xlu0 %v956_v59  ;;  %10722 = vst [vmem:[#allocation59_spill] sm:$0xff] %v7168_v3  ;;  %v7171_v52 = vpop.f32.mrb[29].mxu1  ;;  %v7177_v5 = vpop.permute.xlu1 %1752  ;;  %v794_v3 = vadd.f32 %v7013_v36, %v7120_v28  ;;  %v961_v0 = vmul.f32 %v7022_v53, %v893_v58  ;;  %v935_v8 = vmul.f32 %v7022_v53, %v867_v17  ;;  %v865_v58 = vmax.f32 %v685_v2, 0.0 }
 0x145   : > { %v6203_v59 = vpop.f32.mrb[30].mxu1  ;;  %10723 = vst [vmem:[#allocation60_spill] sm:$0xff] %v7177_v5 }
 0x147   : > { %1018 = vadd.xlane.f32.xlu1 %v931_v43  ;;  %v7175_v43 = vpop.f32.mrb[31].mxu1  ;;  %v7183_v39 = vpop.permute.xlu0 %1748 }
 0x148   : > { %1016 = vadd.xlane.f32.xlu0 %v930_v24  ;;  %v690_v24 = vadd.f32 %v6166_v18, %v7013_v36  ;;  %v7188_v5 = vpop.permute.xlu1 %1760  ;;  %v899_v18 = vmax.f32 %v821_v1, 0.0 }
 0x14a   : > { %v866_v28 = vmax.f32 %v690_v24, 0.0  ;;  %v813_v24 = vadd.f32 %v7013_v36, %v812_v55  ;;  %v871_v55 = vmax.f32 %v709_v11, 0.0 }
 0x14b   : > { %1082 = vadd.xlane.f32.xlu1 %v963_v29  ;;  %v892_v29 = vmax.f32 %v794_v3, 0.0  ;;  %v7193_v62 = vpop.permute.xlu0 %1756  ;;  %v898_v3 = vmax.f32 %v818_v21, 0.0 }
 0x14c   : > { %1080 = vadd.xlane.f32.xlu0 %v962_v57  ;;  %v934_v30 = vmul.f32 %v7022_v53, %v866_v28  ;;  %v933_v28 = vmul.f32 %v7022_v53, %v865_v58  ;;  %v897_v21 = vmax.f32 %v813_v24, 0.0  ;;  %v701_v58 = vadd.f32 %v7013_v36, %v7162_v31 }
 0x14d   : > { %v960_v57 = vmul.f32 %v7022_v53, %v892_v29  ;;  %v966_v17 = vmul.f32 %v7022_v53, %v898_v3  ;;  %v864_v29 = vmax.f32 %v682_v7, 0.0  ;;  %v870_v3 = vmax.f32 %v706_v63, 0.0 }
 0x14f   : > { %1014 = vadd.xlane.f32.xlu1 %v929_v20  ;;  %v967_v20 = vmul.f32 %v7022_v53, %v899_v18  ;;  %v7205_v1 = vpop.permute.xlu0 %1764  ;;  %v837_v18 = vadd.f32 %v6203_v59, %v7013_v36  ;;  %v932_v9 = vmul.f32 %v7022_v53, %v864_v29 }
 0x150   : > { %1012 = vadd.xlane.f32.xlu0 %v928_v44  ;;  %v7199_v44 = vpop.permute.xlu1 %1768 }
 0x151   : > { %v903_v7 = vmax.f32 %v837_v18, 0.0 }
 0x153   : > { %1078 = vadd.xlane.f32.xlu1 %v961_v0  ;;  %v810_v0 = vadd.f32 %v7013_v36, %v7146_v14  ;;  %v7217_v2 = vpop.permute.xlu0 %1772  ;;  %v965_v14 = vmul.f32 %v7022_v53, %v897_v21  ;;  %v971_v29 = vmul.f32 %v7022_v53, %v903_v7 }
 0x154   : > { %1076 = vadd.xlane.f32.xlu0 %v960_v57 }
 0x155   : > { %v896_v57 = vmax.f32 %v810_v0, 0.0  ;;  %v869_v0 = vmax.f32 %v701_v58, 0.0 }
 0x157   : > { %1026 = vadd.xlane.f32.xlu1 %v935_v8  ;;  %v7211_v8 = vpop.permute.xlu1 %1776  ;;  %v964_v59 = vmul.f32 %v7022_v53, %v896_v57  ;;  %v7229_v11 = vpop.permute.xlu0 %1780  ;;  %v937_v57 = vmul.f32 %v7022_v53, %v869_v0 }
 0x158   : > { %1024 = vadd.xlane.f32.xlu0 %v934_v30  ;;  %v834_v30 = vadd.f32 %v7166_v50, %v7013_v36  ;;  %v698_v50 = vadd.f32 %v7013_v36, %v7156_v35 }
 0x15a   : > { %v902_v24 = vmax.f32 %v834_v30, 0.0  ;;  %v868_v63 = vmax.f32 %v698_v50, 0.0 }
 0x15b   : > { %1090 = vadd.xlane.f32.xlu1 %v967_v20  ;;  %v939_v20 = vmul.f32 %v7022_v53, %v871_v55  ;;  %v7223_v16 = vpop.permute.xlu1 %1784  ;;  %v826_v55 = vadd.f32 %v7013_v36, %v7171_v52  ;;  %v7241_v18 = vpop.permute.xlu0 %1788 }
 0x15c   : > { %1088 = vadd.xlane.f32.xlu0 %v966_v17  ;;  %v938_v17 = vmul.f32 %v7022_v53, %v870_v3  ;;  %v970_v31 = vmul.f32 %v7022_v53, %v902_v24 }
 0x15f   : > { %1022 = vadd.xlane.f32.xlu1 %v933_v28  ;;  %v829_v28 = vadd.f32 %v7013_v36, %v7175_v43  ;;  %v7236_v21 = vpop.permute.xlu1 %1792  ;;  %v900_v43 = vmax.f32 %v826_v55, 0.0  ;;  %v7248_v30 = vpop.permute.xlu0 %1796 }
 0x160   : > { %1020 = vadd.xlane.f32.xlu0 %v932_v9 }
 0x161   : > { %v901_v9 = vmax.f32 %v829_v28, 0.0  ;;  %v968_v36 = vmul.f32 %v7022_v53, %v900_v43 }
 0x163   : > { %1086 = vadd.xlane.f32.xlu1 %v965_v14  ;;  %v7244_v35 = vpop.permute.xlu1 %1800  ;;  %v936_v14 = vmul.f32 %v7022_v53, %v868_v63  ;;  %v969_v3 = vmul.f32 %v7022_v53, %v901_v9 }
 0x164   : > { %1084 = vadd.xlane.f32.xlu0 %v964_v59 }
 0x167   : > { %1034 = vadd.xlane.f32.xlu1 %v939_v20  ;;  %v7251_v52 = vpop.permute.xlu1 %1808  ;;  %v7253_v20 = vpop.permute.xlu0 %1804 }
 0x168   : > { %1032 = vadd.xlane.f32.xlu0 %v938_v17  ;;  %10724 = vst [vmem:[#allocation61_spill] sm:$0xff] %v7251_v52 }
 0x16b   : > { %1098 = vadd.xlane.f32.xlu1 %v971_v29  ;;  %v7255_v7 = vpop.permute.xlu1 %1816  ;;  %v7257_v59 = vpop.permute.xlu0 %1812 }
 0x16c   : > { %1096 = vadd.xlane.f32.xlu0 %v970_v31  ;;  %10725 = vst [vmem:[#allocation62_spill] sm:$0xff] %v7255_v7 }
 0x16f   : > { %1030 = vadd.xlane.f32.xlu1 %v937_v57  ;;  %v7259_v58 = vpop.permute.xlu1 %1956  ;;  %v7261_v24 = vpop.permute.xlu0 %1952 }
 0x170   : > { %1028 = vadd.xlane.f32.xlu0 %v936_v14  ;;  %10726 = vst [vmem:[#allocation63_spill] sm:$0xff] %v7259_v58 }
 0x173   : > { %1094 = vadd.xlane.f32.xlu1 %v969_v3 }
 0x174   : > { %1092 = vadd.xlane.f32.xlu0 %v968_v36 }
 0x184   : > { %1960 = vperm.xlu1 %6265, %v6687_v49   ;;  %v7264_v17 = vpop.xlane.xlu1 %976 }
 0x185   : > { %10727 = vst [vmem:[#allocation64_spill] sm:$0xff] %v7264_v17  ;;  %v7266_v29 = vpop.xlane.xlu0 %1040 }
 0x186   : > { %10728 = vst [vmem:[#allocation65_spill] sm:$0xff] %v7266_v29 }
 0x188   : > { %1968 = vperm.xlu1 %6265, %v6719_v25   ;;  %v7269_v53 = vpop.xlane.xlu1 %978 }
 0x189   : > { %10729 = vst [vmem:[#allocation66_spill] sm:$0xff] %v7269_v53  ;;  %v7271_v50 = vpop.xlane.xlu0 %972 }
 0x18a   : > { %10730 = vst [vmem:[#allocation67_spill] sm:$0xff] %v7271_v50  ;;  %1964 = vperm.xlu0 %6264, %v6695_v56  }
 0x18c   : > { %1976 = vperm.xlu1 %6265, %v6754_v13   ;;  %v7275_v0 = vpop.xlane.xlu1 %1042 }
 0x18d   : > { %10731 = vst [vmem:[#allocation68_spill] sm:$0xff] %v7275_v0  ;;  %v7277_v28 = vpop.xlane.xlu0 %1036 }
 0x18e   : > { %10732 = vst [vmem:[#allocation69_spill] sm:$0xff] %v7277_v28  ;;  %1972 = vperm.xlu0 %6264, %v6727_v33  }
 0x190   : > { %1984 = vperm.xlu1 %6265, %v6773_v34   ;;  %v7281_v31 = vpop.xlane.xlu1 %1038 }
 0x191   : > { %10733 = vst [vmem:[#allocation70_spill] sm:$0xff] %v7281_v31  ;;  %v7283_v63 = vpop.xlane.xlu0 %974 }
 0x192   : > { %10734 = vst [vmem:[#allocation71_spill] sm:$0xff] %v7283_v63  ;;  %1980 = vperm.xlu0 %6264, %v6767_v23  }
 0x194   : > { %1992 = vperm.xlu1 %6265, %v6788_v51   ;;  %v7287_v55 = vpop.xlane.xlu1 %986 }
 0x195   : > { %10735 = vst [vmem:[#allocation72_spill] sm:$0xff] %v7287_v55  ;;  %v7289_v57 = vpop.xlane.xlu0 %984 }
 0x196   : > { %10736 = vst [vmem:[#allocation73_spill] sm:$0xff] %v7289_v57  ;;  %1988 = vperm.xlu0 %6264, %v6931_v12  }
 0x198   : > { %2000 = vperm.xlu1 %6265, %v6804_v22   ;;  %v7293_v9 = vpop.xlane.xlu1 %1050 }
 0x199   : > { %10737 = vst [vmem:[#allocation74_spill] sm:$0xff] %v7293_v9  ;;  %v7295_v43 = vpop.xlane.xlu0 %1048 }
 0x19a   : > { %10738 = vst [vmem:[#allocation75_spill] sm:$0xff] %v7295_v43  ;;  %1996 = vperm.xlu0 %6264, %v6936_v54  }
 0x19c   : > { %2008 = vperm.xlu1 %6265, %v6813_v38   ;;  %v7299_v14 = vpop.xlane.xlu1 %982 }
 0x19d   : > { %10739 = vst [vmem:[#allocation76_spill] sm:$0xff] %v7299_v14  ;;  %v7301_v3 = vpop.xlane.xlu0 %980 }
 0x19e   : > { %10740 = vst [vmem:[#allocation77_spill] sm:$0xff] %v7301_v3  ;;  %2004 = vperm.xlu0 %6264, %v6943_v10  }
 0x1a0   : > { %2016 = vperm.xlu1 %6265, %v6821_v45   ;;  %v7305_v36 = vpop.xlane.xlu1 %1046 }
 0x1a1   : > { %10741 = vst [vmem:[#allocation78_spill] sm:$0xff] %v7305_v36  ;;  %v7307_v58 = vpop.xlane.xlu0 %1044 }
 0x1a2   : > { %10742 = vst [vmem:[#allocation79_spill] sm:$0xff] %v7307_v58  ;;  %2012 = vperm.xlu0 %6264, %v6950_v61  }
 0x1a4   : > { %2024 = vperm.xlu1 %6265, %v6833_v60   ;;  %v7311_v7 = vpop.xlane.xlu1 %994 }
 0x1a5   : > { %10743 = vst [vmem:[#allocation80_spill] sm:$0xff] %v7311_v7  ;;  %v7313_v52 = vpop.xlane.xlu0 %992 }
 0x1a6   : > { %10744 = vst [vmem:[#allocation81_spill] sm:$0xff] %v7313_v52  ;;  %2020 = vperm.xlu0 %6264, %v6957_v46  }
 0x1a8   : > { %2032 = vperm.xlu1 %6265, %v6844_v15   ;;  %v7317_v43 = vpop.xlane.xlu1 %1058 }
 0x1a9   : > { %10745 = vst [vmem:[#allocation82_spill] sm:$0xff] %v7317_v43  ;;  %v7319_v9 = vpop.xlane.xlu0 %1056 }
 0x1aa   : > { %10746 = vst [vmem:[#allocation83_spill] sm:$0xff] %v7319_v9  ;;  %2028 = vperm.xlu0 %6264, %v6962_v4  }
 0x1ac   : > { %2040 = vperm.xlu1 %6265, %v6857_v32   ;;  %v7323_v55 = vpop.xlane.xlu1 %990 }
 0x1ad   : > { %10747 = vst [vmem:[#allocation84_spill] sm:$0xff] %v7323_v55  ;;  %v7325_v57 = vpop.xlane.xlu0 %988 }
 0x1ae   : > { %10748 = vst [vmem:[#allocation85_spill] sm:$0xff] %v7325_v57  ;;  %2036 = vperm.xlu0 %6264, %v6965_v6  }
 0x1b0   : > { %2048 = vperm.xlu1 %6265, %v6865_v48   ;;  %v7329_v7 = vpop.xlane.xlu1 %1054 }
 0x1b1   : > { %10749 = vst [vmem:[#allocation86_spill] sm:$0xff] %v7329_v7  ;;  %v7331_v52 = vpop.xlane.xlu0 %1052 }
 0x1b2   : > { %10750 = vst [vmem:[#allocation87_spill] sm:$0xff] %v7331_v52  ;;  %2044 = vperm.xlu0 %6264, %v6970_v37  }
 0x1b4   : > { %2056 = vperm.xlu1 %6265, %v6876_v47   ;;  %v7335_v43 = vpop.xlane.xlu1 %1002 }
 0x1b5   : > { %10751 = vst [vmem:[#allocation88_spill] sm:$0xff] %v7335_v43  ;;  %v7337_v9 = vpop.xlane.xlu0 %1000  ;;  %v6554_v43 = vmov 3  }
 0x1b6   : > { %10752 = vst [vmem:[#allocation89_spill] sm:$0xff] %v7337_v9  ;;  %2052 = vperm.xlu0 %6264, %v6975_v41  }
 0x1b8   : > { %2064 = vperm.xlu1 %6265, %v6885_v19   ;;  %v7341_v55 = vpop.xlane.xlu1 %1066 }
 0x1b9   : > { %10753 = vst [vmem:[#allocation90_spill] sm:$0xff] %v7341_v55  ;;  %v7343_v57 = vpop.xlane.xlu0 %1064  ;;  %v10759_v55 = vld [vmem:[#allocation30_spill] sm:$0xff] }
 0x1ba   : > { %10754 = vst [vmem:[#allocation91_spill] sm:$0xff] %v7343_v57  ;;  %2060 = vperm.xlu0 %6264, %v6978_v27  }
 0x1bc   : > { %2072 = vperm.xlu1 %6265, %v6893_v40   ;;  %v7347_v7 = vpop.xlane.xlu1 %998 }
 0x1bd   : > { %10755 = vst [vmem:[#allocation92_spill] sm:$0xff] %v7347_v7  ;;  %v7349_v52 = vpop.xlane.xlu0 %996 }
 0x1be   : > { %10756 = vst [vmem:[#allocation93_spill] sm:$0xff] %v7349_v52  ;;  %2068 = vperm.xlu0 %6264, %v6983_v42   ;;  %v10763_v52 = vld [vmem:[#allocation5_spill] sm:$0xff] }
 0x1c0   : > { %6266 = vset.pattern.permute.xlu1 %v6554_v43  ;;  %v7352_v9 = vpop.xlane.xlu1 %1062 }
 0x1c1   : > { %10757 = vst [vmem:[#allocation94_spill] sm:$0xff] %v7352_v9  ;;  %2212 = vperm.xlu1 %6266, %v6901_v26   ;;  %v7355_v36 = vpop.xlane.xlu0 %1060 }
 0x1c2   : > { %10758 = vst [vmem:[#allocation95_spill] sm:$0xff] %v7355_v36  ;;  %2076 = vperm.xlu0 %6264, %v10759_v55  }
 0x1c4   : > { %v7358_v57 = vpop.xlane.xlu1 %1010 }
 0x1c5   : > { %10760 = vst [vmem:[#allocation96_spill] sm:$0xff] %v7358_v57  ;;  %2220 = vperm.xlu1 %6266, %v6687_v49   ;;  %v7361_v58 = vpop.xlane.xlu0 %1008 }
 0x1c6   : > { %10761 = vst [vmem:[#allocation97_spill] sm:$0xff] %v7361_v58  ;;  %6267 = vset.pattern.permute.xlu0 %v6554_v43 }
 0x1c7   : > { %2216 = vperm.xlu0 %6267, %v10763_v52  }
 0x1c8   : > { %v7363_v7 = vpop.xlane.xlu1 %1074 }
 0x1c9   : > { %10762 = vst [vmem:[#allocation98_spill] sm:$0xff] %v7363_v7  ;;  %2224 = vperm.xlu1 %6266, %v6695_v56   ;;  %v7367_v9 = vpop.xlane.xlu0 %1072 }
 0x1ca   : > { %10764 = vst [vmem:[#allocation5_spill] sm:$0xff] %v7367_v9 }
 0x1cb   : > { %2228 = vperm.xlu0 %6267, %v6719_v25  }
 0x1cc   : > { %v7369_v29 = vpop.xlane.xlu1 %1006 }
 0x1cd   : > { %10765 = vst [vmem:[#allocation99_spill] sm:$0xff] %v7369_v29  ;;  %2232 = vperm.xlu1 %6266, %v6727_v33   ;;  %v7373_v57 = vpop.xlane.xlu0 %1004 }
 0x1ce   : > { %10766 = vst [vmem:[#allocation100_spill] sm:$0xff] %v7373_v57  ;;  %v6556_v57 = vmov 5  }
 0x1cf   : > { %2236 = vperm.xlu0 %6267, %v6754_v13  }
 0x1d0   : > { %v7375_v36 = vpop.xlane.xlu1 %1070 }
 0x1d1   : > { %10767 = vst [vmem:[#allocation101_spill] sm:$0xff] %v7375_v36  ;;  %2240 = vperm.xlu1 %6266, %v6767_v23   ;;  %v7379_v43 = vpop.xlane.xlu0 %1068 }
 0x1d2   : > { %10768 = vst [vmem:[#allocation102_spill] sm:$0xff] %v7379_v43 }
 0x1d3   : > { %2244 = vperm.xlu0 %6267, %v6773_v34  }
 0x1d4   : > { %v7381_v7 = vpop.xlane.xlu1 %1018 }
 0x1d5   : > { %10769 = vst [vmem:[#allocation103_spill] sm:$0xff] %v7381_v7  ;;  %2248 = vperm.xlu1 %6266, %v6931_v12   ;;  %v7385_v9 = vpop.xlane.xlu0 %1016 }
 0x1d6   : > { %10770 = vst [vmem:[#allocation104_spill] sm:$0xff] %v7385_v9 }
 0x1d7   : > { %2252 = vperm.xlu0 %6267, %v6788_v51  }
 0x1d8   : > { %v7387_v58 = vpop.xlane.xlu1 %1082 }
 0x1d9   : > { %10771 = vst [vmem:[#allocation105_spill] sm:$0xff] %v7387_v58  ;;  %2256 = vperm.xlu1 %6266, %v6936_v54   ;;  %v7391_v36 = vpop.xlane.xlu0 %1080 }
 0x1da   : > { %10772 = vst [vmem:[#allocation106_spill] sm:$0xff] %v7391_v36 }
 0x1db   : > { %2260 = vperm.xlu0 %6267, %v6804_v22  }
 0x1dc   : > { %v7393_v29 = vpop.xlane.xlu1 %1014 }
 0x1dd   : > { %10773 = vst [vmem:[#allocation107_spill] sm:$0xff] %v7393_v29  ;;  %2264 = vperm.xlu1 %6266, %v6943_v10   ;;  %v7397_v7 = vpop.xlane.xlu0 %1012 }
 0x1de   : > { %10774 = vst [vmem:[#allocation108_spill] sm:$0xff] %v7397_v7 }
 0x1df   : > { %2268 = vperm.xlu0 %6267, %v6813_v38  }
 0x1e0   : > { %v7399_v43 = vpop.xlane.xlu1 %1078 }
 0x1e1   : > { %10775 = vst [vmem:[#allocation109_spill] sm:$0xff] %v7399_v43  ;;  %2272 = vperm.xlu1 %6266, %v6950_v61   ;;  %v7403_v58 = vpop.xlane.xlu0 %1076 }
 0x1e2   : > { %10776 = vst [vmem:[#allocation110_spill] sm:$0xff] %v7403_v58 }
 0x1e3   : > { %2276 = vperm.xlu0 %6267, %v6821_v45  }
 0x1e4   : > { %v7405_v9 = vpop.xlane.xlu1 %1026 }
 0x1e5   : > { %10777 = vst [vmem:[#allocation111_spill] sm:$0xff] %v7405_v9  ;;  %2280 = vperm.xlu1 %6266, %v6957_v46   ;;  %v7409_v36 = vpop.xlane.xlu0 %1024 }
 0x1e6   : > { %10778 = vst [vmem:[#allocation112_spill] sm:$0xff] %v7409_v36 }
 0x1e7   : > { %2284 = vperm.xlu0 %6267, %v6833_v60  }
 0x1e8   : > { %v7411_v29 = vpop.xlane.xlu1 %1090 }
 0x1e9   : > { %10779 = vst [vmem:[#allocation113_spill] sm:$0xff] %v7411_v29  ;;  %2288 = vperm.xlu1 %6266, %v6962_v4   ;;  %v7415_v43 = vpop.xlane.xlu0 %1088 }
 0x1ea   : > { %10780 = vst [vmem:[#allocation114_spill] sm:$0xff] %v7415_v43 }
 0x1eb   : > { %2292 = vperm.xlu0 %6267, %v6844_v15  }
 0x1ec   : > { %v7417_v7 = vpop.xlane.xlu1 %1022 }
 0x1ed   : > { %10781 = vst [vmem:[#allocation115_spill] sm:$0xff] %v7417_v7  ;;  %2296 = vperm.xlu1 %6266, %v6965_v6   ;;  %v7421_v9 = vpop.xlane.xlu0 %1020 }
 0x1ee   : > { %10782 = vst [vmem:[#allocation116_spill] sm:$0xff] %v7421_v9 }
 0x1ef   : > { %2300 = vperm.xlu0 %6267, %v6857_v32  }
 0x1f0   : > { %v7423_v58 = vpop.xlane.xlu1 %1086 }
 0x1f1   : > { %10783 = vst [vmem:[#allocation117_spill] sm:$0xff] %v7423_v58  ;;  %2304 = vperm.xlu1 %6266, %v6970_v37   ;;  %v7427_v29 = vpop.xlane.xlu0 %1084 }
 0x1f2   : > { %10784 = vst [vmem:[#allocation118_spill] sm:$0xff] %v7427_v29 }
 0x1f3   : > { %2308 = vperm.xlu0 %6267, %v6865_v48  }
 0x1f4   : > { %v7429_v36 = vpop.xlane.xlu1 %1034 }
 0x1f5   : > { %10785 = vst [vmem:[#allocation119_spill] sm:$0xff] %v7429_v36  ;;  %2312 = vperm.xlu1 %6266, %v6975_v41   ;;  %v7433_v7 = vpop.xlane.xlu0 %1032 }
 0x1f6   : > { %10786 = vst [vmem:[#allocation120_spill] sm:$0xff] %v7433_v7  ;;  %v6555_v7 = vmov 4  }
 0x1f7   : > { %2316 = vperm.xlu0 %6267, %v6876_v47  }
 0x1f8   : > { %v7435_v43 = vpop.xlane.xlu1 %1098 }
 0x1f9   : > { %10787 = vst [vmem:[#allocation121_spill] sm:$0xff] %v7435_v43  ;;  %2320 = vperm.xlu1 %6266, %v6978_v27   ;;  %v7439_v58 = vpop.xlane.xlu0 %1096 }
 0x1fa   : > { %10788 = vst [vmem:[#allocation122_spill] sm:$0xff] %v7439_v58 }
 0x1fb   : > { %2324 = vperm.xlu0 %6267, %v6885_v19  }
 0x1fc   : > { %v7441_v9 = vpop.xlane.xlu1 %1030 }
 0x1fd   : > { %10789 = vst [vmem:[#allocation123_spill] sm:$0xff] %v7441_v9  ;;  %2328 = vperm.xlu1 %6266, %v6983_v42   ;;  %v7447_v29 = vpop.xlane.xlu0 %1028 }
 0x1fe   : > { %10791 = vst [vmem:[#allocation125_spill] sm:$0xff] %v7447_v29 }
 0x1ff   : > { %2332 = vperm.xlu0 %6267, %v6893_v40  }
 0x200   : > { %v7445_v36 = vpop.xlane.xlu1 %1094 }
 0x201   : > { %10790 = vst [vmem:[#allocation124_spill] sm:$0xff] %v7445_v36  ;;  %2336 = vperm.xlu1 %6266, %v10759_v55   ;;  %v7455_v58 = vpop.xlane.xlu0 %1092 }
 0x202   : > { %10793 = vst [vmem:[#allocation127_spill] sm:$0xff] %v7455_v58 }
 0x203   : > { %6268 = vset.pattern.permute.xlu0 %v6555_v7 }
 0x204   : > { %v7451_v43 = vpop.permute.xlu1 %1960  ;;  %2472 = vperm.xlu0 %6268, %v6901_v26  }
 0x205   : > { %10792 = vst [vmem:[#allocation126_spill] sm:$0xff] %v7451_v43  ;;  %6269 = vset.pattern.permute.xlu1 %v6555_v7 }
 0x206   : > { %2476 = vperm.xlu1 %6269, %v10763_v52  }
 0x208   : > { %v7457_v9 = vpop.permute.xlu1 %1968  ;;  %2484 = vperm.xlu0 %6268, %v6695_v56  }
 0x209   : > { %10794 = vst [vmem:[#allocation128_spill] sm:$0xff] %v7457_v9  ;;  %v7461_v36 = vpop.permute.xlu0 %1964 }
 0x20a   : > { %2480 = vperm.xlu1 %6269, %v6687_v49   ;;  %10795 = vst [vmem:[#allocation129_spill] sm:$0xff] %v7461_v36 }
 0x20c   : > { %v7463_v29 = vpop.permute.xlu1 %1976  ;;  %2492 = vperm.xlu0 %6268, %v6727_v33  }
 0x20d   : > { %10796 = vst [vmem:[#allocation130_spill] sm:$0xff] %v7463_v29  ;;  %v7467_v7 = vpop.permute.xlu0 %1972 }
 0x20e   : > { %2488 = vperm.xlu1 %6269, %v6719_v25   ;;  %10797 = vst [vmem:[#allocation131_spill] sm:$0xff] %v7467_v7 }
 0x210   : > { %v7469_v43 = vpop.permute.xlu1 %1984  ;;  %2500 = vperm.xlu0 %6268, %v6767_v23  }
 0x211   : > { %10798 = vst [vmem:[#allocation132_spill] sm:$0xff] %v7469_v43  ;;  %v7473_v58 = vpop.permute.xlu0 %1980 }
 0x212   : > { %2496 = vperm.xlu1 %6269, %v6754_v13   ;;  %10799 = vst [vmem:[#allocation133_spill] sm:$0xff] %v7473_v58 }
 0x214   : > { %v7475_v9 = vpop.permute.xlu1 %1992  ;;  %2508 = vperm.xlu0 %6268, %v6931_v12  }
 0x215   : > { %10800 = vst [vmem:[#allocation134_spill] sm:$0xff] %v7475_v9  ;;  %v7479_v29 = vpop.permute.xlu0 %1988 }
 0x216   : > { %2504 = vperm.xlu1 %6269, %v6773_v34   ;;  %10801 = vst [vmem:[#allocation135_spill] sm:$0xff] %v7479_v29 }
 0x218   : > { %v7481_v36 = vpop.permute.xlu1 %2000  ;;  %2516 = vperm.xlu0 %6268, %v6936_v54  }
 0x219   : > { %10802 = vst [vmem:[#allocation136_spill] sm:$0xff] %v7481_v36  ;;  %v7485_v43 = vpop.permute.xlu0 %1996 }
 0x21a   : > { %2512 = vperm.xlu1 %6269, %v6788_v51   ;;  %10803 = vst [vmem:[#allocation137_spill] sm:$0xff] %v7485_v43 }
 0x21c   : > { %v7487_v7 = vpop.permute.xlu1 %2008  ;;  %2524 = vperm.xlu0 %6268, %v6943_v10  }
 0x21d   : > { %10804 = vst [vmem:[#allocation138_spill] sm:$0xff] %v7487_v7  ;;  %v7491_v58 = vpop.permute.xlu0 %2004 }
 0x21e   : > { %2520 = vperm.xlu1 %6269, %v6804_v22   ;;  %10805 = vst [vmem:[#allocation139_spill] sm:$0xff] %v7491_v58 }
 0x220   : > { %v7493_v9 = vpop.permute.xlu1 %2016  ;;  %2532 = vperm.xlu0 %6268, %v6950_v61  }
 0x221   : > { %10806 = vst [vmem:[#allocation140_spill] sm:$0xff] %v7493_v9  ;;  %v7497_v36 = vpop.permute.xlu0 %2012 }
 0x222   : > { %2528 = vperm.xlu1 %6269, %v6813_v38   ;;  %10807 = vst [vmem:[#allocation141_spill] sm:$0xff] %v7497_v36 }
 0x224   : > { %v7499_v29 = vpop.permute.xlu1 %2024  ;;  %2540 = vperm.xlu0 %6268, %v6957_v46  }
 0x225   : > { %10808 = vst [vmem:[#allocation142_spill] sm:$0xff] %v7499_v29  ;;  %v7503_v7 = vpop.permute.xlu0 %2020 }
 0x226   : > { %2536 = vperm.xlu1 %6269, %v6821_v45   ;;  %10809 = vst [vmem:[#allocation143_spill] sm:$0xff] %v7503_v7 }
 0x228   : > { %v7505_v43 = vpop.permute.xlu1 %2032  ;;  %2548 = vperm.xlu0 %6268, %v6962_v4  }
 0x229   : > { %10810 = vst [vmem:[#allocation144_spill] sm:$0xff] %v7505_v43  ;;  %v7509_v9 = vpop.permute.xlu0 %2028 }
 0x22a   : > { %2544 = vperm.xlu1 %6269, %v6833_v60   ;;  %10811 = vst [vmem:[#allocation145_spill] sm:$0xff] %v7509_v9 }
 0x22c   : > { %v7511_v58 = vpop.permute.xlu1 %2040  ;;  %2556 = vperm.xlu0 %6268, %v6965_v6  }
 0x22d   : > { %10812 = vst [vmem:[#allocation146_spill] sm:$0xff] %v7511_v58  ;;  %v7515_v36 = vpop.permute.xlu0 %2036 }
 0x22e   : > { %2552 = vperm.xlu1 %6269, %v6844_v15   ;;  %10813 = vst [vmem:[#allocation147_spill] sm:$0xff] %v7515_v36 }
 0x230   : > { %v7517_v29 = vpop.permute.xlu1 %2048  ;;  %2564 = vperm.xlu0 %6268, %v6970_v37  }
 0x231   : > { %10814 = vst [vmem:[#allocation148_spill] sm:$0xff] %v7517_v29  ;;  %v7521_v43 = vpop.permute.xlu0 %2044 }
 0x232   : > { %2560 = vperm.xlu1 %6269, %v6857_v32   ;;  %10815 = vst [vmem:[#allocation149_spill] sm:$0xff] %v7521_v43 }
 0x234   : > { %v7523_v7 = vpop.permute.xlu1 %2056  ;;  %2572 = vperm.xlu0 %6268, %v6975_v41  }
 0x235   : > { %10816 = vst [vmem:[#allocation150_spill] sm:$0xff] %v7523_v7  ;;  %v7527_v58 = vpop.permute.xlu0 %2052 }
 0x236   : > { %2568 = vperm.xlu1 %6269, %v6865_v48   ;;  %10817 = vst [vmem:[#allocation151_spill] sm:$0xff] %v7527_v58 }
 0x238   : > { %v7529_v9 = vpop.permute.xlu1 %2064  ;;  %2580 = vperm.xlu0 %6268, %v6978_v27  }
 0x239   : > { %10818 = vst [vmem:[#allocation152_spill] sm:$0xff] %v7529_v9  ;;  %v7533_v29 = vpop.permute.xlu0 %2060 }
 0x23a   : > { %2576 = vperm.xlu1 %6269, %v6876_v47   ;;  %10819 = vst [vmem:[#allocation153_spill] sm:$0xff] %v7533_v29 }
 0x23c   : > { %v7535_v36 = vpop.permute.xlu1 %2072  ;;  %2588 = vperm.xlu0 %6268, %v6983_v42  }
 0x23d   : > { %10820 = vst [vmem:[#allocation154_spill] sm:$0xff] %v7535_v36  ;;  %v7539_v43 = vpop.permute.xlu0 %2068 }
 0x23e   : > { %2584 = vperm.xlu1 %6269, %v6885_v19   ;;  %10821 = vst [vmem:[#allocation155_spill] sm:$0xff] %v7539_v43 }
 0x240   : > { %v7541_v7 = vpop.permute.xlu1 %2212  ;;  %2596 = vperm.xlu0 %6268, %v10759_v55  }
 0x241   : > { %10822 = vst [vmem:[#allocation156_spill] sm:$0xff] %v7541_v7  ;;  %v7545_v9 = vpop.permute.xlu0 %2076 }
 0x242   : > { %2592 = vperm.xlu1 %6269, %v6893_v40   ;;  %10823 = vst [vmem:[#allocation157_spill] sm:$0xff] %v7545_v9 }
 0x244   : > { %v7547_v58 = vpop.permute.xlu1 %2220  ;;  %6271 = vset.pattern.permute.xlu0 %v6556_v57 }
 0x245   : > { %10824 = vst [vmem:[#allocation158_spill] sm:$0xff] %v7547_v58  ;;  %2736 = vperm.xlu0 %6271, %v10763_v52  }
 0x246   : > { %6270 = vset.pattern.permute.xlu1 %v6556_v57  ;;  %v7551_v36 = vpop.permute.xlu0 %2216 }
 0x247   : > { %2732 = vperm.xlu1 %6270, %v6901_v26   ;;  %10825 = vst [vmem:[#allocation159_spill] sm:$0xff] %v7551_v36  ;;  %v6557_v36 = vmov 6  }
 0x248   : > { %v7553_v43 = vpop.permute.xlu1 %2224 }
 0x249   : > { %10826 = vst [vmem:[#allocation160_spill] sm:$0xff] %v7553_v43  ;;  %2748 = vperm.xlu0 %6271, %v6719_v25  }
 0x24a   : > { %v7557_v7 = vpop.permute.xlu0 %2228 }
 0x24b   : > { %2740 = vperm.xlu1 %6270, %v6687_v49   ;;  %10827 = vst [vmem:[#allocation161_spill] sm:$0xff] %v7557_v7 }
 0x24c   : > { %v7559_v9 = vpop.permute.xlu1 %2232 }
 0x24d   : > { %10828 = vst [vmem:[#allocation162_spill] sm:$0xff] %v7559_v9  ;;  %2756 = vperm.xlu0 %6271, %v6754_v13  }
 0x24e   : > { %v7563_v57 = vpop.permute.xlu0 %2236 }
 0x24f   : > { %2744 = vperm.xlu1 %6270, %v6695_v56   ;;  %10829 = vst [vmem:[#allocation163_spill] sm:$0xff] %v7563_v57 }
 0x250   : > { %v7565_v29 = vpop.permute.xlu1 %2240 }
 0x251   : > { %10830 = vst [vmem:[#allocation164_spill] sm:$0xff] %v7565_v29  ;;  %2764 = vperm.xlu0 %6271, %v6773_v34  }
 0x252   : > { %v7569_v43 = vpop.permute.xlu0 %2244 }
 0x253   : > { %2752 = vperm.xlu1 %6270, %v6727_v33   ;;  %10831 = vst [vmem:[#allocation165_spill] sm:$0xff] %v7569_v43 }
 0x254   : > { %v7571_v58 = vpop.permute.xlu1 %2248 }
 0x255   : > { %10832 = vst [vmem:[#allocation166_spill] sm:$0xff] %v7571_v58  ;;  %2772 = vperm.xlu0 %6271, %v6788_v51  }
 0x256   : > { %v7575_v9 = vpop.permute.xlu0 %2252 }
 0x257   : > { %2760 = vperm.xlu1 %6270, %v6767_v23   ;;  %10833 = vst [vmem:[#allocation167_spill] sm:$0xff] %v7575_v9 }
 0x258   : > { %v7577_v7 = vpop.permute.xlu1 %2256 }
 0x259   : > { %10834 = vst [vmem:[#allocation168_spill] sm:$0xff] %v7577_v7  ;;  %2780 = vperm.xlu0 %6271, %v6804_v22  }
 0x25a   : > { %v7581_v29 = vpop.permute.xlu0 %2260 }
 0x25b   : > { %2768 = vperm.xlu1 %6270, %v6931_v12   ;;  %10835 = vst [vmem:[#allocation169_spill] sm:$0xff] %v7581_v29 }
 0x25c   : > { %v7583_v57 = vpop.permute.xlu1 %2264 }
 0x25d   : > { %10836 = vst [vmem:[#allocation170_spill] sm:$0xff] %v7583_v57  ;;  %2788 = vperm.xlu0 %6271, %v6813_v38  }
 0x25e   : > { %v7587_v43 = vpop.permute.xlu0 %2268 }
 0x25f   : > { %2776 = vperm.xlu1 %6270, %v6936_v54   ;;  %10837 = vst [vmem:[#allocation171_spill] sm:$0xff] %v7587_v43 }
 0x260   : > { %v7589_v58 = vpop.permute.xlu1 %2272 }
 0x261   : > { %10838 = vst [vmem:[#allocation172_spill] sm:$0xff] %v7589_v58  ;;  %2796 = vperm.xlu0 %6271, %v6821_v45  }
 0x262   : > { %v7593_v7 = vpop.permute.xlu0 %2276 }
 0x263   : > { %2784 = vperm.xlu1 %6270, %v6943_v10   ;;  %10839 = vst [vmem:[#allocation173_spill] sm:$0xff] %v7593_v7 }
 0x264   : > { %v7595_v9 = vpop.permute.xlu1 %2280 }
 0x265   : > { %10840 = vst [vmem:[#allocation174_spill] sm:$0xff] %v7595_v9  ;;  %2804 = vperm.xlu0 %6271, %v6833_v60  }
 0x266   : > { %v7599_v57 = vpop.permute.xlu0 %2284 }
 0x267   : > { %2792 = vperm.xlu1 %6270, %v6950_v61   ;;  %10841 = vst [vmem:[#allocation175_spill] sm:$0xff] %v7599_v57 }
 0x268   : > { %v7601_v29 = vpop.permute.xlu1 %2288 }
 0x269   : > { %10842 = vst [vmem:[#allocation176_spill] sm:$0xff] %v7601_v29  ;;  %2812 = vperm.xlu0 %6271, %v6844_v15  }
 0x26a   : > { %v7605_v58 = vpop.permute.xlu0 %2292 }
 0x26b   : > { %2800 = vperm.xlu1 %6270, %v6957_v46   ;;  %10843 = vst [vmem:[#allocation177_spill] sm:$0xff] %v7605_v58 }
 0x26c   : > { %v7607_v43 = vpop.permute.xlu1 %2296 }
 0x26d   : > { %10844 = vst [vmem:[#allocation178_spill] sm:$0xff] %v7607_v43  ;;  %2820 = vperm.xlu0 %6271, %v6857_v32  }
 0x26e   : > { %v7611_v7 = vpop.permute.xlu0 %2300 }
 0x26f   : > { %2808 = vperm.xlu1 %6270, %v6962_v4   ;;  %10845 = vst [vmem:[#allocation179_spill] sm:$0xff] %v7611_v7 }
 0x270   : > { %v7613_v9 = vpop.permute.xlu1 %2304 }
 0x271   : > { %10846 = vst [vmem:[#allocation180_spill] sm:$0xff] %v7613_v9  ;;  %2828 = vperm.xlu0 %6271, %v6865_v48  }
 0x272   : > { %v7617_v29 = vpop.permute.xlu0 %2308 }
 0x273   : > { %2816 = vperm.xlu1 %6270, %v6965_v6   ;;  %10847 = vst [vmem:[#allocation181_spill] sm:$0xff] %v7617_v29 }
 0x274   : > { %v7619_v57 = vpop.permute.xlu1 %2312 }
 0x275   : > { %10848 = vst [vmem:[#allocation182_spill] sm:$0xff] %v7619_v57  ;;  %2836 = vperm.xlu0 %6271, %v6876_v47  }
 0x276   : > { %v7623_v43 = vpop.permute.xlu0 %2316 }
 0x277   : > { %2824 = vperm.xlu1 %6270, %v6970_v37   ;;  %10849 = vst [vmem:[#allocation183_spill] sm:$0xff] %v7623_v43 }
 0x278   : > { %v7625_v58 = vpop.permute.xlu1 %2320 }
 0x279   : > { %10850 = vst [vmem:[#allocation184_spill] sm:$0xff] %v7625_v58  ;;  %2844 = vperm.xlu0 %6271, %v6885_v19  }
 0x27a   : > { %v7629_v9 = vpop.permute.xlu0 %2324 }
 0x27b   : > { %2832 = vperm.xlu1 %6270, %v6975_v41   ;;  %10851 = vst [vmem:[#allocation185_spill] sm:$0xff] %v7629_v9 }
 0x27c   : > { %v7631_v7 = vpop.permute.xlu1 %2328 }
 0x27d   : > { %10852 = vst [vmem:[#allocation186_spill] sm:$0xff] %v7631_v7  ;;  %2852 = vperm.xlu0 %6271, %v6893_v40  }
 0x27e   : > { %v7635_v29 = vpop.permute.xlu0 %2332 }
 0x27f   : > { %2840 = vperm.xlu1 %6270, %v6978_v27   ;;  %10853 = vst [vmem:[#allocation187_spill] sm:$0xff] %v7635_v29 }
 0x280   : > { %v7637_v57 = vpop.permute.xlu1 %2336 }
 0x281   : > { %10854 = vst [vmem:[#allocation188_spill] sm:$0xff] %v7637_v57  ;;  %6272 = vset.pattern.permute.xlu0 %v6557_v36 }
 0x282   : > { %2992 = vperm.xlu0 %6272, %v6901_v26  }
 0x283   : > { %2848 = vperm.xlu1 %6270, %v6983_v42   ;;  %v7641_v58 = vpop.permute.xlu0 %2472 }
 0x284   : > { %10855 = vst [vmem:[#allocation189_spill] sm:$0xff] %v7641_v58 }
 0x285   : > { %v7643_v43 = vpop.permute.xlu1 %2476 }
 0x286   : > { %10856 = vst [vmem:[#allocation190_spill] sm:$0xff] %v7643_v43  ;;  %3004 = vperm.xlu0 %6272, %v6695_v56  }
 0x287   : > { %2856 = vperm.xlu1 %6270, %v10759_v55   ;;  %v7647_v7 = vpop.permute.xlu0 %2484 }
 0x288   : > { %10857 = vst [vmem:[#allocation191_spill] sm:$0xff] %v7647_v7 }
 0x289   : > { %v7649_v9 = vpop.permute.xlu1 %2480 }
 0x28a   : > { %10858 = vst [vmem:[#allocation192_spill] sm:$0xff] %v7649_v9  ;;  %3012 = vperm.xlu0 %6272, %v6727_v33   ;;  %v6558_v9 = vmov 7  }
 0x28b   : > { %6273 = vset.pattern.permute.xlu1 %v6557_v36  ;;  %v7653_v57 = vpop.permute.xlu0 %2492 }
 0x28c   : > { %2996 = vperm.xlu1 %6273, %v10763_v52   ;;  %10859 = vst [vmem:[#allocation193_spill] sm:$0xff] %v7653_v57 }
 0x28d   : > { %v7655_v29 = vpop.permute.xlu1 %2488 }
 0x28e   : > { %10860 = vst [vmem:[#allocation194_spill] sm:$0xff] %v7655_v29  ;;  %3020 = vperm.xlu0 %6272, %v6767_v23  }
 0x28f   : > { %v7659_v58 = vpop.permute.xlu0 %2500 }
 0x290   : > { %3000 = vperm.xlu1 %6273, %v6687_v49   ;;  %10861 = vst [vmem:[#allocation195_spill] sm:$0xff] %v7659_v58 }
 0x291   : > { %v7661_v43 = vpop.permute.xlu1 %2496 }
 0x292   : > { %10862 = vst [vmem:[#allocation196_spill] sm:$0xff] %v7661_v43  ;;  %3028 = vperm.xlu0 %6272, %v6931_v12  }
 0x293   : > { %v7665_v36 = vpop.permute.xlu0 %2508 }
 0x294   : > { %3008 = vperm.xlu1 %6273, %v6719_v25   ;;  %10863 = vst [vmem:[#allocation197_spill] sm:$0xff] %v7665_v36 }
 0x295   : > { %v7667_v7 = vpop.permute.xlu1 %2504 }
 0x296   : > { %10864 = vst [vmem:[#allocation198_spill] sm:$0xff] %v7667_v7  ;;  %3036 = vperm.xlu0 %6272, %v6936_v54  }
 0x297   : > { %v7671_v57 = vpop.permute.xlu0 %2516 }
 0x298   : > { %3016 = vperm.xlu1 %6273, %v6754_v13   ;;  %10865 = vst [vmem:[#allocation199_spill] sm:$0xff] %v7671_v57 }
 0x299   : > { %v7673_v29 = vpop.permute.xlu1 %2512 }
 0x29a   : > { %10866 = vst [vmem:[#allocation200_spill] sm:$0xff] %v7673_v29  ;;  %3044 = vperm.xlu0 %6272, %v6943_v10  }
 0x29b   : > { %v7677_v58 = vpop.permute.xlu0 %2524 }
 0x29c   : > { %3024 = vperm.xlu1 %6273, %v6773_v34   ;;  %10867 = vst [vmem:[#allocation201_spill] sm:$0xff] %v7677_v58 }
 0x29d   : > { %v7679_v43 = vpop.permute.xlu1 %2520 }
 0x29e   : > { %10868 = vst [vmem:[#allocation202_spill] sm:$0xff] %v7679_v43  ;;  %3052 = vperm.xlu0 %6272, %v6950_v61  }
 0x29f   : > { %v7683_v7 = vpop.permute.xlu0 %2532 }
 0x2a0   : > { %3032 = vperm.xlu1 %6273, %v6788_v51   ;;  %10869 = vst [vmem:[#allocation203_spill] sm:$0xff] %v7683_v7 }
 0x2a1   : > { %v7685_v36 = vpop.permute.xlu1 %2528 }
 0x2a2   : > { %10870 = vst [vmem:[#allocation204_spill] sm:$0xff] %v7685_v36  ;;  %3060 = vperm.xlu0 %6272, %v6957_v46  }
 0x2a3   : > { %v7689_v57 = vpop.permute.xlu0 %2540 }
 0x2a4   : > { %3040 = vperm.xlu1 %6273, %v6804_v22   ;;  %10871 = vst [vmem:[#allocation205_spill] sm:$0xff] %v7689_v57 }
 0x2a5   : > { %v7691_v29 = vpop.permute.xlu1 %2536 }
 0x2a6   : > { %10872 = vst [vmem:[#allocation206_spill] sm:$0xff] %v7691_v29  ;;  %3068 = vperm.xlu0 %6272, %v6962_v4  }
 0x2a7   : > { %v7695_v58 = vpop.permute.xlu0 %2548 }
 0x2a8   : > { %3048 = vperm.xlu1 %6273, %v6813_v38   ;;  %10873 = vst [vmem:[#allocation207_spill] sm:$0xff] %v7695_v58 }
 0x2a9   : > { %v7697_v43 = vpop.permute.xlu1 %2544 }
 0x2aa   : > { %10874 = vst [vmem:[#allocation208_spill] sm:$0xff] %v7697_v43  ;;  %3076 = vperm.xlu0 %6272, %v6965_v6  }
 0x2ab   : > { %v7701_v7 = vpop.permute.xlu0 %2556 }
 0x2ac   : > { %3056 = vperm.xlu1 %6273, %v6821_v45   ;;  %10875 = vst [vmem:[#allocation209_spill] sm:$0xff] %v7701_v7 }
 0x2ad   : > { %v7703_v36 = vpop.permute.xlu1 %2552 }
 0x2ae   : > { %10876 = vst [vmem:[#allocation210_spill] sm:$0xff] %v7703_v36  ;;  %3084 = vperm.xlu0 %6272, %v6970_v37  }
 0x2af   : > { %v7707_v29 = vpop.permute.xlu0 %2564 }
 0x2b0   : > { %3064 = vperm.xlu1 %6273, %v6833_v60   ;;  %10877 = vst [vmem:[#allocation211_spill] sm:$0xff] %v7707_v29 }
 0x2b1   : > { %v7709_v57 = vpop.permute.xlu1 %2560 }
 0x2b2   : > { %10878 = vst [vmem:[#allocation212_spill] sm:$0xff] %v7709_v57  ;;  %3092 = vperm.xlu0 %6272, %v6975_v41  }
 0x2b3   : > { %v7713_v58 = vpop.permute.xlu0 %2572 }
 0x2b4   : > { %3072 = vperm.xlu1 %6273, %v6844_v15   ;;  %10879 = vst [vmem:[#allocation213_spill] sm:$0xff] %v7713_v58 }
 0x2b5   : > { %v7715_v43 = vpop.permute.xlu1 %2568 }
 0x2b6   : > { %10880 = vst [vmem:[#allocation214_spill] sm:$0xff] %v7715_v43  ;;  %3100 = vperm.xlu0 %6272, %v6978_v27  }
 0x2b7   : > { %v7719_v7 = vpop.permute.xlu0 %2580 }
 0x2b8   : > { %3080 = vperm.xlu1 %6273, %v6857_v32   ;;  %10881 = vst [vmem:[#allocation215_spill] sm:$0xff] %v7719_v7 }
 0x2b9   : > { %v7721_v36 = vpop.permute.xlu1 %2576 }
 0x2ba   : > { %10882 = vst [vmem:[#allocation216_spill] sm:$0xff] %v7721_v36  ;;  %3108 = vperm.xlu0 %6272, %v6983_v42  }
 0x2bb   : > { %v7725_v29 = vpop.permute.xlu0 %2588 }
 0x2bc   : > { %3088 = vperm.xlu1 %6273, %v6865_v48   ;;  %10883 = vst [vmem:[#allocation217_spill] sm:$0xff] %v7725_v29 }
 0x2bd   : > { %v7727_v57 = vpop.permute.xlu1 %2584 }
 0x2be   : > { %10884 = vst [vmem:[#allocation218_spill] sm:$0xff] %v7727_v57  ;;  %3116 = vperm.xlu0 %6272, %v10759_v55  }
 0x2bf   : > { %v7731_v43 = vpop.permute.xlu0 %2596 }
 0x2c0   : > { %3096 = vperm.xlu1 %6273, %v6876_v47   ;;  %10885 = vst [vmem:[#allocation219_spill] sm:$0xff] %v7731_v43 }
 0x2c1   : > { %v7733_v58 = vpop.permute.xlu1 %2592 }
 0x2c2   : > { %10886 = vst [vmem:[#allocation220_spill] sm:$0xff] %v7733_v58  ;;  %6275 = vset.pattern.permute.xlu0 %v6558_v9 }
 0x2c3   : > { %3256 = vperm.xlu0 %6275, %v10763_v52  }
 0x2c4   : > { %3104 = vperm.xlu1 %6273, %v6885_v19   ;;  %v7737_v7 = vpop.permute.xlu0 %2736 }
 0x2c5   : > { %10887 = vst [vmem:[#allocation221_spill] sm:$0xff] %v7737_v7 }
 0x2c6   : > { %v7739_v36 = vpop.permute.xlu1 %2732 }
 0x2c7   : > { %10888 = vst [vmem:[#allocation222_spill] sm:$0xff] %v7739_v36  ;;  %3268 = vperm.xlu0 %6275, %v6719_v25  }
 0x2c8   : > { %3112 = vperm.xlu1 %6273, %v6893_v40   ;;  %v7743_v29 = vpop.permute.xlu0 %2748 }
 0x2c9   : > { %10889 = vst [vmem:[#allocation223_spill] sm:$0xff] %v7743_v29 }
 0x2ca   : > { %v7745_v57 = vpop.permute.xlu1 %2740 }
 0x2cb   : > { %10890 = vst [vmem:[#allocation224_spill] sm:$0xff] %v7745_v57  ;;  %3276 = vperm.xlu0 %6275, %v6754_v13   ;;  %v6559_v57 = vmov 8  }
 0x2cc   : > { %6274 = vset.pattern.permute.xlu1 %v6558_v9  ;;  %v7749_v43 = vpop.permute.xlu0 %2756 }
 0x2cd   : > { %3252 = vperm.xlu1 %6274, %v6901_v26   ;;  %10891 = vst [vmem:[#allocation225_spill] sm:$0xff] %v7749_v43 }
 0x2ce   : > { %v7751_v58 = vpop.permute.xlu1 %2744 }
 0x2cf   : > { %10892 = vst [vmem:[#allocation226_spill] sm:$0xff] %v7751_v58  ;;  %3284 = vperm.xlu0 %6275, %v6773_v34  }
 0x2d0   : > { %v7755_v36 = vpop.permute.xlu0 %2764 }
 0x2d1   : > { %3260 = vperm.xlu1 %6274, %v6687_v49   ;;  %10893 = vst [vmem:[#allocation227_spill] sm:$0xff] %v7755_v36 }
 0x2d2   : > { %v7757_v7 = vpop.permute.xlu1 %2752 }
 0x2d3   : > { %10894 = vst [vmem:[#allocation228_spill] sm:$0xff] %v7757_v7  ;;  %3292 = vperm.xlu0 %6275, %v6788_v51  }
 0x2d4   : > { %v7761_v9 = vpop.permute.xlu0 %2772 }
 0x2d5   : > { %3264 = vperm.xlu1 %6274, %v6695_v56   ;;  %10895 = vst [vmem:[#allocation229_spill] sm:$0xff] %v7761_v9 }
 0x2d6   : > { %v7763_v29 = vpop.permute.xlu1 %2760 }
 0x2d7   : > { %10896 = vst [vmem:[#allocation230_spill] sm:$0xff] %v7763_v29  ;;  %3300 = vperm.xlu0 %6275, %v6804_v22  }
 0x2d8   : > { %v7767_v43 = vpop.permute.xlu0 %2780 }
 0x2d9   : > { %3272 = vperm.xlu1 %6274, %v6727_v33   ;;  %10897 = vst [vmem:[#allocation231_spill] sm:$0xff] %v7767_v43 }
 0x2da   : > { %v7769_v58 = vpop.permute.xlu1 %2768 }
 0x2db   : > { %10898 = vst [vmem:[#allocation232_spill] sm:$0xff] %v7769_v58  ;;  %3308 = vperm.xlu0 %6275, %v6813_v38  }
 0x2dc   : > { %v7773_v36 = vpop.permute.xlu0 %2788 }
 0x2dd   : > { %3280 = vperm.xlu1 %6274, %v6767_v23   ;;  %10899 = vst [vmem:[#allocation233_spill] sm:$0xff] %v7773_v36 }
 0x2de   : > { %v7775_v7 = vpop.permute.xlu1 %2776 }
 0x2df   : > { %10900 = vst [vmem:[#allocation234_spill] sm:$0xff] %v7775_v7  ;;  %3316 = vperm.xlu0 %6275, %v6821_v45  }
 0x2e0   : > { %v7779_v29 = vpop.permute.xlu0 %2796 }
 0x2e1   : > { %3288 = vperm.xlu1 %6274, %v6931_v12   ;;  %10901 = vst [vmem:[#allocation235_spill] sm:$0xff] %v7779_v29 }
 0x2e2   : > { %v7781_v9 = vpop.permute.xlu1 %2784 }
 0x2e3   : > { %10902 = vst [vmem:[#allocation236_spill] sm:$0xff] %v7781_v9  ;;  %3324 = vperm.xlu0 %6275, %v6833_v60  }
 0x2e4   : > { %v7785_v43 = vpop.permute.xlu0 %2804 }
 0x2e5   : > { %3296 = vperm.xlu1 %6274, %v6936_v54   ;;  %10903 = vst [vmem:[#allocation237_spill] sm:$0xff] %v7785_v43 }
 0x2e6   : > { %v7787_v58 = vpop.permute.xlu1 %2792 }
 0x2e7   : > { %10904 = vst [vmem:[#allocation238_spill] sm:$0xff] %v7787_v58  ;;  %3332 = vperm.xlu0 %6275, %v6844_v15  }
 0x2e8   : > { %v7791_v36 = vpop.permute.xlu0 %2812 }
 0x2e9   : > { %3304 = vperm.xlu1 %6274, %v6943_v10   ;;  %10905 = vst [vmem:[#allocation239_spill] sm:$0xff] %v7791_v36 }
 0x2ea   : > { %v7793_v7 = vpop.permute.xlu1 %2800 }
 0x2eb   : > { %10906 = vst [vmem:[#allocation240_spill] sm:$0xff] %v7793_v7  ;;  %3340 = vperm.xlu0 %6275, %v6857_v32  }
 0x2ec   : > { %v7797_v9 = vpop.permute.xlu0 %2820 }
 0x2ed   : > { %3312 = vperm.xlu1 %6274, %v6950_v61   ;;  %10907 = vst [vmem:[#allocation241_spill] sm:$0xff] %v7797_v9 }
 0x2ee   : > { %v7799_v29 = vpop.permute.xlu1 %2808 }
 0x2ef   : > { %10908 = vst [vmem:[#allocation242_spill] sm:$0xff] %v7799_v29  ;;  %3348 = vperm.xlu0 %6275, %v6865_v48  }
 0x2f0   : > { %v7803_v58 = vpop.permute.xlu0 %2828 }
 0x2f1   : > { %3320 = vperm.xlu1 %6274, %v6957_v46   ;;  %10909 = vst [vmem:[#allocation243_spill] sm:$0xff] %v7803_v58 }
 0x2f2   : > { %v7805_v43 = vpop.permute.xlu1 %2816 }
 0x2f3   : > { %10910 = vst [vmem:[#allocation244_spill] sm:$0xff] %v7805_v43  ;;  %3356 = vperm.xlu0 %6275, %v6876_v47  }
 0x2f4   : > { %v7809_v36 = vpop.permute.xlu0 %2836 }
 0x2f5   : > { %3328 = vperm.xlu1 %6274, %v6962_v4   ;;  %10911 = vst [vmem:[#allocation245_spill] sm:$0xff] %v7809_v36 }
 0x2f6   : > { %v7811_v7 = vpop.permute.xlu1 %2824 }
 0x2f7   : > { %10912 = vst [vmem:[#allocation246_spill] sm:$0xff] %v7811_v7  ;;  %3364 = vperm.xlu0 %6275, %v6885_v19  }
 0x2f8   : > { %v7815_v9 = vpop.permute.xlu0 %2844 }
 0x2f9   : > { %3336 = vperm.xlu1 %6274, %v6965_v6   ;;  %10913 = vst [vmem:[#allocation247_spill] sm:$0xff] %v7815_v9 }
 0x2fa   : > { %v7817_v29 = vpop.permute.xlu1 %2832 }
 0x2fb   : > { %10914 = vst [vmem:[#allocation248_spill] sm:$0xff] %v7817_v29  ;;  %3372 = vperm.xlu0 %6275, %v6893_v40  }
 0x2fc   : > { %v7821_v58 = vpop.permute.xlu0 %2852 }
 0x2fd   : > { %3344 = vperm.xlu1 %6274, %v6970_v37   ;;  %10915 = vst [vmem:[#allocation249_spill] sm:$0xff] %v7821_v58 }
 0x2fe   : > { %v7823_v43 = vpop.permute.xlu1 %2840 }
 0x2ff   : > { %10916 = vst [vmem:[#allocation250_spill] sm:$0xff] %v7823_v43  ;;  %6276 = vset.pattern.permute.xlu0 %v6559_v57 }
 0x300   : > { %3512 = vperm.xlu0 %6276, %v6901_v26  }
 0x301   : > { %3352 = vperm.xlu1 %6274, %v6975_v41   ;;  %v7829_v36 = vpop.permute.xlu0 %2992 }
 0x302   : > { %v7827_v7 = vpop.permute.xlu1 %2848  ;;  %10918 = vst [vmem:[#allocation252_spill] sm:$0xff] %v7829_v36 }
 0x303   : > { %10917 = vst [vmem:[#allocation251_spill] sm:$0xff] %v7827_v7 }
 0x304   : > { %3524 = vperm.xlu0 %6276, %v6695_v56  }
 0x305   : > { %3360 = vperm.xlu1 %6274, %v6978_v27   ;;  %v7835_v29 = vpop.permute.xlu0 %3004 }
 0x306   : > { %v7833_v9 = vpop.permute.xlu1 %2856  ;;  %10920 = vst [vmem:[#allocation254_spill] sm:$0xff] %v7835_v29 }
 0x307   : > { %10919 = vst [vmem:[#allocation253_spill] sm:$0xff] %v7833_v9 }
 0x308   : > { %3532 = vperm.xlu0 %6276, %v6727_v33  }
 0x309   : > { %3368 = vperm.xlu1 %6274, %v6983_v42   ;;  %v7839_v58 = vpop.permute.xlu0 %3012 }
 0x30a   : > { %10921 = vst [vmem:[#allocation255_spill] sm:$0xff] %v7839_v58 }
 0x30b   : > { %v7841_v43 = vpop.permute.xlu1 %2996 }
 0x30c   : > { %10922 = vst [vmem:[#allocation256_spill] sm:$0xff] %v7841_v43  ;;  %3540 = vperm.xlu0 %6276, %v6767_v23  }
 0x30d   : > { %3376 = vperm.xlu1 %6274, %v10759_v55   ;;  %v7845_v36 = vpop.permute.xlu0 %3020 }
 0x30e   : > { %10923 = vst [vmem:[#allocation257_spill] sm:$0xff] %v7845_v36 }
 0x30f   : > { %v7847_v7 = vpop.permute.xlu1 %3000 }
 0x310   : > { %10924 = vst [vmem:[#allocation258_spill] sm:$0xff] %v7847_v7  ;;  %3548 = vperm.xlu0 %6276, %v6931_v12   ;;  %v6560_v7 = vmov 9  }
 0x311   : > { %6277 = vset.pattern.permute.xlu1 %v6559_v57  ;;  %v7851_v29 = vpop.permute.xlu0 %3028 }
 0x312   : > { %3516 = vperm.xlu1 %6277, %v10763_v52   ;;  %10925 = vst [vmem:[#allocation259_spill] sm:$0xff] %v7851_v29 }
 0x313   : > { %v7853_v9 = vpop.permute.xlu1 %3008 }
 0x314   : > { %10926 = vst [vmem:[#allocation260_spill] sm:$0xff] %v7853_v9  ;;  %3556 = vperm.xlu0 %6276, %v6936_v54  }
 0x315   : > { %v7857_v58 = vpop.permute.xlu0 %3036 }
 0x316   : > { %3520 = vperm.xlu1 %6277, %v6687_v49   ;;  %10927 = vst [vmem:[#allocation261_spill] sm:$0xff] %v7857_v58 }
 0x317   : > { %v7859_v43 = vpop.permute.xlu1 %3016 }
 0x318   : > { %10928 = vst [vmem:[#allocation262_spill] sm:$0xff] %v7859_v43  ;;  %3564 = vperm.xlu0 %6276, %v6943_v10  }
 0x319   : > { %v7863_v57 = vpop.permute.xlu0 %3044 }
 0x31a   : > { %3528 = vperm.xlu1 %6277, %v6719_v25   ;;  %10929 = vst [vmem:[#allocation263_spill] sm:$0xff] %v7863_v57 }
 0x31b   : > { %v7865_v36 = vpop.permute.xlu1 %3024 }
 0x31c   : > { %10930 = vst [vmem:[#allocation264_spill] sm:$0xff] %v7865_v36  ;;  %3572 = vperm.xlu0 %6276, %v6950_v61  }
 0x31d   : > { %v7869_v9 = vpop.permute.xlu0 %3052 }
 0x31e   : > { %3536 = vperm.xlu1 %6277, %v6754_v13   ;;  %10931 = vst [vmem:[#allocation265_spill] sm:$0xff] %v7869_v9 }
 0x31f   : > { %v7871_v29 = vpop.permute.xlu1 %3032 }
 0x320   : > { %10932 = vst [vmem:[#allocation266_spill] sm:$0xff] %v7871_v29  ;;  %3580 = vperm.xlu0 %6276, %v6957_v46  }
 0x321   : > { %v7875_v43 = vpop.permute.xlu0 %3060 }
 0x322   : > { %3544 = vperm.xlu1 %6277, %v6773_v34   ;;  %10933 = vst [vmem:[#allocation267_spill] sm:$0xff] %v7875_v43 }
 0x323   : > { %v7877_v58 = vpop.permute.xlu1 %3040 }
 0x324   : > { %10934 = vst [vmem:[#allocation268_spill] sm:$0xff] %v7877_v58  ;;  %3588 = vperm.xlu0 %6276, %v6962_v4  }
 0x325   : > { %v7881_v57 = vpop.permute.xlu0 %3068 }
 0x326   : > { %3552 = vperm.xlu1 %6277, %v6788_v51   ;;  %10935 = vst [vmem:[#allocation269_spill] sm:$0xff] %v7881_v57 }
 0x327   : > { %v7883_v36 = vpop.permute.xlu1 %3048 }
 0x328   : > { %10936 = vst [vmem:[#allocation270_spill] sm:$0xff] %v7883_v36  ;;  %3596 = vperm.xlu0 %6276, %v6965_v6  }
 0x329   : > { %v7887_v9 = vpop.permute.xlu0 %3076 }
 0x32a   : > { %3560 = vperm.xlu1 %6277, %v6804_v22   ;;  %10937 = vst [vmem:[#allocation271_spill] sm:$0xff] %v7887_v9 }
 0x32b   : > { %v7889_v29 = vpop.permute.xlu1 %3056 }
 0x32c   : > { %10938 = vst [vmem:[#allocation272_spill] sm:$0xff] %v7889_v29  ;;  %3604 = vperm.xlu0 %6276, %v6970_v37  }
 0x32d   : > { %v7893_v58 = vpop.permute.xlu0 %3084 }
 0x32e   : > { %3568 = vperm.xlu1 %6277, %v6813_v38   ;;  %10939 = vst [vmem:[#allocation273_spill] sm:$0xff] %v7893_v58 }
 0x32f   : > { %v7895_v43 = vpop.permute.xlu1 %3064 }
 0x330   : > { %10940 = vst [vmem:[#allocation274_spill] sm:$0xff] %v7895_v43  ;;  %3612 = vperm.xlu0 %6276, %v6975_v41  }
 0x331   : > { %v7899_v36 = vpop.permute.xlu0 %3092 }
 0x332   : > { %3576 = vperm.xlu1 %6277, %v6821_v45   ;;  %10941 = vst [vmem:[#allocation275_spill] sm:$0xff] %v7899_v36 }
 0x333   : > { %v7901_v57 = vpop.permute.xlu1 %3072 }
 0x334   : > { %10942 = vst [vmem:[#allocation276_spill] sm:$0xff] %v7901_v57  ;;  %3620 = vperm.xlu0 %6276, %v6978_v27  }
 0x335   : > { %v7905_v9 = vpop.permute.xlu0 %3100 }
 0x336   : > { %3584 = vperm.xlu1 %6277, %v6833_v60   ;;  %10943 = vst [vmem:[#allocation277_spill] sm:$0xff] %v7905_v9 }
 0x337   : > { %v7907_v29 = vpop.permute.xlu1 %3080 }
 0x338   : > { %10944 = vst [vmem:[#allocation278_spill] sm:$0xff] %v7907_v29  ;;  %3628 = vperm.xlu0 %6276, %v6983_v42  }
 0x339   : > { %v7911_v58 = vpop.permute.xlu0 %3108 }
 0x33a   : > { %3592 = vperm.xlu1 %6277, %v6844_v15   ;;  %10945 = vst [vmem:[#allocation279_spill] sm:$0xff] %v7911_v58 }
 0x33b   : > { %v7913_v43 = vpop.permute.xlu1 %3088 }
 0x33c   : > { %10946 = vst [vmem:[#allocation280_spill] sm:$0xff] %v7913_v43  ;;  %3636 = vperm.xlu0 %6276, %v10759_v55  }
 0x33d   : > { %v7917_v36 = vpop.permute.xlu0 %3116 }
 0x33e   : > { %3600 = vperm.xlu1 %6277, %v6857_v32   ;;  %10947 = vst [vmem:[#allocation281_spill] sm:$0xff] %v7917_v36 }
 0x33f   : > { %v7919_v57 = vpop.permute.xlu1 %3096 }
 0x340   : > { %10948 = vst [vmem:[#allocation282_spill] sm:$0xff] %v7919_v57  ;;  %6279 = vset.pattern.permute.xlu0 %v6560_v7 }
 0x341   : > { %3776 = vperm.xlu0 %6279, %v10763_v52  }
 0x342   : > { %3608 = vperm.xlu1 %6277, %v6865_v48   ;;  %v7925_v29 = vpop.permute.xlu0 %3256 }
 0x343   : > { %v7923_v9 = vpop.permute.xlu1 %3104  ;;  %10950 = vst [vmem:[#allocation284_spill] sm:$0xff] %v7925_v29 }
 0x344   : > { %10949 = vst [vmem:[#allocation283_spill] sm:$0xff] %v7923_v9 }
 0x345   : > { %3788 = vperm.xlu0 %6279, %v6719_v25  }
 0x346   : > { %3616 = vperm.xlu1 %6277, %v6876_v47   ;;  %v7931_v43 = vpop.permute.xlu0 %3268 }
 0x347   : > { %v7929_v58 = vpop.permute.xlu1 %3112  ;;  %10952 = vst [vmem:[#allocation286_spill] sm:$0xff] %v7931_v43 }
 0x348   : > { %10951 = vst [vmem:[#allocation285_spill] sm:$0xff] %v7929_v58 }
 0x349   : > { %3796 = vperm.xlu0 %6279, %v6754_v13  }
 0x34a   : > { %3624 = vperm.xlu1 %6277, %v6885_v19   ;;  %v7935_v36 = vpop.permute.xlu0 %3276 }
 0x34b   : > { %10953 = vst [vmem:[#allocation287_spill] sm:$0xff] %v7935_v36 }
 0x34c   : > { %v7937_v57 = vpop.permute.xlu1 %3252 }
 0x34d   : > { %10954 = vst [vmem:[#allocation288_spill] sm:$0xff] %v7937_v57  ;;  %3804 = vperm.xlu0 %6279, %v6773_v34  }
 0x34e   : > { %3632 = vperm.xlu1 %6277, %v6893_v40   ;;  %v7941_v29 = vpop.permute.xlu0 %3284 }
 0x34f   : > { %10955 = vst [vmem:[#allocation289_spill] sm:$0xff] %v7941_v29 }
 0x350   : > { %v7943_v9 = vpop.permute.xlu1 %3260 }
 0x351   : > { %10956 = vst [vmem:[#allocation290_spill] sm:$0xff] %v7943_v9  ;;  %3812 = vperm.xlu0 %6279, %v6788_v51   ;;  %v10576_v9 = vlaneseq }
 0x352   : > { %6278 = vset.pattern.permute.xlu1 %v6560_v7  ;;  %v7947_v43 = vpop.permute.xlu0 %3292 }
 0x353   : > { %3772 = vperm.xlu1 %6278, %v6901_v26   ;;  %10957 = vst [vmem:[#allocation291_spill] sm:$0xff] %v7947_v43 }
 0x354   : > { %v7949_v58 = vpop.permute.xlu1 %3264 }
 0x355   : > { %10958 = vst [vmem:[#allocation292_spill] sm:$0xff] %v7949_v58  ;;  %3820 = vperm.xlu0 %6279, %v6804_v22  }
 0x356   : > { %v7953_v36 = vpop.permute.xlu0 %3300 }
 0x357   : > { %3780 = vperm.xlu1 %6278, %v6687_v49   ;;  %10959 = vst [vmem:[#allocation293_spill] sm:$0xff] %v7953_v36 }
 0x358   : > { %v7955_v57 = vpop.permute.xlu1 %3272 }
 0x359   : > { %10960 = vst [vmem:[#allocation294_spill] sm:$0xff] %v7955_v57  ;;  %3828 = vperm.xlu0 %6279, %v6813_v38   ;;  %v11010_v38 = vld [vmem:[#allocation54_spill] sm:$0xff] }
 0x35a   : > { %v7959_v7 = vpop.permute.xlu0 %3308 }
 0x35b   : > { %3784 = vperm.xlu1 %6278, %v6695_v56   ;;  %10961 = vst [vmem:[#allocation295_spill] sm:$0xff] %v7959_v7 }
 0x35c   : > { %v7961_v29 = vpop.permute.xlu1 %3280 }
 0x35d   : > { %10962 = vst [vmem:[#allocation296_spill] sm:$0xff] %v7961_v29  ;;  %3836 = vperm.xlu0 %6279, %v6821_v45   ;;  %v11006_v45 = vld [vmem:[#allocation53_spill] sm:$0xff] }
 0x35e   : > { %v7965_v43 = vpop.permute.xlu0 %3316 }
 0x35f   : > { %3792 = vperm.xlu1 %6278, %v6727_v33   ;;  %10963 = vst [vmem:[#allocation297_spill] sm:$0xff] %v7965_v43 }
 0x360   : > { %v7967_v58 = vpop.permute.xlu1 %3288 }
 0x361   : > { %10964 = vst [vmem:[#allocation298_spill] sm:$0xff] %v7967_v58  ;;  %3844 = vperm.xlu0 %6279, %v6833_v60   ;;  %v11004_v60 = vld [vmem:[#allocation32_spill] sm:$0xff] }
 0x362   : > { %v7971_v36 = vpop.permute.xlu0 %3324 }
 0x363   : > { %3800 = vperm.xlu1 %6278, %v6767_v23   ;;  %10965 = vst [vmem:[#allocation299_spill] sm:$0xff] %v7971_v36 }
 0x364   : > { %v7973_v57 = vpop.permute.xlu1 %3296 }
 0x365   : > { %10966 = vst [vmem:[#allocation300_spill] sm:$0xff] %v7973_v57  ;;  %3852 = vperm.xlu0 %6279, %v6844_v15  }
 0x366   : > { %v7977_v29 = vpop.permute.xlu0 %3332 }
 0x367   : > { %3808 = vperm.xlu1 %6278, %v6931_v12   ;;  %10967 = vst [vmem:[#allocation301_spill] sm:$0xff] %v7977_v29 }
 0x368   : > { %v7979_v7 = vpop.permute.xlu1 %3304 }
 0x369   : > { %10968 = vst [vmem:[#allocation302_spill] sm:$0xff] %v7979_v7  ;;  %3860 = vperm.xlu0 %6279, %v6857_v32  }
 0x36a   : > { %v7983_v43 = vpop.permute.xlu0 %3340 }
 0x36b   : > { %3816 = vperm.xlu1 %6278, %v6936_v54   ;;  %10969 = vst [vmem:[#allocation303_spill] sm:$0xff] %v7983_v43 }
 0x36c   : > { %v7985_v58 = vpop.permute.xlu1 %3312 }
 0x36d   : > { %10970 = vst [vmem:[#allocation304_spill] sm:$0xff] %v7985_v58  ;;  %3868 = vperm.xlu0 %6279, %v6865_v48  }
 0x36e   : > { %v7989_v36 = vpop.permute.xlu0 %3348 }
 0x36f   : > { %3824 = vperm.xlu1 %6278, %v6943_v10   ;;  %10971 = vst [vmem:[#allocation305_spill] sm:$0xff] %v7989_v36 }
 0x370   : > { %v7991_v57 = vpop.permute.xlu1 %3320 }
 0x371   : > { %10972 = vst [vmem:[#allocation306_spill] sm:$0xff] %v7991_v57  ;;  %3876 = vperm.xlu0 %6279, %v6876_v47   ;;  %v10996_v47 = vld [vmem:[#allocation49_spill] sm:$0xff] }
 0x372   : > { %v7995_v29 = vpop.permute.xlu0 %3356 }
 0x373   : > { %3832 = vperm.xlu1 %6278, %v6950_v61   ;;  %10973 = vst [vmem:[#allocation307_spill] sm:$0xff] %v7995_v29  ;;  %v10575_v29 = vmov 10  }
 0x374   : > { %v7997_v7 = vpop.permute.xlu1 %3328 }
 0x375   : > { %10974 = vst [vmem:[#allocation308_spill] sm:$0xff] %v7997_v7  ;;  %3884 = vperm.xlu0 %6279, %v6885_v19   ;;  %v10994_v19 = vld [vmem:[#allocation27_spill] sm:$0xff] }
 0x376   : > { %v8001_v43 = vpop.permute.xlu0 %3364 }
 0x377   : > { %3840 = vperm.xlu1 %6278, %v6957_v46   ;;  %10975 = vst [vmem:[#allocation309_spill] sm:$0xff] %v8001_v43 }
 0x378   : > { %v8003_v58 = vpop.permute.xlu1 %3336 }
 0x379   : > { %10976 = vst [vmem:[#allocation310_spill] sm:$0xff] %v8003_v58  ;;  %3892 = vperm.xlu0 %6279, %v6893_v40   ;;  %v8019_v58 = vshrl.u32 %v10576_v9, 7 }
 0x37a   : > { %v8007_v36 = vpop.permute.xlu0 %3372 }
 0x37b   : > { %3848 = vperm.xlu1 %6278, %v6962_v4   ;;  %10977 = vst [vmem:[#allocation311_spill] sm:$0xff] %v8007_v36 }
 0x37c   : > { %v8009_v57 = vpop.permute.xlu1 %3344 }
 0x37d   : > { %10978 = vst [vmem:[#allocation312_spill] sm:$0xff] %v8009_v57  ;;  %6280 = vset.pattern.permute.xlu0 %v10575_v29  ;;  %v8028_v29 = vsub.s32 0, %v8019_v58 }
 0x37e   : > { %4032 = vperm.xlu0 %6280, %v6901_v26  }
 0x37f   : > { %3856 = vperm.xlu1 %6278, %v6965_v6   ;;  %v8016_v43 = vpop.permute.xlu0 %3512  ;;  %10983 = vst [vmem:[#allocation317_spill] sm:$0xff] %v8028_v29 }
 0x380   : > { %v8014_v7 = vpop.permute.xlu1 %3352  ;;  %10980 = vst [vmem:[#allocation314_spill] sm:$0xff] %v8016_v43  ;;  %v8036_v43 = vsub.s32 1, %v8019_v58 }
 0x381   : > { %10979 = vst [vmem:[#allocation313_spill] sm:$0xff] %v8014_v7  ;;  %v8033_v7 = vld [vmem:[%s10512_s1 + $0xc] sm:$0xff] }
 0x382   : > { %4044 = vperm.xlu0 %6280, %v6695_v56   ;;  %10984 = vst [vmem:[#allocation318_spill] sm:$0xff] %v8036_v43  ;;  %v8050_v56 = vrot.slane %v8033_v7, %v8036_v43 }
 0x383   : > { %3864 = vperm.xlu1 %6278, %v6970_v37   ;;  %v8025_v57 = vpop.permute.xlu0 %3524 }
 0x384   : > { %v8023_v36 = vpop.permute.xlu1 %3360  ;;  %10982 = vst [vmem:[#allocation316_spill] sm:$0xff] %v8025_v57  ;;  %v8046_v57 = vrot.slane %v8033_v7, %v8028_v29  ;;  %v1824_v48 = vmul.f32 %v8050_v56, %v10996_v47 }
 0x385   : > { %10981 = vst [vmem:[#allocation315_spill] sm:$0xff] %v8023_v36 }
 0x386   : > { %4052 = vperm.xlu0 %6280, %v6727_v33   ;;  %10987 = vst [vmem:[#allocation321_spill] sm:$0xff] %v8046_v57  ;;  %v10990_v33 = vld [vmem:[#allocation24_spill] sm:$0xff]  ;;  %v8068_v43 = vmul.f32 %v8046_v57, %v10994_v19 }
 0x387   : > { %3872 = vperm.xlu1 %6278, %v6975_v41   ;;  %v8042_v36 = vpop.permute.xlu0 %3532 }
 0x388   : > { %v8040_v9 = vpop.permute.xlu1 %3368  ;;  %10986 = vst [vmem:[#allocation320_spill] sm:$0xff] %v8042_v36  ;;  %v10992_v36 = vld [vmem:[#allocation25_spill] sm:$0xff]  ;;  %10995 = vst [vmem:[#allocation27_spill] sm:$0xff] %v8068_v43  ;;  %v11013_v43 = vld [vmem:[#allocation36_spill] sm:$0xff] }
 0x389   : > { %10985 = vst [vmem:[#allocation319_spill] sm:$0xff] %v8040_v9  ;;  %v8060_v9 = vmul.f32 %v8046_v57, %v10990_v33  ;;  %v8064_v29 = vmul.f32 %v8046_v57, %v10992_v36  ;;  %v11000_v36 = vld [vmem:[#allocation31_spill] sm:$0xff] }
 0x38a   : > { %4060 = vperm.xlu0 %6280, %v6767_v23   ;;  %v10999_v23 = vld [vmem:[#allocation51_spill] sm:$0xff]  ;;  %v8084_v32 = vmul.f32 %v8046_v57, %v11000_v36 }
 0x38b   : > { %3880 = vperm.xlu1 %6278, %v6978_v27   ;;  %v8056_v40 = vpop.permute.xlu0 %3540  ;;  %10991 = vst [vmem:[#allocation24_spill] sm:$0xff] %v8060_v9  ;;  %10993 = vst [vmem:[#allocation25_spill] sm:$0xff] %v8064_v29  ;;  %v8079_v33 = vmul.f32 %v8050_v56, %v10999_v23  ;;  %v8097_v23 = vmul.f32 %v8050_v56, %v11006_v45  ;;  %v11009_v9 = vld [vmem:[#allocation57_spill] sm:$0xff]  ;;  %v8120_v29 = vmul.f32 %v8046_v57, %v11013_v43  ;;  %v11018_v36 = vld [vmem:[#allocation59_spill] sm:$0xff] }
 0x38c   : > { %v8054_v26 = vpop.permute.xlu1 %3376  ;;  %10989 = vst [vmem:[#allocation323_spill] sm:$0xff] %v8056_v40  ;;  %v1833_v45 = vmul.f32 %v8050_v56, %v11009_v9  ;;  %v8153_v43 = vmul.f32 %v8050_v56, %v7183_v39 }
 0x38d   : > { %10988 = vst [vmem:[#allocation322_spill] sm:$0xff] %v8054_v26  ;;  %v10997_v26 = vld [vmem:[#allocation29_spill] sm:$0xff]  ;;  %11014 = vst [vmem:[#allocation57_spill] sm:$0xff] %v8120_v29 }
 0x38e   : > { %v8075_v40 = vmul.f32 %v8046_v57, %v10997_v26  ;;  %4068 = vperm.xlu0 %6280, %v6931_v12   ;;  %11001 = vst [vmem:[#allocation29_spill] sm:$0xff] %v8084_v32  ;;  %v8093_v26 = vmul.f32 %v8046_v57, %v11004_v60  ;;  %v1832_v12 = vmul.f32 %v8050_v56, %v11010_v38  ;;  %v8123_v60 = vsub.s32 2, %v8019_v58  ;;  %v11023_v38 = vld [vmem:[#allocation46_spill] sm:$0xff] }
 0x38f   : > { %3888 = vperm.xlu1 %6278, %v6983_v42   ;;  %v8086_v19 = vpop.permute.xlu0 %3548  ;;  %v11007_v42 = vld [vmem:[#allocation33_spill] sm:$0xff]  ;;  %v8133_v32 = vmul.f32 %v8050_v56, %v11018_v36  ;;  %v11025_v36 = vld [vmem:[#allocation34_spill] sm:$0xff] }
 0x390   : > { %10998 = vst [vmem:[#allocation49_spill] sm:$0xff] %v8075_v40  ;;  %11002 = vst [vmem:[#allocation51_spill] sm:$0xff] %v8086_v19  ;;  %v8103_v19 = vmul.f32 %v8046_v57, %v11007_v42  ;;  %v11011_v42 = vld [vmem:[#allocation35_spill] sm:$0xff]  ;;  %v1823_v40 = vmul.f32 %v8050_v56, %v11023_v38  ;;  %v8149_v22 = vmul.f32 %v8046_v57, %v11025_v36  ;;  %v11027_v38 = vld [vmem:[#allocation48_spill] sm:$0xff] }
 0x391   : > { %v8088_v15 = vpop.permute.xlu1 %3516  ;;  %11005 = vst [vmem:[#allocation32_spill] sm:$0xff] %v8093_v26  ;;  %11015 = vst [vmem:[#allocation54_spill] sm:$0xff] %v8123_v60  ;;  %v11024_v26 = vmov 10  }
 0x392   : > { %11003 = vst [vmem:[#allocation31_spill] sm:$0xff] %v8088_v15  ;;  %11008 = vst [vmem:[#allocation53_spill] sm:$0xff] %v8103_v19  ;;  %v1887_v15 = vrot.slane %v1824_v48, 7  ;;  %4076 = vperm.xlu0 %6280, %v6936_v54   ;;  %v8116_v48 = vmul.f32 %v8046_v57, %v11011_v42  ;;  %v11019_v42 = vld [vmem:[#allocation47_spill] sm:$0xff]  ;;  %v1901_v19 = vrot.slane %v1832_v12, 7 }
 0x393   : > { %3896 = vperm.xlu1 %6278, %v10759_v55   ;;  %v8125_v47 = vpop.permute.xlu0 %3556  ;;  %v1825_v54 = vmul.f32 %v8050_v56, %v11019_v42  ;;  %v11020_v55 = vld [vmem:[#allocation37_spill] sm:$0xff]  ;;  %11026 = vst [vmem:[#allocation47_spill] sm:$0xff] %v8149_v22  ;;  %v1903_v42 = vrot.slane %v1833_v45, 6  ;;  %v8163_v45 = vrot.slane %v8033_v7, %v8123_v60  ;;  %v11030_v12 = vld [vmem:[#allocation39_spill] sm:$0xff]  ;;  %v1841_v60 = vmul.f32 %v8050_v56, %v7205_v1 }
 0x394   : > { %11012 = vst [vmem:[#allocation33_spill] sm:$0xff] %v8116_v48  ;;  %11016 = vst [vmem:[#allocation35_spill] sm:$0xff] %v8125_v47  ;;  %v8140_v27 = vmul.f32 %v8046_v57, %v11020_v55  ;;  %v11022_v47 = vld [vmem:[#allocation55_spill] sm:$0xff]  ;;  %v8171_v22 = vmul.f32 %v8046_v57, %v11030_v12  ;;  %v1907_v55 = vrot.slane %v8133_v32, 4 }
 0x395   : > { %v8127_v9 = vpop.permute.xlu1 %3520  ;;  %v1889_v48 = vrot.slane %v1825_v54, 6  ;;  %v8189_v54 = vmul.f32 %v8050_v56, %v7217_v2 }
 0x396   : > { %11017 = vst [vmem:[#allocation36_spill] sm:$0xff] %v8127_v9  ;;  %11021 = vst [vmem:[#allocation59_spill] sm:$0xff] %v8140_v27  ;;  %v1831_v9 = vmul.f32 %v8050_v56, %v11022_v47  ;;  %4084 = vperm.xlu0 %6280, %v6943_v10   ;;  %v11032_v47 = vld [vmem:[#allocation56_spill] sm:$0xff]  ;;  %v1888_v10 = vsel %vm1621_vm2, %v1887_v15, %v1823_v40  ;;  %v11035_v15 = vld [vmem:[#allocation38_spill] sm:$0xff] }
 0x397   : > { %6281 = vset.pattern.permute.xlu1 %v11024_v26  ;;  %v1826_v26 = vmul.f32 %v8050_v56, %v11027_v38  ;;  %v8165_v36 = vpop.permute.xlu0 %3564  ;;  %11031 = vst [vmem:[#allocation46_spill] sm:$0xff] %v8171_v22  ;;  %v1834_v29 = vmul.f32 %v8050_v56, %v11032_v47  ;;  %v8196_v40 = vmul.f32 %v8046_v57, %v11035_v15  ;;  %v11041_v27 = vld [vmem:[#allocation50_spill] sm:$0xff] }
 0x398   : > { %4036 = vperm.xlu1 %6281, %v10763_v52   ;;  %11028 = vst [vmem:[#allocation37_spill] sm:$0xff] %v8165_v36  ;;  %v1840_v36 = vmul.f32 %v8050_v56, %v7188_v5  ;;  %v1902_v47 = vsel %vm1621_vm2, %v1901_v19, %v1831_v9  ;;  %v11037_v5 = vld [vmem:[#allocation41_spill] sm:$0xff]  ;;  %v8204_v38 = vmul.f32 %v8050_v56, %v7229_v11  ;;  %v1921_v9 = vrot.slane %v8189_v54, 4  ;;  %v11046_v54 = vld [vmem:[#allocation44_spill] sm:$0xff] }
 0x399   : > { %v8167_v39 = vpop.permute.xlu1 %3528  ;;  %11036 = vst [vmem:[#allocation48_spill] sm:$0xff] %v8196_v40  ;;  %v8200_v1 = vmul.f32 %v8046_v57, %v11037_v5  ;;  %v1890_v32 = vsel %vm1624_vm3, %v1889_v48, %v1888_v10  ;;  %v1839_v15 = vmul.f32 %v8050_v56, %v7193_v62  ;;  %v1905_v40 = vrot.slane %v1834_v29, 5  ;;  %v11042_v10 = vld [vmem:[#allocation58_spill] sm:$0xff]  ;;  %v11043_v62 = vld [vmem:[#allocation43_spill] sm:$0xff] }
 0x39a   : > { %11029 = vst [vmem:[#allocation55_spill] sm:$0xff] %v8167_v39  ;;  %v11033_v39 = vld [vmem:[#allocation40_spill] sm:$0xff]  ;;  %4092 = vperm.xlu0 %6280, %v6950_v61   ;;  %v1828_v5 = vmul.f32 %v8050_v56, %v11041_v27  ;;  %v1915_v11 = vrot.slane %v1840_v36, 7  ;;  %v1917_v61 = vrot.slane %v1841_v60, 6  ;;  %v1836_v48 = vmul.f32 %v8050_v56, %v11042_v10 }
 0x39b   : > { %v8184_v12 = vmul.f32 %v8046_v57, %v11033_v39  ;;  %11038 = vst [vmem:[#allocation39_spill] sm:$0xff] %v8200_v1  ;;  %v1891_v39 = vrot.slane %v1826_v26, 5  ;;  %v8206_v2 = vpop.permute.xlu0 %3572  ;;  %v1904_v26 = vsel %vm1624_vm3, %v1903_v42, %v1902_v47  ;;  %v8228_v29 = vmul.f32 %v8046_v57, %v11043_v62 }
 0x39c   : > { %4040 = vperm.xlu1 %6281, %v6687_v49   ;;  %11039 = vst [vmem:[#allocation56_spill] sm:$0xff] %v8206_v2  ;;  %v1842_v2 = vmul.f32 %v8050_v56, %v7199_v44  ;;  %v8238_v47 = vmul.f32 %v8046_v57, %v11046_v54  ;;  %v1906_v10 = vsel %vm1627_vm4, %v1905_v40, %v1904_v26  ;;  %v11048_v62 = vlaneseq }
 0x39d   : > { %11034 = vst [vmem:[#allocation34_spill] sm:$0xff] %v8184_v12  ;;  %v8208_v19 = vpop.permute.xlu1 %3536  ;;  %11044 = vst [vmem:[#allocation38_spill] sm:$0xff] %v8228_v29  ;;  %v1892_v44 = vsel %vm1627_vm4, %v1891_v39, %v1890_v32  ;;  %v8243_v27 = vmul.f32 %v8050_v56, %v7248_v30  ;;  %v1895_v32 = vrot.slane %v1828_v5, 3  ;;  %v1916_v39 = vsel %vm1621_vm2, %v1915_v11, %v1839_v15  ;;  %v11050_v12 = vld [vmem:[#allocation42_spill] sm:$0xff] }
 0x39e   : > { %11040 = vst [vmem:[#allocation40_spill] sm:$0xff] %v8208_v19  ;;  %4100 = vperm.xlu0 %6280, %v6957_v46   ;;  %11047 = vst [vmem:[#allocation50_spill] sm:$0xff] %v8238_v47  ;;  %v8246_v19 = vand.u32 127, %v11048_v62  ;;  %v1919_v42 = vrot.slane %v1842_v2, 5  ;;  %v1844_v1 = vmul.f32 %v8050_v56, %v7211_v8  ;;  %v8253_v54 = vmul.f32 %v8046_v57, %v11050_v12  ;;  %v11053_v2 = vld [vmem:[#allocation45_spill] sm:$0xff]  ;;  %v11077_v29 = vld [vmem:[#allocation86_spill] sm:$0xff] }
 0x39f   : > { %v8232_v60 = vpop.permute.xlu0 %3580  ;;  %v11052_v40 = vrot.slane %v8079_v33, 4  ;;  %v1909_v30 = vrot.slane %v1836_v48, 3  ;;  %v8260_v62 = vmul.f32 %v8050_v56, %v7253_v20  ;;  %v8266_v8 = vmul.f32 %v8046_v57, %v11053_v2 }
 0x3a0   : > { %4048 = vperm.xlu1 %6281, %v6719_v25   ;;  %11045 = vst [vmem:[#allocation41_spill] sm:$0xff] %v8232_v60  ;;  %11049 = vst [vmem:[#allocation58_spill] sm:$0xff] %v8246_v19  ;;  %v1847_v12 = vmul.f32 %v8050_v56, %v7241_v18  ;;  %v1908_v33 = vsel %vm1630_vm5, %v1907_v55, %v1906_v10  ;;  %v4642_v15 = vadd.s32 4294967288, %v8246_v19  ;;  %v1931_v48 = vrot.slane %v8243_v27, 6  ;;  %v11057_v27 = vld [vmem:[#allocation52_spill] sm:$0xff] }
 0x3a1   : > { %v8234_v36 = vpop.permute.xlu1 %3544  ;;  %11051 = vst [vmem:[#allocation43_spill] sm:$0xff] %v8253_v54  ;;  %v1894_v26 = vsel %vm1630_vm5, %v11052_v40, %v1892_v44  ;;  %11054 = vst [vmem:[#allocation44_spill] sm:$0xff] %v8266_v8  ;;  %v1918_v44 = vsel %vm1624_vm3, %v1917_v61, %v1916_v39  ;;  %v1848_v40 = vmul.f32 %v8050_v56, %v7236_v21  ;;  %v1923_v10 = vrot.slane %v1844_v1, 3  ;;  %v11069_v8 = vld [vmem:[#allocation84_spill] sm:$0xff] }
 0x3a2   : > { %4108 = vperm.xlu0 %6280, %v6962_v4   ;;  %v1896_v18 = vsel %vm1633_vm6, %v1895_v32, %v1894_v26  ;;  %v1920_v55 = vsel %vm1627_vm4, %v1919_v42, %v1918_v44  ;;  %v1910_v54 = vsel %vm1633_vm6, %v1909_v30, %v1908_v33  ;;  %v8288_v20 = vmul.f32 %v8050_v56, %v7257_v59  ;;  %v11061_v33 = vld [vmem:[#allocation60_spill] sm:$0xff] }
 0x3a3   : > { %v8272_v5 = vpop.permute.xlu0 %3588  ;;  %v8292_v61 = vsub.s32 %v8246_v19, %v8019_v58  ;;  %v8299_v1 = vmul.f32 %v8050_v56, %v11057_v27  ;;  %v8303_v42 = vmul.f32 %v8163_v45, %v7261_v24  ;;  %v8306_v59 = vsub.s32 %v4642_v15, %v8019_v58 }
 0x3a4   : > { %4056 = vperm.xlu1 %6281, %v6754_v13   ;;  %11055 = vst [vmem:[#allocation42_spill] sm:$0xff] %v8272_v5  ;;  %v11060_v26 = vrot.slane %v8097_v23, 2  ;;  %v8319_v44 = vmul.f32 %v8050_v56, %v11061_v33  ;;  %v1922_v27 = vsel %vm1630_vm5, %v1921_v9, %v1920_v55  ;;  %v1929_v24 = vrot.slane %v1848_v40, 7 }
 0x3a5   : > { %v8274_v11 = vpop.permute.xlu1 %3552  ;;  %11056 = vst [vmem:[#allocation45_spill] sm:$0xff] %v8292_v61  ;;  %11058 = vst [vmem:[#allocation52_spill] sm:$0xff] %v8306_v59  ;;  %v11062_v21 = vrot.slane %v8153_v43, 2  ;;  %v8328_v2 = vsel %vm1633_vm6, %v1923_v10, %v1922_v27  ;;  %v4646_v23 = vrot.slane %v7283_v63, %v8306_v59  ;;  %v4661_v9 = vrot.slane %v7301_v3, %v8292_v61  ;;  %v11067_v63 = vld [vmem:[#allocation78_spill] sm:$0xff] }
 0x3a6   : > { %4116 = vperm.xlu0 %6280, %v6965_v6   ;;  %v8315_v30 = vsel %vm1636_vm7, %v11060_v26, %v1896_v18  ;;  %v4791_v18 = vrot.slane %v7281_v31, %v8306_v59  ;;  %v4652_v26 = vrot.slane %v7264_v17, %v8292_v61  ;;  %v4665_v43 = vrot.slane %v7299_v14, %v8306_v59  ;;  %v11065_v14 = vld [vmem:[#allocation65_spill] sm:$0xff] }
 0x3a7   : > { %v8308_v32 = vpop.permute.xlu0 %3596  ;;  %v8325_v15 = vsel %vm1636_vm7, %v11062_v21, %v1910_v54  ;;  %v4641_v54 = vrot.slane %v7271_v50, %v8292_v61  ;;  %v4656_v40 = vrot.slane %v7269_v53, %v8306_v59  ;;  %v4787_v55 = vrot.slane %v7277_v28, %v8292_v61  ;;  %v11066_v53 = vld [vmem:[#allocation79_spill] sm:$0xff] }
 0x3a8   : > { %4064 = vperm.xlu1 %6281, %v6773_v34   ;;  %11059 = vst [vmem:[#allocation324_spill] sm:$0xff] %v8308_v32  ;;  %v4800_v10 = vrot.slane %v7275_v0, %v8306_v59  ;;  %v8356_v27 = vmul.f32 %v8050_v56, %v7223_v16  ;;  %v1930_v22 = vsel %vm1621_vm2, %v1929_v24, %v1847_v12  ;;  %v11068_v24 = vld [vmem:[#allocation85_spill] sm:$0xff]  ;;  %v11072_v16 = vld [vmem:[#allocation72_spill] sm:$0xff]  ;;  %vm4573_vm10 = vcmp.eq.s32.totalorder %v8246_v19, 0 }
 0x3a9   : > { %v8310_v39 = vpop.permute.xlu1 %3560  ;;  %v1850_v31 = vmul.f32 %v8050_v56, %v7244_v35  ;;  %v4796_v3 = vrot.slane %v11065_v14, %v8292_v61  ;;  %v4648_v28 = vsel %vm4647_vm8, %v4646_v23, %v4641_v54  ;;  %v4792_v0 = vsel %vm4647_vm8, %v4791_v18, %v4787_v55  ;;  %v11070_v23 = vld [vmem:[#allocation9_spill] sm:$0xff] }
 0x3aa   : > { %4124 = vperm.xlu0 %6280, %v6970_v37   ;;  %v4805_v17 = vrot.slane %v11066_v53, %v8292_v61  ;;  %v4809_v50 = vrot.slane %v11067_v63, %v8306_v59  ;;  %v4666_v12 = vsel %vm4647_vm8, %v4665_v43, %v4661_v9  ;;  %v4679_v35 = vrot.slane %v11068_v24, %v8292_v61  ;;  %v11071_v55 = vld [vmem:[#allocation73_spill] sm:$0xff] }
 0x3ab   : > { %v8350_v21 = vpop.permute.xlu0 %3604  ;;  %v4683_v14 = vrot.slane %v11069_v8, %v8306_v59  ;;  %v4657_v18 = vsel %vm4647_vm8, %v4656_v40, %v4652_v26  ;;  %v4801_v54 = vsel %vm4647_vm8, %v4800_v10, %v4796_v3  ;;  %v4670_v53 = vrot.slane %v11071_v55, %v8292_v61  ;;  %v11075_v26 = vld [vmem:[#allocation74_spill] sm:$0xff]  ;;  %v11076_v55 = vld [vmem:[#allocation87_spill] sm:$0xff] }
 0x3ac   : > { %4072 = vperm.xlu1 %6281, %v6788_v51   ;;  %11063 = vst [vmem:[#allocation60_spill] sm:$0xff] %v8350_v21  ;;  %v4674_v9 = vrot.slane %v11072_v16, %v8306_v59  ;;  %v1932_v8 = vsel %vm1624_vm3, %v1931_v48, %v1930_v22  ;;  %v4928_v24 = vsel %vm1621_vm2, %v4657_v18, %v4648_v28  ;;  %v11078_v28 = vld [vmem:[#allocation93_spill] sm:$0xff]  ;;  %v11079_v48 = vld [vmem:[#allocation92_spill] sm:$0xff] }
 0x3ad   : > { %v8352_v33 = vpop.permute.xlu1 %3568  ;;  %v4942_v47 = vsel %vm1621_vm2, %v4801_v54, %v4792_v0  ;;  %v4818_v40 = vrot.slane %v11075_v26, %v8306_v59  ;;  %v4929_v3 = vsel %vm1624_vm3, %v4666_v12, %v4928_v24  ;;  %v4810_v10 = vsel %vm4647_vm8, %v4809_v50, %v4805_v17  ;;  %v11080_v54 = vld [vmem:[#allocation26_spill] sm:$0xff]  ;;  %v11082_v50 = vld [vmem:[#allocation75_spill] sm:$0xff] }
 0x3ae   : > { %11064 = vst [vmem:[#allocation325_spill] sm:$0xff] %v8352_v33  ;;  %4132 = vperm.xlu0 %6280, %v6975_v41   ;;  %v4823_v16 = vrot.slane %v11076_v55, %v8292_v61  ;;  %v4827_v57 = vrot.slane %v11077_v29, %v8306_v59  ;;  %v4684_v22 = vsel %vm4647_vm8, %v4683_v14, %v4679_v35  ;;  %v11081_v12 = vld [vmem:[#allocation10_spill] sm:$0xff]  ;;  %v11084_v14 = vld [vmem:[#allocation80_spill] sm:$0xff] }
 0x3af   : > { %v8383_v43 = vpop.permute.xlu0 %3612  ;;  %v4697_v0 = vrot.slane %v11078_v28, %v8292_v61  ;;  %v4701_v18 = vrot.slane %v11079_v48, %v8306_v59  ;;  %v4675_v17 = vsel %vm4647_vm8, %v4674_v9, %v4670_v53  ;;  %v4814_v24 = vrot.slane %v11082_v50, %v8292_v61  ;;  %v11086_v28 = vld [vmem:[#allocation61_spill] sm:$0xff]  ;;  %v11087_v9 = vld [vmem:[#allocation83_spill] sm:$0xff] }
 0x3b0   : > { %4080 = vperm.xlu1 %6281, %v11070_v23   ;;  %11073 = vst [vmem:[#allocation9_spill] sm:$0xff] %v8383_v43  ;;  %v1899_v43 = vrot.slane %v8299_v1, 1  ;;  %v11083_v1 = vld [vmem:[#allocation81_spill] sm:$0xff]  ;;  %v4692_v35 = vrot.slane %v11084_v14, %v8306_v59  ;;  %v1933_v48 = vrot.slane %v1850_v31, 5  ;;  %v1852_v21 = vmul.f32 %v8050_v56, %v11086_v28  ;;  %v11089_v28 = vld [vmem:[#allocation95_spill] sm:$0xff] }
 0x3b1   : > { %v8385_v63 = vpop.permute.xlu1 %3576  ;;  %v4688_v55 = vrot.slane %v11083_v1, %v8292_v61  ;;  %v4943_v32 = vsel %vm1624_vm3, %v4810_v10, %v4942_v47  ;;  %v4930_v53 = vsel %vm1627_vm4, %v4675_v17, %v4929_v3  ;;  %v4832_v50 = vrot.slane %v11087_v9, %v8292_v61  ;;  %v11088_v1 = vld [vmem:[#allocation82_spill] sm:$0xff]  ;;  %v11091_v10 = vld [vmem:[#allocation28_spill] sm:$0xff]  ;;  %v11092_v17 = vld [vmem:[#allocation11_spill] sm:$0xff] }
 0x3b2   : > { %11074 = vst [vmem:[#allocation326_spill] sm:$0xff] %v8385_v63  ;;  %4140 = vperm.xlu0 %6280, %v11080_v54   ;;  %v4836_v5 = vrot.slane %v11088_v1, %v8306_v59  ;;  %v4931_v14 = vsel %vm1630_vm5, %v4684_v22, %v4930_v53  ;;  %v1913_v63 = vrot.slane %v8319_v44, 1  ;;  %v4702_v31 = vsel %vm4647_vm8, %v4701_v18, %v4697_v0  ;;  %v11090_v47 = vld [vmem:[#allocation94_spill] sm:$0xff]  ;;  %v11094_v44 = vld [vmem:[#allocation88_spill] sm:$0xff] }
 0x3b3   : > { %v8413_v29 = vpop.permute.xlu0 %3620  ;;  %v4841_v33 = vrot.slane %v11089_v28, %v8292_v61  ;;  %v4845_v3 = vrot.slane %v11090_v47, %v8306_v59  ;;  %v4819_v9 = vsel %vm4647_vm8, %v4818_v40, %v4814_v24  ;;  %v4693_v22 = vsel %vm4647_vm8, %v4692_v35, %v4688_v55  ;;  %v11096_v40 = vld [vmem:[#allocation62_spill] sm:$0xff]  ;;  %v11097_v24 = vld [vmem:[#allocation63_spill] sm:$0xff] }
 0x3b4   : > { %4088 = vperm.xlu1 %6281, %v11081_v12   ;;  %11085 = vst [vmem:[#allocation26_spill] sm:$0xff] %v8413_v29  ;;  %v4828_v29 = vsel %vm4647_vm8, %v4827_v57, %v4823_v16  ;;  %v11093_v57 = vld [vmem:[#allocation89_spill] sm:$0xff]  ;;  %v4710_v0 = vrot.slane %v11094_v44, %v8306_v59  ;;  %v1934_v47 = vsel %vm1627_vm4, %v1933_v48, %v1932_v8  ;;  %v1937_v28 = vrot.slane %v1852_v21, 3 }
 0x3b5   : > { %v8415_v26 = vpop.permute.xlu1 %3584  ;;  %v4706_v16 = vrot.slane %v11093_v57, %v8292_v61  ;;  %v4944_v1 = vsel %vm1627_vm4, %v4819_v9, %v4943_v32  ;;  %v4932_v60 = vsel %vm1633_vm6, %v4693_v22, %v4931_v14  ;;  %v1854_v55 = vmul.f32 %v8050_v56, %v11096_v40  ;;  %v11099_v14 = vld [vmem:[#allocation30_spill] sm:$0xff]  ;;  %v11100_v56 = vld [vmem:[#allocation12_spill] sm:$0xff]  ;;  %v11101_v9 = vld [vmem:[#allocation91_spill] sm:$0xff] }
 0x3b6   : > { %4148 = vperm.xlu0 %6280, %v11091_v10   ;;  %v2084_v35 = vmul.f32 %v8163_v45, %v11097_v24  ;;  %v4945_v57 = vsel %vm1630_vm5, %v4828_v29, %v4944_v1  ;;  %v4933_v44 = vsel %vm1636_vm7, %v4702_v31, %v4932_v60  ;;  %v1927_v21 = vrot.slane %v8356_v27, 1  ;;  %v11102_v60 = vld [vmem:[#allocation90_spill] sm:$0xff] }
 0x3b7   : > { %v8441_v18 = vpop.permute.xlu0 %3628  ;;  %v4837_v32 = vsel %vm4647_vm8, %v4836_v5, %v4832_v50  ;;  %v4846_v48 = vsel %vm4647_vm8, %v4845_v3, %v4841_v33  ;;  %v4850_v29 = vrot.slane %v11101_v9, %v8292_v61  ;;  %v4854_v1 = vrot.slane %v11102_v60, %v8306_v59 }
 0x3b8   : > { %4096 = vperm.xlu1 %6281, %v11092_v17   ;;  %11095 = vst [vmem:[#allocation10_spill] sm:$0xff] %v8441_v18  ;;  %v11098_v18 = vrot.slane %v8204_v38, 2  ;;  %v11103_v5 = vrot.slane %v8260_v62, 4  ;;  %v4946_v50 = vsel %vm1633_vm6, %v4837_v32, %v4945_v57  ;;  %v1941_v22 = vrot.slane %v1854_v55, 1  ;;  %v11107_v57 = vld [vmem:[#allocation13_spill] sm:$0xff] }
 0x3b9   : > { %v8443_v53 = vpop.permute.xlu1 %3592  ;;  %v4947_v40 = vsel %vm1636_vm7, %v4846_v48, %v4946_v50  ;;  %v8482_v24 = vsel %vm1639_vm9, %v1899_v43, %v8315_v30  ;;  %v8486_v62 = vsel %vm1639_vm9, %v1913_v63, %v8325_v15  ;;  %v4855_v15 = vsel %vm4647_vm8, %v4854_v1, %v4850_v29  ;;  %v11112_v32 = vld [vmem:[#allocation101_spill] sm:$0xff] }
 0x3ba   : > { %v1926_v8 = vsel %vm1636_vm7, %v11098_v18, %v8328_v2  ;;  %4156 = vperm.xlu0 %6280, %v11099_v14   ;;  %v4711_v2 = vsel %vm4647_vm8, %v4710_v0, %v4706_v16  ;;  %v1936_v33 = vsel %vm1630_vm5, %v11103_v5, %v1934_v47  ;;  %v2147_v18 = vrot.slane %v2084_v35, 7  ;;  %11104 = vst [vmem:[#allocation61_spill] sm:$0xff] %v8482_v24  ;;  %v11109_v0 = vld [vmem:[#allocation99_spill] sm:$0xff]  ;;  %v11116_v50 = vld [vmem:[#allocation97_spill] sm:$0xff]  ;;  %v11138_v24 = vld [vmem:[#allocation128_spill] sm:$0xff] }
 0x3bb   : > { %v8467_v31 = vpop.permute.xlu0 %3636  ;;  %v4934_v27 = vsel %vm1639_vm9, %v4711_v2, %v4933_v44  ;;  %v1938_v3 = vsel %vm1633_vm6, %v1937_v28, %v1936_v33  ;;  %11105 = vst [vmem:[#allocation28_spill] sm:$0xff] %v8486_v62  ;;  %v8489_v47 = vsel %vm1639_vm9, %v1927_v21, %v1926_v8  ;;  %v10648_v16 = vmov 11   ;;  %v11108_v28 = vld [vmem:[#allocation100_spill] sm:$0xff]  ;;  %v11111_v8 = vld [vmem:[#allocation102_spill] sm:$0xff]  ;;  %v11115_v33 = vld [vmem:[#allocation107_spill] sm:$0xff] }
 0x3bc   : > { %4104 = vperm.xlu1 %6281, %v11100_v56   ;;  %11106 = vst [vmem:[#allocation11_spill] sm:$0xff] %v8489_v47  ;;  %v4715_v44 = vrot.slane %v11108_v28, %v8292_v61  ;;  %v4719_v30 = vrot.slane %v11109_v0, %v8306_v59  ;;  %v4960_v63 = vsel %vm4573_vm10, -1e+30, %v4934_v27  ;;  %v11110_v55 = vrot.slane %v8288_v20, 2  ;;  %v11114_v20 = vld [vmem:[#allocation108_spill] sm:$0xff]  ;;  %v11135_v62 = vld [vmem:[#allocation137_spill] sm:$0xff] }
 0x3bd   : > { %v8469_v38 = vpop.permute.xlu1 %3600  ;;  %v4859_v21 = vrot.slane %v11111_v8, %v8292_v61  ;;  %v4863_v48 = vrot.slane %v11112_v32, %v8306_v59  ;;  %v2148_v29 = vsel %vm1621_vm2, %v2147_v18, %v8303_v42  ;;  %v4733_v1 = vrot.slane %v11114_v20, %v8292_v61  ;;  %v11121_v42 = vld [vmem:[#allocation5_spill] sm:$0xff]  ;;  %v11125_v20 = vld [vmem:[#allocation135_spill] sm:$0xff] }
 0x3be   : > { %6283 = vset.pattern.permute.xlu0 %v10648_v16  ;;  %v1940_v35 = vsel %vm1636_vm7, %v11110_v55, %v1938_v3  ;;  %v4737_v27 = vrot.slane %v11115_v33, %v8306_v59  ;;  %v4724_v3 = vrot.slane %v11116_v50, %v8292_v61  ;;  %v11117_v55 = vld [vmem:[#allocation96_spill] sm:$0xff]  ;;  %v4868_v18 = vrot.slane %v11121_v42, %v8292_v61  ;;  %v11124_v42 = vld [vmem:[#allocation103_spill] sm:$0xff]  ;;  %v11128_v50 = vld [vmem:[#allocation105_spill] sm:$0xff] }
 0x3bf   : > { %4296 = vperm.xlu0 %6283, %v10763_v52   ;;  %v4948_v52 = vsel %vm1639_vm9, %v4855_v15, %v4947_v40  ;;  %v8514_v5 = vsel %vm1639_vm9, %v1941_v22, %v1940_v35  ;;  %v4728_v16 = vrot.slane %v11117_v55, %v8306_v59  ;;  %v8527_v40 = vsub.s32 3, %v8019_v58  ;;  %v11119_v22 = vld [vmem:[#allocation14_spill] sm:$0xff] }
 0x3c0   : > { %4112 = vperm.xlu1 %6281, %v11107_v57   ;;  %v8510_v2 = vpop.permute.xlu0 %3776  ;;  %11113 = vst [vmem:[#allocation62_spill] sm:$0xff] %v8514_v5  ;;  %v8531_v15 = vsel %vm4964_vm11, %v4960_v63, -inf  ;;  %v11122_v35 = vld [vmem:[#allocation98_spill] sm:$0xff]  ;;  %v4720_v9 = vsel %vm4647_vm8, %v4719_v30, %v4715_v44  ;;  %v8543_v32 = vsel %vm4573_vm10, -1e+30, %v4948_v52  ;;  %v4864_v33 = vsel %vm4647_vm8, %v4863_v48, %v4859_v21  ;;  %v11123_v63 = vld [vmem:[#allocation104_spill] sm:$0xff] }
 0x3c1   : > { %v8498_v43 = vpop.permute.xlu1 %3608  ;;  %11118 = vst [vmem:[#allocation63_spill] sm:$0xff] %v8527_v40  ;;  %11120 = vst [vmem:[#allocation30_spill] sm:$0xff] %v8531_v15  ;;  %v4872_v60 = vrot.slane %v11122_v35, %v8306_v59  ;;  %v4742_v55 = vrot.slane %v11123_v63, %v8292_v61  ;;  %v4746_v0 = vrot.slane %v11124_v42, %v8306_v59  ;;  %v11129_v21 = vld [vmem:[#allocation126_spill] sm:$0xff]  ;;  %v11132_v15 = vld [vmem:[#allocation129_spill] sm:$0xff] }
 0x3c2   : > { %v2092_v35 = vmul.f32 %v8163_v45, %v11125_v20  ;;  %v4890_v52 = vrot.slane %v11128_v50, %v8306_v59  ;;  %v4738_v28 = vsel %vm4647_vm8, %v4737_v27, %v4733_v1  ;;  %v2085_v48 = vmul.f32 %v8163_v45, %v11129_v21  ;;  %v11130_v42 = vld [vmem:[#allocation110_spill] sm:$0xff]  ;;  %v11131_v20 = vld [vmem:[#allocation109_spill] sm:$0xff] }
 0x3c3   : > { %4308 = vperm.xlu0 %6283, %v6719_v25   ;;  %v11127_v25 = vld [vmem:[#allocation106_spill] sm:$0xff]  ;;  %v4729_v63 = vsel %vm4647_vm8, %v4728_v16, %v4724_v3  ;;  %v4877_v19 = vrot.slane %v11130_v42, %v8292_v61  ;;  %v4881_v5 = vrot.slane %v11131_v20, %v8306_v59  ;;  %v2086_v47 = vmul.f32 %v8163_v45, %v11132_v15 }
 0x3c4   : > { %4120 = vperm.xlu1 %6281, %v11119_v22   ;;  %v8552_v44 = vpop.permute.xlu0 %3788  ;;  %v4886_v30 = vrot.slane %v11127_v25, %v8292_v61  ;;  %v11133_v25 = vld [vmem:[#allocation15_spill] sm:$0xff]  ;;  %v4873_v50 = vsel %vm4647_vm8, %v4872_v60, %v4868_v18  ;;  %v4935_v1 = vsel %vm1621_vm2, %v4729_v63, %v4720_v9  ;;  %v11134_v27 = vld [vmem:[#allocation134_spill] sm:$0xff]  ;;  %v8575_v16 = vrot.slane %v8033_v7, %v8527_v40 }
 0x3c5   : > { %v8539_v8 = vpop.permute.xlu1 %3616  ;;  %11126 = vst [vmem:[#allocation12_spill] sm:$0xff] %v8552_v44  ;;  %v2093_v21 = vmul.f32 %v8163_v45, %v11134_v27  ;;  %v4949_v42 = vsel %vm1621_vm2, %v4873_v50, %v4864_v33  ;;  %v4936_v15 = vsel %vm1624_vm3, %v4738_v28, %v4935_v1  ;;  %v2161_v20 = vrot.slane %v2092_v35, 7  ;;  %v11139_v50 = vld [vmem:[#allocation131_spill] sm:$0xff]  ;;  %v11140_v35 = vld [vmem:[#allocation132_spill] sm:$0xff] }
 0x3c6   : > { %v2094_v60 = vmul.f32 %v8163_v45, %v11135_v62  ;;  %v4747_v18 = vsel %vm4647_vm8, %v4746_v0, %v4742_v55  ;;  %v8588_v63 = vsel %vm4647_vm8, %v4890_v52, %v4886_v30  ;;  %v2149_v27 = vrot.slane %v2085_v48, 6  ;;  %v11141_v1 = vld [vmem:[#allocation16_spill] sm:$0xff]  ;;  %v11142_v0 = vld [vmem:[#allocation111_spill] sm:$0xff] }
 0x3c7   : > { %4316 = vperm.xlu0 %6283, %v6754_v13   ;;  %11137 = vst [vmem:[#allocation14_spill] sm:$0xff] %v8588_v63  ;;  %v2087_v13 = vmul.f32 %v8163_v45, %v11138_v24  ;;  %v4882_v44 = vsel %vm4647_vm8, %v4881_v5, %v4877_v19  ;;  %v2151_v33 = vrot.slane %v2086_v47, 5  ;;  %v2088_v28 = vmul.f32 %v8163_v45, %v11139_v50  ;;  %v11144_v48 = vld [vmem:[#allocation136_spill] sm:$0xff]  ;;  %v11147_v63 = vld [vmem:[#allocation139_spill] sm:$0xff] }
 0x3c8   : > { %4128 = vperm.xlu1 %6281, %v11133_v25   ;;  %v8584_v9 = vpop.permute.xlu0 %3796  ;;  %v2091_v62 = vmul.f32 %v8163_v45, %v11140_v35  ;;  %v4764_v55 = vrot.slane %v11142_v0, %v8306_v59  ;;  %v8601_v30 = vsel %vm1627_vm4, %v4747_v18, %v4936_v15  ;;  %v2163_v52 = vrot.slane %v2093_v21, 6  ;;  %v11146_v47 = vld [vmem:[#allocation112_spill] sm:$0xff]  ;;  %v11155_v15 = vld [vmem:[#allocation143_spill] sm:$0xff] }
 0x3c9   : > { %v8578_v3 = vpop.permute.xlu1 %3624  ;;  %11136 = vst [vmem:[#allocation13_spill] sm:$0xff] %v8584_v9  ;;  %11143 = vst [vmem:[#allocation135_spill] sm:$0xff] %v8601_v30  ;;  %v2095_v24 = vmul.f32 %v8163_v45, %v11144_v48  ;;  %v4760_v5 = vrot.slane %v11146_v47, %v8292_v61  ;;  %v2165_v35 = vrot.slane %v2094_v60, 5  ;;  %v2096_v0 = vmul.f32 %v8163_v45, %v11147_v63  ;;  %v11152_v60 = vld [vmem:[#allocation133_spill] sm:$0xff] }
 0x3ca   : > { %v2162_v50 = vsel %vm1621_vm2, %v2161_v20, %v2091_v62  ;;  %v8616_v21 = vsel %vm1624_vm3, %v4882_v44, %v4949_v42  ;;  %v2153_v48 = vrot.slane %v2087_v13, 4  ;;  %v2155_v47 = vrot.slane %v2088_v28, 3  ;;  %v11153_v62 = vld [vmem:[#allocation17_spill] sm:$0xff] }
 0x3cb   : > { %4324 = vperm.xlu0 %6283, %v6773_v34   ;;  %11149 = vst [vmem:[#allocation15_spill] sm:$0xff] %v8616_v21  ;;  %v2150_v34 = vsel %vm1624_vm3, %v2149_v27, %v2148_v29  ;;  %v2090_v63 = vmul.f32 %v8163_v45, %v11152_v60  ;;  %v2164_v42 = vsel %vm1624_vm3, %v2163_v52, %v2162_v50  ;;  %v2167_v44 = vrot.slane %v2095_v24, 4  ;;  %v11154_v21 = vld [vmem:[#allocation138_spill] sm:$0xff]  ;;  %v11159_v24 = vld [vmem:[#allocation116_spill] sm:$0xff] }
 0x3cc   : > { %4136 = vperm.xlu1 %6281, %v11141_v1   ;;  %v8613_v9 = vpop.permute.xlu0 %3804  ;;  %v2152_v30 = vsel %vm1627_vm4, %v2151_v33, %v2150_v34  ;;  %v2097_v18 = vmul.f32 %v8163_v45, %v11154_v21  ;;  %v2100_v29 = vmul.f32 %v8163_v45, %v11155_v15  ;;  %v8634_v27 = vsel %vm4647_vm8, %v4764_v55, %v4760_v5  ;;  %v11160_v21 = vld [vmem:[#allocation115_spill] sm:$0xff]  ;;  %v11163_v33 = vld [vmem:[#allocation18_spill] sm:$0xff] }
 0x3cd   : > { %v8606_v19 = vpop.permute.xlu1 %3632  ;;  %11148 = vst [vmem:[#allocation129_spill] sm:$0xff] %v8613_v9  ;;  %11156 = vst [vmem:[#allocation134_spill] sm:$0xff] %v8634_v27  ;;  %v2166_v28 = vsel %vm1627_vm4, %v2165_v35, %v2164_v42  ;;  %v4751_v50 = vrot.slane %v11159_v24, %v8292_v61  ;;  %v4755_v15 = vrot.slane %v11160_v21, %v8306_v59  ;;  %v8649_v55 = vsub.s32 4, %v8019_v58  ;;  %v11164_v9 = vld [vmem:[#allocation145_spill] sm:$0xff]  ;;  %v11184_v61 = vld [vmem:[#allocation148_spill] sm:$0xff] }
 0x3ce   : > { %11145 = vst [vmem:[#allocation126_spill] sm:$0xff] %v8606_v19  ;;  %v11151_v19 = vld [vmem:[#allocation130_spill] sm:$0xff]  ;;  %v2159_v35 = vrot.slane %v2090_v63, 1  ;;  %v2168_v13 = vsel %vm1630_vm5, %v2167_v44, %v2166_v28  ;;  %v2171_v24 = vrot.slane %v2097_v18, 2  ;;  %v2175_v27 = vrot.slane %v2100_v29, 7  ;;  %v11171_v29 = vld [vmem:[#allocation144_spill] sm:$0xff] }
 0x3cf   : > { %v2089_v20 = vmul.f32 %v8163_v45, %v11151_v19  ;;  %4332 = vperm.xlu0 %6283, %v6788_v51   ;;  %v2169_v19 = vrot.slane %v2096_v0, 3  ;;  %v2154_v51 = vsel %vm1630_vm5, %v2153_v48, %v2152_v30  ;;  %11161 = vst [vmem:[#allocation128_spill] sm:$0xff] %v8649_v55  ;;  %v11162_v0 = vld [vmem:[#allocation142_spill] sm:$0xff]  ;;  %v2102_v21 = vmul.f32 %v8163_v45, %v11164_v9  ;;  %v11170_v9 = vld [vmem:[#allocation140_spill] sm:$0xff]  ;;  %v11176_v48 = vld [vmem:[#allocation19_spill] sm:$0xff] }
 0x3d0   : > { %4144 = vperm.xlu1 %6281, %v11153_v62   ;;  %v8639_v34 = vpop.permute.xlu0 %3812  ;;  %v2156_v5 = vsel %vm1633_vm6, %v2155_v47, %v2154_v51  ;;  %v2101_v42 = vmul.f32 %v8163_v45, %v11162_v0  ;;  %v11167_v51 = vld [vmem:[#allocation151_spill] sm:$0xff]  ;;  %v8671_v44 = vsel %vm4647_vm8, %v4755_v15, %v4751_v50  ;;  %v2103_v28 = vmul.f32 %v8163_v45, %v11171_v29 }
 0x3d1   : > { %11158 = vst [vmem:[#allocation137_spill] sm:$0xff] %v8639_v34  ;;  %v2157_v60 = vrot.slane %v2089_v20, 2  ;;  %v2170_v47 = vsel %vm1633_vm6, %v2169_v19, %v2168_v13  ;;  %v11166_v20 = vld [vmem:[#allocation141_spill] sm:$0xff]  ;;  %v2108_v0 = vmul.f32 %v8163_v45, %v11167_v51  ;;  %11169 = vst [vmem:[#allocation132_spill] sm:$0xff] %v8671_v44  ;;  %v11172_v13 = vld [vmem:[#allocation159_spill] sm:$0xff]  ;;  %v8684_v59 = vrot.slane %v8033_v7, %v8649_v55 }
 0x3d2   : > { %v8641_v52 = vpop.permute.xlu1 %3772  ;;  %v2098_v63 = vmul.f32 %v8163_v45, %v11166_v20  ;;  %v2344_v19 = vmul.f32 %v8575_v16, %v11172_v13  ;;  %v2177_v30 = vrot.slane %v2101_v42, 6  ;;  %v11174_v50 = vmov 11   ;;  %v11177_v42 = vld [vmem:[#allocation150_spill] sm:$0xff] }
 0x3d3   : > { %4340 = vperm.xlu0 %6283, %v11070_v23   ;;  %v2099_v23 = vmul.f32 %v8163_v45, %v11170_v9  ;;  %v2158_v51 = vsel %vm1636_vm7, %v2157_v60, %v2156_v5  ;;  %v2172_v9 = vsel %vm1636_vm7, %v2171_v24, %v2170_v47  ;;  %v2179_v13 = vrot.slane %v2102_v21, 5  ;;  %v11178_v20 = vld [vmem:[#allocation158_spill] sm:$0xff]  ;;  %v11180_v47 = vld [vmem:[#allocation153_spill] sm:$0xff]  ;;  %v11181_v21 = vld [vmem:[#allocation156_spill] sm:$0xff] }
 0x3d4   : > { %4152 = vperm.xlu1 %6281, %v11163_v33   ;;  %v8666_v34 = vpop.permute.xlu0 %3820  ;;  %v8688_v15 = vsel %vm1639_vm9, %v2159_v35, %v2158_v51  ;;  %v2173_v5 = vrot.slane %v2098_v63, 1  ;;  %v2189_v60 = vrot.slane %v2108_v0, 7  ;;  %v2109_v55 = vmul.f32 %v8163_v45, %v11177_v42  ;;  %v11182_v0 = vld [vmem:[#allocation147_spill] sm:$0xff]  ;;  %v11183_v42 = vld [vmem:[#allocation146_spill] sm:$0xff] }
 0x3d5   : > { %11168 = vst [vmem:[#allocation131_spill] sm:$0xff] %v8666_v34  ;;  %11175 = vst [vmem:[#allocation16_spill] sm:$0xff] %v8688_v15  ;;  %v2176_v29 = vsel %vm1621_vm2, %v2175_v27, %v2099_v23  ;;  %v2181_v24 = vrot.slane %v2103_v28, 4  ;;  %v2110_v27 = vmul.f32 %v8163_v45, %v11180_v47  ;;  %v2407_v23 = vrot.slane %v2344_v19, 7  ;;  %v11186_v34 = vld [vmem:[#allocation160_spill] sm:$0xff] }
 0x3d6   : > { %v8668_v18 = vpop.permute.xlu1 %3780  ;;  %v2178_v63 = vsel %vm1624_vm3, %v2177_v30, %v2176_v29  ;;  %v2104_v51 = vmul.f32 %v8163_v45, %v11182_v0  ;;  %v2107_v15 = vmul.f32 %v8163_v45, %v11184_v61  ;;  %v2346_v19 = vmul.f32 %v8575_v16, %v11186_v34  ;;  %v11191_v0 = vld [vmem:[#allocation155_spill] sm:$0xff] }
 0x3d7   : > { %4348 = vperm.xlu0 %6283, %v11081_v12   ;;  %v2343_v12 = vmul.f32 %v8575_v16, %v11181_v21  ;;  %v2180_v28 = vsel %vm1627_vm4, %v2179_v13, %v2178_v63  ;;  %v8724_v30 = vsel %vm4964_vm11, %v8543_v32, -inf  ;;  %v8727_v29 = vsel %vm1639_vm9, %v2173_v5, %v2172_v9 }
 0x3d8   : > { %6282 = vset.pattern.permute.xlu1 %v11174_v50  ;;  %v2345_v50 = vmul.f32 %v8575_v16, %v11178_v20  ;;  %v8698_v44 = vpop.permute.xlu0 %3828  ;;  %v8711_v20 = vmul.f32 %v8163_v45, %v11183_v42  ;;  %11187 = vst [vmem:[#allocation139_spill] sm:$0xff] %v8724_v30  ;;  %11188 = vst [vmem:[#allocation130_spill] sm:$0xff] %v8727_v29  ;;  %v2190_v61 = vsel %vm1621_vm2, %v2189_v60, %v2107_v15  ;;  %v11192_v42 = vld [vmem:[#allocation166_spill] sm:$0xff] }
 0x3d9   : > { %4292 = vperm.xlu1 %6282, %v11176_v48   ;;  %11179 = vst [vmem:[#allocation136_spill] sm:$0xff] %v8698_v44  ;;  %v11185_v44 = vld [vmem:[#allocation152_spill] sm:$0xff]  ;;  %v2191_v13 = vrot.slane %v2109_v55, 6  ;;  %v2193_v34 = vrot.slane %v2110_v27, 5  ;;  %v2352_v32 = vmul.f32 %v8575_v16, %v11192_v42  ;;  %v2182_v9 = vsel %vm1630_vm5, %v2181_v24, %v2180_v28  ;;  %v11193_v55 = vld [vmem:[#allocation161_spill] sm:$0xff]  ;;  %v11198_v28 = vld [vmem:[#allocation167_spill] sm:$0xff] }
 0x3da   : > { %v8700_v35 = vpop.permute.xlu1 %3784  ;;  %v2111_v47 = vmul.f32 %v8163_v45, %v11185_v44  ;;  %v2409_v21 = vrot.slane %v2345_v50, 6  ;;  %v2183_v5 = vrot.slane %v2104_v51, 3  ;;  %v2185_v15 = vrot.slane %v8711_v20, 2  ;;  %v11194_v50 = vld [vmem:[#allocation149_spill] sm:$0xff] }
 0x3db   : > { %4356 = vperm.xlu0 %6283, %v11092_v17   ;;  %v2112_v17 = vmul.f32 %v8163_v45, %v11191_v0  ;;  %v2347_v60 = vmul.f32 %v8575_v16, %v11193_v55  ;;  %v2106_v30 = vmul.f32 %v8163_v45, %v11194_v50  ;;  %v2411_v29 = vrot.slane %v2346_v19, 5  ;;  %v11201_v50 = vld [vmem:[#allocation168_spill] sm:$0xff] }
 0x3dc   : > { %v8730_v63 = vpop.permute.xlu0 %3836  ;;  %v2195_v27 = vrot.slane %v2111_v47, 4  ;;  %v2192_v24 = vsel %vm1624_vm3, %v2191_v13, %v2190_v61  ;;  %v2353_v42 = vmul.f32 %v8575_v16, %v11198_v28  ;;  %v2184_v61 = vsel %vm1633_vm6, %v2183_v5, %v2182_v9  ;;  %v11202_v13 = vld [vmem:[#allocation157_spill] sm:$0xff] }
 0x3dd   : > { %4300 = vperm.xlu1 %6282, %v6687_v49   ;;  %11189 = vst [vmem:[#allocation133_spill] sm:$0xff] %v8730_v63  ;;  %v2408_v49 = vsel %vm1621_vm2, %v2407_v23, %v2343_v12  ;;  %v11195_v63 = vld [vmem:[#allocation162_spill] sm:$0xff]  ;;  %v2194_v19 = vsel %vm1627_vm4, %v2193_v34, %v2192_v24  ;;  %v11206_v24 = vld [vmem:[#allocation7_spill] sm:$0xff]  ;;  %v2187_v9 = vrot.slane %v2106_v30, 1  ;;  %v8790_v40 = vsub.s32 5, %v8019_v58 }
 0x3de   : > { %v8732_v44 = vpop.permute.xlu1 %3792  ;;  %v2348_v0 = vmul.f32 %v8575_v16, %v11195_v63  ;;  %v11196_v12 = vld [vmem:[#allocation6_spill] sm:$0xff]  ;;  %v2410_v20 = vsel %vm1624_vm3, %v2409_v21, %v2408_v49  ;;  %v2197_v63 = vrot.slane %v2112_v17, 3  ;;  %v2413_v21 = vrot.slane %v2347_v60, 4  ;;  %v11203_v49 = vld [vmem:[#allocation163_spill] sm:$0xff]  ;;  %v11205_v17 = vld [vmem:[#allocation165_spill] sm:$0xff] }
 0x3df   : > { %11190 = vst [vmem:[#allocation17_spill] sm:$0xff] %v8732_v44  ;;  %4364 = vperm.xlu0 %6283, %v11100_v56   ;;  %v11197_v23 = vld [vmem:[#allocation154_spill] sm:$0xff]  ;;  %v2421_v56 = vrot.slane %v2352_v32, 7  ;;  %v2349_v28 = vmul.f32 %v8575_v16, %v11203_v49  ;;  %v2351_v32 = vmul.f32 %v8575_v16, %v11205_v17  ;;  %v2423_v5 = vrot.slane %v2353_v42, 6  ;;  %v11207_v60 = vld [vmem:[#allocation169_spill] sm:$0xff]  ;;  %11211 = vst [vmem:[#allocation18_spill] sm:$0xff] %v8790_v40 }
 0x3e0   : > { %v2113_v51 = vmul.f32 %v8163_v45, %v11197_v23  ;;  %v8755_v55 = vpop.permute.xlu0 %3844  ;;  %v2114_v23 = vmul.f32 %v8163_v45, %v11202_v13  ;;  %v2415_v44 = vrot.slane %v2348_v0, 3  ;;  %v2196_v45 = vsel %vm1630_vm5, %v2195_v27, %v2194_v19 }
 0x3e1   : > { %4304 = vperm.xlu1 %6282, %v11196_v12   ;;  %11199 = vst [vmem:[#allocation138_spill] sm:$0xff] %v8755_v55  ;;  %v2354_v12 = vmul.f32 %v8575_v16, %v11201_v50  ;;  %v2412_v55 = vsel %vm1627_vm4, %v2411_v29, %v2410_v20  ;;  %v2355_v50 = vmul.f32 %v8575_v16, %v11207_v60  ;;  %v2417_v30 = vrot.slane %v2349_v28, 2  ;;  %v11210_v60 = vld [vmem:[#allocation170_spill] sm:$0xff] }
 0x3e2   : > { %v8757_v47 = vpop.permute.xlu1 %3800  ;;  %v2198_v0 = vsel %vm1633_vm6, %v2197_v63, %v2196_v45  ;;  %v2199_v20 = vrot.slane %v2113_v51, 2  ;;  %v2414_v17 = vsel %vm1630_vm5, %v2413_v21, %v2412_v55  ;;  %v11212_v51 = vld [vmem:[#allocation8_spill] sm:$0xff]  ;;  %v2186_v63 = vsel %vm1636_vm7, %v2185_v15, %v2184_v61 }
 0x3e3   : > { %11200 = vst [vmem:[#allocation143_spill] sm:$0xff] %v8757_v47  ;;  %v11204_v47 = vld [vmem:[#allocation164_spill] sm:$0xff]  ;;  %4372 = vperm.xlu0 %6283, %v11107_v57   ;;  %v2425_v49 = vrot.slane %v2354_v12, 5  ;;  %v2201_v57 = vrot.slane %v2114_v23, 1  ;;  %v2416_v42 = vsel %vm1633_vm6, %v2415_v44, %v2414_v17  ;;  %v11213_v12 = vld [vmem:[#allocation182_spill] sm:$0xff]  ;;  %v8803_v28 = vsel %vm1639_vm9, %v2187_v9, %v2186_v63  ;;  %v11226_v63 = vld [vmem:[#allocation171_spill] sm:$0xff] }
 0x3e4   : > { %v2350_v34 = vmul.f32 %v8575_v16, %v11204_v47  ;;  %v8777_v13 = vpop.permute.xlu0 %3852  ;;  %v2422_v47 = vsel %vm1621_vm2, %v2421_v56, %v2351_v32  ;;  %v2427_v56 = vrot.slane %v2355_v50, 4  ;;  %v2368_v23 = vmul.f32 %v8575_v16, %v11213_v12  ;;  %11215 = vst [vmem:[#allocation141_spill] sm:$0xff] %v8803_v28  ;;  %v11216_v32 = vld [vmem:[#allocation175_spill] sm:$0xff]  ;;  %v11218_v50 = vld [vmem:[#allocation176_spill] sm:$0xff] }
 0x3e5   : > { %4312 = vperm.xlu1 %6282, %v11206_v24   ;;  %11208 = vst [vmem:[#allocation142_spill] sm:$0xff] %v8777_v13  ;;  %v11209_v24 = vld [vmem:[#allocation174_spill] sm:$0xff]  ;;  %v2356_v13 = vmul.f32 %v8575_v16, %v11210_v60  ;;  %v2424_v55 = vsel %vm1624_vm3, %v2423_v5, %v2422_v47  ;;  %v2361_v15 = vmul.f32 %v8575_v16, %v11216_v32 }
 0x3e6   : > { %v8779_v29 = vpop.permute.xlu1 %3808  ;;  %v2360_v27 = vmul.f32 %v8575_v16, %v11209_v24  ;;  %v2419_v19 = vrot.slane %v2350_v34, 1  ;;  %v2200_v34 = vsel %vm1636_vm7, %v2199_v20, %v2198_v0  ;;  %v2418_v45 = vsel %vm1636_vm7, %v2417_v30, %v2416_v42  ;;  %v11220_v24 = vld [vmem:[#allocation183_spill] sm:$0xff]  ;;  %v11222_v30 = vld [vmem:[#allocation173_spill] sm:$0xff]  ;;  %v11229_v32 = vld [vmem:[#allocation178_spill] sm:$0xff] }
 0x3e7   : > { %4380 = vperm.xlu0 %6283, %v11119_v22   ;;  %v2426_v22 = vsel %vm1627_vm4, %v2425_v49, %v2424_v55  ;;  %v8810_v61 = vsel %vm1639_vm9, %v2201_v57, %v2200_v34  ;;  %v2362_v47 = vmul.f32 %v8575_v16, %v11218_v50  ;;  %v2429_v9 = vrot.slane %v2356_v13, 3  ;;  %v11221_v49 = vld [vmem:[#allocation20_spill] sm:$0xff]  ;;  %v11228_v34 = vld [vmem:[#allocation177_spill] sm:$0xff] }
 0x3e8   : > { %v8798_v44 = vpop.permute.xlu0 %3860  ;;  %11217 = vst [vmem:[#allocation151_spill] sm:$0xff] %v8810_v61  ;;  %v2435_v5 = vrot.slane %v2360_v27, 7  ;;  %v8816_v17 = vsel %vm1639_vm9, %v2419_v19, %v2418_v45  ;;  %v2369_v0 = vmul.f32 %v8575_v16, %v11220_v24  ;;  %v8822_v20 = vrot.slane %v8033_v7, %v8790_v40  ;;  %v11223_v19 = vld [vmem:[#allocation184_spill] sm:$0xff]  ;;  %v11230_v50 = vld [vmem:[#allocation181_spill] sm:$0xff] }
 0x3e9   : > { %4320 = vperm.xlu1 %6282, %v11212_v51   ;;  %11214 = vst [vmem:[#allocation145_spill] sm:$0xff] %v8798_v44  ;;  %11219 = vst [vmem:[#allocation140_spill] sm:$0xff] %v8816_v17  ;;  %v2428_v57 = vsel %vm1630_vm5, %v2427_v56, %v2426_v22  ;;  %v2359_v27 = vmul.f32 %v8575_v16, %v11222_v30  ;;  %v2449_v42 = vrot.slane %v2368_v23, 7  ;;  %v11227_v55 = vld [vmem:[#allocation172_spill] sm:$0xff]  ;;  %v2437_v12 = vrot.slane %v2361_v15, 6 }
 0x3ea   : > { %v8800_v21 = vpop.permute.xlu1 %3816  ;;  %v2370_v13 = vmul.f32 %v8575_v16, %v11223_v19  ;;  %v2357_v7 = vmul.f32 %v8575_v16, %v11226_v63  ;;  %v2363_v56 = vmul.f32 %v8575_v16, %v11228_v34  ;;  %v2439_v23 = vrot.slane %v2362_v47, 5  ;;  %v11231_v63 = vld [vmem:[#allocation185_spill] sm:$0xff] }
 0x3eb   : > { %4388 = vperm.xlu0 %6283, %v11133_v25   ;;  %v2358_v25 = vmul.f32 %v8575_v16, %v11227_v55  ;;  %v2436_v22 = vsel %vm1621_vm2, %v2435_v5, %v2359_v27  ;;  %v2364_v45 = vmul.f32 %v8575_v16, %v11229_v32  ;;  %v2367_v24 = vmul.f32 %v8575_v16, %v11230_v50  ;;  %v11232_v55 = vld [vmem:[#allocation190_spill] sm:$0xff]  ;;  %v11233_v34 = vld [vmem:[#allocation21_spill] sm:$0xff]  ;;  %v11235_v50 = vld [vmem:[#allocation192_spill] sm:$0xff] }
 0x3ec   : > { %v8831_v60 = vpop.permute.xlu0 %3868  ;;  %v2430_v30 = vsel %vm1633_vm6, %v2429_v9, %v2428_v57  ;;  %v2451_v19 = vrot.slane %v2369_v0, 6  ;;  %v2371_v40 = vmul.f32 %v8575_v16, %v11231_v63  ;;  %v2604_v15 = vmul.f32 %v8684_v59, %v11232_v55  ;;  %v11234_v27 = vld [vmem:[#allocation186_spill] sm:$0xff] }
 0x3ed   : > { %4328 = vperm.xlu1 %6282, %v11221_v49   ;;  %11224 = vst [vmem:[#allocation144_spill] sm:$0xff] %v8831_v60  ;;  %v2450_v5 = vsel %vm1621_vm2, %v2449_v42, %v2367_v24  ;;  %v2453_v47 = vrot.slane %v2370_v13, 5  ;;  %v2372_v32 = vmul.f32 %v8575_v16, %v11234_v27  ;;  %v2605_v9 = vmul.f32 %v8684_v59, %v11235_v50  ;;  %v11238_v42 = vld [vmem:[#allocation179_spill] sm:$0xff]  ;;  %v11239_v24 = vld [vmem:[#allocation180_spill] sm:$0xff] }
 0x3ee   : > { %v8833_v51 = vpop.permute.xlu1 %3824  ;;  %v2431_v63 = vrot.slane %v2357_v7, 2  ;;  %v2433_v61 = vrot.slane %v2358_v25, 1  ;;  %v2438_v55 = vsel %vm1624_vm3, %v2437_v12, %v2436_v22  ;;  %v2443_v17 = vrot.slane %v2364_v45, 3  ;;  %v11241_v25 = vld [vmem:[#allocation22_spill] sm:$0xff] }
 0x3ef   : > { %11225 = vst [vmem:[#allocation159_spill] sm:$0xff] %v8833_v51  ;;  %4396 = vperm.xlu0 %6283, %v11141_v1   ;;  %v2441_v1 = vrot.slane %v2363_v56, 4  ;;  %v2440_v28 = vsel %vm1627_vm4, %v2439_v23, %v2438_v55  ;;  %v2365_v13 = vmul.f32 %v8575_v16, %v11238_v42  ;;  %v2366_v27 = vmul.f32 %v8575_v16, %v11239_v24  ;;  %v11242_v23 = vld [vmem:[#allocation194_spill] sm:$0xff]  ;;  %v11246_v24 = vld [vmem:[#allocation188_spill] sm:$0xff] }
 0x3f0   : > { %v8858_v0 = vpop.permute.xlu0 %3876  ;;  %v2452_v50 = vsel %vm1624_vm3, %v2451_v19, %v2450_v5  ;;  %v2455_v60 = vrot.slane %v2371_v40, 4  ;;  %v2667_v7 = vrot.slane %v2604_v15, 7  ;;  %v2457_v56 = vrot.slane %v2372_v32, 3  ;;  %v11244_v15 = vld [vmem:[#allocation189_spill] sm:$0xff]  ;;  %v11245_v5 = vld [vmem:[#allocation191_spill] sm:$0xff] }
 0x3f1   : > { %4336 = vperm.xlu1 %6282, %v11233_v34   ;;  %11236 = vst [vmem:[#allocation19_spill] sm:$0xff] %v8858_v0  ;;  %v11240_v0 = vld [vmem:[#allocation187_spill] sm:$0xff]  ;;  %v2454_v12 = vsel %vm1627_vm4, %v2453_v47, %v2452_v50  ;;  %v2669_v22 = vrot.slane %v2605_v9, 6  ;;  %v2607_v45 = vmul.f32 %v8684_v59, %v11242_v23  ;;  %v2432_v40 = vsel %vm1636_vm7, %v2431_v63, %v2430_v30  ;;  %v11247_v63 = vld [vmem:[#allocation193_spill] sm:$0xff] }
 0x3f2   : > { %v8860_v57 = vpop.permute.xlu1 %3832  ;;  %v2373_v44 = vmul.f32 %v8575_v16, %v11240_v0  ;;  %v2442_v19 = vsel %vm1630_vm5, %v2441_v1, %v2440_v28  ;;  %v2606_v0 = vmul.f32 %v8684_v59, %v11245_v5  ;;  %v2445_v32 = vrot.slane %v2365_v13, 2  ;;  %v11248_v1 = vld [vmem:[#allocation23_spill] sm:$0xff]  ;;  %v11254_v5 = vld [vmem:[#allocation208_spill] sm:$0xff] }
 0x3f3   : > { %11237 = vst [vmem:[#allocation150_spill] sm:$0xff] %v8860_v57  ;;  %4404 = vperm.xlu0 %6283, %v11153_v62   ;;  %v2603_v62 = vmul.f32 %v8684_v59, %v11244_v15  ;;  %v2444_v47 = vsel %vm1633_vm6, %v2443_v17, %v2442_v19  ;;  %v2447_v9 = vrot.slane %v2366_v27, 1  ;;  %v2374_v50 = vmul.f32 %v8575_v16, %v11246_v24  ;;  %v11249_v27 = vld [vmem:[#allocation197_spill] sm:$0xff] }
 0x3f4   : > { %v8876_v55 = vpop.permute.xlu0 %3884  ;;  %v2456_v23 = vsel %vm1630_vm5, %v2455_v60, %v2454_v12  ;;  %v2608_v28 = vmul.f32 %v8684_v59, %v11247_v63  ;;  %v2673_v13 = vrot.slane %v2607_v45, 4  ;;  %v2612_v16 = vmul.f32 %v8684_v59, %v11249_v27  ;;  %v11252_v12 = vld [vmem:[#allocation200_spill] sm:$0xff]  ;;  %v11275_v57 = vld [vmem:[#allocation209_spill] sm:$0xff] }
 0x3f5   : > { %4344 = vperm.xlu1 %6282, %v11241_v25   ;;  %11243 = vst [vmem:[#allocation158_spill] sm:$0xff] %v8876_v55  ;;  %v2459_v55 = vrot.slane %v2373_v44, 2  ;;  %v2668_v30 = vsel %vm1621_vm2, %v2667_v7, %v2603_v62  ;;  %v2458_v15 = vsel %vm1633_vm6, %v2457_v56, %v2456_v23  ;;  %v8904_v60 = vsel %vm1639_vm9, %v2433_v61, %v2432_v40  ;;  %v11253_v62 = vld [vmem:[#allocation205_spill] sm:$0xff] }
 0x3f6   : > { %v8878_v42 = vpop.permute.xlu1 %3840  ;;  %v2670_v17 = vsel %vm1624_vm3, %v2669_v22, %v2668_v30  ;;  %11251 = vst [vmem:[#allocation156_spill] sm:$0xff] %v8904_v60  ;;  %v2671_v7 = vrot.slane %v2606_v0, 5  ;;  %v2620_v56 = vmul.f32 %v8684_v59, %v11253_v62  ;;  %v2446_v22 = vsel %vm1636_vm7, %v2445_v32, %v2444_v47  ;;  %v11258_v32 = vld [vmem:[#allocation196_spill] sm:$0xff] }
 0x3f7   : > { %4412 = vperm.xlu0 %6283, %v11163_v33   ;;  %v2613_v33 = vmul.f32 %v8684_v59, %v11252_v12  ;;  %v2461_v45 = vrot.slane %v2374_v50, 1  ;;  %v2621_v24 = vmul.f32 %v8684_v59, %v11254_v5  ;;  %v8914_v23 = vsub.s32 6, %v8019_v58  ;;  %v11259_v12 = vld [vmem:[#allocation198_spill] sm:$0xff]  ;;  %v11270_v60 = vld [vmem:[#allocation216_spill] sm:$0xff] }
 0x3f8   : > { %v8899_v19 = vpop.permute.xlu0 %3892  ;;  %v8917_v30 = vsel %vm1639_vm9, %v2447_v9, %v2446_v22  ;;  %v2460_v61 = vsel %vm1636_vm7, %v2459_v55, %v2458_v15  ;;  %v2675_v40 = vrot.slane %v2608_v28, 3  ;;  %v2672_v0 = vsel %vm1627_vm4, %v2671_v7, %v2670_v17  ;;  %v11261_v55 = vld [vmem:[#allocation199_spill] sm:$0xff]  ;;  %v11262_v7 = vld [vmem:[#allocation206_spill] sm:$0xff] }
 0x3f9   : > { %4352 = vperm.xlu1 %6282, %v11248_v1   ;;  %11250 = vst [vmem:[#allocation153_spill] sm:$0xff] %v8899_v19  ;;  %11255 = vst [vmem:[#allocation147_spill] sm:$0xff] %v8914_v23  ;;  %v11257_v63 = vmov 0   ;;  %v2674_v47 = vsel %vm1630_vm5, %v2673_v13, %v2672_v0  ;;  %v2609_v50 = vmul.f32 %v8684_v59, %v11258_v32  ;;  %v2681_v27 = vrot.slane %v2612_v16, 7  ;;  %v11265_v16 = vld [vmem:[#allocation202_spill] sm:$0xff] }
 0x3fa   : > { %v8901_v44 = vpop.permute.xlu1 %3848  ;;  %11256 = vst [vmem:[#allocation146_spill] sm:$0xff] %v8917_v30  ;;  %v2611_v62 = vmul.f32 %v8684_v59, %v11259_v12  ;;  %v2614_v28 = vmul.f32 %v8684_v59, %v11261_v55  ;;  %v2683_v15 = vrot.slane %v2613_v33, 6  ;;  %v2695_v17 = vrot.slane %v2620_v56, 7  ;;  %v11266_v56 = vld [vmem:[#allocation195_spill] sm:$0xff] }
 0x3fb   : > { %6284 = vset.pattern.permute.xlu0 %v11257_v63  ;;  %v2619_v22 = vmul.f32 %v8684_v59, %v11262_v7  ;;  %v8938_v5 = vsel %vm1639_vm9, %v2461_v45, %v2460_v61  ;;  %v2615_v0 = vmul.f32 %v8684_v59, %v11265_v16  ;;  %v2697_v32 = vrot.slane %v2621_v24, 6  ;;  %v11267_v61 = vld [vmem:[#allocation210_spill] sm:$0xff]  ;;  %v11268_v7 = vld [vmem:[#allocation213_spill] sm:$0xff]  ;;  %v11269_v30 = vld [vmem:[#allocation207_spill] sm:$0xff] }
 0x3fc   : > { %1394 = vperm.xlu0 %6284, %v11176_v48   ;;  %11264 = vst [vmem:[#allocation160_spill] sm:$0xff] %v8938_v5  ;;  %v8945_v48 = vld [vmem:[%s10512_s1 + $0xc] sm:$0xff]  ;;  %v8953_v12 = vmul.f32 %v8684_v59, %v11266_v56  ;;  %v2676_v45 = vsel %vm1633_vm6, %v2675_v40, %v2674_v47  ;;  %v2623_v55 = vmul.f32 %v8684_v59, %v11267_v61  ;;  %v2677_v16 = vrot.slane %v2609_v50, 2 }
 0x3fd   : > { %4360 = vperm.xlu1 %6282, %v6957_v46   ;;  %v8935_v13 = vpop.permute.xlu0 %4032  ;;  %v8949_v33 = vrot.slane %v8945_v48, %v8914_v23  ;;  %v2628_v24 = vmul.f32 %v8684_v59, %v11268_v7  ;;  %v2682_v5 = vsel %vm1621_vm2, %v2681_v27, %v2611_v62  ;;  %v2622_v23 = vmul.f32 %v8684_v59, %v11269_v30  ;;  %v11274_v62 = vld [vmem:[#allocation204_spill] sm:$0xff] }
 0x3fe   : > { %v8929_v9 = vpop.permute.xlu1 %3856  ;;  %11263 = vst [vmem:[#allocation152_spill] sm:$0xff] %v8935_v13  ;;  %v2629_v56 = vmul.f32 %v8684_v59, %v11270_v60  ;;  %v2685_v47 = vrot.slane %v2614_v28, 5  ;;  %v2684_v61 = vsel %vm1624_vm3, %v2683_v15, %v2682_v5  ;;  %v11272_v13 = vld [vmem:[#allocation201_spill] sm:$0xff]  ;;  %v2696_v50 = vsel %vm1621_vm2, %v2695_v17, %v2619_v22  ;;  %v11276_v28 = vld [vmem:[#allocation212_spill] sm:$0xff] }
 0x3ff   : > { %11260 = vst [vmem:[#allocation148_spill] sm:$0xff] %v8929_v9  ;;  %v2616_v7 = vmul.f32 %v8684_v59, %v11272_v13  ;;  %v2687_v27 = vrot.slane %v2615_v0, 4  ;;  %v2617_v30 = vmul.f32 %v8684_v59, %v11274_v62  ;;  %v2698_v60 = vsel %vm1624_vm3, %v2697_v32, %v2696_v50  ;;  %v11277_v9 = vld [vmem:[#allocation214_spill] sm:$0xff] }
 0x400   : > { %1439 = vperm.xlu0 %6284, %v11221_v49   ;;  %v2624_v49 = vmul.f32 %v8684_v59, %v11275_v57  ;;  %v2625_v15 = vmul.f32 %v8684_v59, %v11276_v28  ;;  %v2709_v5 = vrot.slane %v2628_v24, 7  ;;  %v2627_v13 = vmul.f32 %v8684_v59, %v11277_v9  ;;  %v11278_v62 = vld [vmem:[#allocation218_spill] sm:$0xff]  ;;  %v11280_v28 = vld [vmem:[#allocation215_spill] sm:$0xff] }
 0x401   : > { %4368 = vperm.xlu1 %6282, %v6962_v4   ;;  %v8973_v19 = vpop.permute.xlu0 %4044  ;;  %v2679_v17 = vrot.slane %v8953_v12, 1  ;;  %v2699_v22 = vrot.slane %v2622_v23, 5  ;;  %v2711_v0 = vrot.slane %v2629_v56, 6  ;;  %v2631_v32 = vmul.f32 %v8684_v59, %v11278_v62  ;;  %v11281_v12 = vld [vmem:[#allocation203_spill] sm:$0xff] }
 0x402   : > { %v8967_v40 = vpop.permute.xlu1 %3864  ;;  %11273 = vst [vmem:[#allocation166_spill] sm:$0xff] %v8973_v19  ;;  %v2689_v50 = vrot.slane %v2616_v7, 3  ;;  %v2686_v24 = vsel %vm1627_vm4, %v2685_v47, %v2684_v61  ;;  %v2630_v9 = vmul.f32 %v8684_v59, %v11280_v28  ;;  %v2618_v56 = vmul.f32 %v8684_v59, %v11281_v12  ;;  %v11282_v7 = vld [vmem:[#allocation220_spill] sm:$0xff] }
 0x403   : > { %11271 = vst [vmem:[#allocation155_spill] sm:$0xff] %v8967_v40  ;;  %v2701_v40 = vrot.slane %v2623_v55, 4  ;;  %v2678_v55 = vsel %vm1636_vm7, %v2677_v16, %v2676_v45  ;;  %v2688_v23 = vsel %vm1630_vm5, %v2687_v27, %v2686_v24  ;;  %v2691_v62 = vrot.slane %v2617_v30, 2  ;;  %v11283_v24 = vld [vmem:[#allocation221_spill] sm:$0xff] }
 0x404   : > { %1449 = vperm.xlu0 %6284, %v11233_v34   ;;  %v2700_v34 = vsel %vm1627_vm4, %v2699_v22, %v2698_v60  ;;  %v2703_v51 = vrot.slane %v2624_v49, 3  ;;  %v2705_v45 = vrot.slane %v2625_v15, 2  ;;  %v2710_v16 = vsel %vm1621_vm2, %v2709_v5, %v2627_v13  ;;  %v11284_v60 = vld [vmem:[#allocation211_spill] sm:$0xff]  ;;  %v11285_v15 = vld [vmem:[#allocation217_spill] sm:$0xff]  ;;  %v11286_v13 = vld [vmem:[#allocation224_spill] sm:$0xff] }
 0x405   : > { %4376 = vperm.xlu1 %6282, %v6965_v6   ;;  %v8995_v19 = vpop.permute.xlu0 %4052  ;;  %v2712_v47 = vsel %vm1624_vm3, %v2711_v0, %v2710_v16  ;;  %v2715_v61 = vrot.slane %v2631_v32, 4  ;;  %v2633_v27 = vmul.f32 %v8684_v59, %v11282_v7  ;;  %v2864_v28 = vmul.f32 %v8822_v20, %v11283_v24 }
 0x406   : > { %v8989_v57 = vpop.permute.xlu1 %3872  ;;  %v2713_v49 = vrot.slane %v2630_v9, 5  ;;  %v2632_v5 = vmul.f32 %v8684_v59, %v11285_v15  ;;  %v2865_v22 = vmul.f32 %v8822_v20, %v11286_v13  ;;  %v2693_v32 = vrot.slane %v2618_v56, 1 }
 0x407   : > { %11279 = vst [vmem:[#allocation161_spill] sm:$0xff] %v8989_v57  ;;  %v2702_v57 = vsel %vm1630_vm5, %v2701_v40, %v2700_v34  ;;  %v2626_v40 = vmul.f32 %v8684_v59, %v11284_v60  ;;  %v2690_v12 = vsel %vm1633_vm6, %v2689_v50, %v2688_v23  ;;  %v11288_v60 = vld [vmem:[#allocation219_spill] sm:$0xff]  ;;  %v2719_v50 = vrot.slane %v2633_v27, 2 }
 0x408   : > { %1459 = vperm.xlu0 %6284, %v11241_v25   ;;  %v2704_v34 = vsel %vm1633_vm6, %v2703_v51, %v2702_v57  ;;  %v11287_v25 = vld [vmem:[#allocation226_spill] sm:$0xff]  ;;  %v2692_v7 = vsel %vm1636_vm7, %v2691_v62, %v2690_v12  ;;  %v2714_v24 = vsel %vm1627_vm4, %v2713_v49, %v2712_v47  ;;  %v9029_v15 = vmul.f32 %v8684_v59, %v11288_v60  ;;  %v11291_v49 = vld [vmem:[#allocation232_spill] sm:$0xff] }
 0x409   : > { %4384 = vperm.xlu1 %6282, %v6970_v37   ;;  %v9018_v0 = vpop.permute.xlu0 %4060  ;;  %v2866_v16 = vmul.f32 %v8822_v20, %v11287_v25  ;;  %v2706_v9 = vsel %vm1636_vm7, %v2705_v45, %v2704_v34  ;;  %v2716_v56 = vsel %vm1630_vm5, %v2715_v61, %v2714_v24  ;;  %v2927_v23 = vrot.slane %v2864_v28, 7  ;;  %v11289_v51 = vld [vmem:[#allocation222_spill] sm:$0xff]  ;;  %v11295_v28 = vld [vmem:[#allocation240_spill] sm:$0xff] }
 0x40a   : > { %v9010_v30 = vpop.permute.xlu1 %3880  ;;  %v2863_v57 = vmul.f32 %v8822_v20, %v11289_v51  ;;  %v2707_v45 = vrot.slane %v2626_v40, 1  ;;  %v2717_v13 = vrot.slane %v2632_v5, 3  ;;  %v2929_v47 = vrot.slane %v2865_v22, 6  ;;  %v11297_v22 = vld [vmem:[#allocation223_spill] sm:$0xff] }
 0x40b   : > { %v2872_v59 = vmul.f32 %v8822_v20, %v11291_v49  ;;  %v9043_v34 = vsel %vm1639_vm9, %v2679_v17, %v2678_v55  ;;  %v9046_v61 = vsel %vm1639_vm9, %v2693_v32, %v2692_v7  ;;  %v2931_v27 = vrot.slane %v2866_v16, 5  ;;  %v11298_v32 = vld [vmem:[#allocation225_spill] sm:$0xff]  ;;  %v11304_v49 = vld [vmem:[#allocation234_spill] sm:$0xff] }
 0x40c   : > { %1469 = vperm.xlu0 %6284, %v11248_v1   ;;  %11293 = vst [vmem:[#allocation6_spill] sm:$0xff] %v9043_v34  ;;  %11294 = vst [vmem:[#allocation154_spill] sm:$0xff] %v9046_v61  ;;  %v2880_v1 = vmul.f32 %v8822_v20, %v11295_v28  ;;  %v9051_v25 = vsel %vm1639_vm9, %v2707_v45, %v2706_v9  ;;  %v2718_v5 = vsel %vm1633_vm6, %v2717_v13, %v2716_v56  ;;  %v11301_v56 = vld [vmem:[#allocation228_spill] sm:$0xff] }
 0x40d   : > { %4392 = vperm.xlu1 %6282, %v6975_v41   ;;  %v9040_v12 = vpop.permute.xlu0 %4068  ;;  %11296 = vst [vmem:[#allocation167_spill] sm:$0xff] %v9051_v25  ;;  %v2867_v24 = vmul.f32 %v8822_v20, %v11297_v22  ;;  %v9059_v17 = vsel %vm1636_vm7, %v2719_v50, %v2718_v5  ;;  %v2928_v55 = vsel %vm1621_vm2, %v2927_v23, %v2863_v57  ;;  %v9067_v7 = vsub.s32 7, %v8019_v58  ;;  %v11302_v50 = vld [vmem:[#allocation229_spill] sm:$0xff]  ;;  %v11312_v25 = vld [vmem:[#allocation236_spill] sm:$0xff] }
 0x40e   : > { %v9036_v62 = vpop.permute.xlu1 %3888  ;;  %11292 = vst [vmem:[#allocation162_spill] sm:$0xff] %v9040_v12  ;;  %v9064_v16 = vmul.f32 %v8822_v20, %v11298_v32  ;;  %v2930_v60 = vsel %vm1624_vm3, %v2929_v47, %v2928_v55  ;;  %v2868_v51 = vmul.f32 %v8822_v20, %v11301_v56  ;;  %v2873_v45 = vmul.f32 %v8822_v20, %v11302_v50  ;;  %v11306_v47 = vld [vmem:[#allocation227_spill] sm:$0xff]  ;;  %v11307_v32 = vld [vmem:[#allocation237_spill] sm:$0xff]  ;;  %v11308_v50 = vld [vmem:[#allocation248_spill] sm:$0xff] }
 0x40f   : > { %11290 = vst [vmem:[#allocation149_spill] sm:$0xff] %v9036_v62  ;;  %11299 = vst [vmem:[#allocation168_spill] sm:$0xff] %v9067_v7  ;;  %v2941_v23 = vrot.slane %v2872_v59, 7  ;;  %v2932_v13 = vsel %vm1627_vm4, %v2931_v27, %v2930_v60  ;;  %v2874_v58 = vmul.f32 %v8822_v20, %v11304_v49  ;;  %v2955_v28 = vrot.slane %v2880_v1, 7  ;;  %v11309_v60 = vld [vmem:[#allocation231_spill] sm:$0xff]  ;;  %v11313_v34 = vld [vmem:[#allocation244_spill] sm:$0xff] }
 0x410   : > { %1479 = vperm.xlu0 %6284, %v6957_v46   ;;  %v11305_v46 = vld [vmem:[#allocation242_spill] sm:$0xff]  ;;  %v2933_v22 = vrot.slane %v2867_v24, 4  ;;  %v2871_v55 = vmul.f32 %v8822_v20, %v11306_v47  ;;  %v2881_v56 = vmul.f32 %v8822_v20, %v11307_v32  ;;  %v2888_v59 = vmul.f32 %v8822_v20, %v11308_v50  ;;  %v11310_v49 = vld [vmem:[#allocation235_spill] sm:$0xff] }
 0x411   : > { %4400 = vperm.xlu1 %6282, %v11080_v54   ;;  %v9077_v57 = vpop.permute.xlu0 %4076  ;;  %v2882_v5 = vmul.f32 %v8822_v20, %v11305_v46  ;;  %v2875_v1 = vmul.f32 %v8822_v20, %v11309_v60  ;;  %v2879_v46 = vmul.f32 %v8822_v20, %v11310_v49  ;;  %v9098_v24 = vrot.slane %v8945_v48, %v9067_v7  ;;  %v11323_v12 = vld [vmem:[#allocation246_spill] sm:$0xff] }
 0x412   : > { %v9070_v9 = vpop.permute.xlu1 %3896  ;;  %11303 = vst [vmem:[#allocation163_spill] sm:$0xff] %v9077_v57  ;;  %v2934_v47 = vsel %vm1630_vm5, %v2933_v22, %v2932_v13  ;;  %v2935_v32 = vrot.slane %v2868_v51, 3  ;;  %v2943_v50 = vrot.slane %v2873_v45, 6  ;;  %v2942_v40 = vsel %vm1621_vm2, %v2941_v23, %v2871_v55  ;;  %v11314_v51 = vld [vmem:[#allocation250_spill] sm:$0xff]  ;;  %v11316_v55 = vld [vmem:[#allocation239_spill] sm:$0xff] }
 0x413   : > { %11300 = vst [vmem:[#allocation157_spill] sm:$0xff] %v9070_v9  ;;  %v2945_v60 = vrot.slane %v2874_v58, 5  ;;  %v2876_v49 = vmul.f32 %v8822_v20, %v11312_v25  ;;  %v2956_v61 = vsel %vm1621_vm2, %v2955_v28, %v2879_v46  ;;  %v2959_v48 = vrot.slane %v2882_v5, 5  ;;  %v11315_v23 = vld [vmem:[#allocation230_spill] sm:$0xff]  ;;  %v11318_v5 = vld [vmem:[#allocation233_spill] sm:$0xff]  ;;  %v11319_v46 = vld [vmem:[#allocation243_spill] sm:$0xff] }
 0x414   : > { %1489 = vperm.xlu0 %6284, %v6962_v4   ;;  %v2957_v7 = vrot.slane %v2881_v56, 6  ;;  %v2884_v4 = vmul.f32 %v8822_v20, %v11313_v34  ;;  %v2969_v13 = vrot.slane %v2888_v59, 7  ;;  %v2890_v45 = vmul.f32 %v8822_v20, %v11314_v51 }
 0x415   : > { %4408 = vperm.xlu1 %6282, %v11091_v10   ;;  %v9103_v9 = vpop.permute.xlu0 %4084  ;;  %v2870_v22 = vmul.f32 %v8822_v20, %v11315_v23  ;;  %v2947_v58 = vrot.slane %v2875_v1, 4  ;;  %v2883_v25 = vmul.f32 %v8822_v20, %v11316_v55  ;;  %v2877_v34 = vmul.f32 %v8822_v20, %v11318_v5 }
 0x416   : > { %11311 = vst [vmem:[#allocation164_spill] sm:$0xff] %v9103_v9  ;;  %v11317_v9 = vld [vmem:[#allocation245_spill] sm:$0xff]  ;;  %v2944_v56 = vsel %vm1624_vm3, %v2943_v50, %v2942_v40  ;;  %v2958_v59 = vsel %vm1624_vm3, %v2957_v7, %v2956_v61  ;;  %v2887_v51 = vmul.f32 %v8822_v20, %v11319_v46  ;;  %v2949_v57 = vrot.slane %v2876_v49, 3  ;;  %v11322_v61 = vld [vmem:[#allocation251_spill] sm:$0xff] }
 0x417   : > { %v9105_v27 = vpop.permute.xlu1 %4036  ;;  %v2889_v28 = vmul.f32 %v8822_v20, %v11317_v9  ;;  %v2946_v55 = vsel %vm1627_vm4, %v2945_v60, %v2944_v56  ;;  %v11321_v9 = vld [vmem:[#allocation238_spill] sm:$0xff]  ;;  %v2960_v62 = vsel %vm1627_vm4, %v2959_v48, %v2958_v59  ;;  %v2963_v5 = vrot.slane %v2884_v4, 3  ;;  %v11324_v49 = vld [vmem:[#allocation247_spill] sm:$0xff] }
 0x418   : > { %1499 = vperm.xlu0 %6284, %v6965_v6   ;;  %v2878_v6 = vmul.f32 %v8822_v20, %v11321_v9  ;;  %v2970_v40 = vsel %vm1621_vm2, %v2969_v13, %v2887_v51  ;;  %v2973_v50 = vrot.slane %v2890_v45, 5  ;;  %v2892_v7 = vmul.f32 %v8822_v20, %v11322_v61  ;;  %v11325_v45 = vld [vmem:[#allocation241_spill] sm:$0xff] }
 0x419   : > { %4416 = vperm.xlu1 %6282, %v11099_v14   ;;  %v9128_v23 = vpop.permute.xlu0 %4092  ;;  %v2961_v46 = vrot.slane %v2883_v25, 4  ;;  %v2886_v60 = vmul.f32 %v8822_v20, %v11323_v12  ;;  %v2891_v56 = vmul.f32 %v8822_v20, %v11324_v49  ;;  %v2936_v48 = vsel %vm1633_vm6, %v2935_v32, %v2934_v47  ;;  %v11326_v61 = vld [vmem:[#allocation249_spill] sm:$0xff] }
 0x41a   : > { %11320 = vst [vmem:[#allocation165_spill] sm:$0xff] %v9128_v23  ;;  %v2971_v23 = vrot.slane %v2889_v28, 6  ;;  %v2939_v4 = vrot.slane %v2870_v22, 1  ;;  %v2948_v13 = vsel %vm1630_vm5, %v2947_v58, %v2946_v55  ;;  %v2885_v59 = vmul.f32 %v8822_v20, %v11325_v45  ;;  %v11327_v45 = vld [vmem:[#allocation253_spill] sm:$0xff] }
 0x41b   : > { %v9130_v1 = vpop.permute.xlu1 %4040  ;;  %v2951_v25 = vrot.slane %v2877_v34, 2  ;;  %v2950_v12 = vsel %vm1633_vm6, %v2949_v57, %v2948_v13  ;;  %v2962_v28 = vsel %vm1630_vm5, %v2961_v46, %v2960_v62  ;;  %v2977_v22 = vrot.slane %v2892_v7, 3  ;;  %v11335_v13 = vld [vmem:[#allocation254_spill] sm:$0xff] }
 0x41c   : > { %1509 = vperm.xlu0 %6284, %v6970_v37   ;;  %v2972_v9 = vsel %vm1624_vm3, %v2971_v23, %v2970_v40  ;;  %v2953_v37 = vrot.slane %v2878_v6, 1  ;;  %v2964_v47 = vsel %vm1633_vm6, %v2963_v5, %v2962_v28  ;;  %v2967_v58 = vrot.slane %v2886_v60, 1  ;;  %v11331_v40 = vld [vmem:[#allocation256_spill] sm:$0xff]  ;;  %v9188_v60 = vld [vmem:[%s10512_s1 + $0x14] sm:$0xf] }
 0x41d   : > { %6285 = vset.pattern.permute.xlu1 %v11257_v63  ;;  %v9149_v51 = vpop.permute.xlu0 %4100  ;;  %v2974_v32 = vsel %vm1627_vm4, %v2973_v50, %v2972_v9  ;;  %v2975_v55 = vrot.slane %v2891_v56, 4  ;;  %v2893_v49 = vmul.f32 %v8822_v20, %v11326_v61  ;;  %v2894_v34 = vmul.f32 %v8822_v20, %v11327_v45  ;;  %v11337_v9 = vld [vmem:[#allocation266_spill] sm:$0xff]  ;;  %v11340_v45 = vld [vmem:[#allocation317_spill] sm:$0xff] }
 0x41e   : > { %v11328_v62 = vrot.slane %v9029_v15, 1  ;;  %v11330_v23 = vrot.slane %v9064_v16, 2  ;;  %v2965_v5 = vrot.slane %v2885_v59, 2  ;;  %v3124_v50 = vmul.f32 %v8949_v33, %v11331_v40 }
 0x41f   : > { %v9151_v63 = vpop.permute.xlu1 %4048  ;;  %v2952_v20 = vsel %vm1636_vm7, %v2951_v25, %v2950_v12  ;;  %v2976_v15 = vsel %vm1630_vm5, %v2975_v55, %v2974_v32  ;;  %v3126_v59 = vmul.f32 %v8949_v33, %v11335_v13  ;;  %v2979_v12 = vrot.slane %v2893_v49, 2  ;;  %v11345_v13 = vld [vmem:[#allocation264_spill] sm:$0xff] }
 0x420   : > { %1519 = vperm.xlu0 %6284, %v6975_v41   ;;  %v9167_v57 = vsel %vm1639_vm9, %v11328_v62, %v9059_v17  ;;  %v2938_v6 = vsel %vm1636_vm7, %v11330_v23, %v2936_v48  ;;  %v11333_v17 = vld [vmem:[#allocation258_spill] sm:$0xff]  ;;  %v9191_v56 = vsel %vm1639_vm9, %v2953_v37, %v2952_v20  ;;  %v2966_v48 = vsel %vm1636_vm7, %v2965_v5, %v2964_v47  ;;  %v11338_v37 = vld [vmem:[#allocation259_spill] sm:$0xff]  ;;  %v11343_v20 = vld [vmem:[#allocation260_spill] sm:$0xff] }
 0x421   : > { %11329 = vst [vmem:[#allocation7_spill] sm:$0xff] %v9167_v57  ;;  %v9174_v7 = vpop.permute.xlu0 %4108  ;;  %v9179_v41 = vsel %vm1639_vm9, %v2939_v4, %v2938_v6  ;;  %v3125_v16 = vmul.f32 %v8949_v33, %v11333_v17  ;;  %11334 = vst [vmem:[#allocation174_spill] sm:$0xff] %v9191_v56  ;;  %v2978_v4 = vsel %vm1633_vm6, %v2977_v22, %v2976_v15  ;;  %v2981_v28 = vrot.slane %v2894_v34, 1  ;;  %v11339_v47 = vld [vmem:[#allocation274_spill] sm:$0xff]  ;;  %v11341_v34 = vld [vmem:[#allocation252_spill] sm:$0xff] }
 0x422   : > { %11332 = vst [vmem:[#allocation169_spill] sm:$0xff] %v9179_v41  ;;  %v9198_v25 = vsel %vm1639_vm9, %v2967_v58, %v2966_v48  ;;  %v3133_v32 = vmul.f32 %v8949_v33, %v11337_v9  ;;  %v3187_v55 = vrot.slane %v3124_v50, 7  ;;  %v3132_v61 = vmul.f32 %v8949_v33, %v11338_v37  ;;  %v11342_v5 = vld [vmem:[#allocation267_spill] sm:$0xff]  ;;  %v11344_v17 = vld [vmem:[#allocation261_spill] sm:$0xff] }
 0x423   : > { %v9176_v46 = vpop.permute.xlu1 %4056  ;;  %11336 = vst [vmem:[#allocation170_spill] sm:$0xff] %v9198_v25  ;;  %v3141_v22 = vmul.f32 %v8949_v33, %v11339_v47  ;;  %v9209_v62 = vrot.slane %v9188_v60, %v11340_v45  ;;  %v3123_v23 = vmul.f32 %v8949_v33, %v11341_v34  ;;  %v3189_v6 = vrot.slane %v3125_v16, 6  ;;  %v11347_v34 = vld [vmem:[#allocation268_spill] sm:$0xff]  ;;  %v11354_v25 = vld [vmem:[#allocation270_spill] sm:$0xff] }
 0x424   : > { %1529 = vperm.xlu0 %6284, %v11080_v54   ;;  %v2980_v54 = vsel %vm1636_vm7, %v2979_v12, %v2978_v4  ;;  %v3140_v40 = vmul.f32 %v8949_v33, %v11342_v5  ;;  %v3191_v50 = vrot.slane %v3126_v59, 5  ;;  %v3127_v15 = vmul.f32 %v8949_v33, %v11343_v20  ;;  %v11348_v4 = vld [vmem:[#allocation272_spill] sm:$0xff] }
 0x425   : > { %v9211_v58 = vpop.permute.xlu0 %4116  ;;  %v3134_v48 = vmul.f32 %v8949_v33, %v11344_v17  ;;  %v3131_v9 = vmul.f32 %v8949_v33, %v11345_v13  ;;  %v9227_v37 = vsel %vm1639_vm9, %v2981_v28, %v2980_v54  ;;  %v3203_v47 = vrot.slane %v3133_v32, 6  ;;  %v11349_v17 = vld [vmem:[#allocation276_spill] sm:$0xff]  ;;  %v11351_v32 = vld [vmem:[#allocation255_spill] sm:$0xff] }
 0x426   : > { %11346 = vst [vmem:[#allocation8_spill] sm:$0xff] %v9227_v37  ;;  %v3135_v16 = vmul.f32 %v8949_v33, %v11347_v34  ;;  %v3139_v12 = vmul.f32 %v8949_v33, %v11348_v4  ;;  %v3188_v59 = vsel %vm1621_vm2, %v3187_v55, %v3123_v23  ;;  %v3201_v5 = vrot.slane %v3132_v61, 7  ;;  %v11352_v4 = vld [vmem:[#allocation269_spill] sm:$0xff]  ;;  %v11353_v61 = vld [vmem:[#allocation262_spill] sm:$0xff] }
 0x427   : > { %v9213_v49 = vpop.permute.xlu1 %4064  ;;  %v3217_v20 = vrot.slane %v3141_v22, 6  ;;  %v3143_v45 = vmul.f32 %v8949_v33, %v11349_v17  ;;  %v3128_v54 = vmul.f32 %v8949_v33, %v11351_v32  ;;  %v3190_v34 = vsel %vm1624_vm3, %v3189_v6, %v3188_v59  ;;  %v11355_v6 = vld [vmem:[#allocation263_spill] sm:$0xff]  ;;  %v11356_v59 = vld [vmem:[#allocation278_spill] sm:$0xff] }
 0x428   : > { %1539 = vperm.xlu0 %6284, %v11091_v10   ;;  %v3215_v37 = vrot.slane %v3140_v40, 7  ;;  %v3142_v10 = vmul.f32 %v8949_v33, %v11352_v4  ;;  %v3193_v57 = vrot.slane %v3127_v15, 4  ;;  %v3205_v55 = vrot.slane %v3134_v48, 5 }
 0x429   : > { %v9237_v13 = vpop.permute.xlu0 %4124  ;;  %v3129_v22 = vmul.f32 %v8949_v33, %v11353_v61  ;;  %v3202_v23 = vsel %vm1621_vm2, %v3201_v5, %v3131_v9  ;;  %v3137_v56 = vmul.f32 %v8949_v33, %v11354_v25  ;;  %v3136_v40 = vmul.f32 %v8949_v33, %v11355_v6 }
 0x42a   : > { %11350 = vst [vmem:[#allocation182_spill] sm:$0xff] %v9237_v13  ;;  %v3204_v17 = vsel %vm1624_vm3, %v3203_v47, %v3202_v23  ;;  %v3207_v13 = vrot.slane %v3135_v16, 4  ;;  %v3216_v32 = vsel %vm1621_vm2, %v3215_v37, %v3139_v12  ;;  %v3221_v48 = vrot.slane %v3143_v45, 4  ;;  %v11358_v16 = vld [vmem:[#allocation257_spill] sm:$0xff] }
 0x42b   : > { %v9239_v28 = vpop.permute.xlu1 %4072  ;;  %v3218_v15 = vsel %vm1624_vm3, %v3217_v20, %v3216_v32  ;;  %v3145_v4 = vmul.f32 %v8949_v33, %v11356_v59  ;;  %v3130_v25 = vmul.f32 %v8949_v33, %v11358_v16  ;;  %v3192_v37 = vsel %vm1627_vm4, %v3191_v50, %v3190_v34  ;;  %v11360_v45 = vld [vmem:[#allocation265_spill] sm:$0xff] }
 0x42c   : > { %1549 = vperm.xlu0 %6284, %v11099_v14   ;;  %v3219_v12 = vrot.slane %v3142_v10, 5  ;;  %v11359_v14 = vld [vmem:[#allocation271_spill] sm:$0xff]  ;;  %v3194_v61 = vsel %vm1630_vm5, %v3193_v57, %v3192_v37  ;;  %v3197_v20 = vrot.slane %v3129_v22, 2  ;;  %v3138_v23 = vmul.f32 %v8949_v33, %v11360_v45  ;;  %v11361_v10 = vld [vmem:[#allocation282_spill] sm:$0xff]  ;;  %v11366_v45 = vld [vmem:[#allocation277_spill] sm:$0xff] }
 0x42d   : > { %v9259_v9 = vpop.permute.xlu0 %4132  ;;  %v3144_v5 = vmul.f32 %v8949_v33, %v11359_v14  ;;  %v3206_v32 = vsel %vm1627_vm4, %v3205_v55, %v3204_v17  ;;  %v3195_v6 = vrot.slane %v3128_v54, 3  ;;  %v3209_v41 = vrot.slane %v3136_v40, 3  ;;  %v11364_v54 = vld [vmem:[#allocation273_spill] sm:$0xff] }
 0x42e   : > { %11357 = vst [vmem:[#allocation175_spill] sm:$0xff] %v9259_v9  ;;  %v3208_v59 = vsel %vm1630_vm5, %v3207_v13, %v3206_v32  ;;  %v3211_v9 = vrot.slane %v3137_v56, 2  ;;  %v3220_v16 = vsel %vm1627_vm4, %v3219_v12, %v3218_v15  ;;  %v3225_v34 = vrot.slane %v3145_v4, 2  ;;  %v11365_v56 = vld [vmem:[#allocation275_spill] sm:$0xff] }
 0x42f   : > { %v9261_v47 = vpop.permute.xlu1 %4080  ;;  %v3222_v50 = vsel %vm1630_vm5, %v3221_v48, %v3220_v16  ;;  %v3149_v14 = vmul.f32 %v8949_v33, %v11361_v10  ;;  %v3196_v37 = vsel %vm1633_vm6, %v3195_v6, %v3194_v61  ;;  %v3223_v55 = vrot.slane %v3144_v5, 3  ;;  %v11367_v5 = vld [vmem:[#allocation280_spill] sm:$0xff] }
 0x430   : > { %v3146_v13 = vmul.f32 %v8949_v33, %v11364_v54  ;;  %v3148_v17 = vmul.f32 %v8949_v33, %v11365_v56  ;;  %v3199_v40 = vrot.slane %v3130_v25, 1  ;;  %v3198_v15 = vsel %vm1636_vm7, %v3197_v20, %v3196_v37  ;;  %v11368_v54 = vld [vmem:[#allocation283_spill] sm:$0xff]  ;;  %v11369_v20 = vld [vmem:[#allocation290_spill] sm:$0xff]  ;;  %v11372_v56 = vld [vmem:[#allocation284_spill] sm:$0xff] }
 0x431   : > { %v9277_v57 = vpop.permute.xlu0 %4140  ;;  %v3213_v48 = vrot.slane %v3138_v23, 1  ;;  %v3210_v4 = vsel %vm1633_vm6, %v3209_v41, %v3208_v59  ;;  %v3150_v32 = vmul.f32 %v8949_v33, %v11366_v45  ;;  %v3224_v61 = vsel %vm1633_vm6, %v3223_v55, %v3222_v50  ;;  %v11373_v55 = vld [vmem:[#allocation292_spill] sm:$0xff]  ;;  %v11376_v45 = vld [vmem:[#allocation279_spill] sm:$0xff] }
 0x432   : > { %11362 = vst [vmem:[#allocation176_spill] sm:$0xff] %v9277_v57  ;;  %v3212_v12 = vsel %vm1636_vm7, %v3211_v9, %v3210_v4  ;;  %v3147_v6 = vmul.f32 %v8949_v33, %v11367_v5  ;;  %v3226_v16 = vsel %vm1636_vm7, %v3225_v34, %v3224_v61  ;;  %v3231_v10 = vrot.slane %v3149_v14, 6  ;;  %v11377_v5 = vld [vmem:[#allocation298_spill] sm:$0xff] }
 0x433   : > { %v9279_v22 = vpop.permute.xlu1 %4088  ;;  %v3151_v25 = vmul.f32 %v8949_v33, %v11368_v54  ;;  %v3385_v23 = vmul.f32 %v9098_v24, %v11369_v20  ;;  %v3227_v59 = vrot.slane %v3146_v13, 1  ;;  %v3229_v37 = vrot.slane %v3148_v17, 7 }
 0x434   : > { %11363 = vst [vmem:[#allocation183_spill] sm:$0xff] %v9279_v22  ;;  %v3384_v50 = vmul.f32 %v9098_v24, %v11372_v56  ;;  %v3386_v4 = vmul.f32 %v9098_v24, %v11373_v55  ;;  %v9308_v34 = vsel %vm1639_vm9, %v3199_v40, %v3198_v15  ;;  %v9311_v14 = vsel %vm1639_vm9, %v3213_v48, %v3212_v12  ;;  %v11379_v56 = vld [vmem:[#allocation288_spill] sm:$0xff]  ;;  %v11380_v40 = vld [vmem:[#allocation281_spill] sm:$0xff] }
 0x435   : > { %v9299_v41 = vpop.permute.xlu0 %4148  ;;  %11374 = vst [vmem:[#allocation184_spill] sm:$0xff] %v9308_v34  ;;  %11375 = vst [vmem:[#allocation171_spill] sm:$0xff] %v9311_v14  ;;  %v3152_v61 = vmul.f32 %v8949_v33, %v11376_v45  ;;  %v3392_v54 = vmul.f32 %v9098_v24, %v11377_v5  ;;  %v3233_v13 = vrot.slane %v3150_v32, 5  ;;  %v9318_v17 = vsel %vm1639_vm9, %v3227_v59, %v3226_v16  ;;  %v11383_v5 = vld [vmem:[#allocation285_spill] sm:$0xff]  ;;  %v11403_v22 = vld [vmem:[#allocation304_spill] sm:$0xff] }
 0x436   : > { %11370 = vst [vmem:[#allocation20_spill] sm:$0xff] %v9299_v41  ;;  %11378 = vst [vmem:[#allocation172_spill] sm:$0xff] %v9318_v17  ;;  %v3230_v20 = vsel %vm1621_vm2, %v3229_v37, %v3147_v6  ;;  %v3383_v55 = vmul.f32 %v9098_v24, %v11379_v56  ;;  %v3154_v15 = vmul.f32 %v8949_v33, %v11380_v40  ;;  %v3235_v12 = vrot.slane %v3151_v25, 4  ;;  %v11384_v6 = vld [vmem:[#allocation294_spill] sm:$0xff] }
 0x437   : > { %v9301_v9 = vpop.permute.xlu1 %4096  ;;  %v3232_v48 = vsel %vm1624_vm3, %v3231_v10, %v3230_v20  ;;  %v3449_v41 = vrot.slane %v3385_v23, 6  ;;  %v3447_v32 = vrot.slane %v3384_v50, 7  ;;  %v3153_v16 = vmul.f32 %v8949_v33, %v11383_v5  ;;  %v11385_v17 = vld [vmem:[#allocation286_spill] sm:$0xff]  ;;  %v11387_v50 = vld [vmem:[#allocation291_spill] sm:$0xff]  ;;  %v11388_v33 = vld [vmem:[#allocation300_spill] sm:$0xff] }
 0x438   : > { %11371 = vst [vmem:[#allocation173_spill] sm:$0xff] %v9301_v9  ;;  %v3451_v59 = vrot.slane %v3386_v4, 5  ;;  %v3388_v37 = vmul.f32 %v9098_v24, %v11384_v6  ;;  %v3237_v56 = vrot.slane %v3152_v61, 3  ;;  %v3387_v40 = vmul.f32 %v9098_v24, %v11385_v17  ;;  %v11386_v10 = vld [vmem:[#allocation306_spill] sm:$0xff]  ;;  %v11389_v6 = vld [vmem:[#allocation289_spill] sm:$0xff] }
 0x439   : > { %v9326_v45 = vpop.permute.xlu0 %4156  ;;  %v3461_v9 = vrot.slane %v3392_v54, 7  ;;  %v3400_v25 = vmul.f32 %v9098_v24, %v11386_v10  ;;  %v3234_v23 = vsel %vm1627_vm4, %v3233_v13, %v3232_v48  ;;  %v3448_v20 = vsel %vm1621_vm2, %v3447_v32, %v3383_v55  ;;  %v11391_v13 = vld [vmem:[#allocation287_spill] sm:$0xff] }
 0x43a   : > { %11381 = vst [vmem:[#allocation177_spill] sm:$0xff] %v9326_v45  ;;  %v3393_v45 = vmul.f32 %v9098_v24, %v11387_v50  ;;  %v3394_v4 = vmul.f32 %v9098_v24, %v11388_v33  ;;  %v3241_v5 = vrot.slane %v3154_v15, 1  ;;  %v3236_v61 = vsel %vm1630_vm5, %v3235_v12, %v3234_v23  ;;  %v11392_v23 = vld [vmem:[#allocation308_spill] sm:$0xff] }
 0x43b   : > { %v9328_v57 = vpop.permute.xlu1 %4104  ;;  %v3391_v17 = vmul.f32 %v9098_v24, %v11389_v6  ;;  %v3450_v54 = vsel %vm1624_vm3, %v3449_v41, %v3448_v20  ;;  %v3239_v10 = vrot.slane %v3153_v16, 2  ;;  %v3389_v55 = vmul.f32 %v9098_v24, %v11391_v13  ;;  %v11393_v41 = vld [vmem:[#allocation299_spill] sm:$0xff] }
 0x43c   : > { %11382 = vst [vmem:[#allocation178_spill] sm:$0xff] %v9328_v57  ;;  %v3452_v48 = vsel %vm1627_vm4, %v3451_v59, %v3450_v54  ;;  %v3455_v32 = vrot.slane %v3388_v37, 3  ;;  %v3453_v33 = vrot.slane %v3387_v40, 4  ;;  %v3475_v12 = vrot.slane %v3400_v25, 7  ;;  %v11395_v37 = vld [vmem:[#allocation293_spill] sm:$0xff] }
 0x43d   : > { %v3462_v15 = vsel %vm1621_vm2, %v3461_v9, %v3391_v17  ;;  %v3402_v6 = vmul.f32 %v9098_v24, %v11392_v23  ;;  %v3463_v57 = vrot.slane %v3393_v45, 6  ;;  %v3401_v20 = vmul.f32 %v9098_v24, %v11393_v41  ;;  %v11396_v9 = vld [vmem:[#allocation297_spill] sm:$0xff] }
 0x43e   : > { %v9353_v50 = vpop.permute.xlu0 %4296  ;;  %v3465_v16 = vrot.slane %v3394_v4, 5  ;;  %v3238_v59 = vsel %vm1633_vm6, %v3237_v56, %v3236_v61  ;;  %v3395_v54 = vmul.f32 %v9098_v24, %v11395_v37  ;;  %v3454_v40 = vsel %vm1630_vm5, %v3453_v33, %v3452_v48  ;;  %v11398_v56 = vld [vmem:[#allocation301_spill] sm:$0xff]  ;;  %v11399_v33 = vld [vmem:[#allocation310_spill] sm:$0xff] }
 0x43f   : > { %v9348_v14 = vpop.permute.xlu1 %4112  ;;  %v3399_v25 = vmul.f32 %v9098_v24, %v11396_v9  ;;  %v3240_v45 = vsel %vm1636_vm7, %v3239_v10, %v3238_v59  ;;  %v3457_v23 = vrot.slane %v3389_v55, 2  ;;  %v3456_v4 = vsel %vm1633_vm6, %v3455_v32, %v3454_v40  ;;  %v11400_v55 = vld [vmem:[#allocation313_spill] sm:$0xff]  ;;  %v11402_v40 = vld [vmem:[#allocation296_spill] sm:$0xff] }
 0x440   : > { %11390 = vst [vmem:[#allocation181_spill] sm:$0xff] %v9348_v14  ;;  %v11394_v14 = vld [vmem:[#allocation302_spill] sm:$0xff]  ;;  %v3464_v41 = vsel %vm1624_vm3, %v3463_v57, %v3462_v15  ;;  %v3403_v61 = vmul.f32 %v9098_v24, %v11398_v56  ;;  %v3479_v48 = vrot.slane %v3402_v6, 5  ;;  %v3404_v9 = vmul.f32 %v9098_v24, %v11399_v33  ;;  %v11401_v57 = vld [vmem:[#allocation295_spill] sm:$0xff] }
 0x441   : > { %v3396_v13 = vmul.f32 %v9098_v24, %v11394_v14  ;;  %v3476_v37 = vsel %vm1621_vm2, %v3475_v12, %v3399_v25  ;;  %v3477_v34 = vrot.slane %v3401_v20, 6  ;;  %v3408_v32 = vmul.f32 %v9098_v24, %v11400_v55  ;;  %v11406_v25 = vld [vmem:[#allocation318_spill] sm:$0xff] }
 0x442   : > { %v9373_v14 = vpop.permute.xlu0 %4308  ;;  %v3467_v59 = vrot.slane %v3395_v54, 4  ;;  %v3397_v15 = vmul.f32 %v9098_v24, %v11401_v57  ;;  %v3390_v56 = vmul.f32 %v9098_v24, %v11402_v40  ;;  %v3398_v12 = vmul.f32 %v9098_v24, %v11403_v22 }
 0x443   : > { %v9368_v17 = vpop.permute.xlu1 %4120  ;;  %v3469_v10 = vrot.slane %v3396_v13, 3  ;;  %v9392_v20 = vsel %vm1639_vm9, %v3241_v5, %v3240_v45  ;;  %v3478_v13 = vsel %vm1624_vm3, %v3477_v34, %v3476_v37  ;;  %v9398_v54 = vrot.slane %v9188_v60, %v11406_v25  ;;  %v11408_v5 = vld [vmem:[#allocation303_spill] sm:$0xff] }
 0x444   : > { %11397 = vst [vmem:[#allocation185_spill] sm:$0xff] %v9368_v17  ;;  %v3466_v17 = vsel %vm1627_vm4, %v3465_v16, %v3464_v41  ;;  %11405 = vst [vmem:[#allocation21_spill] sm:$0xff] %v9392_v20  ;;  %v3458_v16 = vsel %vm1636_vm7, %v3457_v23, %v3456_v4  ;;  %v3481_v33 = vrot.slane %v3403_v61, 4  ;;  %v3480_v22 = vsel %vm1627_vm4, %v3479_v48, %v3478_v13  ;;  %v11409_v4 = vld [vmem:[#allocation315_spill] sm:$0xff] }
 0x445   : > { %v3468_v55 = vsel %vm1630_vm5, %v3467_v59, %v3466_v17  ;;  %v3483_v57 = vrot.slane %v3404_v9, 3  ;;  %v3405_v45 = vmul.f32 %v9098_v24, %v11408_v5  ;;  %v3489_v23 = vrot.slane %v3408_v32, 7  ;;  %v11412_v17 = vld [vmem:[#allocation305_spill] sm:$0xff]  ;;  %v11414_v32 = vld [vmem:[#allocation312_spill] sm:$0xff]  ;;  %v11417_v5 = vld [vmem:[#allocation31_spill] sm:$0xff] }
 0x446   : > { %v9400_v41 = vpop.permute.xlu0 %4316  ;;  %v3470_v40 = vsel %vm1633_vm6, %v3469_v10, %v3468_v55  ;;  %v3410_v34 = vmul.f32 %v9098_v24, %v11409_v4  ;;  %v3471_v37 = vrot.slane %v3397_v15, 2  ;;  %v3459_v25 = vrot.slane %v3390_v56, 1  ;;  %v11413_v9 = vld [vmem:[#allocation309_spill] sm:$0xff] }
 0x447   : > { %v9389_v6 = vpop.permute.xlu1 %4128  ;;  %11407 = vst [vmem:[#allocation186_spill] sm:$0xff] %v9400_v41  ;;  %v3473_v20 = vrot.slane %v3398_v12, 1  ;;  %v3407_v48 = vmul.f32 %v9098_v24, %v11412_v17  ;;  %v3411_v10 = vmul.f32 %v9098_v24, %v11413_v9  ;;  %v3482_v59 = vsel %vm1630_vm5, %v3481_v33, %v3480_v22  ;;  %v11416_v12 = vld [vmem:[#allocation311_spill] sm:$0xff]  ;;  %v11418_v33 = vld [vmem:[#allocation36_spill] sm:$0xff] }
 0x448   : > { %11404 = vst [vmem:[#allocation190_spill] sm:$0xff] %v9389_v6  ;;  %v11410_v6 = vld [vmem:[#allocation307_spill] sm:$0xff]  ;;  %v3406_v13 = vmul.f32 %v9098_v24, %v11414_v32  ;;  %v3472_v15 = vsel %vm1636_vm7, %v3471_v37, %v3470_v40  ;;  %v3484_v56 = vsel %vm1633_vm6, %v3483_v57, %v3482_v59  ;;  %v3644_v4 = vmul.f32 %v9209_v62, %v11417_v5 }
 0x449   : > { %v3409_v61 = vmul.f32 %v9098_v24, %v11410_v6  ;;  %v3413_v6 = vmul.f32 %v9098_v24, %v11416_v12  ;;  %v3485_v17 = vrot.slane %v3405_v45, 2  ;;  %v3490_v9 = vsel %vm1621_vm2, %v3489_v23, %v3407_v48  ;;  %v11420_v37 = vld [vmem:[#allocation319_spill] sm:$0xff] }
 0x44a   : > { %v9420_v55 = vpop.permute.xlu0 %4324  ;;  %v3645_v22 = vmul.f32 %v9209_v62, %v11418_v33  ;;  %v9432_v32 = vsel %vm1639_vm9, %v3459_v25, %v3458_v16  ;;  %v9435_v40 = vsel %vm1639_vm9, %v3473_v20, %v3472_v15  ;;  %v3412_v59 = vmul.f32 %v9098_v24, %v11420_v37  ;;  %v11426_v33 = vld [vmem:[#allocation314_spill] sm:$0xff]  ;;  %v11427_v37 = vld [vmem:[#allocation320_spill] sm:$0xff] }
 0x44b   : > { %v9411_v41 = vpop.permute.xlu1 %4136  ;;  %11415 = vst [vmem:[#allocation179_spill] sm:$0xff] %v9420_v55  ;;  %11419 = vst [vmem:[#allocation180_spill] sm:$0xff] %v9435_v40  ;;  %v3491_v57 = vrot.slane %v3409_v61, 6  ;;  %v3495_v12 = vrot.slane %v3411_v10, 4  ;;  %v3486_v5 = vsel %vm1636_vm7, %v3485_v17, %v3484_v56  ;;  %v3487_v45 = vrot.slane %v3406_v13, 1  ;;  %v11421_v55 = vld [vmem:[#allocation316_spill] sm:$0xff] }
 0x44c   : > { %11411 = vst [vmem:[#allocation192_spill] sm:$0xff] %v9411_v41  ;;  %v3493_v41 = vrot.slane %v3410_v34, 5  ;;  %v3646_v23 = vmul.f32 %v9209_v62, %v11421_v55  ;;  %v3499_v48 = vrot.slane %v3413_v6, 2  ;;  %v3707_v25 = vrot.slane %v3644_v4, 7  ;;  %v11424_v10 = vld [vmem:[#allocation51_spill] sm:$0xff] }
 0x44d   : > { %v3492_v16 = vsel %vm1624_vm3, %v3491_v57, %v3490_v9  ;;  %v3653_v20 = vmul.f32 %v9209_v62, %v8274_v11  ;;  %v3652_v56 = vmul.f32 %v9209_v62, %v11424_v10  ;;  %v3709_v13 = vrot.slane %v3645_v22, 6  ;;  %v11425_v17 = vld [vmem:[#allocation55_spill] sm:$0xff]  ;;  %v11428_v57 = vld [vmem:[#allocation54_spill] sm:$0xff] }
 0x44e   : > { %v9442_v34 = vpop.permute.xlu0 %4332  ;;  %v3494_v15 = vsel %vm1627_vm4, %v3493_v41, %v3492_v16  ;;  %v3647_v55 = vmul.f32 %v9209_v62, %v11425_v17  ;;  %v3643_v6 = vmul.f32 %v9209_v62, %v11426_v33  ;;  %v3648_v4 = vmul.f32 %v9209_v62, %v11427_v37  ;;  %v11430_v10 = vld [vmem:[#allocation35_spill] sm:$0xff] }
 0x44f   : > { %11422 = vst [vmem:[#allocation187_spill] sm:$0xff] %v9442_v34  ;;  %v9447_v61 = vpop.permute.xlu1 %4144  ;;  %v3497_v9 = vrot.slane %v3412_v59, 3  ;;  %v9460_v11 = vrot.slane %v9188_v60, %v11428_v57  ;;  %v9463_v41 = vsel %vm1639_vm9, %v3487_v45, %v3486_v5  ;;  %v3711_v16 = vrot.slane %v3646_v23, 5  ;;  %v11432_v23 = vld [vmem:[#allocation40_spill] sm:$0xff]  ;;  %v11433_v34 = vld [vmem:[#allocation322_spill] sm:$0xff] }
 0x450   : > { %11423 = vst [vmem:[#allocation22_spill] sm:$0xff] %v9447_v61  ;;  %11429 = vst [vmem:[#allocation194_spill] sm:$0xff] %v9463_v41  ;;  %v3654_v22 = vmul.f32 %v9209_v62, %v11430_v10  ;;  %v3651_v17 = vmul.f32 %v9209_v62, %v8234_v36  ;;  %v3496_v33 = vsel %vm1630_vm5, %v3495_v12, %v3494_v15  ;;  %v3723_v37 = vrot.slane %v3653_v20, 6  ;;  %v11435_v20 = vld [vmem:[#allocation323_spill] sm:$0xff] }
 0x451   : > { %v3708_v59 = vsel %vm1621_vm2, %v3707_v25, %v3643_v6  ;;  %v3655_v57 = vmul.f32 %v9209_v62, %v8310_v39  ;;  %v3721_v40 = vrot.slane %v3652_v56, 7  ;;  %v3713_v45 = vrot.slane %v3647_v55, 4  ;;  %v11436_v56 = vld [vmem:[#allocation41_spill] sm:$0xff] }
 0x452   : > { %v9469_v61 = vpop.permute.xlu0 %4340  ;;  %v3710_v5 = vsel %vm1624_vm3, %v3709_v13, %v3708_v59  ;;  %v3649_v10 = vmul.f32 %v9209_v62, %v11432_v23  ;;  %v3715_v41 = vrot.slane %v3648_v4, 3  ;;  %v3498_v36 = vsel %vm1633_vm6, %v3497_v9, %v3496_v33  ;;  %v11437_v9 = vld [vmem:[#allocation325_spill] sm:$0xff] }
 0x453   : > { %11431 = vst [vmem:[#allocation189_spill] sm:$0xff] %v9469_v61  ;;  %v3414_v61 = vmul.f32 %v9098_v24, %v11433_v34  ;;  %v3661_v12 = vmul.f32 %v9209_v62, %v8415_v26  ;;  %v9483_v25 = vpop.permute.xlu1 %4152  ;;  %v3650_v39 = vmul.f32 %v9209_v62, %v11435_v20  ;;  %v3725_v15 = vrot.slane %v3654_v22, 5  ;;  %v11438_v33 = vld [vmem:[#allocation37_spill] sm:$0xff]  ;;  %v11439_v20 = vld [vmem:[#allocation326_spill] sm:$0xff] }
 0x454   : > { %11434 = vst [vmem:[#allocation191_spill] sm:$0xff] %v9483_v25  ;;  %v3660_v13 = vmul.f32 %v9209_v62, %v11436_v56  ;;  %v3722_v55 = vsel %vm1621_vm2, %v3721_v40, %v3651_v17  ;;  %v3712_v4 = vsel %vm1627_vm4, %v3711_v16, %v3710_v5  ;;  %v3727_v34 = vrot.slane %v3655_v57, 4  ;;  %v11440_v5 = vld [vmem:[#allocation42_spill] sm:$0xff] }
 0x455   : > { %v3724_v24 = vsel %vm1624_vm3, %v3723_v37, %v3722_v55  ;;  %v3657_v26 = vmul.f32 %v9209_v62, %v11437_v9  ;;  %v3656_v59 = vmul.f32 %v9209_v62, %v11438_v33  ;;  %v3714_v22 = vsel %vm1630_vm5, %v3713_v45, %v3712_v4  ;;  %v11441_v45 = vld [vmem:[#allocation56_spill] sm:$0xff] }
 0x456   : > { %v9490_v6 = vpop.permute.xlu0 %4348  ;;  %v3717_v23 = vrot.slane %v3649_v10, 2  ;;  %v3659_v56 = vmul.f32 %v9209_v62, %v11439_v20  ;;  %v3500_v40 = vsel %vm1636_vm7, %v3499_v48, %v3498_v36  ;;  %v3501_v17 = vrot.slane %v3414_v61, 1 }
 0x457   : > { %v3737_v25 = vrot.slane %v3661_v12, 6  ;;  %v3663_v16 = vmul.f32 %v9209_v62, %v8443_v53  ;;  %v3719_v57 = vrot.slane %v3650_v39, 1  ;;  %v3735_v37 = vrot.slane %v3660_v13, 7  ;;  %v11442_v39 = vld [vmem:[#allocation324_spill] sm:$0xff] }
 0x458   : > { %v3662_v55 = vmul.f32 %v9209_v62, %v11440_v5  ;;  %v3726_v9 = vsel %vm1627_vm4, %v3725_v15, %v3724_v24  ;;  %v3658_v10 = vmul.f32 %v9209_v62, %v11441_v45  ;;  %v3716_v4 = vsel %vm1633_vm6, %v3715_v41, %v3714_v22  ;;  %v9513_v36 = vpop.permute.xlu1 %4292  ;;  %v11443_v24 = vld [vmem:[#allocation60_spill] sm:$0xff]  ;;  %v11445_v22 = vld [vmem:[#allocation9_spill] sm:$0xff] }
 0x459   : > { %v3728_v48 = vsel %vm1630_vm5, %v3727_v34, %v3726_v9  ;;  %v3731_v61 = vrot.slane %v3657_v26, 2  ;;  %v3729_v53 = vrot.slane %v3656_v59, 3  ;;  %v3718_v12 = vsel %vm1636_vm7, %v3717_v23, %v3716_v4  ;;  %v11446_v4 = vld [vmem:[#allocation26_spill] sm:$0xff] }
 0x45a   : > { %v9507_v33 = vpop.permute.xlu0 %4356  ;;  %v3664_v13 = vmul.f32 %v9209_v62, %v11442_v39  ;;  %v3736_v15 = vsel %vm1621_vm2, %v3735_v37, %v3659_v56  ;;  %v3666_v20 = vmul.f32 %v9209_v62, %v11443_v24  ;;  %v3741_v45 = vrot.slane %v3663_v16, 4 }
 0x45b   : > { %v3738_v5 = vsel %vm1624_vm3, %v3737_v25, %v3736_v15  ;;  %v3665_v41 = vmul.f32 %v9209_v62, %v8469_v38  ;;  %v9525_v34 = vsel %vm1639_vm9, %v3501_v17, %v3500_v40  ;;  %v3739_v26 = vrot.slane %v3662_v55, 5  ;;  %v11447_v17 = vld [vmem:[#allocation10_spill] sm:$0xff] }
 0x45c   : > { %11444 = vst [vmem:[#allocation188_spill] sm:$0xff] %v9525_v34  ;;  %v3730_v59 = vsel %vm1633_vm6, %v3729_v53, %v3728_v48  ;;  %v3668_v23 = vmul.f32 %v9209_v62, %v11445_v22  ;;  %v3733_v56 = vrot.slane %v3658_v10, 1  ;;  %v3670_v25 = vmul.f32 %v9209_v62, %v11446_v4  ;;  %v9550_v15 = vpop.permute.xlu1 %4300 }
 0x45d   : > { %v3732_v37 = vsel %vm1636_vm7, %v3731_v61, %v3730_v59  ;;  %v3669_v38 = vmul.f32 %v9209_v62, %v8539_v8  ;;  %v9538_v40 = vsel %vm1639_vm9, %v3719_v57, %v3718_v12  ;;  %v9542_v16 = vmul.f32 %v9209_v62, %v11447_v17 }
 0x45e   : > { %v9530_v9 = vpop.permute.xlu0 %4364  ;;  %v3740_v55 = vsel %vm1627_vm4, %v3739_v26, %v3738_v5  ;;  %v9547_v10 = vmul.f32 %v9209_v62, %v8467_v31  ;;  %v3743_v48 = vrot.slane %v3664_v13, 3  ;;  %v3747_v61 = vrot.slane %v3666_v20, 1  ;;  %v11462_v26 = vld [vmem:[#allocation148_spill] sm:$0xff] }
 0x45f   : > { %v3742_v53 = vsel %vm1630_vm5, %v3741_v45, %v3740_v55  ;;  %v3745_v39 = vrot.slane %v3665_v41, 2  ;;  %v9553_v8 = vsel %vm1639_vm9, %v3733_v56, %v3732_v37  ;;  %v3749_v57 = vrot.slane %v3668_v23, 7  ;;  %v11449_v23 = vld [vmem:[#allocation63_spill] sm:$0xff]  ;;  %v11450_v37 = vld [vmem:[#allocation12_spill] sm:$0xff] }
 0x460   : > { %11448 = vst [vmem:[#allocation193_spill] sm:$0xff] %v9547_v10  ;;  %v3667_v12 = vmul.f32 %v9209_v62, %v8498_v43  ;;  %v3905_v24 = vmul.f32 %v9398_v54, %v8668_v18  ;;  %v3753_v31 = vrot.slane %v3670_v25, 5  ;;  %v3904_v13 = vmul.f32 %v9398_v54, %v8510_v2  ;;  %v11451_v25 = vld [vmem:[#allocation13_spill] sm:$0xff] }
 0x461   : > { %v3751_v20 = vrot.slane %v3669_v38, 6  ;;  %v3906_v45 = vmul.f32 %v9398_v54, %v8700_v35  ;;  %v3757_v41 = vrot.slane %v9542_v16, 3  ;;  %v3744_v59 = vsel %vm1633_vm6, %v3743_v48, %v3742_v53 }
 0x462   : > { %v9559_v5 = vpop.permute.xlu0 %4372  ;;  %v3671_v43 = vmul.f32 %v9209_v62, %v8578_v3  ;;  %v3746_v18 = vsel %vm1636_vm7, %v3745_v39, %v3744_v59  ;;  %v3903_v22 = vmul.f32 %v9398_v54, %v8641_v52  ;;  %v3912_v2 = vmul.f32 %v9398_v54, %v8779_v29  ;;  %v11452_v29 = vld [vmem:[#allocation17_spill] sm:$0xff] }
 0x463   : > { %v9577_v35 = vrot.slane %v9188_v60, %v11449_v23  ;;  %v3750_v56 = vsel %vm1621_vm2, %v3749_v57, %v3667_v12  ;;  %v3907_v4 = vmul.f32 %v9398_v54, %v11450_v37  ;;  %v3909_v3 = vmul.f32 %v9398_v54, %v11451_v25  ;;  %v9589_v60 = vpop.permute.xlu1 %4304  ;;  %v11453_v57 = vld [vmem:[#allocation126_spill] sm:$0xff]  ;;  %v11454_v59 = vld [vmem:[#allocation137_spill] sm:$0xff] }
 0x464   : > { %v3969_v38 = vrot.slane %v3905_v24, 6  ;;  %v3967_v16 = vrot.slane %v3904_v13, 7  ;;  %v3752_v52 = vsel %vm1624_vm3, %v3751_v20, %v3750_v56  ;;  %v3971_v55 = vrot.slane %v3906_v45, 5 }
 0x465   : > { %v3908_v48 = vmul.f32 %v9398_v54, %v11452_v29  ;;  %v9592_v53 = vsel %vm1639_vm9, %v3747_v61, %v3746_v18  ;;  %v3755_v39 = vrot.slane %v3671_v43, 4  ;;  %v3673_v12 = vmul.f32 %v9209_v62, %v11453_v57  ;;  %v11455_v62 = vld [vmem:[#allocation129_spill] sm:$0xff] }
 0x466   : > { %v9584_v17 = vpop.permute.xlu0 %4380  ;;  %v3920_v24 = vmul.f32 %v9398_v54, %v8878_v42  ;;  %v3913_v13 = vmul.f32 %v9398_v54, %v11454_v59  ;;  %v3968_v20 = vsel %vm1621_vm2, %v3967_v16, %v3903_v22  ;;  %v3981_v45 = vrot.slane %v3912_v2, 7  ;;  %v11456_v59 = vld [vmem:[#allocation138_spill] sm:$0xff] }
 0x467   : > { %v3914_v56 = vmul.f32 %v9398_v54, %v8800_v21  ;;  %v3973_v37 = vrot.slane %v3907_v4, 4  ;;  %v3977_v25 = vrot.slane %v3909_v3, 2  ;;  %v3754_v61 = vsel %vm1627_vm4, %v3753_v31, %v3752_v52  ;;  %v11457_v52 = vld [vmem:[#allocation159_spill] sm:$0xff] }
 0x468   : > { %v3970_v43 = vsel %vm1624_vm3, %v3969_v38, %v3968_v20  ;;  %v3911_v42 = vmul.f32 %v9398_v54, %v11455_v62  ;;  %v3975_v57 = vrot.slane %v3908_v48, 3  ;;  %v3921_v22 = vmul.f32 %v9398_v54, %v11456_v59  ;;  %v9618_v62 = vpop.permute.xlu1 %4312 }
 0x469   : > { %v3972_v29 = vsel %vm1627_vm4, %v3971_v55, %v3970_v43  ;;  %v3756_v2 = vsel %vm1630_vm5, %v3755_v39, %v3754_v61  ;;  %v3759_v21 = vrot.slane %v3673_v12, 2  ;;  %v3995_v4 = vrot.slane %v3920_v24, 7  ;;  %v11458_v55 = vld [vmem:[#allocation131_spill] sm:$0xff]  ;;  %v11459_v43 = vld [vmem:[#allocation133_spill] sm:$0xff] }
 0x46a   : > { %v9605_v18 = vpop.permute.xlu0 %4388  ;;  %v3922_v31 = vmul.f32 %v9398_v54, %v8901_v44  ;;  %v3983_v3 = vrot.slane %v3913_v13, 6  ;;  %v3982_v38 = vsel %vm1621_vm2, %v3981_v45, %v3911_v42  ;;  %v3985_v16 = vrot.slane %v3914_v56, 5  ;;  %v11460_v24 = vld [vmem:[#allocation143_spill] sm:$0xff]  ;;  %v11461_v56 = vld [vmem:[#allocation136_spill] sm:$0xff] }
 0x46b   : > { %v3916_v20 = vmul.f32 %v9398_v54, %v11457_v52  ;;  %v3915_v48 = vmul.f32 %v9398_v54, %v11458_v55  ;;  %v3919_v39 = vmul.f32 %v9398_v54, %v11459_v43  ;;  %v3974_v12 = vsel %vm1630_vm5, %v3973_v37, %v3972_v29  ;;  %v11463_v29 = vld [vmem:[#allocation142_spill] sm:$0xff] }
 0x46c   : > { %v3910_v44 = vmul.f32 %v9398_v54, %v11460_v24  ;;  %v3758_v45 = vsel %vm1633_vm6, %v3757_v41, %v3756_v2  ;;  %v3917_v61 = vmul.f32 %v9398_v54, %v11461_v56  ;;  %v3976_v42 = vsel %vm1633_vm6, %v3975_v57, %v3974_v12  ;;  %v11464_v2 = vld [vmem:[#allocation161_spill] sm:$0xff] }
 0x46d   : > { %v3997_v59 = vrot.slane %v3921_v22, 6  ;;  %v3984_v52 = vsel %vm1624_vm3, %v3983_v3, %v3982_v38  ;;  %v3996_v55 = vsel %vm1621_vm2, %v3995_v4, %v3919_v39  ;;  %v3999_v43 = vrot.slane %v3922_v31, 5  ;;  %v11466_v38 = vld [vmem:[#allocation150_spill] sm:$0xff]  ;;  %v11467_v12 = vld [vmem:[#allocation145_spill] sm:$0xff] }
 0x46e   : > { %v9627_v13 = vpop.permute.xlu0 %4396  ;;  %v3924_v37 = vmul.f32 %v9398_v54, %v11462_v26  ;;  %v3923_v24 = vmul.f32 %v9398_v54, %v11463_v29  ;;  %v3986_v23 = vsel %vm1627_vm4, %v3985_v16, %v3984_v52  ;;  %v3989_v41 = vrot.slane %v3916_v20, 3  ;;  %v9653_v52 = vpop.permute.xlu1 %4320 }
 0x46f   : > { %v3928_v56 = vmul.f32 %v9398_v54, %v11464_v2  ;;  %v9643_v57 = vsel %vm1636_vm7, %v3759_v21, %v3758_v45  ;;  %v3987_v22 = vrot.slane %v3915_v48, 4  ;;  %v3979_v3 = vrot.slane %v3910_v44, 1  ;;  %v11468_v45 = vld [vmem:[#allocation155_spill] sm:$0xff] }
 0x470   : > { %11465 = vst [vmem:[#allocation23_spill] sm:$0xff] %v9643_v57  ;;  %v3918_v4 = vmul.f32 %v9398_v54, %v11466_v38  ;;  %v3991_v26 = vrot.slane %v3917_v61, 2  ;;  %v3978_v39 = vsel %vm1636_vm7, %v3977_v25, %v3976_v42  ;;  %v3925_v16 = vmul.f32 %v9398_v54, %v11467_v12 }
 0x471   : > { %v3998_v20 = vsel %vm1624_vm3, %v3997_v59, %v3996_v55  ;;  %v3988_v21 = vsel %vm1630_vm5, %v3987_v22, %v3986_v23  ;;  %v4003_v44 = vrot.slane %v3924_v37, 3  ;;  %v3926_v29 = vmul.f32 %v9398_v54, %v11468_v45  ;;  %v11469_v59 = vld [vmem:[#allocation19_spill] sm:$0xff]  ;;  %v11470_v22 = vld [vmem:[#allocation158_spill] sm:$0xff] }
 0x472   : > { %v9647_v31 = vpop.permute.xlu0 %4404  ;;  %v4000_v48 = vsel %vm1627_vm4, %v3999_v43, %v3998_v20  ;;  %v4001_v2 = vrot.slane %v3923_v24, 4  ;;  %v3990_v61 = vsel %vm1633_vm6, %v3989_v41, %v3988_v21  ;;  %v4009_v38 = vrot.slane %v3928_v56, 7  ;;  %v11472_v24 = vld [vmem:[#allocation144_spill] sm:$0xff]  ;;  %v11473_v20 = vld [vmem:[#allocation166_spill] sm:$0xff] }
 0x473   : > { %v3930_v25 = vmul.f32 %v9398_v54, %v9010_v30  ;;  %v9663_v42 = vsel %vm1639_vm9, %v3979_v3, %v3978_v39  ;;  %v3929_v55 = vmul.f32 %v9398_v54, %v11469_v59  ;;  %v3993_v23 = vrot.slane %v3918_v4, 1 }
 0x474   : > { %v3931_v43 = vmul.f32 %v9398_v54, %v11470_v22  ;;  %v4005_v12 = vrot.slane %v3925_v16, 2  ;;  %v3927_v41 = vmul.f32 %v9398_v54, %v11472_v24  ;;  %v4002_v56 = vsel %vm1630_vm5, %v4001_v2, %v4000_v48  ;;  %v9687_v2 = vpop.permute.xlu1 %4328 }
 0x475   : > { %v4166_v30 = vmul.f32 %v9460_v11, %v11473_v20  ;;  %v3992_v3 = vsel %vm1636_vm7, %v3991_v26, %v3990_v61  ;;  %v4004_v39 = vsel %vm1633_vm6, %v4003_v44, %v4002_v56  ;;  %v4007_v21 = vrot.slane %v3926_v29, 1  ;;  %v11474_v29 = vld [vmem:[#allocation153_spill] sm:$0xff]  ;;  %v11475_v61 = vld [vmem:[#allocation152_spill] sm:$0xff] }
 0x476   : > { %v9669_v37 = vpop.permute.xlu0 %4412  ;;  %v4164_v4 = vmul.f32 %v9460_v11, %v9105_v27  ;;  %v9682_v45 = vmul.f32 %v9460_v11, %v8995_v19  ;;  %v4010_v16 = vsel %vm1621_vm2, %v4009_v38, %v3927_v41  ;;  %v4013_v59 = vrot.slane %v3930_v25, 5  ;;  %v11476_v41 = vld [vmem:[#allocation321_spill] sm:$0xff] }
 0x477   : > { %11471 = vst [vmem:[#allocation197_spill] sm:$0xff] %v9669_v37  ;;  %v4165_v48 = vmul.f32 %v9460_v11, %v9130_v1  ;;  %v4011_v22 = vrot.slane %v3929_v55, 6  ;;  %v9690_v26 = vsel %vm1639_vm9, %v3993_v23, %v3992_v3  ;;  %v4015_v44 = vrot.slane %v3931_v43, 4  ;;  %v11477_v3 = vld [vmem:[#allocation162_spill] sm:$0xff] }
 0x478   : > { %v9694_v27 = vmul.f32 %v9460_v11, %v9018_v0  ;;  %v9698_v19 = vmul.f32 %v9398_v54, %v11474_v29  ;;  %v4163_v38 = vmul.f32 %v9460_v11, %v11475_v61  ;;  %v4231_v25 = vrot.slane %v4166_v30, 5 }
 0x479   : > { %v4006_v1 = vsel %vm1636_vm7, %v4005_v12, %v4004_v39  ;;  %v4012_v23 = vsel %vm1624_vm3, %v4011_v22, %v4010_v16  ;;  %v4227_v43 = vrot.slane %v4164_v4, 7  ;;  %v4235_v56 = vrot.slane %v9682_v45, 3  ;;  %v11478_v12 = vld [vmem:[#allocation149_spill] sm:$0xff]  ;;  %v11479_v4 = vld [vmem:[#allocation24_spill] sm:$0xff]  ;;  %v11481_v45 = vld [vmem:[#allocation163_spill] sm:$0xff] }
 0x47a   : > { %v9704_v55 = vsel %vm1639_vm9, %v4007_v21, %v4006_v1  ;;  %v4014_v20 = vsel %vm1627_vm4, %v4013_v59, %v4012_v23  ;;  %v4172_v29 = vmul.f32 %v9460_v11, %v11477_v3  ;;  %v4229_v61 = vrot.slane %v4165_v48, 6  ;;  %v11482_v1 = vld [vmem:[#allocation164_spill] sm:$0xff]  ;;  %v9734_v3 = vpop.permute.xlu1 %4336 }
 0x47b   : > { %v1395_v24 = vpop.permute.xlu0 %1394  ;;  %v9715_v39 = vmul.f32 %v9398_v54, %v11478_v12  ;;  %v4167_v21 = vmul.f32 %v9460_v11, %v9151_v63  ;;  %v11480_v16 = vrot.slane %v11479_v4, 7  ;;  %v9724_v59 = vmul.f32 %v9460_v11, %v11481_v45  ;;  %v11484_v12 = vld [vmem:[#allocation25_spill] sm:$0xff]  ;;  %v11486_v45 = vld [vmem:[#allocation27_spill] sm:$0xff] }
 0x47c   : > { %v1556_v0 = vmul.f32 %v11476_v41, %v1395_v24  ;;  %v9728_v48 = vmul.f32 %v9460_v11, %v11482_v1  ;;  %v11483_v24 = vld [vmem:[#allocation165_spill] sm:$0xff]  ;;  %v11485_v63 = vrot.slane %v11484_v12, 6  ;;  %v11487_v10 = vrot.slane %v11486_v45, 5 }
 0x47d   : > { %v9732_v23 = vmul.f32 %v9460_v11, %v11483_v24  ;;  %v4241_v24 = vrot.slane %v4172_v29, 7  ;;  %v9750_v12 = vmul.f32 %v9460_v11, %v9149_v51  ;;  %v9763_v29 = vld [vmem:[%s10512_s1 + $0x1a] ss:$0 sm:$0xff]  ;;  %v4245_v51 = vrot.slane %v9724_v59, 5 }
 0x47e   : > { %v1622_v22 = vsel %vm1621_vm2, %v11480_v16, %v1556_v0  ;;  %v9740_v0 = vsel %vm1630_vm5, %v4015_v44, %v4014_v20  ;;  %v4228_v16 = vsel %vm1621_vm2, %v4227_v43, %v4163_v38  ;;  %v4233_v20 = vrot.slane %v4167_v21, 4  ;;  %v11490_v43 = vld [vmem:[#allocation29_spill] sm:$0xff]  ;;  %v11492_v21 = vld [vmem:[#allocation32_spill] sm:$0xff] }
 0x47f   : > { %v1625_v4 = vsel %vm1624_vm3, %v11485_v63, %v1622_v22  ;;  %v1440_v30 = vpop.permute.xlu0 %1439  ;;  %v4230_v34 = vsel %vm1624_vm3, %v4229_v61, %v4228_v16  ;;  %v11488_v22 = vld [vmem:[#allocation49_spill] sm:$0xff]  ;;  %v4173_v38 = vmul.f32 %v9460_v11, %v9239_v28  ;;  %v11491_v45 = vrot.slane %v11490_v43, 3 }
 0x480   : > { %v1628_v1 = vsel %vm1627_vm4, %v11487_v10, %v1625_v4  ;;  %v1565_v57 = vmul.f32 %v11476_v41, %v1440_v30  ;;  %v11489_v63 = vrot.slane %v11488_v22, 4  ;;  %v11493_v16 = vrot.slane %v11492_v21, 2  ;;  %v11495_v43 = vld [vmem:[#allocation53_spill] sm:$0xff]  ;;  %v9783_v21 = vpop.permute.xlu1 %4344 }
 0x481   : > { %v4232_v22 = vsel %vm1627_vm4, %v4231_v25, %v4230_v34  ;;  %v4169_v4 = vmul.f32 %v9460_v11, %v9176_v46  ;;  %v4425_v46 = vmul.f32 %v9577_v35, %v9550_v15 }
 0x482   : > { %v1631_v44 = vsel %vm1630_vm5, %v11489_v63, %v1628_v1  ;;  %v1641_v30 = vrot.slane %v1565_v57, 7  ;;  %v11494_v63 = vld [vmem:[#allocation47_spill] sm:$0xff]  ;;  %v4234_v25 = vsel %vm1630_vm5, %v4233_v20, %v4232_v22  ;;  %v4424_v20 = vmul.f32 %v9577_v35, %v9353_v50 }
 0x483   : > { %v1634_v10 = vsel %vm1633_vm6, %v11491_v45, %v1631_v44  ;;  %v1450_v1 = vpop.permute.xlu0 %1449  ;;  %v11496_v45 = vrot.slane %v11495_v43, 1  ;;  %v4236_v22 = vsel %vm1633_vm6, %v4235_v56, %v4234_v25  ;;  %v4237_v15 = vrot.slane %v4169_v4, 2 }
 0x484   : > { %v1637_v28 = vsel %vm1636_vm7, %v11493_v16, %v1634_v10  ;;  %v1642_v57 = vsel %vm1621_vm2, %v1641_v30, %v11494_v63  ;;  %v1567_v44 = vmul.f32 %v11476_v41, %v1450_v1  ;;  %v4171_v10 = vmul.f32 %v9460_v11, %v9213_v49  ;;  %v11497_v63 = vld [vmem:[#allocation33_spill] sm:$0xff] }
 0x485   : > { %v1640_v59 = vsel %vm1639_vm9, %v11496_v45, %v1637_v28  ;;  %v9789_v30 = vmul.f32 %v9460_v11, %v9174_v7  ;;  %v4243_v16 = vrot.slane %v4173_v38, 6  ;;  %v4175_v1 = vmul.f32 %v9460_v11, %v9261_v47 }
 0x486   : > { %v1687_v34 = vadd.f32 %v9763_v29, %v1640_v59  ;;  %v1645_v28 = vrot.slane %v1567_v44, 5  ;;  %v11498_v49 = vrot.slane %v11497_v63, 6  ;;  %v11499_v59 = vld [vmem:[#allocation61_spill] sm:$0xff]  ;;  %v4426_v7 = vmul.f32 %v9577_v35, %v9589_v60  ;;  %v11500_v63 = vld [vmem:[#allocation16_spill] sm:$0xff] }
 0x487   : > { %v1460_v45 = vpop.permute.xlu0 %1459  ;;  %v4242_v44 = vsel %vm1621_vm2, %v4241_v24, %v4171_v10  ;;  %v4423_v50 = vmul.f32 %v9577_v35, %v9513_v36  ;;  %v4247_v60 = vrot.slane %v4175_v1, 4  ;;  %v4489_v37 = vrot.slane %v4425_v46, 6  ;;  %v11503_v24 = vld [vmem:[#allocation140_spill] sm:$0xff] }
 0x488   : > { %v1644_v43 = vsel %vm1624_vm3, %v11498_v49, %v1642_v57  ;;  %v1947_v61 = vadd.f32 %v11499_v59, %v1687_v34  ;;  %v1569_v47 = vmul.f32 %v11476_v41, %v1460_v45  ;;  %v4259_v49 = vrot.slane %v9789_v30, 5 }
 0x489   : > { %v1646_v38 = vsel %vm1627_vm4, %v1645_v28, %v1644_v43  ;;  %v4244_v34 = vsel %vm1624_vm3, %v4243_v16, %v4242_v44  ;;  %v9812_v28 = vpop.permute.xlu1 %4352  ;;  %v11501_v43 = vld [vmem:[#allocation57_spill] sm:$0xff]  ;;  %v4491_v25 = vrot.slane %v4426_v7, 5  ;;  %v4238_v36 = vsel %vm1636_vm7, %v4237_v15, %v4236_v22  ;;  %v11505_v15 = vld [vmem:[#allocation59_spill] sm:$0xff] }
 0x48a   : > { %v2207_v57 = vadd.f32 %v11500_v63, %v1947_v61  ;;  %v1649_v59 = vrot.slane %v1569_v47, 3  ;;  %v11502_v45 = vrot.slane %v11501_v43, 4  ;;  %v4487_v61 = vrot.slane %v4424_v20, 7  ;;  %v11504_v47 = vld [vmem:[#allocation6_spill] sm:$0xff] }
 0x48b   : > { %v1470_v4 = vpop.permute.xlu0 %1469  ;;  %v9823_v1 = vmul.f32 %v9460_v11, %v9211_v58  ;;  %v4428_v46 = vmul.f32 %v9577_v35, %v9618_v62  ;;  %v4246_v44 = vsel %vm1627_vm4, %v4245_v51, %v4244_v34  ;;  %v4427_v20 = vmul.f32 %v9577_v35, %v9373_v14  ;;  %v11507_v62 = vld [vmem:[#allocation169_spill] sm:$0xff] }
 0x48c   : > { %v1648_v56 = vsel %vm1630_vm5, %v11502_v45, %v1646_v38  ;;  %v2467_v10 = vadd.f32 %v11503_v24, %v2207_v57  ;;  %v1571_v16 = vmul.f32 %v11476_v41, %v1470_v4  ;;  %v4488_v7 = vsel %vm1621_vm2, %v4487_v61, %v4423_v50  ;;  %v11508_v4 = vld [vmem:[#allocation183_spill] sm:$0xff]  ;;  %v11509_v61 = vld [vmem:[#allocation184_spill] sm:$0xff] }
 0x48d   : > { %v1650_v63 = vsel %vm1633_vm6, %v1649_v59, %v1648_v56  ;;  %v4248_v59 = vsel %vm1630_vm5, %v4247_v60, %v4246_v44  ;;  %v4490_v22 = vsel %vm1624_vm3, %v4489_v37, %v4488_v7  ;;  %v11506_v58 = vrot.slane %v11505_v15, 2  ;;  %v9845_v60 = vpop.permute.xlu1 %4360 }
 0x48e   : > { %v2727_v38 = vadd.f32 %v11504_v47, %v2467_v10  ;;  %v1653_v57 = vrot.slane %v1571_v16, 1  ;;  %v4177_v51 = vmul.f32 %v9460_v11, %v11508_v4  ;;  %v4492_v34 = vsel %vm1627_vm4, %v4491_v25, %v4490_v22  ;;  %v11510_v47 = vld [vmem:[#allocation186_spill] sm:$0xff]  ;;  %v11513_v22 = vld [vmem:[#allocation28_spill] sm:$0xff] }
 0x48f   : > { %v1652_v43 = vsel %vm1636_vm7, %v11506_v58, %v1650_v63  ;;  %v1480_v45 = vpop.permute.xlu0 %1479  ;;  %v4495_v24 = vrot.slane %v4428_v46, 3  ;;  %v4430_v37 = vmul.f32 %v9577_v35, %v9653_v52  ;;  %v4493_v16 = vrot.slane %v4427_v20, 4  ;;  %v11515_v4 = vld [vmem:[#allocation130_spill] sm:$0xff] }
 0x490   : > { %v2987_v56 = vadd.f32 %v11507_v62, %v2727_v38  ;;  %v1654_v14 = vsel %vm1639_vm9, %v1653_v57, %v1652_v43  ;;  %v1573_v50 = vmul.f32 %v11476_v41, %v1480_v45  ;;  %v4429_v38 = vmul.f32 %v9577_v35, %v11510_v47  ;;  %v11514_v62 = vld [vmem:[#allocation48_spill] sm:$0xff]  ;;  %v11518_v47 = vld [vmem:[#allocation46_spill] sm:$0xff] }
 0x491   : > { %v1688_v10 = vadd.f32 %v9763_v29, %v1654_v14  ;;  %v4432_v25 = vmul.f32 %v9577_v35, %v9687_v2  ;;  %v11511_v7 = vrot.slane %v9694_v27, 1  ;;  %v11512_v52 = vrot.slane %v9728_v48, 3 }
 0x492   : > { %v3247_v63 = vadd.f32 %v11509_v61, %v2987_v56  ;;  %v1655_v44 = vrot.slane %v1573_v50, 7  ;;  %v4251_v43 = vrot.slane %v4177_v51, 2  ;;  %v4494_v45 = vsel %vm1630_vm5, %v4493_v16, %v4492_v34  ;;  %v9872_v61 = vpop.permute.xlu1 %4368 }
 0x493   : > { %v4240_v46 = vsel %vm1639_vm9, %v11511_v7, %v4238_v36  ;;  %v4250_v57 = vsel %vm1633_vm6, %v11512_v52, %v4248_v59  ;;  %v1948_v15 = vadd.f32 %v11513_v22, %v1688_v10  ;;  %v1490_v58 = vpop.permute.xlu0 %1489  ;;  %v4496_v27 = vsel %vm1633_vm6, %v4495_v24, %v4494_v45  ;;  %v11516_v10 = vld [vmem:[#allocation187_spill] sm:$0xff]  ;;  %v11521_v22 = vld [vmem:[#allocation189_spill] sm:$0xff] }
 0x494   : > { %v3507_v20 = vadd.f32 %v9432_v32, %v3247_v63  ;;  %v1656_v2 = vsel %vm1621_vm2, %v1655_v44, %v11514_v62  ;;  %v1575_v56 = vmul.f32 %v11476_v41, %v1490_v58  ;;  %v4499_v36 = vrot.slane %v4430_v37, 1  ;;  %v11517_v63 = vld [vmem:[#allocation156_spill] sm:$0xff] }
 0x495   : > { %v2208_v48 = vadd.f32 %v11515_v4, %v1948_v15  ;;  %v4497_v14 = vrot.slane %v4429_v38, 2  ;;  %v4501_v50 = vrot.slane %v4432_v25, 7  ;;  %v4434_v32 = vmul.f32 %v9577_v35, %v9734_v3  ;;  %v11520_v38 = vld [vmem:[#allocation179_spill] sm:$0xff] }
 0x496   : > { %v3767_v59 = vadd.f32 %v9538_v40, %v3507_v20  ;;  %v1659_v51 = vrot.slane %v1575_v56, 5  ;;  %v4433_v34 = vmul.f32 %v9577_v35, %v11516_v10  ;;  %v11519_v24 = vrot.slane %v11518_v47, 6  ;;  %v11522_v20 = vld [vmem:[#allocation154_spill] sm:$0xff] }
 0x497   : > { %v2468_v16 = vadd.f32 %v11517_v63, %v2208_v48  ;;  %v1500_v44 = vpop.permute.xlu0 %1499  ;;  %v4431_v25 = vmul.f32 %v9577_v35, %v11520_v38  ;;  %v4498_v3 = vsel %vm1636_vm7, %v4497_v14, %v4496_v27  ;;  %v4435_v15 = vmul.f32 %v9577_v35, %v11521_v22  ;;  %v11523_v48 = vld [vmem:[#allocation174_spill] sm:$0xff] }
 0x498   : > { %v1658_v37 = vsel %vm1624_vm3, %v11519_v24, %v1656_v2  ;;  %v4027_v40 = vadd.f32 %v9663_v42, %v3767_v59  ;;  %v1577_v52 = vmul.f32 %v11476_v41, %v1500_v44  ;;  %v4500_v58 = vsel %vm1639_vm9, %v4499_v36, %v4498_v3  ;;  %v11524_v14 = vld [vmem:[#allocation34_spill] sm:$0xff] }
 0x499   : > { %v1660_v7 = vsel %vm1627_vm4, %v1659_v51, %v1658_v37  ;;  %v2728_v45 = vadd.f32 %v11522_v20, %v2468_v16  ;;  %v4502_v2 = vsel %vm1621_vm2, %v4501_v50, %v4431_v25  ;;  %v4505_v42 = vrot.slane %v4434_v32, 5  ;;  %v11526_v16 = vld [vmem:[#allocation178_spill] sm:$0xff]  ;;  %v4377_v37 = vpop.permute.xlu1 %4376 }
 0x49a   : > { %v4287_v62 = vadd.f32 %v4240_v46, %v4027_v40  ;;  %v4436_v56 = vmul.f32 %v9577_v35, %v9783_v21  ;;  %v1663_v4 = vrot.slane %v1577_v52, 3  ;;  %v4503_v27 = vrot.slane %v4433_v34, 6  ;;  %v9903_v21 = vld [vmem:[%s10512_s1 + $0x1b] ss:$0 sm:$0xff]  ;;  %v11527_v40 = vld [vmem:[#allocation171_spill] sm:$0xff] }
 0x49b   : > { %v2988_v59 = vadd.f32 %v11523_v48, %v2728_v45  ;;  %v11525_v51 = vrot.slane %v11524_v14, 4  ;;  %v1510_v63 = vpop.permute.xlu0 %1509  ;;  %v4252_v36 = vsel %vm1636_vm7, %v4251_v43, %v4250_v57  ;;  %v4181_v46 = vmul.f32 %v9460_v11, %v11526_v16  ;;  %v11528_v52 = vld [vmem:[#allocation39_spill] sm:$0xff]  ;;  %v11530_v45 = vld [vmem:[#allocation180_spill] sm:$0xff] }
 0x49c   : > { %v4547_v47 = vadd.f32 %v4500_v58, %v4287_v62  ;;  %v1579_v32 = vmul.f32 %v11476_v41, %v1510_v63  ;;  %v4507_v34 = vrot.slane %v4435_v15, 4  ;;  %v4504_v24 = vsel %vm1624_vm3, %v4503_v27, %v4502_v2 }
 0x49d   : > { %v1662_v10 = vsel %vm1630_vm5, %v11525_v51, %v1660_v7  ;;  %v3248_v38 = vadd.f32 %v11527_v40, %v2988_v59  ;;  %v4506_v57 = vsel %vm1627_vm4, %v4505_v42, %v4504_v24  ;;  %v4509_v43 = vrot.slane %v4436_v56, 3  ;;  %v11531_v42 = vld [vmem:[#allocation173_spill] sm:$0xff] }
 0x49e   : > { %v1664_v50 = vsel %vm1633_vm6, %v1663_v4, %v1662_v10  ;;  %v4551_v44 = vmax.f32 %v4547_v47, 0.0  ;;  %v4438_v25 = vmul.f32 %v9577_v35, %v9812_v28  ;;  %v1667_v3 = vrot.slane %v1579_v32, 1  ;;  %v4385_v32 = vpop.permute.xlu1 %4384 }
 0x49f   : > { %v4437_v7 = vmul.f32 %v9577_v35, %v9490_v6  ;;  %v11529_v22 = vrot.slane %v11528_v52, 2  ;;  %v1520_v58 = vpop.permute.xlu0 %1519  ;;  %v3508_v62 = vadd.f32 %v11530_v45, %v3248_v38  ;;  %v4263_v2 = vrot.slane %v9823_v1, 3 }
 0x4a0   : > { %v4559_v20 = vmul.f32 %v9903_v21, %v4551_v44  ;;  %v4179_v56 = vmul.f32 %v9460_v11, %v11531_v42  ;;  %v1581_v4 = vmul.f32 %v11476_v41, %v1520_v58  ;;  %v11532_v6 = vrot.slane %v9732_v23, 1  ;;  %v11533_v23 = vld [vmem:[#allocation11_spill] sm:$0xff] }
 0x4a1   : > { %v1666_v15 = vsel %vm1636_vm7, %v11529_v22, %v1664_v50  ;;  %v4508_v48 = vsel %vm1630_vm5, %v4507_v34, %v4506_v57  ;;  %v3768_v14 = vadd.f32 %v9553_v8, %v3508_v62  ;;  %v4513_v10 = vrot.slane %v4438_v25, 1  ;;  %v11535_v8 = vld [vmem:[#allocation181_spill] sm:$0xff]  ;;  %v11536_v57 = vld [vmem:[#allocation43_spill] sm:$0xff]  ;;  %v11539_v62 = vld [vmem:[#allocation38_spill] sm:$0xff] }
 0x4a2   : > { %v1668_v28 = vsel %vm1639_vm9, %v1667_v3, %v1666_v15  ;;  %v4254_v27 = vsel %vm1639_vm9, %v11532_v6, %v4252_v36  ;;  %4563 = vadd.xlane.f32.xlu0 %v4559_v20  ;;  %v4510_v51 = vsel %vm1633_vm6, %v4509_v43, %v4508_v48  ;;  %v4440_v63 = vmul.f32 %v9577_v35, %v9845_v60  ;;  %v11537_v3 = vld [vmem:[#allocation141_spill] sm:$0xff]  ;;  %v11538_v20 = vld [vmem:[#allocation146_spill] sm:$0xff] }
 0x4a3   : > { %v1689_v59 = vadd.f32 %v9763_v29, %v1668_v28  ;;  %v1669_v47 = vrot.slane %v1581_v4, 7  ;;  %v4257_v16 = vrot.slane %v4181_v46, 6  ;;  %v4511_v50 = vrot.slane %v4437_v7, 2  ;;  %v1530_v36 = vpop.permute.xlu0 %1529 }
 0x4a4   : > { %v4028_v34 = vadd.f32 %v9690_v26, %v3768_v14  ;;  %v11534_v44 = vrot.slane %v9750_v12, 7  ;;  %v4183_v38 = vmul.f32 %v9460_v11, %v11535_v8  ;;  %v1583_v60 = vmul.f32 %v11476_v41, %v1530_v36  ;;  %v11543_v36 = vld [vmem:[#allocation170_spill] sm:$0xff] }
 0x4a5   : > { %v1949_v24 = vadd.f32 %v11533_v23, %v1689_v59  ;;  %v1670_v43 = vsel %vm1621_vm2, %v1669_v47, %v11536_v57  ;;  %v4441_v46 = vmul.f32 %v9577_v35, %v9530_v9  ;;  %v4512_v25 = vsel %vm1636_vm7, %v4511_v50, %v4510_v51  ;;  %v4393_v51 = vpop.permute.xlu1 %4392 }
 0x4a6   : > { %v4256_v40 = vsel %vm1621_vm2, %v11534_v44, %v4179_v56  ;;  %v4288_v26 = vadd.f32 %v4254_v27, %v4028_v34  ;;  %v4514_v12 = vsel %vm1639_vm9, %v4513_v10, %v4512_v25  ;;  %v4515_v52 = vrot.slane %v4440_v63, 7  ;;  %v11542_v10 = vld [vmem:[#allocation167_spill] sm:$0xff]  ;;  %v11544_v44 = vld [vmem:[#allocation50_spill] sm:$0xff] }
 0x4a7   : > { %v2209_v7 = vadd.f32 %v11537_v3, %v1949_v24  ;;  %v4442_v22 = vmul.f32 %v9577_v35, %v9872_v61  ;;  %v1673_v15 = vrot.slane %v1583_v60, 5  ;;  %v4258_v58 = vsel %vm1624_vm3, %v4257_v16, %v4256_v40  ;;  %v1540_v56 = vpop.permute.xlu0 %1539  ;;  %v11541_v61 = vld [vmem:[#allocation185_spill] sm:$0xff] }
 0x4a8   : > { %v11540_v42 = vrot.slane %v11539_v62, 6  ;;  %v4548_v28 = vadd.f32 %v4514_v12, %v4288_v26  ;;  %v4261_v4 = vrot.slane %v4183_v38, 4  ;;  %v4439_v6 = vmul.f32 %v9577_v35, %v9507_v33  ;;  %v11547_v26 = vld [vmem:[#allocation172_spill] sm:$0xff] }
 0x4a9   : > { %v2469_v45 = vadd.f32 %v11538_v20, %v2209_v7  ;;  %v1585_v48 = vmul.f32 %v11476_v41, %v1540_v56  ;;  %v4185_v59 = vmul.f32 %v9460_v11, %v11541_v61  ;;  %v4517_v14 = vrot.slane %v4441_v46, 6  ;;  %v11551_v56 = vld [vmem:[#allocation175_spill] sm:$0xff] }
 0x4aa   : > { %v1672_v9 = vsel %vm1624_vm3, %v11540_v42, %v1670_v43  ;;  %v4552_v47 = vmax.f32 %v4548_v28, 0.0  ;;  %v4516_v16 = vsel %vm1621_vm2, %v4515_v52, %v4439_v6  ;;  %v4519_v50 = vrot.slane %v4442_v22, 5  ;;  %v11546_v43 = vld [vmem:[#allocation182_spill] sm:$0xff] }
 0x4ab   : > { %v1674_v27 = vsel %vm1627_vm4, %v1673_v15, %v1672_v9  ;;  %v2729_v63 = vadd.f32 %v11542_v10, %v2469_v45  ;;  %v4444_v23 = vmul.f32 %v9577_v35, %v4377_v37  ;;  %v1677_v24 = vrot.slane %v1585_v48, 3  ;;  %v1550_v38 = vpop.permute.xlu0 %1549  ;;  %v11550_v42 = vld [vmem:[#allocation194_spill] sm:$0xff] }
 0x4ac   : > { %v4443_v33 = vmul.f32 %v9577_v35, %v9559_v5  ;;  %v11545_v40 = vrot.slane %v11544_v44, 4  ;;  %v4560_v57 = vmul.f32 %v9903_v21, %v4552_v47  ;;  %v4186_v60 = vmul.f32 %v9460_v11, %v11546_v43  ;;  %v11554_v47 = vld [vmem:[#allocation190_spill] sm:$0xff]  ;;  %v11558_v43 = vld [vmem:[#allocation139_spill] sm:$0xff] }
 0x4ad   : > { %v2989_v34 = vadd.f32 %v11543_v36, %v2729_v63  ;;  %v4260_v37 = vsel %vm1627_vm4, %v4259_v49, %v4258_v58  ;;  %v1587_v5 = vmul.f32 %v11476_v41, %v1550_v38  ;;  %v4265_v3 = vrot.slane %v4185_v59, 2  ;;  %v4401_v58 = vpop.permute.xlu1 %4400  ;;  %v11548_v41 = vld [vmem:[#allocation44_spill] sm:$0xff]  ;;  %v11553_v59 = vld [vmem:[#allocation30_spill] sm:$0xff]  ;;  %v11557_v38 = vld [vmem:[#allocation151_spill] sm:$0xff] }
 0x4ae   : > { %v1676_v8 = vsel %vm1630_vm5, %v11545_v40, %v1674_v27  ;;  %v4262_v25 = vsel %vm1630_vm5, %v4261_v4, %v4260_v37  ;;  %v4518_v7 = vsel %vm1624_vm3, %v4517_v14, %v4516_v16  ;;  %4565 = vadd.xlane.f32.xlu1 %v4560_v57  ;;  %v4523_v22 = vrot.slane %v4444_v23, 3  ;;  %v11555_v23 = vld [vmem:[#allocation62_spill] sm:$0xff]  ;;  %v11559_v37 = vld [vmem:[#allocation176_spill] sm:$0xff] }
 0x4af   : > { %v1678_v46 = vsel %vm1633_vm6, %v1677_v24, %v1676_v8  ;;  %v3249_v12 = vadd.f32 %v11547_v26, %v2989_v34  ;;  %v4520_v52 = vsel %vm1627_vm4, %v4519_v50, %v4518_v7  ;;  %v4446_v15 = vmul.f32 %v9577_v35, %v4385_v32  ;;  %v11552_v32 = vld [vmem:[#allocation192_spill] sm:$0xff]  ;;  %v11556_v44 = vld [vmem:[#allocation22_spill] sm:$0xff] }
 0x4b0   : > { %v1681_v30 = vrot.slane %v1587_v5, 1  ;;  %v4521_v20 = vrot.slane %v4443_v33, 4  ;;  %v4445_v49 = vmul.f32 %v9577_v35, %v9584_v17  ;;  %v11549_v45 = vrot.slane %v11548_v41, 2  ;;  %v11560_v7 = vld [vmem:[#allocation160_spill] sm:$0xff]  ;;  %v11563_v41 = vld [vmem:[#allocation191_spill] sm:$0xff] }
 0x4b1   : > { %v3509_v9 = vadd.f32 %v11550_v42, %v3249_v12  ;;  %v4188_v28 = vmul.f32 %v9460_v11, %v11551_v56  ;;  %v4264_v4 = vsel %vm1633_vm6, %v4263_v2, %v4262_v25  ;;  %v4189_v6 = vmul.f32 %v9460_v11, %v11552_v32 }
 0x4b2   : > { %v1680_v62 = vsel %vm1636_vm7, %v11549_v45, %v1678_v46  ;;  %v4266_v17 = vsel %vm1636_vm7, %v4265_v3, %v4264_v4  ;;  %v4522_v48 = vsel %vm1630_vm5, %v4521_v20, %v4520_v52  ;;  %4966 = vmax.xlane.f32.xlu1 %v11553_v59  ;;  %v4267_v10 = vrot.slane %v4186_v60, 1  ;;  %v11561_v52 = vld [vmem:[#allocation157_spill] sm:$0xff] }
 0x4b3   : > { %v1682_v27 = vsel %vm1639_vm9, %v1681_v30, %v1680_v62  ;;  %v3769_v14 = vadd.f32 %v9592_v53, %v3509_v9  ;;  %v4524_v1 = vsel %vm1633_vm6, %v4523_v22, %v4522_v48  ;;  %v4527_v63 = vrot.slane %v4446_v15, 1  ;;  %v11562_v15 = vld [vmem:[#allocation20_spill] sm:$0xff]  ;;  %v11564_v62 = vld [vmem:[#allocation7_spill] sm:$0xff] }
 0x4b4   : > { %v1690_v61 = vadd.f32 %v9763_v29, %v1682_v27  ;;  %v4448_v2 = vmul.f32 %v9577_v35, %v4393_v51  ;;  %v4187_v16 = vmul.f32 %v9460_v11, %v11554_v47  ;;  %v4525_v50 = vrot.slane %v4445_v49, 2  ;;  %v4409_v51 = vpop.permute.xlu1 %4408  ;;  %v11565_v27 = vld [vmem:[#allocation8_spill] sm:$0xff]  ;;  %v11567_v47 = vld [vmem:[#allocation177_spill] sm:$0xff] }
 0x4b5   : > { %v4029_v33 = vadd.f32 %v9704_v55, %v3769_v14  ;;  %v4017_v29 = vrot.slane %v9715_v39, 3  ;;  %v4269_v36 = vrot.slane %v4188_v28, 7  ;;  %v4268_v34 = vsel %vm1639_vm9, %v4267_v10, %v4266_v17 }
 0x4b6   : > { %v1950_v24 = vadd.f32 %v11555_v23, %v1690_v61  ;;  %v4271_v53 = vrot.slane %v4189_v6, 6  ;;  %v4191_v40 = vmul.f32 %v9460_v11, %v11556_v44  ;;  %v4526_v8 = vsel %vm1636_vm7, %v4525_v50, %v4524_v1  ;;  %4972 = vmax.xlane.f32.xlu1 %v11558_v43  ;;  %v11570_v44 = vld [vmem:[#allocation45_spill] sm:$0xff] }
 0x4b7   : > { %v4289_v60 = vadd.f32 %v4268_v34, %v4029_v33  ;;  %v4190_v55 = vmul.f32 %v9460_v11, %v11559_v37  ;;  %v4528_v39 = vsel %vm1639_vm9, %v4527_v63, %v4526_v8  ;;  %v4529_v46 = vrot.slane %v4448_v2, 7  ;;  %v11566_v2 = vld [vmem:[#allocation21_spill] sm:$0xff]  ;;  %v11569_v34 = vld [vmem:[#allocation188_spill] sm:$0xff] }
 0x4b8   : > { %v2210_v57 = vadd.f32 %v11557_v38, %v1950_v24  ;;  %v4450_v5 = vmul.f32 %v9577_v35, %v4401_v58  ;;  %v4270_v25 = vsel %vm1621_vm2, %v4269_v36, %v4187_v16  ;;  %v4449_v3 = vmul.f32 %v9577_v35, %v9627_v13  ;;  %v4417_v6 = vpop.permute.xlu1 %4416  ;;  %v11573_v38 = vld [vmem:[#allocation123_spill] sm:$0xff]  ;;  %v11575_v43 = vld [vmem:[#allocation193_spill] sm:$0xff] }
 0x4b9   : > { %v4549_v12 = vadd.f32 %v4528_v39, %v4289_v60  ;;  %v3934_v22 = vmul.f32 %v9398_v54, %v11561_v52  ;;  %v4192_v30 = vmul.f32 %v9460_v11, %v11562_v15  ;;  %v4272_v20 = vsel %vm1624_vm3, %v4271_v53, %v4270_v25 }
 0x4ba   : > { %v2470_v26 = vadd.f32 %v11560_v7, %v2210_v57  ;;  %v4447_v49 = vmul.f32 %v9577_v35, %v9605_v18  ;;  %v4275_v58 = vrot.slane %v4191_v40, 4  ;;  %v4193_v45 = vmul.f32 %v9460_v11, %v11563_v41  ;;  %v11571_v40 = vld [vmem:[#allocation125_spill] sm:$0xff] }
 0x4bb   : > { %v4553_v42 = vmax.f32 %v4549_v12, 0.0  ;;  %v4273_v9 = vrot.slane %v4190_v55, 5  ;;  %v4533_v28 = vrot.slane %v4450_v5, 5  ;;  %v4452_v54 = vmul.f32 %v9577_v35, %v4409_v51  ;;  %v11572_v51 = vld [vmem:[#allocation52_spill] sm:$0xff] }
 0x4bc   : > { %v2730_v13 = vadd.f32 %v11564_v62, %v2470_v26  ;;  %v4530_v56 = vsel %vm1621_vm2, %v4529_v46, %v4447_v49  ;;  %v4531_v4 = vrot.slane %v4449_v3, 6  ;;  %v4451_v32 = vmul.f32 %v9577_v35, %v9647_v31  ;;  %v11577_v26 = vld [vmem:[#allocation135_spill] sm:$0xff]  ;;  %v11578_v12 = vld [vmem:[#allocation132_spill] sm:$0xff] }
 0x4bd   : > { %v4561_v17 = vmul.f32 %v9903_v21, %v4553_v42  ;;  %v4018_v48 = vsel %vm1633_vm6, %v4017_v29, %v9740_v0  ;;  %v4021_v61 = vrot.slane %v3934_v22, 1  ;;  %v4277_v59 = vrot.slane %v4192_v30, 3  ;;  %v11568_v29 = vld [vmem:[#allocation197_spill] sm:$0xff]  ;;  %v11579_v22 = vld [vmem:[#allocation118_spill] sm:$0xff]  ;;  %v11583_v62 = vld [vmem:[#allocation127_spill] sm:$0xff] }
 0x4be   : > { %v2990_v18 = vadd.f32 %v11565_v27, %v2730_v13  ;;  %v4274_v14 = vsel %vm1627_vm4, %v4273_v9, %v4272_v20  ;;  %v4279_v1 = vrot.slane %v4193_v45, 2  ;;  %v4532_v63 = vsel %vm1624_vm3, %v4531_v4, %v4530_v56  ;;  %v11581_v30 = vld [vmem:[#allocation117_spill] sm:$0xff]  ;;  %v11584_v42 = vld [vmem:[#allocation124_spill] sm:$0xff]  ;;  %v11586_v4 = vld [vmem:[#allocation119_spill] sm:$0xff] }
 0x4bf   : > { %v4276_v10 = vsel %vm1630_vm5, %v4275_v58, %v4274_v14  ;;  %4567 = vadd.xlane.f32.xlu0 %v4561_v17  ;;  %v4194_v16 = vmul.f32 %v9460_v11, %v11567_v47  ;;  %v4534_v50 = vsel %vm1627_vm4, %v4533_v28, %v4532_v63  ;;  %v4537_v23 = vrot.slane %v4452_v54, 3  ;;  %v11574_v11 = vld [vmem:[#allocation23_spill] sm:$0xff]  ;;  %v11585_v28 = vld [vmem:[#allocation120_spill] sm:$0xff]  ;;  %v11588_v17 = vld [vmem:[#allocation14_spill] sm:$0xff] }
 0x4c0   : > { %v3250_v31 = vadd.f32 %v11566_v2, %v2990_v18  ;;  %v4454_v0 = vmul.f32 %v9577_v35, %v4417_v6  ;;  %v4019_v24 = vrot.slane %v9698_v19, 2  ;;  %v4535_v33 = vrot.slane %v4451_v32, 4  ;;  %v11587_v18 = vld [vmem:[#allocation15_spill] sm:$0xff]  ;;  %v11590_v2 = vld [vmem:[#allocation114_spill] sm:$0xff]  ;;  %v11592_v47 = vld [vmem:[#allocation113_spill] sm:$0xff] }
 0x4c1   : > { %v4453_v36 = vmul.f32 %v9577_v35, %v11568_v29  ;;  %v4769_v8 = vrot.slane %v11571_v40, %v11570_v44  ;;  %v4773_v57 = vrot.slane %v11573_v38, %v11572_v51  ;;  %v11576_v60 = vrot.slane %v11575_v43, 1  ;;  %v11596_v43 = vld [vmem:[#allocation58_spill] sm:$0xff] }
 0x4c2   : > { %v3510_v53 = vadd.f32 %v11569_v34, %v3250_v31  ;;  %v4278_v55 = vsel %vm1633_vm6, %v4277_v59, %v4276_v10  ;;  %v4020_v19 = vsel %vm1636_vm7, %v4019_v24, %v4018_v48  ;;  %v4536_v35 = vsel %vm1630_vm5, %v4535_v33, %v4534_v50  ;;  %v11589_v59 = vld [vmem:[#allocation134_spill] sm:$0xff]  ;;  %v11595_v33 = vld [vmem:[#allocation121_spill] sm:$0xff] }
 0x4c3   : > { %v3762_v37 = vsel %vm1639_vm9, %v11576_v60, %v11574_v11  ;;  %v4280_v39 = vsel %vm1636_vm7, %v4279_v1, %v4278_v55  ;;  %v4022_v5 = vsel %vm1639_vm9, %v4021_v61, %v4020_v19  ;;  %v4281_v25 = vrot.slane %v4194_v16, 1 }
 0x4c4   : > { %v3770_v46 = vadd.f32 %v3762_v37, %v3510_v53  ;;  %v4538_v3 = vsel %vm1633_vm6, %v4537_v23, %v4536_v35  ;;  %v4541_v7 = vrot.slane %v4454_v0, 1  ;;  %v4938_v52 = vsel %vm1630_vm5, %v11578_v12, %v11577_v26  ;;  %v11594_v0 = vld [vmem:[#allocation122_spill] sm:$0xff] }
 0x4c5   : > { %v11580_v15 = vrot.slane %v11579_v22, %v11570_v44  ;;  %v11582_v20 = vrot.slane %v11581_v30, %v11572_v51  ;;  %v4539_v58 = vrot.slane %v4453_v36, 2  ;;  %v4774_v45 = vsel %vm4647_vm8, %v4773_v57, %v4769_v8  ;;  %v11598_v12 = vld [vmem:[#allocation318_spill] sm:$0xff] }
 0x4c6   : > { %v4030_v41 = vadd.f32 %v4022_v5, %v3770_v46  ;;  %v4913_v13 = vrot.slane %v11583_v62, %v11570_v44  ;;  %v4917_v9 = vrot.slane %v11584_v42, %v11572_v51  ;;  %v4282_v56 = vsel %vm1639_vm9, %v4281_v25, %v4280_v39 }
 0x4c7   : > { %v4900_v49 = vsel %vm4647_vm8, %v11582_v20, %v11580_v15  ;;  %v4778_v54 = vrot.slane %v11585_v28, %v11570_v44  ;;  %v4782_v32 = vrot.slane %v11586_v4, %v11572_v51  ;;  %v4540_v6 = vsel %vm1636_vm7, %v4539_v58, %v4538_v3  ;;  %v11599_v15 = vld [vmem:[#allocation67_spill] sm:$0xff] }
 0x4c8   : > { %v4290_v27 = vadd.f32 %v4282_v56, %v4030_v41  ;;  %v4951_v48 = vsel %vm1627_vm4, %v11588_v17, %v11587_v18  ;;  %v4542_v61 = vsel %vm1639_vm9, %v4541_v7, %v4540_v6  ;;  %v4939_v14 = vsel %vm1633_vm6, %v11589_v59, %v4938_v52  ;;  %v11597_v7 = vld [vmem:[#allocation317_spill] sm:$0xff]  ;;  %v11601_v41 = vld [vmem:[#allocation64_spill] sm:$0xff] }
 0x4c9   : > { %v4952_v10 = vsel %vm1630_vm5, %v4900_v49, %v4951_v48  ;;  %v4940_v63 = vsel %vm1636_vm7, %v4774_v45, %v4939_v14  ;;  %v11591_v31 = vrot.slane %v11590_v2, %v11570_v44  ;;  %v11593_v16 = vrot.slane %v11592_v47, %v11572_v51  ;;  %v11600_v49 = vld [vmem:[#allocation71_spill] sm:$0xff]  ;;  %v11606_v59 = vld [vmem:[#allocation81_spill] sm:$0xff] }
 0x4ca   : > { %v4550_v1 = vadd.f32 %v4542_v61, %v4290_v27  ;;  %v4918_v23 = vsel %vm4647_vm8, %v4917_v9, %v4913_v13  ;;  %v4922_v24 = vrot.slane %v11594_v0, %v11570_v44  ;;  %v4926_v29 = vrot.slane %v11595_v33, %v11572_v51  ;;  %v11602_v13 = vld [vmem:[#allocation18_spill] sm:$0xff]  ;;  %v11605_v48 = vld [vmem:[#allocation147_spill] sm:$0xff] }
 0x4cb   : > { %v4909_v50 = vsel %vm4647_vm8, %v11593_v16, %v11591_v31  ;;  %v4783_v34 = vsel %vm4647_vm8, %v4782_v32, %v4778_v54  ;;  %vm5933_vm12 = vcmp.eq.s32.totalorder %v11596_v43, 16  ;;  %v11603_v32 = vld [vmem:[#allocation54_spill] sm:$0xff]  ;;  %v11608_v31 = vld [vmem:[#allocation168_spill] sm:$0xff] }
 0x4cc   : > { %v4554_v36 = vmax.f32 %v4550_v1, 0.0  ;;  %v4941_v53 = vsel %vm1639_vm9, %v4783_v34, %v4940_v63  ;;  %v4953_v8 = vsel %vm1633_vm6, %v4909_v50, %v4952_v10  ;;  %v4927_v37 = vsel %vm4647_vm8, %v4926_v29, %v4922_v24  ;;  %v11604_v27 = vld [vmem:[#allocation66_spill] sm:$0xff]  ;;  %v11607_v10 = vld [vmem:[#allocation77_spill] sm:$0xff]  ;;  %v11610_v29 = vld [vmem:[#allocation63_spill] sm:$0xff] }
 0x4cd   : > { %v4954_v11 = vsel %vm1636_vm7, %v4918_v23, %v4953_v8  ;;  %v4961_v60 = vsel %vm4573_vm10, -1e+30, %v4941_v53  ;;  %v11609_v50 = vld [vmem:[#allocation93_spill] sm:$0xff]  ;;  %v11611_v34 = vld [vmem:[#allocation76_spill] sm:$0xff] }
 0x4ce   : > { %v4562_v57 = vmul.f32 %v9903_v21, %v4554_v36  ;;  %v4955_v55 = vsel %vm1639_vm9, %v4927_v37, %v4954_v11  ;;  %v4968_v19 = vsel %vm4964_vm11, %v4961_v60, -inf  ;;  %v11612_v11 = vld [vmem:[#allocation89_spill] sm:$0xff] }
 0x4cf   : > { %v4963_v39 = vsel %vm4573_vm10, -1e+30, %v4955_v55 }
 0x4d0   : > { %4569 = vadd.xlane.f32.xlu0 %v4562_v57  ;;  %v4974_v35 = vsel %vm4964_vm11, %v4963_v39, -inf }
 0x4d4   : > { %4969 = vmax.xlane.f32.xlu0 %v4968_v19  ;;  %v11613_v19 = vld [vmem:[#allocation73_spill] sm:$0xff] }
 0x4d8   : > { %4975 = vmax.xlane.f32.xlu0 %v4974_v35 }
 0x52f   : > { %v4564_v21 = vpop.xlane.xlu0 %4563 }
 0x530   : > { %v5934_v46 = vsel %vm5933_vm12, %v4564_v21, 0.0 }
 0x531   : > { %5938 = vst [vmem:[%s10125_s27] sm:$0xff] %v5934_v46 }
 0x53b   : > { %v4566_v5 = vpop.xlane.xlu1 %4565 }
 0x53c   : > { %v5935_v25 = vsel %vm5933_vm12, %v4566_v5, 0.0 }
 0x53d   : > { %5939 = vst [vmem:[%s10125_s27 + $0x8] sm:$0xff] %v5935_v25  ;;  %v11614_v25 = vld [vmem:[#allocation128_spill] sm:$0xff] }
 0x53f   : > { %v4967_v3 = vpop.xlane.xlu1 %4966 }
 0x540   : > { %v4984_v26 = vrot.slane %v4967_v3, %v11597_v7  ;;  %v4988_v52 = vrot.slane %v4967_v3, %v11598_v12  ;;  %v10137_v9 = vrot.slane %v4967_v3, %v11602_v13  ;;  %v4992_v6 = vrot.slane %v4967_v3, %v11603_v32 }
 0x541   : > { %v10142_v61 = vrot.slane %v4967_v3, %v11605_v48  ;;  %v10148_v16 = vrot.slane %v4967_v3, %v11608_v31  ;;  %v4996_v36 = vrot.slane %v4967_v3, %v11610_v29 }
 0x542   : > { %v5141_v20 = vsub.f32 %v11599_v15, %v4984_v26  ;;  %v5142_v58 = vsub.f32 %v11600_v49, %v4984_v26  ;;  %v5143_v45 = vsub.f32 %v11601_v41, %v4988_v52  ;;  %v5144_v18 = vsub.f32 %v11604_v27, %v4988_v52  ;;  %v11615_v52 = vld [vmem:[#allocation72_spill] sm:$0xff] }
 0x543   : > { %v5151_v14 = vsub.f32 %v11606_v59, %v10137_v9  ;;  %v5145_v1 = vsub.f32 %v11607_v10, %v4992_v6  ;;  %v5153_v23 = vsub.f32 %v11609_v50, %v10142_v61  ;;  %v5146_v53 = vsub.f32 %v11611_v34, %v4992_v6  ;;  %v11617_v59 = vld [vmem:[#allocation84_spill] sm:$0xff] }
 0x544   : > { %v5205_v56 = vmul.f32 1.442695, %v5141_v20  ;;  %v5207_v54 = vmul.f32 1.442695, %v5142_v58  ;;  %v5209_v17 = vmul.f32 1.442695, %v5143_v45  ;;  %v5155_v60 = vsub.f32 %v11612_v11, %v10148_v16 }
 0x545   : > { %v5211_v63 = vmul.f32 1.442695, %v5144_v18  ;;  %v5225_v24 = vmul.f32 1.442695, %v5151_v14  ;;  %v5213_v8 = vmul.f32 1.442695, %v5145_v1  ;;  %v5147_v39 = vsub.f32 %v11613_v19, %v4996_v36 }
 0x546   : > { %6350 = vpow2.f32 %v5205_v56  ;;  %v5229_v37 = vmul.f32 1.442695, %v5153_v23  ;;  %v5215_v35 = vmul.f32 1.442695, %v5146_v53  ;;  %v5233_v5 = vmul.f32 1.442695, %v5155_v60 }
 0x547   : > { %6352 = vpow2.f32 %v5207_v54  ;;  %v5000_v26 = vrot.slane %v4967_v3, %v11614_v25  ;;  %v5148_v15 = vsub.f32 %v11615_v52, %v4996_v36  ;;  %v5217_v20 = vmul.f32 1.442695, %v5147_v39  ;;  %v11616_v56 = vld [vmem:[#allocation85_spill] sm:$0xff]  ;;  %v11619_v53 = vld [vmem:[#allocation100_spill] sm:$0xff] }
 0x548   : > { %6354 = vpow2.f32 %v5209_v17  ;;  %v11620_v60 = vld [vmem:[#allocation97_spill] sm:$0xff]  ;;  %v11623_v52 = vld [vmem:[#allocation88_spill] sm:$0xff] }
 0x549   : > { %6356 = vpow2.f32 %v5211_v63  ;;  %v5149_v54 = vsub.f32 %v11616_v56, %v5000_v26  ;;  %v5219_v6 = vmul.f32 1.442695, %v5148_v15  ;;  %v5150_v14 = vsub.f32 %v11617_v59, %v5000_v26 }
 0x54a   : > { %6358 = vpow2.f32 %v5225_v24  ;;  %v11618_v24 = vld [vmem:[#allocation80_spill] sm:$0xff]  ;;  %v5156_v15 = vsub.f32 %v11623_v52, %v10148_v16 }
 0x54b   : > { %6360 = vpow2.f32 %v5213_v8  ;;  %v5221_v10 = vmul.f32 1.442695, %v5149_v54  ;;  %v5152_v36 = vsub.f32 %v11618_v24, %v10137_v9  ;;  %v5223_v34 = vmul.f32 1.442695, %v5150_v14  ;;  %v11625_v54 = vld [vmem:[#allocation99_spill] sm:$0xff] }
 0x54c   : > { %v4568_v21 = vpop.xlane.xlu0 %4567  ;;  %6362 = vpow2.f32 %v5229_v37  ;;  %v5235_v56 = vmul.f32 1.442695, %v5156_v15  ;;  %v11631_v15 = vld [vmem:[#allocation70_spill] sm:$0xff] }
 0x54d   : > { %6364 = vpow2.f32 %v5215_v35  ;;  %v5936_v49 = vsel %vm5933_vm12, %v4568_v21, 0.0  ;;  %v5227_v39 = vmul.f32 1.442695, %v5152_v36  ;;  %v11628_v36 = vld [vmem:[#allocation112_spill] sm:$0xff] }
 0x54e   : > { %5940 = vst [vmem:[%s10125_s27 + $0x10] sm:$0xff] %v5936_v49  ;;  %6366 = vpow2.f32 %v5233_v5 }
 0x54f   : > { %6368 = vpow2.f32 %v5217_v20 }
 0x550   : > { %v6351_v57 = vpop.eup %6350  ;;  %6370 = vpow2.f32 %v5219_v6 }
 0x551   : > { %v6353_v55 = vpop.eup %6352  ;;  %5398 = vperm.xlu1 %6285, %v6351_v57   ;;  %6372 = vpow2.f32 %v5221_v10  ;;  %v11627_v10 = vld [vmem:[#allocation96_spill] sm:$0xff] }
 0x552   : > { %5401 = vperm.xlu0 %6284, %v6353_v55   ;;  %v6355_v46 = vpop.eup %6354  ;;  %v11621_v55 = vld [vmem:[#allocation92_spill] sm:$0xff]  ;;  %6374 = vpow2.f32 %v5223_v34 }
 0x553   : > { %v6357_v58 = vpop.eup %6356  ;;  %v5154_v19 = vsub.f32 %v11621_v55, %v10142_v61 }
 0x554   : > { %v6359_v45 = vpop.eup %6358 }
 0x555   : > { %5404 = vperm.xlu1 %6285, %v6355_v46   ;;  %v6361_v27 = vpop.eup %6360  ;;  %v11622_v46 = vld [vmem:[#allocation108_spill] sm:$0xff]  ;;  %v5231_v20 = vmul.f32 1.442695, %v5154_v19 }
 0x556   : > { %5428 = vperm.xlu0 %6284, %v6359_v45   ;;  %v6363_v17 = vpop.eup %6362 }
 0x557   : > { %v6365_v63 = vpop.eup %6364 }
 0x558   : > { %v6367_v23 = vpop.eup %6366 }
 0x559   : > { %5407 = vperm.xlu1 %6285, %v6357_v58   ;;  %v6369_v57 = vpop.eup %6368  ;;  %v11624_v58 = vld [vmem:[#allocation104_spill] sm:$0xff] }
 0x55a   : > { %5434 = vperm.xlu0 %6284, %v6363_v17   ;;  %v6371_v21 = vpop.eup %6370 }
 0x55b   : > { %v6373_v49 = vpop.eup %6372 }
 0x55d   : > { %v4570_v41 = vpop.xlane.xlu0 %4569  ;;  %5410 = vperm.xlu1 %6285, %v6361_v27   ;;  %v11626_v27 = vld [vmem:[#allocation116_spill] sm:$0xff] }
 0x55e   : > { %v5937_v3 = vsel %vm5933_vm12, %v4570_v41, 0.0  ;;  %5440 = vperm.xlu0 %6284, %v6367_v23  }
 0x55f   : > { %5941 = vst [vmem:[%s10125_s27 + $0x18] sm:$0xff] %v5937_v3  ;;  %v6375_v3 = vpop.eup %6374 }
 0x561   : > { %v10166_v18 = vpop.xlane.xlu0 %4969  ;;  %5413 = vperm.xlu1 %6285, %v6365_v63  }
 0x562   : > { %v5016_v1 = vrot.slane %v10166_v18, %v11597_v7  ;;  %v5020_v50 = vrot.slane %v10166_v18, %v11598_v12  ;;  %v5024_v11 = vrot.slane %v10166_v18, %v11603_v32  ;;  %v5028_v9 = vrot.slane %v10166_v18, %v11610_v29 }
 0x563   : > { %v10188_v61 = vrot.slane %v10166_v18, %v11614_v25  ;;  %v10194_v16 = vrot.slane %v10166_v18, %v11602_v13 }
 0x564   : > { %v5157_v8 = vsub.f32 %v11619_v53, %v5016_v1  ;;  %v5159_v37 = vsub.f32 %v11620_v60, %v5020_v50  ;;  %v5161_v5 = vsub.f32 %v11622_v46, %v5024_v11  ;;  %v5163_v41 = vsub.f32 %v11624_v58, %v5028_v9  ;;  %v11629_v60 = vld [vmem:[#allocation107_spill] sm:$0xff] }
 0x565   : > { %5416 = vperm.xlu1 %6285, %v6369_v57   ;;  %v5158_v6 = vsub.f32 %v11625_v54, %v5016_v1  ;;  %v5165_v17 = vsub.f32 %v11626_v27, %v10188_v61  ;;  %v5160_v63 = vsub.f32 %v11627_v10, %v5020_v50  ;;  %v10201_v1 = vrot.slane %v10166_v18, %v11605_v48  ;;  %v11630_v46 = vld [vmem:[#allocation103_spill] sm:$0xff]  ;;  %v10216_v58 = vpop.xlane.xlu0 %4975  ;;  %v11633_v54 = vld [vmem:[#allocation68_spill] sm:$0xff] }
 0x566   : > { %v5237_v35 = vmul.f32 1.442695, %v5157_v8  ;;  %v5241_v26 = vmul.f32 1.442695, %v5159_v37  ;;  %v5245_v45 = vmul.f32 1.442695, %v5161_v5  ;;  %v5167_v34 = vsub.f32 %v11628_v36, %v10194_v16  ;;  %v10205_v8 = vpop.xlane.xlu1 %4972 }
 0x567   : > { %v5249_v59 = vmul.f32 1.442695, %v5163_v41  ;;  %v5239_v23 = vmul.f32 1.442695, %v5158_v6  ;;  %v5253_v53 = vmul.f32 1.442695, %v5165_v17  ;;  %v5162_v37 = vsub.f32 %v11629_v60, %v5024_v11 }
 0x568   : > { %6376 = vpow2.f32 %v5237_v35  ;;  %v5243_v50 = vmul.f32 1.442695, %v5160_v63  ;;  %v5048_v19 = vrot.slane %v10205_v8, %v11597_v7  ;;  %v5257_v35 = vmul.f32 1.442695, %v5167_v34  ;;  %v11632_v41 = vld [vmem:[#allocation115_spill] sm:$0xff] }
 0x569   : > { %5419 = vperm.xlu1 %6285, %v6371_v21   ;;  %6378 = vpow2.f32 %v5227_v39  ;;  %v5169_v39 = vsub.f32 %v11571_v40, %v10201_v1  ;;  %v5164_v5 = vsub.f32 %v11630_v46, %v5028_v9  ;;  %v5052_v52 = vrot.slane %v10205_v8, %v11598_v12 }
 0x56a   : > { %6380 = vpow2.f32 %v5241_v26  ;;  %v5247_v26 = vmul.f32 1.442695, %v5162_v37  ;;  %v5080_v27 = vrot.slane %v10216_v58, %v11597_v7  ;;  %v11637_v37 = vld [vmem:[#allocation98_spill] sm:$0xff] }
 0x56b   : > { %6382 = vpow2.f32 %v5231_v20  ;;  %v5174_v20 = vsub.f32 %v11631_v15, %v5048_v19  ;;  %v5251_v9 = vmul.f32 1.442695, %v5164_v5  ;;  %v5176_v6 = vsub.f32 %v11633_v54, %v5052_v52 }
 0x56c   : > { %6384 = vpow2.f32 %v5245_v45  ;;  %v5166_v45 = vsub.f32 %v11632_v41, %v10188_v61 }
 0x56d   : > { %5422 = vperm.xlu1 %6285, %v6373_v49   ;;  %6386 = vpow2.f32 %v5235_v56  ;;  %v5261_v49 = vmul.f32 1.442695, %v5169_v39  ;;  %v5275_v63 = vmul.f32 1.442695, %v5176_v6 }
 0x56e   : > { %6388 = vpow2.f32 %v5249_v59  ;;  %v11634_v59 = vld [vmem:[#allocation111_spill] sm:$0xff]  ;;  %v5255_v10 = vmul.f32 1.442695, %v5166_v45 }
 0x56f   : > { %6390 = vpow2.f32 %v5239_v23  ;;  %v5084_v23 = vrot.slane %v10216_v58, %v11598_v12  ;;  %v11638_v12 = vld [vmem:[#allocation65_spill] sm:$0xff] }
 0x570   : > { %6392 = vpow2.f32 %v5253_v53  ;;  %v11636_v53 = vld [vmem:[#allocation69_spill] sm:$0xff] }
 0x571   : > { %5425 = vperm.xlu1 %6285, %v6375_v3   ;;  %6394 = vpow2.f32 %v5243_v50  ;;  %v5271_v3 = vmul.f32 1.442695, %v5174_v20  ;;  %v5173_v7 = vsub.f32 %v11636_v53, %v5048_v19  ;;  %v5192_v50 = vsub.f32 %v11637_v37, %v5084_v23  ;;  %v11639_v19 = vld [vmem:[#allocation78_spill] sm:$0xff] }
 0x572   : > { %v6377_v14 = vpop.eup %6376  ;;  %6396 = vpow2.f32 %v5257_v35  ;;  %v5175_v35 = vsub.f32 %v11638_v12, %v5052_v52  ;;  %v5060_v52 = vrot.slane %v10205_v8, %v11610_v29  ;;  %v5096_v12 = vrot.slane %v10216_v58, %v11614_v25 }
 0x573   : > { %5446 = vperm.xlu0 %6284, %v6377_v14   ;;  %v6379_v24 = vpop.eup %6378  ;;  %6398 = vpow2.f32 %v5247_v26  ;;  %v5168_v14 = vsub.f32 %v11634_v59, %v10194_v16  ;;  %v5056_v16 = vrot.slane %v10205_v8, %v11603_v32  ;;  %v5088_v26 = vrot.slane %v10216_v58, %v11603_v32  ;;  %v11642_v32 = vld [vmem:[#allocation5_spill] sm:$0xff]  ;;  %v11643_v59 = vld [vmem:[#allocation74_spill] sm:$0xff] }
 0x574   : > { %v6381_v57 = vpop.eup %6380  ;;  %6400 = vpow2.f32 %v5261_v49  ;;  %v5273_v20 = vmul.f32 1.442695, %v5175_v35  ;;  %v11640_v49 = vld [vmem:[#allocation102_spill] sm:$0xff]  ;;  %v5191_v6 = vsub.f32 %v11642_v32, %v5084_v23  ;;  %v5064_v23 = vrot.slane %v10205_v8, %v11614_v25 }
 0x575   : > { %5431 = vperm.xlu1 %6285, %v6379_v24   ;;  %v6383_v55 = vpop.eup %6382  ;;  %6402 = vpow2.f32 %v5251_v9  ;;  %v11635_v24 = vld [vmem:[#allocation101_spill] sm:$0xff]  ;;  %v5178_v5 = vsub.f32 %v11639_v19, %v5056_v16  ;;  %v11649_v25 = vld [vmem:[#allocation106_spill] sm:$0xff] }
 0x576   : > { %v6385_v21 = vpop.eup %6384  ;;  %6404 = vpow2.f32 %v5271_v3  ;;  %v5190_v36 = vsub.f32 %v11635_v24, %v5080_v27  ;;  %v11641_v9 = vld [vmem:[#allocation109_spill] sm:$0xff] }
 0x577   : > { %5452 = vperm.xlu0 %6284, %v6381_v57   ;;  %v6387_v11 = vpop.eup %6386  ;;  %6406 = vpow2.f32 %v5255_v10  ;;  %v5259_v57 = vmul.f32 1.442695, %v5168_v14  ;;  %v5279_v45 = vmul.f32 1.442695, %v5178_v5  ;;  %v5180_v14 = vsub.f32 %v11643_v59, %v5060_v52 }
 0x578   : > { %v6389_v40 = vpop.eup %6388  ;;  %6408 = vpow2.f32 %v5275_v63  ;;  %v11644_v63 = vld [vmem:[#allocation79_spill] sm:$0xff]  ;;  %v5072_v59 = vrot.slane %v10205_v8, %v11605_v48 }
 0x579   : > { %5437 = vperm.xlu1 %6285, %v6383_v55   ;;  %v6391_v56 = vpop.eup %6390  ;;  %v5303_v55 = vmul.f32 1.442695, %v5190_v36  ;;  %6410 = vpow2.f32 %v5259_v57  ;;  %v5177_v24 = vsub.f32 %v11644_v63, %v5056_v16  ;;  %v5305_v36 = vmul.f32 1.442695, %v5191_v6  ;;  %v11647_v16 = vld [vmem:[#allocation86_spill] sm:$0xff]  ;;  %v11651_v6 = vld [vmem:[#allocation87_spill] sm:$0xff] }
 0x57a   : > { %v6393_v17 = vpop.eup %6392  ;;  %v5283_v53 = vmul.f32 1.442695, %v5180_v14 }
 0x57b   : > { %5458 = vperm.xlu0 %6284, %v6385_v21   ;;  %v6395_v61 = vpop.eup %6394  ;;  %v5269_v21 = vmul.f32 1.442695, %v5173_v7  ;;  %6412 = vpow2.f32 %v5303_v55  ;;  %v11645_v7 = vld [vmem:[#allocation105_spill] sm:$0xff]  ;;  %v5277_v37 = vmul.f32 1.442695, %v5177_v24  ;;  %v11652_v24 = vld [vmem:[#allocation95_spill] sm:$0xff] }
 0x57c   : > { %v6397_v34 = vpop.eup %6396 }
 0x57d   : > { %5443 = vperm.xlu1 %6285, %v6387_v11   ;;  %v6399_v60 = vpop.eup %6398  ;;  %v5307_v11 = vmul.f32 1.442695, %v5192_v50  ;;  %6414 = vpow2.f32 %v5269_v21 }
 0x57e   : > { %v6401_v39 = vpop.eup %6400 }
 0x57f   : > { %5464 = vperm.xlu0 %6284, %v6389_v40   ;;  %v6403_v46 = vpop.eup %6402  ;;  %v5189_v40 = vsub.f32 %v11640_v49, %v5080_v27  ;;  %6416 = vpow2.f32 %v5307_v11  ;;  %v5092_v27 = vrot.slane %v10216_v58, %v11610_v29  ;;  %v11646_v29 = vld [vmem:[#allocation110_spill] sm:$0xff] }
 0x580   : > { %v6405_v15 = vpop.eup %6404  ;;  %6418 = vpow2.f32 %v5273_v20  ;;  %v5193_v50 = vsub.f32 %v11646_v29, %v5088_v26  ;;  %v5198_v20 = vsub.f32 %v11581_v30, %v5096_v12  ;;  %v5181_v30 = vsub.f32 %v11651_v6, %v5064_v23 }
 0x581   : > { %5449 = vperm.xlu1 %6285, %v6391_v56   ;;  %v6407_v41 = vpop.eup %6406  ;;  %v5194_v56 = vsub.f32 %v11641_v9, %v5088_v26  ;;  %v5301_v3 = vmul.f32 1.442695, %v5189_v40  ;;  %6420 = vpow2.f32 %v5279_v45  ;;  %v5196_v57 = vsub.f32 %v11645_v7, %v5092_v27  ;;  %v11653_v7 = vld [vmem:[#allocation83_spill] sm:$0xff] }
 0x582   : > { %v6409_v54 = vpop.eup %6408  ;;  %v5309_v5 = vmul.f32 1.442695, %v5193_v50  ;;  %v5068_v26 = vrot.slane %v10205_v8, %v11602_v13 }
 0x583   : > { %5470 = vperm.xlu0 %6284, %v6393_v17   ;;  %v6411_v17 = vpop.eup %6410  ;;  %v5311_v10 = vmul.f32 1.442695, %v5194_v56  ;;  %6422 = vpow2.f32 %v5301_v3  ;;  %v5315_v35 = vmul.f32 1.442695, %v5196_v57  ;;  %v5100_v56 = vrot.slane %v10216_v58, %v11602_v13 }
 0x584   : > { %v5197_v13 = vsub.f32 %v11579_v22, %v5096_v12  ;;  %v5044_v22 = vrot.slane %v10166_v18, %v11608_v31 }
 0x585   : > { %5455 = vperm.xlu1 %6285, %v6395_v61   ;;  %v6413_v61 = vpop.eup %6412  ;;  %6424 = vpow2.f32 %v5311_v10 }
 0x586   : > { %6426 = vpow2.f32 %v5305_v36  ;;  %v5185_v36 = vsub.f32 %v11652_v24, %v5072_v59  ;;  %v5317_v57 = vmul.f32 1.442695, %v5197_v13  ;;  %v5171_v12 = vsub.f32 %v11585_v28, %v5044_v22  ;;  %v11655_v28 = vld [vmem:[#allocation94_spill] sm:$0xff] }
 0x587   : > { %5476 = vperm.xlu0 %6284, %v6397_v34   ;;  %v6415_v34 = vpop.eup %6414  ;;  %6428 = vpow2.f32 %v5283_v53 }
 0x588   : > { %6430 = vpow2.f32 %v5277_v37  ;;  %v5293_v37 = vmul.f32 1.442695, %v5185_v36 }
 0x589   : > { %5461 = vperm.xlu1 %6285, %v6399_v60   ;;  %v6417_v60 = vpop.eup %6416  ;;  %6432 = vpow2.f32 %v5315_v35 }
 0x58a   : > { %v6419_v55 = vpop.eup %6418  ;;  %6434 = vpow2.f32 %v5309_v5  ;;  %v5265_v5 = vmul.f32 1.442695, %v5171_v12 }
 0x58b   : > { %5482 = vperm.xlu0 %6284, %v6401_v39   ;;  %v5182_v39 = vsub.f32 %v11647_v16, %v5064_v23  ;;  %v6421_v21 = vpop.eup %6420 }
 0x58d   : > { %5467 = vperm.xlu1 %6285, %v6403_v46   ;;  %v11648_v46 = vld [vmem:[#allocation75_spill] sm:$0xff]  ;;  %v6423_v11 = vpop.eup %6422 }
 0x58e   : > { %v5179_v19 = vsub.f32 %v11648_v46, %v5060_v52  ;;  %v11650_v52 = vld [vmem:[#allocation82_spill] sm:$0xff] }
 0x58f   : > { %5497 = vperm.xlu0 %6284, %v6405_v15   ;;  %v5287_v15 = vmul.f32 1.442695, %v5182_v39  ;;  %v6425_v49 = vpop.eup %6424  ;;  %v5184_v9 = vsub.f32 %v11650_v52, %v5068_v26  ;;  %v5076_v39 = vrot.slane %v10205_v8, %v11608_v31 }
 0x590   : > { %v5281_v40 = vmul.f32 1.442695, %v5179_v19  ;;  %v6427_v45 = vpop.eup %6426 }
 0x591   : > { %5473 = vperm.xlu1 %6285, %v6407_v41   ;;  %v5195_v41 = vsub.f32 %v11649_v25, %v5092_v27  ;;  %6436 = vpow2.f32 %v5287_v15  ;;  %v6429_v32 = vpop.eup %6428  ;;  %v5291_v14 = vmul.f32 1.442695, %v5184_v9  ;;  %v5200_v27 = vsub.f32 %v11592_v47, %v5100_v56 }
 0x592   : > { %6438 = vpow2.f32 %v5281_v40  ;;  %v5183_v47 = vsub.f32 %v11653_v7, %v5068_v26  ;;  %v5186_v26 = vsub.f32 %v11655_v28, %v5072_v59 }
 0x593   : > { %5503 = vperm.xlu0 %6284, %v6409_v54   ;;  %v5319_v54 = vmul.f32 1.442695, %v5198_v20  ;;  %v5313_v3 = vmul.f32 1.442695, %v5195_v41  ;;  %v5323_v23 = vmul.f32 1.442695, %v5200_v27 }
 0x594   : > { %v5295_v40 = vmul.f32 1.442695, %v5186_v26 }
 0x595   : > { %5479 = vperm.xlu1 %6285, %v6411_v17   ;;  %v6431_v17 = vpop.eup %6430  ;;  %6440 = vpow2.f32 %v5319_v54 }
 0x596   : > { %v6433_v10 = vpop.eup %6432  ;;  %6442 = vpow2.f32 %v5313_v3 }
 0x597   : > { %5545 = vperm.xlu0 %6284, %v6413_v61   ;;  %v5285_v61 = vmul.f32 1.442695, %v5181_v30  ;;  %v6435_v63 = vpop.eup %6434  ;;  %6444 = vpow2.f32 %v5291_v14 }
 0x599   : > { %5494 = vperm.xlu1 %6285, %v6415_v34   ;;  %v5104_v34 = vrot.slane %v10216_v58, %v11605_v48  ;;  %6446 = vpow2.f32 %v5285_v61  ;;  %v5199_v48 = vsub.f32 %v11590_v2, %v5100_v56  ;;  %v11654_v2 = vld [vmem:[#allocation91_spill] sm:$0xff]  ;;  %v11656_v56 = vld [vmem:[#allocation90_spill] sm:$0xff] }
 0x59a   : > { %6448 = vpow2.f32 %v5323_v23  ;;  %v5187_v19 = vsub.f32 %v11654_v2, %v5076_v39  ;;  %v5188_v54 = vsub.f32 %v11656_v56, %v5076_v39 }
 0x59b   : > { %5551 = vperm.xlu0 %6284, %v6417_v60   ;;  %v6437_v53 = vpop.eup %6436  ;;  %v5201_v29 = vsub.f32 %v11583_v62, %v5104_v34  ;;  %6450 = vpow2.f32 %v5317_v57  ;;  %v5170_v62 = vsub.f32 %v11573_v38, %v10201_v1  ;;  %v5202_v25 = vsub.f32 %v11584_v42, %v5104_v34 }
 0x59c   : > { %v6439_v60 = vpop.eup %6438  ;;  %6452 = vpow2.f32 %v5293_v37  ;;  %v5299_v30 = vmul.f32 1.442695, %v5188_v54 }
 0x59d   : > { %5500 = vperm.xlu1 %6285, %v6419_v55   ;;  %v5289_v55 = vmul.f32 1.442695, %v5183_v47  ;;  %v5325_v35 = vmul.f32 1.442695, %v5201_v29  ;;  %v5263_v15 = vmul.f32 1.442695, %v5170_v62 }
 0x59e   : > { %v5327_v52 = vmul.f32 1.442695, %v5202_v25 }
 0x59f   : > { %5509 = vperm.xlu0 %6284, %v6421_v21   ;;  %v6441_v50 = vpop.eup %6440  ;;  %6454 = vpow2.f32 %v5289_v55  ;;  %v5321_v21 = vmul.f32 1.442695, %v5199_v48 }
 0x5a0   : > { %v6443_v16 = vpop.eup %6442  ;;  %6456 = vpow2.f32 %v5325_v35 }
 0x5a1   : > { %5542 = vperm.xlu1 %6285, %v6423_v11   ;;  %v6445_v18 = vpop.eup %6444  ;;  %v5108_v11 = vrot.slane %v10216_v58, %v11608_v31  ;;  %6458 = vpow2.f32 %v5321_v21 }
 0x5a2   : > { %6460 = vpow2.f32 %v5265_v5 }
 0x5a3   : > { %5557 = vperm.xlu0 %6284, %v6425_v49   ;;  %v6447_v46 = vpop.eup %6446  ;;  %v5297_v49 = vmul.f32 1.442695, %v5187_v19  ;;  %v5203_v38 = vsub.f32 %v11594_v0, %v5108_v11  ;;  %6462 = vpow2.f32 %v5263_v15  ;;  %v5204_v3 = vsub.f32 %v11595_v33, %v5108_v11 }
 0x5a4   : > { %v6449_v8 = vpop.eup %6448 }
 0x5a5   : > { %5548 = vperm.xlu1 %6285, %v6427_v45   ;;  %v6451_v20 = vpop.eup %6450  ;;  %6464 = vpow2.f32 %v5297_v49  ;;  %v5329_v58 = vmul.f32 1.442695, %v5203_v38  ;;  %v5172_v45 = vsub.f32 %v11586_v4, %v5044_v22  ;;  %v5331_v59 = vmul.f32 1.442695, %v5204_v3 }
 0x5a6   : > { %v6453_v1 = vpop.eup %6452  ;;  %6466 = vpow2.f32 %v5295_v40 }
 0x5a7   : > { %5515 = vperm.xlu0 %6284, %v6429_v32   ;;  %6468 = vpow2.f32 %v5329_v58  ;;  %v5267_v32 = vmul.f32 1.442695, %v5172_v45 }
 0x5a8   : > { %6470 = vpow2.f32 %v5327_v52 }
 0x5a9   : > { %5506 = vperm.xlu1 %6285, %v6431_v17   ;;  %v6455_v31 = vpop.eup %6454  ;;  %6472 = vpow2.f32 %v5267_v32 }
 0x5aa   : > { %v6457_v41 = vpop.eup %6456  ;;  %6474 = vpow2.f32 %v5299_v30 }
 0x5ab   : > { %5563 = vperm.xlu0 %6284, %v6433_v10   ;;  %v6459_v9 = vpop.eup %6458  ;;  %6476 = vpow2.f32 %v5331_v59 }
 0x5ac   : > { %v6461_v0 = vpop.eup %6460 }
 0x5ad   : > { %5554 = vperm.xlu1 %6285, %v6435_v63   ;;  %v6463_v42 = vpop.eup %6462 }
 0x5af   : > { %5521 = vperm.xlu0 %6284, %v6437_v53   ;;  %v6465_v6 = vpop.eup %6464 }
 0x5b0   : > { %v6467_v4 = vpop.eup %6466 }
 0x5b1   : > { %5512 = vperm.xlu1 %6285, %v6439_v60   ;;  %v6469_v17 = vpop.eup %6468 }
 0x5b2   : > { %v6471_v14 = vpop.eup %6470 }
 0x5b3   : > { %5569 = vperm.xlu0 %6284, %v6441_v50   ;;  %v6473_v10 = vpop.eup %6472 }
 0x5b4   : > { %v6475_v13 = vpop.eup %6474 }
 0x5b5   : > { %5560 = vperm.xlu1 %6285, %v6443_v16   ;;  %v6477_v24 = vpop.eup %6476 }
 0x5b7   : > { %5527 = vperm.xlu0 %6284, %v6445_v18  }
 0x5b9   : > { %5518 = vperm.xlu1 %6285, %v6447_v46  }
 0x5bb   : > { %5575 = vperm.xlu0 %6284, %v6449_v8  }
 0x5bd   : > { %5566 = vperm.xlu1 %6285, %v6451_v20  }
 0x5bf   : > { %5530 = vperm.xlu0 %6284, %v6453_v1  }
 0x5c1   : > { %5524 = vperm.xlu1 %6285, %v6455_v31  }
 0x5c3   : > { %5578 = vperm.xlu0 %6284, %v6457_v41  }
 0x5c5   : > { %5572 = vperm.xlu1 %6285, %v6459_v9  }
 0x5c7   : > { %5488 = vperm.xlu0 %6284, %v6461_v0  }
 0x5c9   : > { %5485 = vperm.xlu1 %6285, %v6463_v42  }
 0x5cb   : > { %5536 = vperm.xlu0 %6284, %v6465_v6  }
 0x5cd   : > { %5533 = vperm.xlu1 %6285, %v6467_v4  }
 0x5cf   : > { %5584 = vperm.xlu0 %6284, %v6469_v17  }
 0x5d0   : > { %v5399_v27 = vpop.permute.xlu1 %5398 }
 0x5d1   : > { %5581 = vperm.xlu1 %6285, %v6471_v14   ;;  %v5402_v36 = vpop.permute.xlu0 %5401  ;;  %v5592_v16 = vrot.slane %v5399_v27, %v11570_v44 }
 0x5d2   : > { %v5596_v48 = vrot.slane %v5402_v36, %v11572_v51 }
 0x5d4   : > { %v5405_v61 = vpop.permute.xlu1 %5404  ;;  %v5597_v8 = vsel %vm4647_vm8, %v5596_v48, %v5592_v16 }
 0x5d5   : > { %5491 = vperm.xlu1 %6285, %v6473_v10   ;;  %v5429_v23 = vpop.permute.xlu0 %5428  ;;  %v5601_v39 = vrot.slane %v5405_v61, %v11570_v44 }
 0x5d6   : > { %v5637_v28 = vrot.slane %v5429_v23, %v11570_v44 }
 0x5d8   : > { %v5408_v63 = vpop.permute.xlu1 %5407 }
 0x5d9   : > { %5539 = vperm.xlu1 %6285, %v6475_v13   ;;  %v5435_v7 = vpop.permute.xlu0 %5434  ;;  %v5605_v29 = vrot.slane %v5408_v63, %v11572_v51 }
 0x5da   : > { %v5646_v20 = vrot.slane %v5435_v7, %v11570_v44 }
 0x5db   : > { %v5606_v21 = vsel %vm4647_vm8, %v5605_v29, %v5601_v39 }
 0x5dc   : > { %v5411_v33 = vpop.permute.xlu1 %5410  ;;  %v5877_v49 = vsel %vm1621_vm2, %v5606_v21, %v5597_v8 }
 0x5dd   : > { %5587 = vperm.xlu1 %6285, %v6477_v24   ;;  %v5441_v60 = vpop.permute.xlu0 %5440  ;;  %v5610_v35 = vrot.slane %v5411_v33, %v11570_v44 }
 0x5de   : > { %v5655_v45 = vrot.slane %v5441_v60, %v11570_v44 }
 0x5e0   : > { %v5414_v34 = vpop.permute.xlu1 %5413 }
 0x5e1   : > { %v5614_v50 = vrot.slane %v5414_v34, %v11572_v51 }
 0x5e3   : > { %v5615_v19 = vsel %vm4647_vm8, %v5614_v50, %v5610_v35 }
 0x5e4   : > { %v5417_v53 = vpop.permute.xlu1 %5416  ;;  %v5878_v40 = vsel %vm1624_vm3, %v5615_v19, %v5877_v49 }
 0x5e5   : > { %v5619_v46 = vrot.slane %v5417_v53, %v11570_v44 }
 0x5e8   : > { %v5420_v47 = vpop.permute.xlu1 %5419 }
 0x5e9   : > { %v5623_v12 = vrot.slane %v5420_v47, %v11572_v51 }
 0x5eb   : > { %v5624_v26 = vsel %vm4647_vm8, %v5623_v12, %v5619_v46 }
 0x5ec   : > { %v5423_v57 = vpop.permute.xlu1 %5422  ;;  %v5879_v31 = vsel %vm1627_vm4, %v5624_v26, %v5878_v40 }
 0x5ed   : > { %v5628_v5 = vrot.slane %v5423_v57, %v11570_v44 }
 0x5f0   : > { %v5426_v37 = vpop.permute.xlu1 %5425 }
 0x5f1   : > { %v5632_v18 = vrot.slane %v5426_v37, %v11572_v51 }
 0x5f2   : > { %v5447_v22 = vpop.permute.xlu0 %5446 }
 0x5f3   : > { %v5633_v38 = vsel %vm4647_vm8, %v5632_v18, %v5628_v5  ;;  %v5664_v30 = vrot.slane %v5447_v22, %v11570_v44 }
 0x5f4   : > { %v5432_v55 = vpop.permute.xlu1 %5431  ;;  %v5880_v52 = vsel %vm1630_vm5, %v5633_v38, %v5879_v31 }
 0x5f5   : > { %v5641_v2 = vrot.slane %v5432_v55, %v11572_v51 }
 0x5f6   : > { %v5453_v62 = vpop.permute.xlu0 %5452 }
 0x5f7   : > { %v5642_v25 = vsel %vm4647_vm8, %v5641_v2, %v5637_v28  ;;  %v5673_v10 = vrot.slane %v5453_v62, %v11570_v44 }
 0x5f8   : > { %v5438_v11 = vpop.permute.xlu1 %5437  ;;  %v5881_v0 = vsel %vm1633_vm6, %v5642_v25, %v5880_v52 }
 0x5f9   : > { %v5650_v15 = vrot.slane %v5438_v11, %v11572_v51 }
 0x5fa   : > { %v5459_v1 = vpop.permute.xlu0 %5458 }
 0x5fb   : > { %v5651_v58 = vsel %vm4647_vm8, %v5650_v15, %v5646_v20  ;;  %v5682_v33 = vrot.slane %v5459_v1, %v11570_v44 }
 0x5fc   : > { %v5444_v41 = vpop.permute.xlu1 %5443  ;;  %v5882_v32 = vsel %vm1636_vm7, %v5651_v58, %v5881_v0 }
 0x5fd   : > { %v5659_v9 = vrot.slane %v5444_v41, %v11572_v51 }
 0x5fe   : > { %v5465_v56 = vpop.permute.xlu0 %5464 }
 0x5ff   : > { %v5660_v54 = vsel %vm4647_vm8, %v5659_v9, %v5655_v45  ;;  %v5691_v57 = vrot.slane %v5465_v56, %v11570_v44 }
 0x600   : > { %v5450_v42 = vpop.permute.xlu1 %5449  ;;  %v5883_v6 = vsel %vm1639_vm9, %v5660_v54, %v5882_v32 }
 0x601   : > { %v5668_v3 = vrot.slane %v5450_v42, %v11572_v51  ;;  %v10322_v4 = vsel %vm4573_vm10, 0.0, %v5883_v6 }
 0x602   : > { %v5471_v17 = vpop.permute.xlu0 %5470  ;;  %v5913_v59 = vsel %vm4964_vm11, %v10322_v4, 0.0 }
 0x603   : > { %v5669_v14 = vsel %vm4647_vm8, %v5668_v3, %v5664_v30  ;;  %5914 = vadd.xlane.f32.xlu0 %v5913_v59  ;;  %v5700_v55 = vrot.slane %v5471_v17, %v11570_v44 }
 0x604   : > { %v5456_v27 = vpop.permute.xlu1 %5455 }
 0x605   : > { %v5677_v61 = vrot.slane %v5456_v27, %v11572_v51 }
 0x606   : > { %v5477_v13 = vpop.permute.xlu0 %5476 }
 0x607   : > { %v5678_v63 = vsel %vm4647_vm8, %v5677_v61, %v5673_v10  ;;  %v5709_v6 = vrot.slane %v5477_v13, %v11570_v44 }
 0x608   : > { %v5884_v24 = vsel %vm1621_vm2, %v5678_v63, %v5669_v14  ;;  %v5462_v36 = vpop.permute.xlu1 %5461 }
 0x609   : > { %v5686_v34 = vrot.slane %v5462_v36, %v11572_v51 }
 0x60a   : > { %v10333_v23 = vpop.permute.xlu0 %5482 }
 0x60b   : > { %v5687_v53 = vsel %vm4647_vm8, %v5686_v34, %v5682_v33  ;;  %v5718_v36 = vrot.slane %v10333_v23, %v11570_v44 }
 0x60c   : > { %v5885_v7 = vsel %vm1624_vm3, %v5687_v53, %v5884_v24  ;;  %v5468_v47 = vpop.permute.xlu1 %5467 }
 0x60d   : > { %v5695_v60 = vrot.slane %v5468_v47, %v11572_v51 }
 0x60e   : > { %v5498_v37 = vpop.permute.xlu0 %5497 }
 0x60f   : > { %v5696_v22 = vsel %vm4647_vm8, %v5695_v60, %v5691_v57  ;;  %v5740_v59 = vrot.slane %v5498_v37, %v11572_v51 }
 0x610   : > { %v5886_v29 = vsel %vm1627_vm4, %v5696_v22, %v5885_v7  ;;  %v5474_v50 = vpop.permute.xlu1 %5473 }
 0x611   : > { %v5704_v48 = vrot.slane %v5474_v50, %v11572_v51 }
 0x612   : > { %v5504_v16 = vpop.permute.xlu0 %5503 }
 0x613   : > { %v5705_v39 = vsel %vm4647_vm8, %v5704_v48, %v5700_v55  ;;  %v5749_v30 = vrot.slane %v5504_v16, %v11572_v51 }
 0x614   : > { %v5887_v12 = vsel %vm1630_vm5, %v5705_v39, %v5886_v29  ;;  %v5480_v35 = vpop.permute.xlu1 %5479 }
 0x615   : > { %v5713_v56 = vrot.slane %v5480_v35, %v11572_v51 }
 0x616   : > { %v5546_v18 = vpop.permute.xlu0 %5545 }
 0x617   : > { %v5714_v10 = vsel %vm4647_vm8, %v5713_v56, %v5709_v6  ;;  %v5812_v33 = vrot.slane %v5546_v18, %v11572_v51 }
 0x618   : > { %v5495_v62 = vpop.permute.xlu1 %5494  ;;  %v5888_v22 = vsel %vm1633_vm6, %v5714_v10, %v5887_v12 }
 0x619   : > { %v5736_v32 = vrot.slane %v5495_v62, %v11570_v44 }
 0x61a   : > { %v5552_v21 = vpop.permute.xlu0 %5551 }
 0x61b   : > { %v5821_v14 = vrot.slane %v5552_v21, %v11572_v51  ;;  %v5741_v34 = vsel %vm4647_vm8, %v5740_v59, %v5736_v32 }
 0x61c   : > { %v5501_v46 = vpop.permute.xlu1 %5500 }
 0x61d   : > { %v5745_v54 = vrot.slane %v5501_v46, %v11570_v44 }
 0x61e   : > { %v5510_v2 = vpop.permute.xlu0 %5509 }
 0x61f   : > { %v5758_v61 = vrot.slane %v5510_v2, %v11572_v51  ;;  %v5750_v63 = vsel %vm4647_vm8, %v5749_v30, %v5745_v54 }
 0x620   : > { %v5543_v19 = vpop.permute.xlu1 %5542  ;;  %v5891_v29 = vsel %vm1621_vm2, %v5750_v63, %v5741_v34 }
 0x621   : > { %v5808_v27 = vrot.slane %v5543_v19, %v11570_v44 }
 0x622   : > { %v5558_v5 = vpop.permute.xlu0 %5557 }
 0x623   : > { %v5830_v23 = vrot.slane %v5558_v5, %v11572_v51  ;;  %v5813_v50 = vsel %vm4647_vm8, %v5812_v33, %v5808_v27 }
 0x624   : > { %v5549_v11 = vpop.permute.xlu1 %5548 }
 0x625   : > { %v5817_v42 = vrot.slane %v5549_v11, %v11570_v44 }
 0x626   : > { %v5516_v8 = vpop.permute.xlu0 %5515 }
 0x627   : > { %v5822_v53 = vsel %vm4647_vm8, %v5821_v14, %v5817_v42  ;;  %v5767_v7 = vrot.slane %v5516_v8, %v11572_v51 }
 0x628   : > { %v5507_v28 = vpop.permute.xlu1 %5506  ;;  %v5898_v55 = vsel %vm1621_vm2, %v5822_v53, %v5813_v50 }
 0x629   : > { %v5754_v3 = vrot.slane %v5507_v28, %v11570_v44 }
 0x62a   : > { %v10345_v26 = vpop.permute.xlu0 %5563 }
 0x62b   : > { %v5759_v47 = vsel %vm4647_vm8, %v5758_v61, %v5754_v3  ;;  %v5839_v35 = vrot.slane %v10345_v26, %v11572_v51 }
 0x62c   : > { %v5555_v15 = vpop.permute.xlu1 %5554  ;;  %v5892_v18 = vsel %vm1624_vm3, %v5759_v47, %v5891_v29 }
 0x62d   : > { %v5826_v57 = vrot.slane %v5555_v15, %v11570_v44 }
 0x62e   : > { %v10347_v20 = vpop.permute.xlu0 %5521 }
 0x62f   : > { %v5776_v12 = vrot.slane %v10347_v20, %v11572_v51  ;;  %v5831_v21 = vsel %vm4647_vm8, %v5830_v23, %v5826_v57 }
 0x630   : > { %v5513_v49 = vpop.permute.xlu1 %5512  ;;  %v5899_v27 = vsel %vm1624_vm3, %v5831_v21, %v5898_v55 }
 0x631   : > { %v5763_v24 = vrot.slane %v5513_v49, %v11570_v44 }
 0x632   : > { %v10349_v38 = vpop.permute.xlu0 %5569 }
 0x633   : > { %v5768_v48 = vsel %vm4647_vm8, %v5767_v7, %v5763_v24  ;;  %v5848_v46 = vrot.slane %v10349_v38, %v11572_v51 }
 0x634   : > { %v5561_v1 = vpop.permute.xlu1 %5560  ;;  %v5893_v8 = vsel %vm1627_vm4, %v5768_v48, %v5892_v18 }
 0x635   : > { %v5835_v16 = vrot.slane %v5561_v1, %v11570_v44 }
 0x636   : > { %v5528_v40 = vpop.permute.xlu0 %5527 }
 0x637   : > { %v5785_v28 = vrot.slane %v5528_v40, %v11572_v51  ;;  %v5840_v20 = vsel %vm4647_vm8, %v5839_v35, %v5835_v16 }
 0x638   : > { %v5519_v25 = vpop.permute.xlu1 %5518  ;;  %v5900_v24 = vsel %vm1627_vm4, %v5840_v20, %v5899_v27 }
 0x639   : > { %v5772_v39 = vrot.slane %v5519_v25, %v11570_v44 }
 0x63a   : > { %v10351_v31 = vpop.permute.xlu0 %5575 }
 0x63b   : > { %v5777_v49 = vsel %vm4647_vm8, %v5776_v12, %v5772_v39  ;;  %v5857_v56 = vrot.slane %v10351_v31, %v11572_v51 }
 0x63c   : > { %v10353_v58 = vpop.permute.xlu1 %5566 }
 0x63d   : > { %v5844_v1 = vrot.slane %v10353_v58, %v11570_v44  ;;  %v5894_v58 = vsel %vm1630_vm5, %v5777_v49, %v5893_v8 }
 0x63e   : > { %v5531_v45 = vpop.permute.xlu0 %5530 }
 0x63f   : > { %v5790_v38 = vrot.slane %v5531_v45, %v11570_v44  ;;  %v5849_v3 = vsel %vm4647_vm8, %v5848_v46, %v5844_v1 }
 0x640   : > { %v5525_v41 = vpop.permute.xlu1 %5524  ;;  %v5901_v33 = vsel %vm1630_vm5, %v5849_v3, %v5900_v24 }
 0x641   : > { %v5781_v62 = vrot.slane %v5525_v41, %v11570_v44 }
 0x642   : > { %v10357_v9 = vpop.permute.xlu0 %5578 }
 0x643   : > { %v5786_v25 = vsel %vm4647_vm8, %v5785_v28, %v5781_v62  ;;  %v5862_v31 = vrot.slane %v10357_v9, %v11570_v44 }
 0x644   : > { %v10355_v52 = vpop.permute.xlu1 %5572 }
 0x645   : > { %v5853_v41 = vrot.slane %v10355_v52, %v11570_v44 }
 0x646   : > { %v5489_v13 = vpop.permute.xlu0 %5488 }
 0x647   : > { %v5727_v26 = vrot.slane %v5489_v13, %v11570_v44  ;;  %v5858_v10 = vsel %vm4647_vm8, %v5857_v56, %v5853_v41 }
 0x648   : > { %v5486_v0 = vpop.permute.xlu1 %5485  ;;  %v5902_v47 = vsel %vm1633_vm6, %v5858_v10, %v5901_v33 }
 0x649   : > { %v5722_v60 = vrot.slane %v5486_v0, %v11572_v51 }
 0x64a   : > { %v5537_v2 = vpop.permute.xlu0 %5536 }
 0x64b   : > { %v5723_v19 = vsel %vm4647_vm8, %v5722_v60, %v5718_v36  ;;  %v5799_v6 = vrot.slane %v5537_v2, %v11570_v44 }
 0x64c   : > { %v5534_v17 = vpop.permute.xlu1 %5533  ;;  %v5889_v0 = vsel %vm1636_vm7, %v5723_v19, %v5888_v22 }
 0x64d   : > { %v5794_v5 = vrot.slane %v5534_v17, %v11572_v51  ;;  %v5895_v17 = vsel %vm1633_vm6, %v5786_v25, %v5894_v58 }
 0x64e   : > { %v5585_v59 = vpop.permute.xlu0 %5584 }
 0x64f   : > { %v5795_v54 = vsel %vm4647_vm8, %v5794_v5, %v5790_v38  ;;  %v5871_v34 = vrot.slane %v5585_v59, %v11570_v44 }
 0x650   : > { %v5582_v37 = vpop.permute.xlu1 %5581  ;;  %v5896_v63 = vsel %vm1636_vm7, %v5795_v54, %v5895_v17 }
 0x651   : > { %v5866_v32 = vrot.slane %v5582_v37, %v11572_v51 }
 0x653   : > { %v5867_v13 = vsel %vm4647_vm8, %v5866_v32, %v5862_v31 }
 0x654   : > { %v5492_v11 = vpop.permute.xlu1 %5491  ;;  %v5903_v37 = vsel %vm1636_vm7, %v5867_v13, %v5902_v47 }
 0x655   : > { %v5731_v15 = vrot.slane %v5492_v11, %v11572_v51 }
 0x657   : > { %v5732_v40 = vsel %vm4647_vm8, %v5731_v15, %v5727_v26 }
 0x658   : > { %v5540_v45 = vpop.permute.xlu1 %5539  ;;  %v5890_v42 = vsel %vm1639_vm9, %v5732_v40, %v5889_v0 }
 0x659   : > { %v5803_v52 = vrot.slane %v5540_v45, %v11572_v51  ;;  %v5910_v30 = vsel %vm4573_vm10, 0.0, %v5890_v42 }
 0x65a   : > { %v5916_v14 = vsel %vm4964_vm11, %v5910_v30, 0.0 }
 0x65b   : > { %v5804_v61 = vsel %vm4647_vm8, %v5803_v52, %v5799_v6  ;;  %5917 = vadd.xlane.f32.xlu1 %v5916_v14 }
 0x65c   : > { %v5588_v36 = vpop.permute.xlu1 %5587  ;;  %v5897_v9 = vsel %vm1639_vm9, %v5804_v61, %v5896_v63 }
 0x65d   : > { %v5875_v53 = vrot.slane %v5588_v36, %v11572_v51  ;;  %v5911_v7 = vsel %vm4573_vm10, 0.0, %v5897_v9 }
 0x65e   : > { %v5919_v57 = vsel %vm4964_vm11, %v5911_v7, 0.0 }
 0x65f   : > { %v5876_v60 = vsel %vm4647_vm8, %v5875_v53, %v5871_v34  ;;  %5920 = vadd.xlane.f32.xlu0 %v5919_v57 }
 0x660   : > { %v5904_v22 = vsel %vm1639_vm9, %v5876_v60, %v5903_v37 }
 0x661   : > { %v5912_v44 = vsel %vm4573_vm10, 0.0, %v5904_v22 }
 0x662   : > { %v5922_v51 = vsel %vm4964_vm11, %v5912_v44, 0.0 }
 0x663   : > { %5923 = vadd.xlane.f32.xlu0 %v5922_v51 }
 0x690   : > { %v5915_v29 = vpop.xlane.xlu0 %5914 }
 0x691   : > { %6478 = vrcp.f32 %v5915_v29 }
 0x69b   : > { %v6479_v23 = vpop.eup %6478 }
 0x69c   : > { %v5926_v50 = vmul.f32 %v6479_v23, %v10322_v4 }
 0x69e   : > { %5942 = vst.msk [vmem:[%s10125_s27] sm:$0xff] %vm4964_vm11, %v5926_v50 }
 0x6e8   : > { %v5918_v55 = vpop.xlane.xlu1 %5917 }
 0x6e9   : > { %6480 = vrcp.f32 %v5918_v55 }
 0x6ec   : > { %v5921_v48 = vpop.xlane.xlu0 %5920 }
 0x6ed   : > { %6482 = vrcp.f32 %v5921_v48 }
 0x6f0   : > { %v5924_v43 = vpop.xlane.xlu0 %5923 }
 0x6f1   : > { %6484 = vrcp.f32 %v5924_v43 }
 0x6f3   : > { %v6481_v16 = vpop.eup %6480 }
 0x6f4   : > { %v5928_v39 = vmul.f32 %v6481_v16, %v5910_v30 }
 0x6f6   : > { %5943 = vst.msk [vmem:[%s10125_s27 + $0x8] sm:$0xff] %vm4964_vm11, %v5928_v39 }
 0x6f7   : > { %v6483_v35 = vpop.eup %6482 }
 0x6f8   : > { %v5930_v18 = vmul.f32 %v6483_v35, %v5911_v7 }
 0x6fa   : > { %5944 = vst.msk [vmem:[%s10125_s27 + $0x10] sm:$0xff] %vm4964_vm11, %v5930_v18 }
 0x6fb   : > { %v6485_v4 = vpop.eup %6484 }
 0x6fc   : > { %v5932_v12 = vmul.f32 %v6485_v4, %v5912_v44 }
 0x6fe   : > { %5945 = vst.msk [vmem:[%s10125_s27 + $0x18] sm:$0xff] %vm4964_vm11, %v5932_v12 }
 0x6ff   : > { %6500 = shalt.err (!%p6497_p3)
}
 0x700   : > { %s6501_s14 = scalar_lea.hbm %s10462_s4, 512  ;;  %s6505_s21 = scalar_lea.hbm %s10513_s2, 1024 }
 0x701   : > { %p6502_p4 = scmp.ne.s32.totalorder %s10462_s4, %s6501_s14  ;;  %p6506_p9 = scmp.lt.u32.totalorder %s10462_s4, %s10513_s2 }
 0x702   : > { %p6507_p10 = scmp.lt.u32.totalorder %s6505_s21, %s6501_s14  ;;  %p6509_p12 = scmp.lt.u32.totalorder %s6501_s14, %s10462_s4 }
 0x703   : > { %p6503_p7 = pnand %p6502_p4, %p6619_p5 }
 0x704   : > { %p6508_p11 = por %p6507_p10, %p6506_p9 }
 0x705   : > { %p6504_p8 = pneg %p6503_p7 }
 0x706   : > { %p6510_p13 = por %p6509_p12, %p6508_p11 }
 0x708   : > { %p6511_p0 = pnand %p6510_p13, %p6504_p8 }
 0x70a   : > { %6514 = shalt.err (!%p6511_p0)
}
 0x70b   : > { %s6564_s24 = smov 128   ;;  %s6565_s25 = smov 8  }
 0x70c   : > { %6208 = dma.vmem_to_hbm [thread:$0]  (%p6619_p5), %s10464_s29, 512, %s10462_s4, %s10470_s5, %s6564_s24, %s6564_s24, %s6565_s25  }
 0x70d PF: > { %p6214_p1 = scmp.ge.s32.totalorder %s6549_s12, 2  ;;  %s5975_s26 = sand.u32 1, %s6537_s9  }
 0x70e   : > { %s5976_s27 = scalar_lea.sflag [#allocation3], %s5975_s26 }
 0x70f   : > { %p6211_p2 = pnand %p6214_p1, %p6623_p6 }
 0x711   : > { %6532 = dma.done.wait (!%p6211_p2), %s5976_s27, 512  }
 0x712   : > { %6534 = vsyncadd (!%p6211_p2), %s5976_s27, 4294966784  ;;  %p12_p3 = scmp.ge.s32.totalorder %s6606_s15, 4   ;;  %s11657_s9 = smov %s6541_s10 }
 0x713   : > { %s11658_s10 = smov %s6545_s11  ;;  %s11659_s11 = smov %s6617_s18 }
 0x714   : > { %s11660_s12 = smov %s6606_s15  ;;  %14 = sbr.rel (!%p12_p3) target bundleno = 3 (0x3), region = 63 }
 0x71b   :  { %5981 = vsyncpa [#allocation3], 1 }
 0x71c   :  { %5983 = vsyncpa [#allocation3 + $0x1], 1 }

</bundles_post_ra>
